<compile_context>
chip_gen: v6e
topology: v6e:2x2x1
jax: 0.10.0
libtpu: 0.0.40
codegen_flags: <defaults>
</compile_context>

<pallas_src>
import functools

import numpy as np
import jax
import jax.numpy as jnp
from jax.experimental import pallas as pl
from jax.experimental.pallas import tpu as pltpu

BN_EPS = 1e-5


# ----------------------------------------------------------------------------
# In-kernel 3x3 'same' conv on pixel rows: 9 per-tap (Cin,Cout) bf16 matmuls.
#   src_ref: (pad + H*W + pad, Cin) f32 scratch, halo rows are zero.
#   w_ref  : (9, Cin, Cout) bf16, tap t = (dy+1)*3 + (dx+1), BN scale folded in.
# dy handled by the zero halo rows; dx handled by masking the w-boundary rows.
# ----------------------------------------------------------------------------
def _conv3x3(src_ref, w_ref, pad, hw, wdim, is_w_first, is_w_last):
    acc = None
    for t in range(9):                      # unrolled; all offsets static
        dy, dx = t // 3 - 1, t % 3 - 1
        start = pad + dy * wdim + dx
        lhs = src_ref[start:start + hw, :]          # (H*W, Cin) f32
        if dx == 1:
            lhs = jnp.where(is_w_last, 0.0, lhs)    # w = W-1 has no right nbr
        elif dx == -1:
            lhs = jnp.where(is_w_first, 0.0, lhs)   # w = 0 has no left nbr
        part = jnp.dot(lhs.astype(jnp.bfloat16), w_ref[t],
                       preferred_element_type=jnp.float32)
        acc = part if acc is None else acc + part   # init from first tap
    return acc


def _bottleneck_kernel(x_ref, w1_ref, b1_ref, w2_ref, b2_ref, o_ref,
                       xp_ref, tp_ref, *, add, W, pad):
    hw = x_ref.shape[0]                      # H*W pixel rows

    # w-boundary masks (shared by both convs), built from a cheap 2D iota.
    pidx = jax.lax.broadcasted_iota(jnp.int32, (hw, 1), 0)
    wcol = pidx % W
    is_w_first = wcol == 0
    is_w_last = wcol == W - 1

    # Zero ONLY the halo rows; interior rows are fully rewritten below.
    # Done every step (cheap: 2*pad rows) so it stays correct when the
    # "parallel" grid axis is split across TensorCores (per-core scratch).
    zx = jnp.zeros((pad, xp_ref.shape[1]), jnp.float32)
    xp_ref[0:pad, :] = zx
    xp_ref[pad + hw:pad + hw + pad, :] = zx
    zt = jnp.zeros((pad, tp_ref.shape[1]), jnp.float32)
    tp_ref[0:pad, :] = zt
    tp_ref[pad + hw:pad + hw + pad, :] = zt

    # ---- cv1: conv3x3 (c1 -> c_), + bias (BN folded), SiLU in f32 ----------
    xp_ref[pad:pad + hw, :] = x_ref[...].astype(jnp.float32)
    z = _conv3x3(xp_ref, w1_ref, pad, hw, W, is_w_first, is_w_last)
    z = z + b1_ref[...]
    z = z * jax.nn.sigmoid(z)                # SiLU (sigmoid -> EUP)

    # ---- cv2: conv3x3 (c_ -> c2) --------------------------------------------
    tp_ref[pad:pad + hw, :] = z
    z = _conv3x3(tp_ref, w2_ref, pad, hw, W, is_w_first, is_w_last)
    z = z + b2_ref[...]
    z = z * jax.nn.sigmoid(z)

    if add:                                   # shortcut (c1 == c2)
        z = z + x_ref[...].astype(jnp.float32)
    o_ref[...] = z.astype(o_ref.dtype)        # dense (H*W, C2) store


# ----------------------------------------------------------------------------
# Wrapper: NHWC in, NHWC out.  Only a free (N,H,W,C)->(N,H*W,C) reshape.
# ----------------------------------------------------------------------------
def bottleneck_forward(x_nhwc, params, *, add):
    """Bottleneck forward.  x_nhwc: (N, H, W, C1) -> (N, H, W, C2) bfloat16."""
    N, H, W, C1 = x_nhwc.shape
    HW = H * W
    Cm = params["w1"].shape[2]               # c_
    C2 = params["w2"].shape[2]
    pad = (W + 1 + 7) // 8 * 8               # halo rows per side, sublane aligned
    rows = HW + 2 * pad

    x = x_nhwc.reshape(N, HW, C1).astype(jnp.bfloat16)   # no-op if already bf16

    kernel = functools.partial(_bottleneck_kernel, add=add, W=W, pad=pad)
    out = pl.pallas_call(
        kernel,
        out_shape=jax.ShapeDtypeStruct((N, HW, C2), jnp.bfloat16),
        grid_spec=pltpu.PrefetchScalarGridSpec(
            num_scalar_prefetch=0,
            grid=(N,),
            in_specs=[
                pl.BlockSpec((None, HW, C1), lambda n: (n, 0, 0)),   # x (bf16)
                pl.BlockSpec((9, C1, Cm), lambda n: (0, 0, 0)),      # cv1 taps (bf16)
                pl.BlockSpec((1, Cm), lambda n: (0, 0)),             # cv1 bias (f32)
                pl.BlockSpec((9, Cm, C2), lambda n: (0, 0, 0)),      # cv2 taps (bf16)
                pl.BlockSpec((1, C2), lambda n: (0, 0)),             # cv2 bias (f32)
            ],
            out_specs=pl.BlockSpec((None, HW, C2), lambda n: (n, 0, 0)),
            scratch_shapes=[
                pltpu.VMEM((rows, C1), jnp.float32),   # halo-padded input rows
                pltpu.VMEM((rows, Cm), jnp.float32),   # halo-padded cv1 output
            ],
        ),
        compiler_params=pltpu.CompilerParams(dimension_semantics=("parallel",)),
    )(x, params["w1"], params["b1"], params["w2"], params["b2"])

    return out.reshape(N, H, W, C2)


# ----------------------------------------------------------------------------
# Parameter setup (deterministic, synthetic) + host-side BN folding.
# ----------------------------------------------------------------------------
def _init_conv_bn(key, cin, cout):
    kw, kg, kb, km, kv = jax.random.split(key, 5)
    fan_in = cin * 9
    w = jax.random.normal(kw, (3, 3, cin, cout), jnp.float32) / np.sqrt(fan_in)
    gamma = 1.0 + 0.1 * jax.random.normal(kg, (cout,), jnp.float32)
    beta = 0.1 * jax.random.normal(kb, (cout,), jnp.float32)
    mean = 0.1 * jax.random.normal(km, (cout,), jnp.float32)
    var = 1.0 + 0.1 * jax.random.uniform(kv, (cout,), jnp.float32)
    return dict(w=w, gamma=gamma, beta=beta, mean=mean, var=var)


def _fold_conv_bn(p):
    """Fold eval-mode BN into the conv: w' = w*scale[co], b = beta - mean*scale."""
    scale = p["gamma"] / jnp.sqrt(p["var"] + BN_EPS)
    w_folded = p["w"] * scale[None, None, None, :]
    bias = p["beta"] - p["mean"] * scale
    cin, cout = p["w"].shape[2], p["w"].shape[3]
    return (w_folded.reshape(9, cin, cout).astype(jnp.bfloat16),
            bias.reshape(1, cout).astype(jnp.float32))


def build_bottleneck_params(key, c1, c2, shortcut=True, e=0.5):
    """Bottleneck(c1, c2, shortcut, g=1, k=(3,3), e) parameters, eval-mode BN."""
    c_ = int(c2 * e)
    k1, k2 = jax.random.split(key)
    cv1 = _init_conv_bn(k1, c1, c_)          # cv1: 3x3  c1 -> c_
    cv2 = _init_conv_bn(k2, c_, c2)          # cv2: 3x3  c_ -> c2
    w1, b1 = _fold_conv_bn(cv1)
    w2, b2 = _fold_conv_bn(cv2)
    params = {"w1": w1, "b1": b1, "w2": w2, "b2": b2}
    raw = {"cv1": cv1, "cv2": cv2}
    add = bool(shortcut and c1 == c2)
    return params, raw, add


# ----------------------------------------------------------------------------
# Pure-JAX f32 reference (module-faithful conv+BN+SiLU), NHWC throughout.
# ----------------------------------------------------------------------------
def _reference_bottleneck(x_nhwc_f32, raw, add):
    def conv_bn_silu(x, p):
        y = jax.lax.conv_general_dilated(
            x, p["w"], window_strides=(1, 1), padding="SAME",
            dimension_numbers=("NHWC", "HWIO", "NHWC"),
            precision=jax.lax.Precision.HIGHEST)
        scale = p["gamma"] / jnp.sqrt(p["var"] + BN_EPS)
        bias = p["beta"] - p["mean"] * scale
        y = y * scale + bias
        return y * jax.nn.sigmoid(y)

    y = conv_bn_silu(x_nhwc_f32, raw["cv1"])
    y = conv_bn_silu(y, raw["cv2"])
    return x_nhwc_f32 + y if add else y


if __name__ == "__main__":
    key = jax.random.PRNGKey(0)
    kx, kp = jax.random.split(key)

    N, H, W = 2, 16, 16
    C1 = C2 = 128                         # Bottleneck(c1=128, c2=128) -> c_ = 64
    x_f32 = jax.random.normal(kx, (N, H, W, C1), jnp.float32)
    x = x_f32.astype(jnp.bfloat16)        # NHWC bf16 activations end-to-end

    params, raw, add = build_bottleneck_params(kp, C1, C2, shortcut=True, e=0.5)

    fwd = jax.jit(functools.partial(bottleneck_forward, add=add))
    out = jax.block_until_ready(fwd(x, params))

    assert out.shape == (N, H, W, C2), out.shape
    out_f32 = np.asarray(out.astype(jnp.float32))
    assert np.all(np.isfinite(out_f32))

    # Loose tolerance: kernel uses bf16 MXU operands (x, t, folded weights),
    # reference is full f32.
    ref = _reference_bottleneck(x.astype(jnp.float32), raw, add)
    np.testing.assert_allclose(out_f32, np.asarray(ref), rtol=5e-2, atol=5e-2)
    print("KERNEL_OK")
</pallas_src>

<mosaic_0001>
module attributes {stable_mosaic.version = 11 : i64} {
  func.func @_bottleneck_kernel(%arg0: i32, %arg1: memref<1x256x128xbf16, #tpu.memory_space<vmem>>, %arg2: memref<9x128x64xbf16, #tpu.memory_space<vmem>>, %arg3: memref<1x64xf32, #tpu.memory_space<vmem>>, %arg4: memref<9x64x128xbf16, #tpu.memory_space<vmem>>, %arg5: memref<1x128xf32, #tpu.memory_space<vmem>>, %arg6: memref<1x256x128xbf16, #tpu.memory_space<vmem>>, %arg7: memref<304x128xf32, #tpu.memory_space<vmem>>, %arg8: memref<304x64xf32, #tpu.memory_space<vmem>>) attributes {dimension_semantics = [#tpu.dimension_semantics<parallel>], iteration_bounds = array<i64: 2>, scalar_prefetch = 0 : i64, scratch_operands = 2 : i64, tpu.core_type = #tpu.core_type<tc>, window_params = [{transform_indices = @transform_0, window_bounds = array<i64: 1, 256, 128>}, {pipeline_mode = #tpu.pipeline_mode<synchronous>, transform_indices = @transform_1, window_bounds = array<i64: 9, 128, 64>}, {pipeline_mode = #tpu.pipeline_mode<synchronous>, transform_indices = @transform_2, window_bounds = array<i64: 1, 64>}, {pipeline_mode = #tpu.pipeline_mode<synchronous>, transform_indices = @transform_3, window_bounds = array<i64: 9, 64, 128>}, {pipeline_mode = #tpu.pipeline_mode<synchronous>, transform_indices = @transform_4, window_bounds = array<i64: 1, 128>}, {transform_indices = @transform_5, window_bounds = array<i64: 1, 256, 128>}]} {
    %0 = tpu.iota {dimensions = array<i32: 0>} : vector<256x1xi32>
    %c16_i32 = arith.constant 16 : i32
    %c0_i32 = arith.constant 0 : i32
    %1 = arith.cmpi eq, %c16_i32, %c0_i32 : i32
    %c1_i32 = arith.constant 1 : i32
    %2 = arith.select %1, %c1_i32, %c16_i32 : i32
    %3 = vector.broadcast %2 : i32 to vector<256x1xi32>
    %4 = arith.remsi %0, %3 : vector<256x1xi32>
    %c0_i32_0 = arith.constant 0 : i32
    %5 = vector.broadcast %c0_i32_0 : i32 to vector<256x1xi32>
    %6 = arith.cmpi ne, %4, %5 : vector<256x1xi32>
    %c0_i32_1 = arith.constant 0 : i32
    %7 = vector.broadcast %c0_i32_1 : i32 to vector<256x1xi32>
    %8 = arith.cmpi slt, %4, %7 : vector<256x1xi32>
    %c0_i32_2 = arith.constant 0 : i32
    %9 = arith.cmpi slt, %2, %c0_i32_2 : i32
    %10 = vector.broadcast %9 : i1 to vector<256x1xi1>
    %11 = vector.broadcast %10 : vector<256x1xi1> to vector<256x1xi1>
    %12 = arith.xori %8, %11 : vector<256x1xi1>
    %13 = arith.andi %12, %6 : vector<256x1xi1>
    %14 = vector.broadcast %2 : i32 to vector<256x1xi32>
    %15 = arith.addi %4, %14 : vector<256x1xi32>
    %16 = arith.select %13, %15, %4 : vector<256x1xi1>, vector<256x1xi32>
    %c0_i32_3 = arith.constant 0 : i32
    %17 = vector.broadcast %c0_i32_3 : i32 to vector<256x1xi32>
    %18 = arith.cmpi eq, %16, %17 : vector<256x1xi32>
    %c15_i32 = arith.constant 15 : i32
    %19 = vector.broadcast %c15_i32 : i32 to vector<256x1xi32>
    %20 = arith.cmpi eq, %16, %19 : vector<256x1xi32>
    %cst = arith.constant 0.000000e+00 : f32
    %21 = vector.broadcast %cst : f32 to vector<24x128xf32>
    %c0 = arith.constant 0 : index
    %c0_4 = arith.constant 0 : index
    %22 = vector.load %arg7[%c0, %c0_4] : memref<304x128xf32, #tpu.memory_space<vmem>>, vector<24x128xf32>
    tpu.vector_store %arg7[%c0, %c0_4], %21 {strides = array<i32>} : memref<304x128xf32, #tpu.memory_space<vmem>>, vector<24x128xf32>,
    %c280 = arith.constant 280 : index
    %c0_5 = arith.constant 0 : index
    %23 = vector.load %arg7[%c280, %c0_5] : memref<304x128xf32, #tpu.memory_space<vmem>>, vector<24x128xf32>
    tpu.vector_store %arg7[%c280, %c0_5], %21 {strides = array<i32>} : memref<304x128xf32, #tpu.memory_space<vmem>>, vector<24x128xf32>,
    %cst_6 = arith.constant 0.000000e+00 : f32
    %24 = vector.broadcast %cst_6 : f32 to vector<24x64xf32>
    %c0_7 = arith.constant 0 : index
    %c0_8 = arith.constant 0 : index
    %25 = vector.load %arg8[%c0_7, %c0_8] : memref<304x64xf32, #tpu.memory_space<vmem>>, vector<24x64xf32>
    tpu.vector_store %arg8[%c0_7, %c0_8], %24 {strides = array<i32>} : memref<304x64xf32, #tpu.memory_space<vmem>>, vector<24x64xf32>,
    %c280_9 = arith.constant 280 : index
    %c0_10 = arith.constant 0 : index
    %26 = vector.load %arg8[%c280_9, %c0_10] : memref<304x64xf32, #tpu.memory_space<vmem>>, vector<24x64xf32>
    tpu.vector_store %arg8[%c280_9, %c0_10], %24 {strides = array<i32>} : memref<304x64xf32, #tpu.memory_space<vmem>>, vector<24x64xf32>,
    %c0_11 = arith.constant 0 : index
    %c0_12 = arith.constant 0 : index
    %c0_13 = arith.constant 0 : index
    %27 = vector.load %arg1[%c0_11, %c0_12, %c0_13] : memref<1x256x128xbf16, #tpu.memory_space<vmem>>, vector<1x256x128xbf16>
    %28 = vector.shape_cast %27 : vector<1x256x128xbf16> to vector<256x128xbf16>
    %29 = arith.extf %28 : vector<256x128xbf16> to vector<256x128xf32>
    %c24 = arith.constant 24 : index
    %c0_14 = arith.constant 0 : index
    %30 = vector.load %arg7[%c24, %c0_14] : memref<304x128xf32, #tpu.memory_space<vmem>>, vector<256x128xf32>
    tpu.vector_store %arg7[%c24, %c0_14], %29 {strides = array<i32>} : memref<304x128xf32, #tpu.memory_space<vmem>>, vector<256x128xf32>,
    %c7 = arith.constant 7 : index
    %c0_15 = arith.constant 0 : index
    %31 = vector.load %arg7[%c7, %c0_15] : memref<304x128xf32, #tpu.memory_space<vmem>>, vector<256x128xf32>
    %cst_16 = arith.constant 0.000000e+00 : f32
    %32 = vector.shape_cast %18 : vector<256x1xi1> to vector<256x1xi1>
    %33 = vector.broadcast %32 : vector<256x1xi1> to vector<256x128xi1>
    %34 = vector.broadcast %cst_16 : f32 to vector<256x128xf32>
    %35 = arith.select %33, %34, %31 : vector<256x128xi1>, vector<256x128xf32>
    %36 = arith.truncf %35 : vector<256x128xf32> to vector<256x128xbf16>
    %c0_17 = arith.constant 0 : index
    %c0_18 = arith.constant 0 : index
    %c0_19 = arith.constant 0 : index
    %37 = vector.load %arg2[%c0_17, %c0_18, %c0_19] : memref<9x128x64xbf16, #tpu.memory_space<vmem>>, vector<1x128x64xbf16>
    %38 = vector.shape_cast %37 : vector<1x128x64xbf16> to vector<128x64xbf16>
    %cst_20 = arith.constant dense<0.000000e+00> : vector<256x64xf32>
    %39 = tpu.matmul %36, %38, %cst_20 {dimension_numbers = #tpu.dot_dimension_numbers<[1], [0], [0], [1], [0, 0, 1, 1], [], []>} : vector<256x128xbf16>, vector<128x64xbf16>, vector<256x64xf32> -> vector<256x64xf32>
    %c8 = arith.constant 8 : index
    %c0_21 = arith.constant 0 : index
    %40 = vector.load %arg7[%c8, %c0_21] : memref<304x128xf32, #tpu.memory_space<vmem>>, vector<256x128xf32>
    %41 = arith.truncf %40 : vector<256x128xf32> to vector<256x128xbf16>
    %c1 = arith.constant 1 : index
    %c0_22 = arith.constant 0 : index
    %c0_23 = arith.constant 0 : index
    %42 = vector.load %arg2[%c1, %c0_22, %c0_23] : memref<9x128x64xbf16, #tpu.memory_space<vmem>>, vector<1x128x64xbf16>
    %43 = vector.shape_cast %42 : vector<1x128x64xbf16> to vector<128x64xbf16>
    %cst_24 = arith.constant dense<0.000000e+00> : vector<256x64xf32>
    %44 = tpu.matmul %41, %43, %cst_24 {dimension_numbers = #tpu.dot_dimension_numbers<[1], [0], [0], [1], [0, 0, 1, 1], [], []>} : vector<256x128xbf16>, vector<128x64xbf16>, vector<256x64xf32> -> vector<256x64xf32>
    %45 = arith.addf %39, %44 : vector<256x64xf32>
    %c9 = arith.constant 9 : index
    %c0_25 = arith.constant 0 : index
    %46 = vector.load %arg7[%c9, %c0_25] : memref<304x128xf32, #tpu.memory_space<vmem>>, vector<256x128xf32>
    %cst_26 = arith.constant 0.000000e+00 : f32
    %47 = vector.shape_cast %20 : vector<256x1xi1> to vector<256x1xi1>
    %48 = vector.broadcast %47 : vector<256x1xi1> to vector<256x128xi1>
    %49 = vector.broadcast %cst_26 : f32 to vector<256x128xf32>
    %50 = arith.select %48, %49, %46 : vector<256x128xi1>, vector<256x128xf32>
    %51 = arith.truncf %50 : vector<256x128xf32> to vector<256x128xbf16>
    %c2 = arith.constant 2 : index
    %c0_27 = arith.constant 0 : index
    %c0_28 = arith.constant 0 : index
    %52 = vector.load %arg2[%c2, %c0_27, %c0_28] : memref<9x128x64xbf16, #tpu.memory_space<vmem>>, vector<1x128x64xbf16>
    %53 = vector.shape_cast %52 : vector<1x128x64xbf16> to vector<128x64xbf16>
    %cst_29 = arith.constant dense<0.000000e+00> : vector<256x64xf32>
    %54 = tpu.matmul %51, %53, %cst_29 {dimension_numbers = #tpu.dot_dimension_numbers<[1], [0], [0], [1], [0, 0, 1, 1], [], []>} : vector<256x128xbf16>, vector<128x64xbf16>, vector<256x64xf32> -> vector<256x64xf32>
    %55 = arith.addf %45, %54 : vector<256x64xf32>
    %c23 = arith.constant 23 : index
    %c0_30 = arith.constant 0 : index
    %56 = vector.load %arg7[%c23, %c0_30] : memref<304x128xf32, #tpu.memory_space<vmem>>, vector<256x128xf32>
    %cst_31 = arith.constant 0.000000e+00 : f32
    %57 = vector.shape_cast %18 : vector<256x1xi1> to vector<256x1xi1>
    %58 = vector.broadcast %57 : vector<256x1xi1> to vector<256x128xi1>
    %59 = vector.broadcast %cst_31 : f32 to vector<256x128xf32>
    %60 = arith.select %58, %59, %56 : vector<256x128xi1>, vector<256x128xf32>
    %61 = arith.truncf %60 : vector<256x128xf32> to vector<256x128xbf16>
    %c3 = arith.constant 3 : index
    %c0_32 = arith.constant 0 : index
    %c0_33 = arith.constant 0 : index
    %62 = vector.load %arg2[%c3, %c0_32, %c0_33] : memref<9x128x64xbf16, #tpu.memory_space<vmem>>, vector<1x128x64xbf16>
    %63 = vector.shape_cast %62 : vector<1x128x64xbf16> to vector<128x64xbf16>
    %cst_34 = arith.constant dense<0.000000e+00> : vector<256x64xf32>
    %64 = tpu.matmul %61, %63, %cst_34 {dimension_numbers = #tpu.dot_dimension_numbers<[1], [0], [0], [1], [0, 0, 1, 1], [], []>} : vector<256x128xbf16>, vector<128x64xbf16>, vector<256x64xf32> -> vector<256x64xf32>
    %65 = arith.addf %55, %64 : vector<256x64xf32>
    %c24_35 = arith.constant 24 : index
    %c0_36 = arith.constant 0 : index
    %66 = vector.load %arg7[%c24_35, %c0_36] : memref<304x128xf32, #tpu.memory_space<vmem>>, vector<256x128xf32>
    %67 = arith.truncf %66 : vector<256x128xf32> to vector<256x128xbf16>
    %c4 = arith.constant 4 : index
    %c0_37 = arith.constant 0 : index
    %c0_38 = arith.constant 0 : index
    %68 = vector.load %arg2[%c4, %c0_37, %c0_38] : memref<9x128x64xbf16, #tpu.memory_space<vmem>>, vector<1x128x64xbf16>
    %69 = vector.shape_cast %68 : vector<1x128x64xbf16> to vector<128x64xbf16>
    %cst_39 = arith.constant dense<0.000000e+00> : vector<256x64xf32>
    %70 = tpu.matmul %67, %69, %cst_39 {dimension_numbers = #tpu.dot_dimension_numbers<[1], [0], [0], [1], [0, 0, 1, 1], [], []>} : vector<256x128xbf16>, vector<128x64xbf16>, vector<256x64xf32> -> vector<256x64xf32>
    %71 = arith.addf %65, %70 : vector<256x64xf32>
    %c25 = arith.constant 25 : index
    %c0_40 = arith.constant 0 : index
    %72 = vector.load %arg7[%c25, %c0_40] : memref<304x128xf32, #tpu.memory_space<vmem>>, vector<256x128xf32>
    %cst_41 = arith.constant 0.000000e+00 : f32
    %73 = vector.shape_cast %20 : vector<256x1xi1> to vector<256x1xi1>
    %74 = vector.broadcast %73 : vector<256x1xi1> to vector<256x128xi1>
    %75 = vector.broadcast %cst_41 : f32 to vector<256x128xf32>
    %76 = arith.select %74, %75, %72 : vector<256x128xi1>, vector<256x128xf32>
    %77 = arith.truncf %76 : vector<256x128xf32> to vector<256x128xbf16>
    %c5 = arith.constant 5 : index
    %c0_42 = arith.constant 0 : index
    %c0_43 = arith.constant 0 : index
    %78 = vector.load %arg2[%c5, %c0_42, %c0_43] : memref<9x128x64xbf16, #tpu.memory_space<vmem>>, vector<1x128x64xbf16>
    %79 = vector.shape_cast %78 : vector<1x128x64xbf16> to vector<128x64xbf16>
    %cst_44 = arith.constant dense<0.000000e+00> : vector<256x64xf32>
    %80 = tpu.matmul %77, %79, %cst_44 {dimension_numbers = #tpu.dot_dimension_numbers<[1], [0], [0], [1], [0, 0, 1, 1], [], []>} : vector<256x128xbf16>, vector<128x64xbf16>, vector<256x64xf32> -> vector<256x64xf32>
    %81 = arith.addf %71, %80 : vector<256x64xf32>
    %c39 = arith.constant 39 : index
    %c0_45 = arith.constant 0 : index
    %82 = vector.load %arg7[%c39, %c0_45] : memref<304x128xf32, #tpu.memory_space<vmem>>, vector<256x128xf32>
    %cst_46 = arith.constant 0.000000e+00 : f32
    %83 = vector.shape_cast %18 : vector<256x1xi1> to vector<256x1xi1>
    %84 = vector.broadcast %83 : vector<256x1xi1> to vector<256x128xi1>
    %85 = vector.broadcast %cst_46 : f32 to vector<256x128xf32>
    %86 = arith.select %84, %85, %82 : vector<256x128xi1>, vector<256x128xf32>
    %87 = arith.truncf %86 : vector<256x128xf32> to vector<256x128xbf16>
    %c6 = arith.constant 6 : index
    %c0_47 = arith.constant 0 : index
    %c0_48 = arith.constant 0 : index
    %88 = vector.load %arg2[%c6, %c0_47, %c0_48] : memref<9x128x64xbf16, #tpu.memory_space<vmem>>, vector<1x128x64xbf16>
    %89 = vector.shape_cast %88 : vector<1x128x64xbf16> to vector<128x64xbf16>
    %cst_49 = arith.constant dense<0.000000e+00> : vector<256x64xf32>
    %90 = tpu.matmul %87, %89, %cst_49 {dimension_numbers = #tpu.dot_dimension_numbers<[1], [0], [0], [1], [0, 0, 1, 1], [], []>} : vector<256x128xbf16>, vector<128x64xbf16>, vector<256x64xf32> -> vector<256x64xf32>
    %91 = arith.addf %81, %90 : vector<256x64xf32>
    %c40 = arith.constant 40 : index
    %c0_50 = arith.constant 0 : index
    %92 = vector.load %arg7[%c40, %c0_50] : memref<304x128xf32, #tpu.memory_space<vmem>>, vector<256x128xf32>
    %93 = arith.truncf %92 : vector<256x128xf32> to vector<256x128xbf16>
    %c7_51 = arith.constant 7 : index
    %c0_52 = arith.constant 0 : index
    %c0_53 = arith.constant 0 : index
    %94 = vector.load %arg2[%c7_51, %c0_52, %c0_53] : memref<9x128x64xbf16, #tpu.memory_space<vmem>>, vector<1x128x64xbf16>
    %95 = vector.shape_cast %94 : vector<1x128x64xbf16> to vector<128x64xbf16>
    %cst_54 = arith.constant dense<0.000000e+00> : vector<256x64xf32>
    %96 = tpu.matmul %93, %95, %cst_54 {dimension_numbers = #tpu.dot_dimension_numbers<[1], [0], [0], [1], [0, 0, 1, 1], [], []>} : vector<256x128xbf16>, vector<128x64xbf16>, vector<256x64xf32> -> vector<256x64xf32>
    %97 = arith.addf %91, %96 : vector<256x64xf32>
    %c41 = arith.constant 41 : index
    %c0_55 = arith.constant 0 : index
    %98 = vector.load %arg7[%c41, %c0_55] : memref<304x128xf32, #tpu.memory_space<vmem>>, vector<256x128xf32>
    %cst_56 = arith.constant 0.000000e+00 : f32
    %99 = vector.shape_cast %20 : vector<256x1xi1> to vector<256x1xi1>
    %100 = vector.broadcast %99 : vector<256x1xi1> to vector<256x128xi1>
    %101 = vector.broadcast %cst_56 : f32 to vector<256x128xf32>
    %102 = arith.select %100, %101, %98 : vector<256x128xi1>, vector<256x128xf32>
    %103 = arith.truncf %102 : vector<256x128xf32> to vector<256x128xbf16>
    %c8_57 = arith.constant 8 : index
    %c0_58 = arith.constant 0 : index
    %c0_59 = arith.constant 0 : index
    %104 = vector.load %arg2[%c8_57, %c0_58, %c0_59] : memref<9x128x64xbf16, #tpu.memory_space<vmem>>, vector<1x128x64xbf16>
    %105 = vector.shape_cast %104 : vector<1x128x64xbf16> to vector<128x64xbf16>
    %cst_60 = arith.constant dense<0.000000e+00> : vector<256x64xf32>
    %106 = tpu.matmul %103, %105, %cst_60 {dimension_numbers = #tpu.dot_dimension_numbers<[1], [0], [0], [1], [0, 0, 1, 1], [], []>} : vector<256x128xbf16>, vector<128x64xbf16>, vector<256x64xf32> -> vector<256x64xf32>
    %107 = arith.addf %97, %106 : vector<256x64xf32>
    %c0_61 = arith.constant 0 : index
    %c0_62 = arith.constant 0 : index
    %108 = vector.load %arg3[%c0_61, %c0_62] : memref<1x64xf32, #tpu.memory_space<vmem>>, vector<1x64xf32>
    %109 = vector.broadcast %108 : vector<1x64xf32> to vector<256x64xf32>
    %110 = arith.addf %107, %109 : vector<256x64xf32>
    %111 = arith.negf %110 : vector<256x64xf32>
    %112 = math.exp %111 : vector<256x64xf32>
    %cst_63 = arith.constant 1.000000e+00 : f32
    %113 = vector.broadcast %cst_63 : f32 to vector<256x64xf32>
    %114 = arith.addf %113, %112 : vector<256x64xf32>
    %115 = arith.divf %113, %114 : vector<256x64xf32>
    %116 = arith.mulf %110, %115 : vector<256x64xf32>
    %c24_64 = arith.constant 24 : index
    %c0_65 = arith.constant 0 : index
    %117 = vector.load %arg8[%c24_64, %c0_65] : memref<304x64xf32, #tpu.memory_space<vmem>>, vector<256x64xf32>
    tpu.vector_store %arg8[%c24_64, %c0_65], %116 {strides = array<i32>} : memref<304x64xf32, #tpu.memory_space<vmem>>, vector<256x64xf32>,
    %c7_66 = arith.constant 7 : index
    %c0_67 = arith.constant 0 : index
    %118 = vector.load %arg8[%c7_66, %c0_67] : memref<304x64xf32, #tpu.memory_space<vmem>>, vector<256x64xf32>
    %cst_68 = arith.constant 0.000000e+00 : f32
    %119 = vector.shape_cast %18 : vector<256x1xi1> to vector<256x1xi1>
    %120 = vector.broadcast %119 : vector<256x1xi1> to vector<256x64xi1>
    %121 = vector.broadcast %cst_68 : f32 to vector<256x64xf32>
    %122 = arith.select %120, %121, %118 : vector<256x64xi1>, vector<256x64xf32>
    %123 = arith.truncf %122 : vector<256x64xf32> to vector<256x64xbf16>
    %c0_69 = arith.constant 0 : index
    %c0_70 = arith.constant 0 : index
    %c0_71 = arith.constant 0 : index
    %124 = vector.load %arg4[%c0_69, %c0_70, %c0_71] : memref<9x64x128xbf16, #tpu.memory_space<vmem>>, vector<1x64x128xbf16>
    %125 = vector.shape_cast %124 : vector<1x64x128xbf16> to vector<64x128xbf16>
    %cst_72 = arith.constant dense<0.000000e+00> : vector<256x128xf32>
    %126 = tpu.matmul %123, %125, %cst_72 {dimension_numbers = #tpu.dot_dimension_numbers<[1], [0], [0], [1], [0, 0, 1, 1], [], []>} : vector<256x64xbf16>, vector<64x128xbf16>, vector<256x128xf32> -> vector<256x128xf32>
    %c8_73 = arith.constant 8 : index
    %c0_74 = arith.constant 0 : index
    %127 = vector.load %arg8[%c8_73, %c0_74] : memref<304x64xf32, #tpu.memory_space<vmem>>, vector<256x64xf32>
    %128 = arith.truncf %127 : vector<256x64xf32> to vector<256x64xbf16>
    %c1_75 = arith.constant 1 : index
    %c0_76 = arith.constant 0 : index
    %c0_77 = arith.constant 0 : index
    %129 = vector.load %arg4[%c1_75, %c0_76, %c0_77] : memref<9x64x128xbf16, #tpu.memory_space<vmem>>, vector<1x64x128xbf16>
    %130 = vector.shape_cast %129 : vector<1x64x128xbf16> to vector<64x128xbf16>
    %cst_78 = arith.constant dense<0.000000e+00> : vector<256x128xf32>
    %131 = tpu.matmul %128, %130, %cst_78 {dimension_numbers = #tpu.dot_dimension_numbers<[1], [0], [0], [1], [0, 0, 1, 1], [], []>} : vector<256x64xbf16>, vector<64x128xbf16>, vector<256x128xf32> -> vector<256x128xf32>
    %132 = arith.addf %126, %131 : vector<256x128xf32>
    %c9_79 = arith.constant 9 : index
    %c0_80 = arith.constant 0 : index
    %133 = vector.load %arg8[%c9_79, %c0_80] : memref<304x64xf32, #tpu.memory_space<vmem>>, vector<256x64xf32>
    %cst_81 = arith.constant 0.000000e+00 : f32
    %134 = vector.shape_cast %20 : vector<256x1xi1> to vector<256x1xi1>
    %135 = vector.broadcast %134 : vector<256x1xi1> to vector<256x64xi1>
    %136 = vector.broadcast %cst_81 : f32 to vector<256x64xf32>
    %137 = arith.select %135, %136, %133 : vector<256x64xi1>, vector<256x64xf32>
    %138 = arith.truncf %137 : vector<256x64xf32> to vector<256x64xbf16>
    %c2_82 = arith.constant 2 : index
    %c0_83 = arith.constant 0 : index
    %c0_84 = arith.constant 0 : index
    %139 = vector.load %arg4[%c2_82, %c0_83, %c0_84] : memref<9x64x128xbf16, #tpu.memory_space<vmem>>, vector<1x64x128xbf16>
    %140 = vector.shape_cast %139 : vector<1x64x128xbf16> to vector<64x128xbf16>
    %cst_85 = arith.constant dense<0.000000e+00> : vector<256x128xf32>
    %141 = tpu.matmul %138, %140, %cst_85 {dimension_numbers = #tpu.dot_dimension_numbers<[1], [0], [0], [1], [0, 0, 1, 1], [], []>} : vector<256x64xbf16>, vector<64x128xbf16>, vector<256x128xf32> -> vector<256x128xf32>
    %142 = arith.addf %132, %141 : vector<256x128xf32>
    %c23_86 = arith.constant 23 : index
    %c0_87 = arith.constant 0 : index
    %143 = vector.load %arg8[%c23_86, %c0_87] : memref<304x64xf32, #tpu.memory_space<vmem>>, vector<256x64xf32>
    %cst_88 = arith.constant 0.000000e+00 : f32
    %144 = vector.shape_cast %18 : vector<256x1xi1> to vector<256x1xi1>
    %145 = vector.broadcast %144 : vector<256x1xi1> to vector<256x64xi1>
    %146 = vector.broadcast %cst_88 : f32 to vector<256x64xf32>
    %147 = arith.select %145, %146, %143 : vector<256x64xi1>, vector<256x64xf32>
    %148 = arith.truncf %147 : vector<256x64xf32> to vector<256x64xbf16>
    %c3_89 = arith.constant 3 : index
    %c0_90 = arith.constant 0 : index
    %c0_91 = arith.constant 0 : index
    %149 = vector.load %arg4[%c3_89, %c0_90, %c0_91] : memref<9x64x128xbf16, #tpu.memory_space<vmem>>, vector<1x64x128xbf16>
    %150 = vector.shape_cast %149 : vector<1x64x128xbf16> to vector<64x128xbf16>
    %cst_92 = arith.constant dense<0.000000e+00> : vector<256x128xf32>
    %151 = tpu.matmul %148, %150, %cst_92 {dimension_numbers = #tpu.dot_dimension_numbers<[1], [0], [0], [1], [0, 0, 1, 1], [], []>} : vector<256x64xbf16>, vector<64x128xbf16>, vector<256x128xf32> -> vector<256x128xf32>
    %152 = arith.addf %142, %151 : vector<256x128xf32>
    %c24_93 = arith.constant 24 : index
    %c0_94 = arith.constant 0 : index
    %153 = vector.load %arg8[%c24_93, %c0_94] : memref<304x64xf32, #tpu.memory_space<vmem>>, vector<256x64xf32>
    %154 = arith.truncf %153 : vector<256x64xf32> to vector<256x64xbf16>
    %c4_95 = arith.constant 4 : index
    %c0_96 = arith.constant 0 : index
    %c0_97 = arith.constant 0 : index
    %155 = vector.load %arg4[%c4_95, %c0_96, %c0_97] : memref<9x64x128xbf16, #tpu.memory_space<vmem>>, vector<1x64x128xbf16>
    %156 = vector.shape_cast %155 : vector<1x64x128xbf16> to vector<64x128xbf16>
    %cst_98 = arith.constant dense<0.000000e+00> : vector<256x128xf32>
    %157 = tpu.matmul %154, %156, %cst_98 {dimension_numbers = #tpu.dot_dimension_numbers<[1], [0], [0], [1], [0, 0, 1, 1], [], []>} : vector<256x64xbf16>, vector<64x128xbf16>, vector<256x128xf32> -> vector<256x128xf32>
    %158 = arith.addf %152, %157 : vector<256x128xf32>
    %c25_99 = arith.constant 25 : index
    %c0_100 = arith.constant 0 : index
    %159 = vector.load %arg8[%c25_99, %c0_100] : memref<304x64xf32, #tpu.memory_space<vmem>>, vector<256x64xf32>
    %cst_101 = arith.constant 0.000000e+00 : f32
    %160 = vector.shape_cast %20 : vector<256x1xi1> to vector<256x1xi1>
    %161 = vector.broadcast %160 : vector<256x1xi1> to vector<256x64xi1>
    %162 = vector.broadcast %cst_101 : f32 to vector<256x64xf32>
    %163 = arith.select %161, %162, %159 : vector<256x64xi1>, vector<256x64xf32>
    %164 = arith.truncf %163 : vector<256x64xf32> to vector<256x64xbf16>
    %c5_102 = arith.constant 5 : index
    %c0_103 = arith.constant 0 : index
    %c0_104 = arith.constant 0 : index
    %165 = vector.load %arg4[%c5_102, %c0_103, %c0_104] : memref<9x64x128xbf16, #tpu.memory_space<vmem>>, vector<1x64x128xbf16>
    %166 = vector.shape_cast %165 : vector<1x64x128xbf16> to vector<64x128xbf16>
    %cst_105 = arith.constant dense<0.000000e+00> : vector<256x128xf32>
    %167 = tpu.matmul %164, %166, %cst_105 {dimension_numbers = #tpu.dot_dimension_numbers<[1], [0], [0], [1], [0, 0, 1, 1], [], []>} : vector<256x64xbf16>, vector<64x128xbf16>, vector<256x128xf32> -> vector<256x128xf32>
    %168 = arith.addf %158, %167 : vector<256x128xf32>
    %c39_106 = arith.constant 39 : index
    %c0_107 = arith.constant 0 : index
    %169 = vector.load %arg8[%c39_106, %c0_107] : memref<304x64xf32, #tpu.memory_space<vmem>>, vector<256x64xf32>
    %cst_108 = arith.constant 0.000000e+00 : f32
    %170 = vector.shape_cast %18 : vector<256x1xi1> to vector<256x1xi1>
    %171 = vector.broadcast %170 : vector<256x1xi1> to vector<256x64xi1>
    %172 = vector.broadcast %cst_108 : f32 to vector<256x64xf32>
    %173 = arith.select %171, %172, %169 : vector<256x64xi1>, vector<256x64xf32>
    %174 = arith.truncf %173 : vector<256x64xf32> to vector<256x64xbf16>
    %c6_109 = arith.constant 6 : index
    %c0_110 = arith.constant 0 : index
    %c0_111 = arith.constant 0 : index
    %175 = vector.load %arg4[%c6_109, %c0_110, %c0_111] : memref<9x64x128xbf16, #tpu.memory_space<vmem>>, vector<1x64x128xbf16>
    %176 = vector.shape_cast %175 : vector<1x64x128xbf16> to vector<64x128xbf16>
    %cst_112 = arith.constant dense<0.000000e+00> : vector<256x128xf32>
    %177 = tpu.matmul %174, %176, %cst_112 {dimension_numbers = #tpu.dot_dimension_numbers<[1], [0], [0], [1], [0, 0, 1, 1], [], []>} : vector<256x64xbf16>, vector<64x128xbf16>, vector<256x128xf32> -> vector<256x128xf32>
    %178 = arith.addf %168, %177 : vector<256x128xf32>
    %c40_113 = arith.constant 40 : index
    %c0_114 = arith.constant 0 : index
    %179 = vector.load %arg8[%c40_113, %c0_114] : memref<304x64xf32, #tpu.memory_space<vmem>>, vector<256x64xf32>
    %180 = arith.truncf %179 : vector<256x64xf32> to vector<256x64xbf16>
    %c7_115 = arith.constant 7 : index
    %c0_116 = arith.constant 0 : index
    %c0_117 = arith.constant 0 : index
    %181 = vector.load %arg4[%c7_115, %c0_116, %c0_117] : memref<9x64x128xbf16, #tpu.memory_space<vmem>>, vector<1x64x128xbf16>
    %182 = vector.shape_cast %181 : vector<1x64x128xbf16> to vector<64x128xbf16>
    %cst_118 = arith.constant dense<0.000000e+00> : vector<256x128xf32>
    %183 = tpu.matmul %180, %182, %cst_118 {dimension_numbers = #tpu.dot_dimension_numbers<[1], [0], [0], [1], [0, 0, 1, 1], [], []>} : vector<256x64xbf16>, vector<64x128xbf16>, vector<256x128xf32> -> vector<256x128xf32>
    %184 = arith.addf %178, %183 : vector<256x128xf32>
    %c41_119 = arith.constant 41 : index
    %c0_120 = arith.constant 0 : index
    %185 = vector.load %arg8[%c41_119, %c0_120] : memref<304x64xf32, #tpu.memory_space<vmem>>, vector<256x64xf32>
    %cst_121 = arith.constant 0.000000e+00 : f32
    %186 = vector.shape_cast %20 : vector<256x1xi1> to vector<256x1xi1>
    %187 = vector.broadcast %186 : vector<256x1xi1> to vector<256x64xi1>
    %188 = vector.broadcast %cst_121 : f32 to vector<256x64xf32>
    %189 = arith.select %187, %188, %185 : vector<256x64xi1>, vector<256x64xf32>
    %190 = arith.truncf %189 : vector<256x64xf32> to vector<256x64xbf16>
    %c8_122 = arith.constant 8 : index
    %c0_123 = arith.constant 0 : index
    %c0_124 = arith.constant 0 : index
    %191 = vector.load %arg4[%c8_122, %c0_123, %c0_124] : memref<9x64x128xbf16, #tpu.memory_space<vmem>>, vector<1x64x128xbf16>
    %192 = vector.shape_cast %191 : vector<1x64x128xbf16> to vector<64x128xbf16>
    %cst_125 = arith.constant dense<0.000000e+00> : vector<256x128xf32>
    %193 = tpu.matmul %190, %192, %cst_125 {dimension_numbers = #tpu.dot_dimension_numbers<[1], [0], [0], [1], [0, 0, 1, 1], [], []>} : vector<256x64xbf16>, vector<64x128xbf16>, vector<256x128xf32> -> vector<256x128xf32>
    %194 = arith.addf %184, %193 : vector<256x128xf32>
    %c0_126 = arith.constant 0 : index
    %c0_127 = arith.constant 0 : index
    %195 = vector.load %arg5[%c0_126, %c0_127] : memref<1x128xf32, #tpu.memory_space<vmem>>, vector<1x128xf32>
    %196 = vector.broadcast %195 : vector<1x128xf32> to vector<256x128xf32>
    %197 = arith.addf %194, %196 : vector<256x128xf32>
    %198 = arith.negf %197 : vector<256x128xf32>
    %199 = math.exp %198 : vector<256x128xf32>
    %cst_128 = arith.constant 1.000000e+00 : f32
    %200 = vector.broadcast %cst_128 : f32 to vector<256x128xf32>
    %201 = arith.addf %200, %199 : vector<256x128xf32>
    %202 = arith.divf %200, %201 : vector<256x128xf32>
    %203 = arith.mulf %197, %202 : vector<256x128xf32>
    %c0_129 = arith.constant 0 : index
    %c0_130 = arith.constant 0 : index
    %c0_131 = arith.constant 0 : index
    %204 = vector.load %arg1[%c0_129, %c0_130, %c0_131] : memref<1x256x128xbf16, #tpu.memory_space<vmem>>, vector<1x256x128xbf16>
    %205 = vector.shape_cast %204 : vector<1x256x128xbf16> to vector<256x128xbf16>
    %206 = arith.extf %205 : vector<256x128xbf16> to vector<256x128xf32>
    %207 = arith.addf %203, %206 : vector<256x128xf32>
    %208 = arith.truncf %207 : vector<256x128xf32> to vector<256x128xbf16>
    %c0_132 = arith.constant 0 : index
    %c0_133 = arith.constant 0 : index
    %c0_134 = arith.constant 0 : index
    %209 = vector.load %arg6[%c0_132, %c0_133, %c0_134] : memref<1x256x128xbf16, #tpu.memory_space<vmem>>, vector<1x256x128xbf16>
    %210 = vector.shape_cast %209 : vector<1x256x128xbf16> to vector<256x128xbf16>
    %211 = vector.shape_cast %208 : vector<256x128xbf16> to vector<1x256x128xbf16>
    tpu.vector_store %arg6[%c0_132, %c0_133, %c0_134], %211 {strides = array<i32>} : memref<1x256x128xbf16, #tpu.memory_space<vmem>>, vector<1x256x128xbf16>,
    return
  }
  func.func @transform_0(%arg0: i32) -> (i32, i32, i32) {
    %c0_i32 = arith.constant 0 : i32
    %c0_i32_0 = arith.constant 0 : i32
    %c0_i32_1 = arith.constant 0 : i32
    return %arg0, %c0_i32, %c0_i32_0 : i32, i32, i32
  }
  func.func @transform_1(%arg0: i32) -> (i32, i32, i32) {
    %c0_i32 = arith.constant 0 : i32
    %c0_i32_0 = arith.constant 0 : i32
    %c0_i32_1 = arith.constant 0 : i32
    %c0_i32_2 = arith.constant 0 : i32
    return %c0_i32, %c0_i32_0, %c0_i32_1 : i32, i32, i32
  }
  func.func @transform_2(%arg0: i32) -> (i32, i32) {
    %c0_i32 = arith.constant 0 : i32
    %c0_i32_0 = arith.constant 0 : i32
    %c0_i32_1 = arith.constant 0 : i32
    return %c0_i32, %c0_i32_0 : i32, i32
  }
  func.func @transform_3(%arg0: i32) -> (i32, i32, i32) {
    %c0_i32 = arith.constant 0 : i32
    %c0_i32_0 = arith.constant 0 : i32
    %c0_i32_1 = arith.constant 0 : i32
    %c0_i32_2 = arith.constant 0 : i32
    return %c0_i32, %c0_i32_0, %c0_i32_1 : i32, i32, i32
  }
  func.func @transform_4(%arg0: i32) -> (i32, i32) {
    %c0_i32 = arith.constant 0 : i32
    %c0_i32_0 = arith.constant 0 : i32
    %c0_i32_1 = arith.constant 0 : i32
    return %c0_i32, %c0_i32_0 : i32, i32
  }
  func.func @transform_5(%arg0: i32) -> (i32, i32, i32) {
    %c0_i32 = arith.constant 0 : i32
    %c0_i32_0 = arith.constant 0 : i32
    %c0_i32_1 = arith.constant 0 : i32
    return %arg0, %c0_i32, %c0_i32_0 : i32, i32, i32
  }
}

</mosaic_0001>

<bundles_post_ra>
// kernel: bottleneck_forward.1
= control target key start
LH: loop header
LB: loop body
LE: loop exit
PB: predicated region body
PF: predicated region fallthrough
CT: control target
= control target key end

     0   :  { %10 = vsyncpa [#allocation5], 0  ;;  %s14434_s0 = inlined_call_operand.vmem [shape: bf16[2,256,128], index: 0, kind: input, shape index: {}]   ;;  %s14435_s1 = inlined_call_operand.vmem [shape: bf16[9,128,64], index: 1, kind: input, shape index: {}]   ;;  %s14436_s2 = inlined_call_operand.vmem [shape: f32[1,64], index: 2, kind: input, shape index: {}]   ;;  %s14437_s3 = inlined_call_operand.vmem [shape: bf16[9,64,128], index: 3, kind: input, shape index: {}]   ;;  %s14438_s4 = inlined_call_operand.vmem [shape: f32[1,128], index: 4, kind: input, shape index: {}]   ;;  %s14439_s5 = inlined_call_operand.hbm [shape: bf16[2,256,128], index: 5, kind: output, shape index: {}]  }
   0x1   :  { %12 = vsyncpa [#allocation5 + $0x1], 0  ;;  %s10672_s18 = smov 0   ;;  %s10674_s19 = smov 0  }
   0x2   :  { %s10676_s20 = smov 0   ;;  %s10678_s21 = smov 0  }
   0x3 LB: > { %s10693_s22 = sadd.s32 4294967295, %s10634_s21   ;;  %s7738_s23 = sadd.s32 4294967294, %s10634_s21   ;;  %s10634_s21 = sphi %s10678_s21, %s15414_s21   ;;  %s10630_s20 = sphi %s10676_s20, %s15413_s20   ;;  %s10626_s19 = sphi %s10674_s19, %s15412_s19   ;;  %s10622_s18 = sphi %s10672_s18, %s15411_s18  }
   0x4   : > { %s10697_s24 = sadd.s32 1, %s10634_s21   ;;  %s135_s25 = sadd.s32 1, %s10630_s20 }
   0x5   : > { %s132_s26 = ssub.s32 %s10634_s21, %s10697_s24  ;;  %p145_p0 = scmp.ne.s32.totalorder %s10630_s20, %s10626_s19 }
   0x6   : > { %p133_p1 = scmp.eq.s32.totalorder %s132_s26, 0  ;;  %p146_p2 = scmp.eq.s32.totalorder %s10693_s22, 1 }
   0x7   : > { %p151_p3 = scmp.ne.s32.totalorder %s10626_s19, %s10622_s18  ;;  %p152_p4 = scmp.eq.s32.totalorder %s7738_s23, 1 }
   0x8   : > { %s10708_s27 = scalar_select %p133_p1, %s10630_s20, %s135_s25  }
   0x9   : > { %p10710_p5 = por %p146_p2, %p145_p0  ;;  %p10714_p6 = por %p152_p4, %p151_p3 }
   0xa   : > { %p7741_p7 = scmp.ge.s32.totalorder %s10634_s21, 1  ;;  %p190_p8 = scmp.lt.s32.totalorder %s10634_s21, 3 }
   0xc   : > { %p191_p9 = pnand %p7741_p7, %p190_p8 }
   0xe   : > { %194 = sbr.rel (%p191_p9) target bundleno = 1136 (0x470), region = 40 }
  0x13   : > { %v10194_v0 = vld [vmem:[%s14435_s1 + $0x78] sm:$0xff]   ;;  %v10636_v2 = vmov 0.0   ;;  %v224_v3 = vlaneseq  ;;  %v10196_v4 = vld [vmem:[%s14435_s1 + $0x70] sm:$0xff]   ;;  %p218_p10 = scmp.lt.s32.totalorder %s10693_s22, 1  ;;  %v10198_v6 = vld [vmem:[%s14435_s1 + $0x68] sm:$0xff]   ;;  %v10637_v8 = vmov 0.0|0.0  }
  0x14   : > { %v10195_v1 = vld [vmem:[%s14435_s1 + $0x38] sm:$0xff]   ;;  %706 = vst [vmem:[#allocation2 + $0x8] sm:$0xff] %v10636_v2  ;;  %707 = vst [vmem:[#allocation2 + $0x10] sm:$0xff] %v10636_v2  ;;  %9359 = vmatprep.subr.bf16.mxu0 %v10194_v0  ;;  %v10197_v5 = vld [vmem:[%s14435_s1 + $0x30] sm:$0xff]   ;;  %9375 = vmatprep.mubr.bf16.mxu0 %v10637_v8  ;;  %v14656_v15 = vmov 0  ;;  %vm14446_vm2 = vmmov 1  }
  0x15   : > { %705 = vst [vmem:[#allocation2] sm:$0xff] %v10636_v2  ;;  %708 = vst [vmem:[#allocation2 + $0x118] sm:$0xff] %v10636_v2  ;;  %9407 = vmatprep.subr.bf16.mxu1 %v10195_v1  ;;  %9360 = vmatpush3.bf16.msra.mxu0 %v10194_v0  ;;  %v10199_v7 = vld [vmem:[%s14435_s1 + $0x28] sm:$0xff]   ;;  %v10745_v9 = vshrl.u32 %v224_v3, 7  ;;  %s219_s17 = scalar_select %p218_p10, %s10693_s22, 1  ;;  %v10200_v10 = vld [vmem:[%s14435_s1 + $0x60] sm:$0xff]  }
  0x16   : > { %709 = vst [vmem:[#allocation2 + $0x120] sm:$0xff] %v10636_v2  ;;  %710 = vst [vmem:[#allocation2 + $0x128] sm:$0xff] %v10636_v2  ;;  %9408 = vmatpush3.bf16.msra.mxu1 %v10195_v1  ;;  %9361 = vmatprep.subr.bf16.mxu0 %v10196_v4  ;;  %v10201_v11 = vld [vmem:[%s14435_s1 + $0x20] sm:$0xff]   ;;  %v10202_v13 = vld [vmem:[%s14435_s1 + $0x58] sm:$0xff]   ;;  %v14659_v20 = vmov 0  ;;  %v14661_v48 = vmov 0 }
  0x17   : > { %9409 = vmatprep.subr.bf16.mxu1 %v10197_v5  ;;  %v261_v12 = vand.u32 15, %v10745_v9  ;;  %s8676_s6 = sshll.u32 %s219_s17, 7  ;;  %v10203_v14 = vld [vmem:[%s14435_s1 + $0x18] sm:$0xff]   ;;  %v10204_v16 = vld [vmem:[%s14435_s1 + $0x50] sm:$0xff]   ;;  %v227_v25 = vadd.s32 16, %v10745_v9  ;;  %v229_v27 = vadd.s32 32, %v10745_v9 }
  0x18   : > { %s10768_s13 = scalar_lea.vmem %s14434_s0, %s8676_s6  ;;  %v10205_v19 = vld [vmem:[%s14435_s1 + $0x10] sm:$0xff]   ;;  %v10206_v28 = vld [vmem:[%s14435_s1 + $0x48] sm:$0xff]   ;;  %v231_v32 = vadd.s32 48, %v10745_v9  ;;  %v10208_v39 = vld [vmem:[%s14435_s1 + $0x40] sm:$0xff]   ;;  %v233_v43 = vadd.s32 64, %v10745_v9  ;;  %v14664_v51 = vmov 0 }
  0x19   : > { %9362 = vmatpush3.bf16.msra.mxu0 %v10196_v4  ;;  %vm10761_vm0 = vcmp.eq.s32.totalorder %v261_v12, 0  ;;  %v8711_v22 = vld [vmem:[%s10768_s13] sm:$0xff]   ;;  %v8918_v26 = vld [vmem:[%s10768_s13 + $0x8] sm:$0xff]   ;;  %v8919_v31 = vld [vmem:[%s10768_s13 + $0x10] sm:$0xff]   ;;  %v275_v36 = vand.u32 15, %v227_v25  ;;  %v289_v37 = vand.u32 15, %v229_v27 }
  0x1a   : > { %9410 = vmatpush3.bf16.msra.mxu1 %v10197_v5  ;;  %9363 = vmatprep.subr.bf16.mxu0 %v10198_v6  ;;  %v14657_v15 = vsel %vm10761_vm0, 4294967295, %v14656_v15  ;;  %vm7777_vm1 = vmneg %vm10761_vm0  ;;  %v8712_v23 = vunpack.c.l.bf16 %v8711_v22  ;;  %v8713_v24 = vunpack.c.h.bf16 %v8711_v22  ;;  %v8716_v29 = vunpack.c.l.bf16 %v8918_v26  ;;  %v10207_v33 = vld [vmem:[%s14435_s1 + $0x8] sm:$0xff]   ;;  %v8920_v38 = vld [vmem:[%s10768_s13 + $0x18] sm:$0xff]   ;;  %s215_s25 = sand.u32 1, %s10626_s19   ;;  %s10639_s11 = smov [#allocation4]  }
  0x1b   : > { %9411 = vmatprep.subr.bf16.mxu1 %v10199_v7  ;;  %14658 = vst [vmem:[#allocation7_spill] sm:$0xff] %v14657_v15  ;;  %v815_v18 = vld [vmem:[#allocation2 + $0xf] sm:$0xff]  ;;  %vm10779_vm3 = vmpackc.low %vm14446_vm2, %vm7777_vm1  ;;  %v8717_v30 = vunpack.c.h.bf16 %v8918_v26  ;;  %v8720_v34 = vunpack.c.l.bf16 %v8919_v31  ;;  %v8721_v35 = vunpack.c.h.bf16 %v8919_v31  ;;  %v303_v40 = vand.u32 15, %v231_v32  ;;  %v8921_v44 = vld [vmem:[%s10768_s13 + $0x20] sm:$0xff]   ;;  %s14232_s26 = sshll.u32 %s215_s25, 7  ;;  %s14394_s10 = scalar_lea.sflag [#allocation5], %s215_s25 }
  0x1c   : > { %v814_v17 = vld [vmem:[#allocation2 + $0x7] sm:$0xff]  ;;  %v14660_v20 = vsel %vm10779_vm3, 4294967295, %v14659_v20  ;;  %782 = vst [vmem:[#allocation2 + $0x18] sm:$0xff] %v8712_v23  ;;  %783 = vst [vmem:[#allocation2 + $0x20] sm:$0xff] %v8713_v24  ;;  %v8724_v41 = vunpack.c.l.bf16 %v8920_v38  ;;  %v8725_v42 = vunpack.c.h.bf16 %v8920_v38  ;;  %v8728_v46 = vunpack.c.l.bf16 %v8921_v44  ;;  %v10211_v50 = vld [vmem:[%s14435_s1 + $0xb8] sm:$0xff]   ;;  %s14256_s30 = scalar_lea.vmem [#allocation4], %s14232_s26 }
  0x1d   : > { %9364 = vmatpush3.bf16.msra.mxu0 %v10198_v6  ;;  %v7779_v21 = vpack.c.bf16 %v815_v18, %v814_v17  ;;  %784 = vst [vmem:[#allocation2 + $0x28] sm:$0xff] %v8716_v29  ;;  %785 = vst [vmem:[#allocation2 + $0x30] sm:$0xff] %v8717_v30  ;;  %v10209_v45 = vld [vmem:[%s14435_s1] sm:$0xff]   ;;  %v8729_v47 = vunpack.c.h.bf16 %v8921_v44  ;;  %vm10806_vm4 = vcmp.eq.s32.totalorder %v275_v36, 0  ;;  %v8922_v49 = vld [vmem:[%s10768_s13 + $0x28] sm:$0xff]   ;;  %vm10814_vm5 = vcmp.eq.s32.totalorder %v289_v37, 0 }
  0x1e   : > { %9412 = vmatpush3.bf16.msra.mxu1 %v10199_v7  ;;  %9365 = vmatprep.subr.bf16.mxu0 %v10200_v10  ;;  %786 = vst [vmem:[#allocation2 + $0x38] sm:$0xff] %v8720_v34  ;;  %787 = vst [vmem:[#allocation2 + $0x40] sm:$0xff] %v8721_v35  ;;  %v14662_v48 = vsel %vm10806_vm4, 4294967295, %v14661_v48  ;;  %v14665_v51 = vsel %vm10814_vm5, 4294967295, %v14664_v51  ;;  %v235_v52 = vadd.s32 80, %v10745_v9  ;;  %v8732_v53 = vunpack.c.l.bf16 %v8922_v49  ;;  %v8923_v59 = vld [vmem:[%s10768_s13 + $0x30] sm:$0xff]  }
  0x1f   : > { %9413 = vmatprep.subr.bf16.mxu1 %v10201_v11  ;;  %9423 = vmatprep.mubr.msk.bf16.mxu1 %vm10779_vm3, %v7779_v21  ;;  %14663 = vst [vmem:[#allocation8_spill] sm:$0xff] %v14662_v48  ;;  %788 = vst [vmem:[#allocation2 + $0x48] sm:$0xff] %v8724_v41  ;;  %v8733_v54 = vunpack.c.h.bf16 %v8922_v49  ;;  %vm10819_vm6 = vcmp.eq.s32.totalorder %v303_v40, 0  ;;  %v14667_v57 = vmov 0  ;;  %v317_v58 = vand.u32 15, %v233_v43  ;;  %v10210_v0 = vld [vmem:[%s10768_s13] sm:$0xff] }
  0x20   : > { %789 = vst [vmem:[#allocation2 + $0x50] sm:$0xff] %v8725_v42  ;;  %14666 = vst [vmem:[#allocation9_spill] sm:$0xff] %v14665_v51  ;;  %v14668_v57 = vsel %vm10819_vm6, 4294967295, %v14667_v57  ;;  %v8736_v62 = vunpack.c.l.bf16 %v8923_v59  ;;  %v8737_v63 = vunpack.c.h.bf16 %v8923_v59  ;;  %v331_v3 = vand.u32 15, %v235_v52  ;;  %v10212_v5 = vld [vmem:[%s10768_s13 + $0x8] sm:$0xff]  ;;  %v10214_v12 = vld [vmem:[%s14435_s1 + $0xb0] sm:$0xff]  }
  0x21   : > { %9366 = vmatpush3.bf16.msra.mxu0 %v10200_v10  ;;  %790 = vst [vmem:[#allocation2 + $0x58] sm:$0xff] %v8728_v46  ;;  %791 = vst [vmem:[#allocation2 + $0x60] sm:$0xff] %v8729_v47  ;;  %v14670_v4 = vmov 0  ;;  %vm10844_vm11 = vcmp.eq.s32.totalorder %v317_v58, 0  ;;  %v14672_v7 = vmov 0  ;;  %v237_v8 = vadd.s32 96, %v10745_v9 }
  0x22   : > { %9414 = vmatpush3.bf16.msra.mxu1 %v10201_v11  ;;  %9367 = vmatprep.subr.bf16.mxu0 %v10202_v13  ;;  %14669 = vst [vmem:[#allocation10_spill] sm:$0xff] %v14668_v57  ;;  %vm7781_vm7 = vmneg %vm10806_vm4  ;;  %v14673_v7 = vsel %vm10844_vm11, 4294967295, %v14672_v7  ;;  %v8924_v10 = vld [vmem:[%s10768_s13 + $0x38] sm:$0xff]   ;;  %v14675_v11 = vmov 0  ;;  %vm10874_vm15 = vcmp.eq.s32.totalorder %v331_v3, 0  ;;  %v14679_v17 = vmov 0 }
  0x23   : > { %9415 = vmatprep.subr.bf16.mxu1 %v10203_v14  ;;  %v816_v55 = vld [vmem:[#allocation2 + $0x17] sm:$0xff]  ;;  %v817_v56 = vld [vmem:[#allocation2 + $0x1f] sm:$0xff]  ;;  %792 = vst [vmem:[#allocation2 + $0x68] sm:$0xff] %v8732_v53  ;;  %793 = vst [vmem:[#allocation2 + $0x70] sm:$0xff] %v8733_v54  ;;  %v14680_v17 = vsel %vm10874_vm15, 4294967295, %v14679_v17  ;;  %v345_v24 = vand.u32 15, %v237_v8 }
  0x24   : > { %v818_v60 = vld [vmem:[#allocation2 + $0x27] sm:$0xff]  ;;  %v819_v61 = vld [vmem:[#allocation2 + $0x2f] sm:$0xff]  ;;  %vm7785_vm8 = vmneg %vm10814_vm5  ;;  %v10829_v1 = vpack.c.bf16 %v817_v56, %v816_v55  ;;  %794 = vst [vmem:[#allocation2 + $0x78] sm:$0xff] %v8736_v62  ;;  %v239_v31 = vadd.s32 112, %v10745_v9  ;;  %v14684_v35 = vmov 0  ;;  %v241_v36 = vadd.s32 128, %v10745_v9 }
  0x25   : > { %9368 = vmatpush3.bf16.msra.mxu0 %v10202_v13  ;;  %vm7789_vm9 = vmneg %vm10819_vm6  ;;  %795 = vst [vmem:[#allocation2 + $0x80] sm:$0xff] %v8737_v63  ;;  %v10842_v6 = vpack.c.bf16 %v819_v61, %v818_v60  ;;  %v8740_v13 = vunpack.c.l.bf16 %v8924_v10  ;;  %v10217_v18 = vld [vmem:[%s14435_s1 + $0xa8] sm:$0xff]   ;;  %v820_v21 = vld [vmem:[#allocation2 + $0x37] sm:$0xff]  ;;  %v14687_v40 = vmov 0  ;;  %v243_v56 = vadd.s32 144, %v10745_v9  ;;  %s7676_s6 = sshll.u32 %s14256_s30, 4  ;;  %s14388_s6 = int_to_ptr.vmem [resolvable:$true] %s7676_s6 }
  0x26   : > { %9416 = vmatpush3.bf16.msra.mxu1 %v10203_v14  ;;  %9369 = vmatprep.subr.bf16.mxu0 %v10204_v16  ;;  %vm10837_vm10 = vmpackc.low %vm14446_vm2, %vm7781_vm7  ;;  %14674 = vst [vmem:[#allocation11_spill] sm:$0xff] %v14673_v7  ;;  %v8741_v14 = vunpack.c.h.bf16 %v8924_v10  ;;  %v821_v22 = vld [vmem:[#allocation2 + $0x3f] sm:$0xff]  ;;  %v822_v23 = vld [vmem:[#allocation2 + $0x47] sm:$0xff]  ;;  %v359_v44 = vand.u32 15, %v239_v31  ;;  %v373_v49 = vand.u32 15, %v241_v36  ;;  %v14689_v61 = vmov 0 }
  0x27   : > { %9417 = vmatprep.subr.bf16.mxu1 %v10205_v19  ;;  %v14671_v4 = vsel %vm10837_vm10, 4294967295, %v14670_v4  ;;  %vm10854_vm12 = vmpackc.low %vm14446_vm2, %vm7785_vm8  ;;  %14681 = vst [vmem:[#allocation12_spill] sm:$0xff] %v14680_v17  ;;  %v823_v27 = vld [vmem:[#allocation2 + $0x4f] sm:$0xff]  ;;  %v10215_v29 = vld [vmem:[%s10768_s13 + $0x18] sm:$0xff]  ;;  %v10889_v30 = vpack.c.bf16 %v821_v22, %v820_v21  ;;  %vm10905_vm8 = vcmp.eq.s32.totalorder %v345_v24, 0  ;;  %v14692_v62 = vmov 0 }
  0x28   : > { %v14676_v11 = vsel %vm10854_vm12, 4294967295, %v14675_v11  ;;  %vm10865_vm13 = vmpackc.low %vm14446_vm2, %vm7789_vm9  ;;  %796 = vst [vmem:[#allocation2 + $0x88] sm:$0xff] %v8740_v13  ;;  %v10224_v32 = vld [vmem:[%s14435_s1 + $0xf8] sm:$0xff]   ;;  %v10903_v34 = vpack.c.bf16 %v823_v27, %v822_v23  ;;  %v14685_v35 = vsel %vm10905_vm8, 4294967295, %v14684_v35  ;;  %v10220_v37 = vld [vmem:[%s14435_s1 + $0xa0] sm:$0xff]   ;;  %vm14448_vm6 = vcmask 523264  }
  0x29   : > { %9370 = vmatpush3.bf16.msra.mxu0 %v10204_v16  ;;  %v14677_v16 = vmov 0  ;;  %vm7793_vm14 = vmneg %vm10844_vm11  ;;  %797 = vst [vmem:[#allocation2 + $0x90] sm:$0xff] %v8741_v14  ;;  %v10225_v38 = vld [vmem:[%s14435_s1 + $0xf0] sm:$0xff]   ;;  %v10216_v46 = vld [vmem:[%s10768_s13 + $0x20] sm:$0xff]  ;;  %vm10959_vm11 = vcmp.eq.s32.totalorder %v373_v49, 0  ;;  %v387_v22 = vand.u32 15, %v243_v56 }
  0x2a   : > { %9418 = vmatpush3.bf16.msra.mxu1 %v10205_v19  ;;  %9371 = vmatprep.subr.bf16.mxu0 %v10206_v28  ;;  %v14678_v16 = vsel %vm10865_vm13, 4294967295, %v14677_v16  ;;  %v8925_v19 = vld [vmem:[%s10768_s13 + $0x40] sm:$0xff]   ;;  %vm7797_vm1 = vmneg %vm10874_vm15  ;;  %14686 = vst [vmem:[#allocation13_spill] sm:$0xff] %v14685_v35  ;;  %v824_v43 = vld [vmem:[#allocation2 + $0x57] sm:$0xff]  ;;  %v14806_v57 = vmov 0  ;;  %s10578_s12 = sshll.u32 %s10639_s11, 4  ;;  %s10579_s12 = int_to_ptr.vmem [resolvable:$false] %s10578_s12 }
  0x2b   : > { %9419 = vmatprep.subr.bf16.mxu1 %v10207_v33  ;;  %v8744_v25 = vunpack.c.l.bf16 %v8925_v19  ;;  %v8745_v26 = vunpack.c.h.bf16 %v8925_v19  ;;  %vm10899_vm7 = vmpackc.low %vm14446_vm2, %vm7793_vm14  ;;  %v825_v47 = vld [vmem:[#allocation2 + $0x5f] sm:$0xff]  ;;  %v826_v53 = vld [vmem:[#allocation2 + $0x67] sm:$0xff]  ;;  %716 = vst.msk [vmem:[#allocation3 + $0x120] sm:$0xff] %vm14448_vm6, %v10636_v2  ;;  %s10580_s14 = scalar_lea.vmem %s10579_s12, 4096  ;;  %p10581_p0 = scmp.lt.s32.totalorder %s14388_s6, %s10579_s12 }
  0x2c   : > { %vm10921_vm9 = vmpackc.low %vm14446_vm2, %vm7797_vm1  ;;  %v827_v54 = vld [vmem:[#allocation2 + $0x6f] sm:$0xff]  ;;  %v10223_v55 = vld [vmem:[%s14435_s1 + $0x98] sm:$0xff]   ;;  %v10942_v59 = vpack.c.bf16 %v825_v47, %v824_v43  ;;  %vm10945_vm1 = vcmp.eq.s32.totalorder %v359_v44, 0  ;;  %717 = vst.msk [vmem:[#allocation3 + $0x128] sm:$0xff] %vm14448_vm6, %v10636_v2 }
  0x2d   : > { %9372 = vmatpush3.bf16.msra.mxu0 %v10206_v28  ;;  %v10213_v28 = vld [vmem:[%s10768_s13 + $0x10] sm:$0xff]  ;;  %798 = vst [vmem:[#allocation2 + $0x98] sm:$0xff] %v8744_v25  ;;  %799 = vst [vmem:[#allocation2 + $0xa0] sm:$0xff] %v8745_v26  ;;  %v14688_v40 = vsel %vm10921_vm9, 4294967295, %v14687_v40  ;;  %v10229_v58 = vld [vmem:[%s14435_s1 + $0xe8] sm:$0xff]   ;;  %v14690_v61 = vsel %vm10945_vm1, 4294967295, %v14689_v61  ;;  %v10957_v63 = vpack.c.bf16 %v827_v54, %v826_v53 }
  0x2e   : > { %9420 = vmatpush3.bf16.msra.mxu1 %v10207_v33  ;;  %9373 = vmatprep.subr.bf16.mxu0 %v10208_v39  ;;  %v14682_v33 = vmov 0  ;;  %vm7801_vm14 = vmneg %vm10905_vm8  ;;  %v10218_v60 = vld [vmem:[%s10768_s13 + $0x28] sm:$0xff]  ;;  %14691 = vst [vmem:[#allocation14_spill] sm:$0xff] %v14690_v61  ;;  %v8928_v3 = vld [vmem:[%s10768_s13 + $0x58] sm:$0xff]   ;;  %vm11012_vm8 = vcmp.eq.s32.totalorder %v387_v22, 0  ;;  %v249_v54 = vadd.s32 192, %v10745_v9 }
  0x2f   : > { %9421 = vmatprep.subr.bf16.mxu1 %v10209_v45  ;;  %v14683_v33 = vsel %vm10899_vm7, 4294967295, %v14682_v33  ;;  %vm10953_vm15 = vmpackc.low %vm14446_vm2, %vm7801_vm14  ;;  %v10230_v8 = vld [vmem:[%s14435_s1 + $0xe0] sm:$0xff]   ;;  %v8756_v10 = vunpack.c.l.bf16 %v8928_v3  ;;  %712 = vst.msk [vmem:[#allocation3] sm:$0xff] %vm14448_vm6, %v10636_v2  ;;  %v828_v19 = vld [vmem:[#allocation2 + $0x77] sm:$0xff] }
  0x30   : > { %v14693_v62 = vsel %vm10953_vm15, 4294967295, %v14692_v62  ;;  %v8929_v13 = vld [vmem:[%s10768_s13 + $0x60] sm:$0xff]   ;;  %713 = vst.msk [vmem:[#allocation3 + $0x8] sm:$0xff] %vm14448_vm6, %v10636_v2  ;;  %714 = vst.msk [vmem:[#allocation3 + $0x10] sm:$0xff] %vm14448_vm6, %v10636_v2  ;;  %v831_v24 = vld [vmem:[#allocation2 + $0x8f] sm:$0xff] }
  0x31   : > { %9374 = vmatpush3.bf16.msra.mxu0 %v10208_v39  ;;  %v8926_v39 = vld [vmem:[%s10768_s13 + $0x48] sm:$0xff]   ;;  %715 = vst.msk [vmem:[#allocation3 + $0x118] sm:$0xff] %vm14448_vm6, %v10636_v2  ;;  %vm7805_vm14 = vmneg %vm10945_vm1  ;;  %v8760_v14 = vunpack.c.l.bf16 %v8929_v13  ;;  %v829_v21 = vld [vmem:[#allocation2 + $0x7f] sm:$0xff]  ;;  %v245_v2 = vadd.s32 160, %v10745_v9  ;;  %vm14697_vm6 = vmmov 1  }
  0x32   : > { %9422 = vmatpush3.bf16.msra.mxu1 %v10209_v45  ;;  %9455 = vmatprep.subr.bf16.mxu0 %v10211_v50  ;;  %v8748_v41 = vunpack.c.l.bf16 %v8926_v39  ;;  %v8749_v42 = vunpack.c.h.bf16 %v8926_v39  ;;  %v8927_v45 = vld [vmem:[%s10768_s13 + $0x50] sm:$0xff]   ;;  %804 = vst [vmem:[#allocation2 + $0xc8] sm:$0xff] %v8756_v10  ;;  %v830_v23 = vld [vmem:[#allocation2 + $0x87] sm:$0xff]  ;;  %v10234_v26 = vld [vmem:[%s14435_s1 + $0xd8] sm:$0xff]  }
  0x33   : > { %9503 = vmatprep.subr.bf16.mxu1 %v10224_v32  ;;  %v8753_v52 = vunpack.c.h.bf16 %v8927_v45  ;;  %806 = vst [vmem:[#allocation2 + $0xd8] sm:$0xff] %v8760_v14  ;;  %v10233_v25 = vld [vmem:[%s14435_s1 + $0x88] sm:$0xff]   ;;  %v10219_v27 = vld [vmem:[%s10768_s13 + $0x30] sm:$0xff]  ;;  %vm11005_vm2 = vmpackc.low %vm14697_vm6, %vm7805_vm14  ;;  %v401_v36 = vand.u32 15, %v245_v2  ;;  %v11025_v39 = vpack.c.bf16 %v831_v24, %v830_v23  ;;  %v14712_v14 = vmov 0 }
  0x34   : > { %9376 = vmatmul.mubr.bf16.vlgmr.msra.gmra.mxu0 %v10210_v0  ;;  %800 = vst [vmem:[#allocation2 + $0xa8] sm:$0xff] %v8748_v41  ;;  %801 = vst [vmem:[#allocation2 + $0xb0] sm:$0xff] %v8749_v42  ;;  %v14694_v0 = vmov 0  ;;  %v10221_v31 = vld [vmem:[%s10768_s13 + $0x38] sm:$0xff]  ;;  %v247_v41 = vadd.s32 176, %v10745_v9  ;;  %v8931_v44 = vld [vmem:[%s10768_s13 + $0x70] sm:$0xff]  }
  0x35   : > { %9424 = vmatmul.mubr.msk.bf16.vlgmr.msra.gmra.mxu1 %vm10837_vm10, %v10829_v1  ;;  %9456 = vmatpush3.bf16.msra.mxu0 %v10211_v50  ;;  %v8752_v50 = vunpack.c.l.bf16 %v8927_v45  ;;  %803 = vst [vmem:[#allocation2 + $0xc0] sm:$0xff] %v8753_v52  ;;  %v14695_v0 = vsel %vm10959_vm11, 4294967295, %v14694_v0  ;;  %vm14703_vm5 = vmneg %vm10959_vm11  ;;  %v10235_v45 = vld [vmem:[%s14435_s1 + $0xd0] sm:$0xff]   ;;  %v8769_v47 = vunpack.c.h.bf16 %v8931_v44  ;;  %vm11037_vm14 = vcmp.eq.s32.totalorder %v401_v36, 0  ;;  %v10226_v10 = vld [vmem:[%s10768_s13 + $0x48] sm:$0xff] }
  0x36   : > { %9379 = vmatprep.mubr.bf16.mxu0 %v10212_v5  ;;  %9427 = vmatprep.mubr.msk.bf16.mxu1 %vm10854_vm12, %v10842_v6  ;;  %14696 = vst [vmem:[#allocation15_spill] sm:$0xff] %v14695_v0  ;;  %v10228_v5 = vld [vmem:[%s14435_s1 + $0x90] sm:$0xff]   ;;  %vm11021_vm1 = vmpackc.low %vm14697_vm6, %vm14703_vm5  ;;  %v14706_v52 = vmov 0  ;;  %v415_v56 = vand.u32 15, %v247_v41  ;;  %v11083_v22 = vld [vmem:[%s14435_s1 + $0x138] sm:$0xff]   ;;  %v14717_v2 = vmov 0 }
  0x37   : > { %9457 = vmatprep.subr.bf16.mxu0 %v10214_v12  ;;  %9504 = vmatpush3.bf16.msra.mxu1 %v10224_v32  ;;  %802 = vst [vmem:[#allocation2 + $0xb8] sm:$0xff] %v8752_v50  ;;  %v14700_v32 = vmov 0  ;;  %v832_v49 = vld [vmem:[#allocation2 + $0x97] sm:$0xff]  ;;  %v833_v50 = vld [vmem:[#allocation2 + $0x9f] sm:$0xff]  ;;  %v14707_v52 = vsel %vm11037_vm14, 4294967295, %v14706_v52  ;;  %811 = vst [vmem:[#allocation2 + $0x100] sm:$0xff] %v8769_v47 }
  0x38   : > { %9505 = vmatprep.subr.bf16.mxu1 %v10225_v38  ;;  %v14701_v32 = vsel %vm11012_vm8, 4294967295, %v14700_v32  ;;  %14708 = vst [vmem:[#allocation17_spill] sm:$0xff] %v14707_v52  ;;  %vm7817_vm5 = vmneg %vm11037_vm14  ;;  %vm11067_vm0 = vcmp.eq.s32.totalorder %v415_v56, 0  ;;  %v253_v23 = vadd.s32 224, %v10745_v9  ;;  %v10231_v41 = vld [vmem:[%s10768_s13 + $0x58] sm:$0xff]  ;;  %v14725_v47 = vmov 0 }
  0x39   : > { %9458 = vmatpush3.bf16.msra.mxu0 %v10214_v12  ;;  %v8757_v12 = vunpack.c.h.bf16 %v8928_v3  ;;  %14702 = vst [vmem:[#allocation16_spill] sm:$0xff] %v14701_v32  ;;  %v10222_v3 = vld [vmem:[%s10768_s13 + $0x40] sm:$0xff]  ;;  %vm14709_vm11 = vmneg %vm11012_vm8  ;;  %v14713_v14 = vsel %vm11067_vm0, 4294967295, %v14712_v14  ;;  %v1466_v52 = vld [vmem:[#allocation2 + $0x51] sm:$0xff]  ;;  %v246_v0 = vadd.s32 168, %v10745_v9 }
  0x3a   : > { %9459 = vmatprep.subr.bf16.mxu0 %v10217_v18  ;;  %vm11058_vm4 = vmpackc.low %vm14697_vm6, %vm14709_vm11  ;;  %14714 = vst [vmem:[#allocation18_spill] sm:$0xff] %v14713_v14  ;;  %v10248_v61 = vld [vmem:[%s14435_s1 + $0x110] sm:$0xff]   ;;  %v2199_v48 = vld [vmem:[#allocation2 + $0x28] sm:$0xff] }
  0x3b   : > { %9506 = vmatpush3.bf16.msra.mxu1 %v10225_v38  ;;  %805 = vst [vmem:[#allocation2 + $0xd0] sm:$0xff] %v8757_v12  ;;  %v14704_v38 = vmov 0  ;;  %v834_v53 = vld [vmem:[#allocation2 + $0xa7] sm:$0xff]  ;;  %v429_v12 = vand.u32 15, %v249_v54  ;;  %vm11075_vm11 = vmpackc.low %vm14697_vm6, %vm7817_vm5  ;;  %v2200_v15 = vld [vmem:[#allocation2 + $0x30] sm:$0xff] }
  0x3c   : > { %9380 = vmatmul.mubr.bf16.gmra.mxu0 %v10213_v28  ;;  %9507 = vmatprep.subr.bf16.mxu1 %v10229_v58  ;;  %v14698_v28 = vmov 0  ;;  %v14705_v38 = vsel %vm11021_vm1, 4294967295, %v14704_v38  ;;  %vm14720_vm8 = vmneg %vm11067_vm0 }
  0x3d   : > { %9428 = vmatmul.mubr.msk.bf16.gmra.mxu1 %vm10865_vm13, %v10889_v30  ;;  %9383 = vmatprep.mubr.bf16.mxu0 %v10215_v29  ;;  %v14699_v28 = vsel %vm11005_vm2, 4294967295, %v14698_v28  ;;  %v11009_v29 = vpack.c.bf16 %v829_v21, %v828_v19  ;;  %v14715_v19 = vmov 0  ;;  %v251_v21 = vadd.s32 208, %v10745_v9 }
  0x3e   : > { %9431 = vmatprep.mubr.msk.bf16.mxu1 %vm10899_vm7, %v10903_v34  ;;  %9460 = vmatpush3.bf16.msra.mxu0 %v10217_v18  ;;  %v8761_v18 = vunpack.c.h.bf16 %v8929_v13  ;;  %v14716_v19 = vsel %vm11075_vm11, 4294967295, %v14715_v19  ;;  %vm11090_vm14 = vcmp.eq.s32.totalorder %v429_v12, 0  ;;  %v836_v24 = vld [vmem:[#allocation2 + $0xb7] sm:$0xff]  ;;  %v11144_v12 = vld [vmem:[%s10768_s13 + $0x68] sm:$0xff] }
  0x3f   : > { %9461 = vmatprep.subr.bf16.mxu0 %v10220_v37  ;;  %9508 = vmatpush3.bf16.msra.mxu1 %v10229_v58  ;;  %v10239_v58 = vld [vmem:[%s14435_s1 + $0xc8] sm:$0xff]   ;;  %v14718_v2 = vsel %vm11090_vm14, 4294967295, %v14717_v2  ;;  %vm7825_vm5 = vmneg %vm11090_vm14  ;;  %v443_v36 = vand.u32 15, %v251_v21 }
  0x40   : > { %807 = vst [vmem:[#allocation2 + $0xe0] sm:$0xff] %v8761_v18  ;;  %9509 = vmatprep.subr.bf16.mxu1 %v10230_v8  ;;  %v10240_v18 = vld [vmem:[%s14435_s1 + $0xc0] sm:$0xff]   ;;  %14719 = vst [vmem:[#allocation19_spill] sm:$0xff] %v14718_v2 }
  0x41   : > { %vm11117_vm14 = vmpackc.low %vm14697_vm6, %vm7825_vm5 }
  0x42   : > { %9462 = vmatpush3.bf16.msra.mxu0 %v10220_v37  ;;  %v8930_v37 = vld [vmem:[%s10768_s13 + $0x68] sm:$0xff]  }
  0x43   : > { %9463 = vmatprep.subr.bf16.mxu0 %v10223_v55  ;;  %9510 = vmatpush3.bf16.msra.mxu1 %v10230_v8  ;;  %v8764_v42 = vunpack.c.l.bf16 %v8930_v37  ;;  %v8765_v43 = vunpack.c.h.bf16 %v8930_v37  ;;  %v11062_v8 = vpack.c.bf16 %v833_v50, %v832_v49  ;;  %v226_v49 = vadd.s32 8, %v10745_v9  ;;  %v840_v50 = vld [vmem:[#allocation2 + $0xd7] sm:$0xff] }
  0x44   : > { %9384 = vmatmul.mubr.bf16.gmra.mxu0 %v10216_v46  ;;  %9511 = vmatprep.subr.bf16.mxu1 %v10234_v26  ;;  %v8768_v46 = vunpack.c.l.bf16 %v8931_v44 }
  0x45   : > { %9432 = vmatmul.mubr.msk.bf16.gmra.mxu1 %vm10921_vm9, %v10942_v59  ;;  %9387 = vmatprep.mubr.bf16.mxu0 %v10218_v60  ;;  %808 = vst [vmem:[#allocation2 + $0xe8] sm:$0xff] %v8764_v42  ;;  %809 = vst [vmem:[#allocation2 + $0xf0] sm:$0xff] %v8765_v43  ;;  %v835_v60 = vld [vmem:[#allocation2 + $0xaf] sm:$0xff]  ;;  %v457_v42 = vand.u32 15, %v253_v23  ;;  %v14721_v43 = vmov 0  ;;  %v14733_v23 = vmov 0 }
  0x46   : > { %9435 = vmatprep.mubr.msk.bf16.mxu1 %vm10953_vm15, %v10957_v63  ;;  %9464 = vmatpush3.bf16.msra.mxu0 %v10223_v55  ;;  %810 = vst [vmem:[#allocation2 + $0xf8] sm:$0xff] %v8768_v46  ;;  %v10238_v55 = vld [vmem:[%s14435_s1 + $0x80] sm:$0xff]   ;;  %v11065_v13 = vpack.c.bf16 %v835_v60, %v834_v53  ;;  %v14723_v46 = vmov 0  ;;  %v14728_v53 = vmov 0 }
  0x47   : > { %9465 = vmatprep.subr.bf16.mxu0 %v10228_v5  ;;  %9512 = vmatpush3.bf16.msra.mxu1 %v10234_v26  ;;  %v838_v26 = vld [vmem:[#allocation2 + $0xc7] sm:$0xff]  ;;  %v14724_v46 = vsel %vm11117_vm14, 4294967295, %v14723_v46  ;;  %v841_v54 = vld [vmem:[#allocation2 + $0xdf] sm:$0xff] }
  0x48   : > { %9513 = vmatprep.subr.bf16.mxu1 %v10235_v45  ;;  %v10232_v60 = vld [vmem:[%s10768_s13 + $0x60] sm:$0xff] }
  0x4a   : > { %9466 = vmatpush3.bf16.msra.mxu0 %v10228_v5  ;;  %v14710_v5 = vmov 0 }
  0x4b   : > { %9467 = vmatprep.subr.bf16.mxu0 %v10233_v25  ;;  %9514 = vmatpush3.bf16.msra.mxu1 %v10235_v45  ;;  %v14711_v5 = vsel %vm11058_vm4, 4294967295, %v14710_v5  ;;  %v255_v45 = vadd.s32 240, %v10745_v9 }
  0x4c   : > { %9388 = vmatmul.mubr.bf16.gmra.mxu0 %v10219_v27  ;;  %9515 = vmatprep.subr.bf16.mxu1 %v10239_v58  ;;  %v839_v27 = vld [vmem:[#allocation2 + $0xcf] sm:$0xff]  ;;  %v842_v56 = vld [vmem:[#allocation2 + $0xe7] sm:$0xff] }
  0x4d   : > { %9436 = vmatmul.mubr.msk.bf16.gmra.mxu1 %vm11005_vm2, %v11009_v29  ;;  %9391 = vmatprep.mubr.bf16.mxu0 %v10221_v31  ;;  %v10227_v31 = vld [vmem:[%s10768_s13 + $0x50] sm:$0xff]  ;;  %v11113_v44 = vpack.c.bf16 %v839_v27, %v838_v26  ;;  %v14738_v26 = vmov 0  ;;  %v230_v27 = vadd.s32 40, %v10745_v9 }
  0x4e   : > { %9439 = vmatprep.mubr.msk.bf16.mxu1 %vm11021_vm1, %v11025_v39  ;;  %9468 = vmatpush3.bf16.msra.mxu0 %v10233_v25  ;;  %v837_v25 = vld [vmem:[#allocation2 + $0xbf] sm:$0xff] }
  0x4f   : > { %9469 = vmatprep.subr.bf16.mxu0 %v10238_v55  ;;  %9516 = vmatpush3.bf16.msra.mxu1 %v10239_v58  ;;  %v11102_v37 = vpack.c.bf16 %v837_v25, %v836_v24  ;;  %v843_v58 = vld [vmem:[#allocation2 + $0xef] sm:$0xff]  ;;  %v14736_v24 = vmov 0  ;;  %v228_v25 = vadd.s32 24, %v10745_v9 }
  0x50   : > { %9517 = vmatprep.subr.bf16.mxu1 %v10240_v18  ;;  %v11151_v21 = vpack.c.bf16 %v843_v58, %v842_v56  ;;  %v14741_v56 = vmov 0 }
  0x52   : > { %9470 = vmatpush3.bf16.msra.mxu0 %v10238_v55  ;;  %v471_v55 = vand.u32 15, %v255_v45  ;;  %v1458_v45 = vld [vmem:[#allocation2 + $0x11] sm:$0xff] }
  0x53   : > { %9551 = vmatprep.subr.bf16.mxu0 %v11083_v22  ;;  %9518 = vmatpush3.bf16.msra.mxu1 %v10240_v18  ;;  %v14731_v18 = vmov 0 }
  0x54   : > { %9392 = vmatmul.mubr.bf16.gmra.mxu0 %v10222_v3  ;;  %v268_v3 = vand.u32 15, %v226_v49  ;;  %v282_v49 = vand.u32 15, %v228_v25  ;;  %v14746_v25 = vmov 0 }
  0x55   : > { %9440 = vmatmul.mubr.msk.bf16.gmra.mxu1 %vm11058_vm4, %v11062_v8  ;;  %9395 = vmatprep.mubr.bf16.mxu0 %v10226_v10  ;;  %vm11121_vm4 = vcmp.eq.s32.totalorder %v443_v36, 0  ;;  %v11141_v10 = vpack.c.bf16 %v841_v54, %v840_v50  ;;  %v1457_v36 = vld [vmem:[#allocation2 + $0x9] sm:$0xff]  ;;  %v296_v54 = vand.u32 15, %v230_v27  ;;  %v1459_v27 = vld [vmem:[#allocation2 + $0x19] sm:$0xff] }
  0x56   : > { %9443 = vmatprep.mubr.msk.bf16.mxu1 %vm11075_vm11, %v11065_v13  ;;  %vm11109_vm11 = vmpackc.low %vm14697_vm6, %vm14720_vm8  ;;  %v14726_v47 = vsel %vm11121_vm4, 4294967295, %v14725_v47  ;;  %vm11129_vm8 = vcmp.eq.s32.totalorder %v457_v42, 0  ;;  %v845_v42 = vld [vmem:[#allocation2 + $0xff] sm:$0xff]  ;;  %v11186_v50 = vld [vmem:[%s10768_s13 + $0x70] sm:$0xff] }
  0x57   : > { %v14722_v43 = vsel %vm11109_vm11, 4294967295, %v14721_v43  ;;  %14727 = vst [vmem:[#allocation20_spill] sm:$0xff] %v14726_v47  ;;  %v14729_v53 = vsel %vm11129_vm8, 4294967295, %v14728_v53  ;;  %vm7829_vm5 = vmneg %vm11121_vm4  ;;  %v238_v47 = vadd.s32 104, %v10745_v9 }
  0x58   : > { %14730 = vst [vmem:[#allocation21_spill] sm:$0xff] %v14729_v53  ;;  %vm7833_vm0 = vmneg %vm11129_vm8  ;;  %vm11163_vm8 = vcmp.eq.s32.totalorder %v268_v3, 15  ;;  %v14743_v3 = vmov 0  ;;  %v236_v53 = vadd.s32 88, %v10745_v9 }
  0x59   : > { %vm11158_vm4 = vmpackc.low %vm14697_vm6, %vm7833_vm0  ;;  %v14739_v26 = vsel %vm11163_vm8, 4294967295, %v14738_v26 }
  0x5a   : > { %v14737_v24 = vsel %vm11158_vm4, 4294967295, %v14736_v24  ;;  %14740 = vst [vmem:[#allocation23_spill] sm:$0xff] %v14739_v26  ;;  %v14749_v26 = vmov 0  ;;  %v338_v32 = vand.u32 15, %v236_v53  ;;  %v14766_v53 = vmov 0 }
  0x5c   : > { %9396 = vmatmul.mubr.bf16.gmra.mxu0 %v10227_v31  ;;  %v11171_v31 = vld [vmem:[%s14435_s1 + $0x178] sm:$0xff]  }
  0x5d   : > { %9444 = vmatmul.mubr.msk.bf16.gmra.mxu1 %vm11109_vm11, %v11102_v37  ;;  %9399 = vmatprep.mubr.bf16.mxu0 %v10231_v41  ;;  %vm11147_vm11 = vmpackc.low %vm14697_vm6, %vm7829_vm5  ;;  %v844_v41 = vld [vmem:[#allocation2 + $0xf7] sm:$0xff] }
  0x5e   : > { %9447 = vmatprep.mubr.msk.bf16.mxu1 %vm11117_vm14, %v11113_v44  ;;  %v14732_v18 = vsel %vm11147_vm11, 4294967295, %v14731_v18  ;;  %vm11153_vm14 = vcmp.eq.s32.totalorder %v471_v55, 0  ;;  %9599 = vmatprep.subr.bf16.mxu1 %v11171_v31  ;;  %vm7865_vm5 = vmneg %vm11163_vm8  ;;  %v232_v55 = vadd.s32 56, %v10745_v9  ;;  %v11194_v58 = vpack.c.bf16 %v845_v42, %v844_v41  ;;  %v1461_v42 = vld [vmem:[#allocation2 + $0x29] sm:$0xff] }
  0x5f   : > { %v14734_v23 = vsel %vm11153_vm14, 4294967295, %v14733_v23  ;;  %vm7837_vm0 = vmneg %vm11153_vm14  ;;  %vm11201_vm8 = vcmp.eq.s32.totalorder %v282_v49, 15  ;;  %v234_v41 = vadd.s32 72, %v10745_v9 }
  0x60   : > { %14735 = vst [vmem:[#allocation22_spill] sm:$0xff] %v14734_v23  ;;  %vm11190_vm14 = vmpackc.low %vm14697_vm6, %vm7837_vm0  ;;  %v14747_v25 = vsel %vm11201_vm8, 4294967295, %v14746_v25  ;;  %v310_v23 = vand.u32 15, %v232_v55 }
  0x61   : > { %v14742_v56 = vsel %vm11190_vm14, 4294967295, %v14741_v56  ;;  %14748 = vst [vmem:[#allocation25_spill] sm:$0xff] %v14747_v25  ;;  %vm7869_vm0 = vmneg %vm11201_vm8  ;;  %v324_v55 = vand.u32 15, %v234_v41  ;;  %v1463_v41 = vld [vmem:[#allocation2 + $0x39] sm:$0xff]  ;;  %v10247_v25 = vld [vmem:[%s14435_s1 + $0x170] sm:$0xff]  }
  0x64   : > { %9400 = vmatmul.mubr.bf16.gmra.mxu0 %v10232_v60  ;;  %v7867_v60 = vpack.c.bf16 %v1458_v45, %v1457_v36  ;;  %v1460_v36 = vld [vmem:[#allocation2 + $0x21] sm:$0xff]  ;;  %v1462_v45 = vld [vmem:[#allocation2 + $0x31] sm:$0xff] }
  0x65   : > { %9448 = vmatmul.mubr.msk.bf16.gmra.mxu1 %vm11147_vm11, %v11141_v10  ;;  %9403 = vmatprep.mubr.bf16.mxu0 %v11144_v12  ;;  %vm11206_vm11 = vcmp.eq.s32.totalorder %v296_v54, 15  ;;  %v11223_v49 = vpack.c.bf16 %v1460_v36, %v1459_v27  ;;  %v14752_v54 = vmov 0  ;;  %v11246_v27 = vld [vmem:[%s10768_s13 + $0x78] sm:$0xff]   ;;  %v1464_v36 = vld [vmem:[#allocation2 + $0x41] sm:$0xff] }
  0x66   : > { %9451 = vmatprep.mubr.msk.bf16.mxu1 %vm11158_vm4, %v11151_v21  ;;  %vm11197_vm4 = vmpackc.low %vm7865_vm5, %vm14697_vm6  ;;  %v14750_v26 = vsel %vm11206_vm11, 4294967295, %v14749_v26  ;;  %v8772_v2 = vunpack.c.l.bf16 %v11246_v27  ;;  %v8773_v14 = vunpack.c.h.bf16 %v11246_v27 }
  0x67   : > { %v14744_v3 = vsel %vm11197_vm4, 4294967295, %v14743_v3  ;;  %14751 = vst [vmem:[#allocation26_spill] sm:$0xff] %v14750_v26  ;;  %vm7873_vm5 = vmneg %vm11206_vm11  ;;  %v11240_v26 = vpack.c.bf16 %v1462_v45, %v1461_v42  ;;  %v14760_v42 = vmov 0  ;;  %v1465_v45 = vld [vmem:[#allocation2 + $0x49] sm:$0xff] }
  0x68   : > { %14745 = vst [vmem:[#allocation24_spill] sm:$0xff] %v14744_v3  ;;  %vm11236_vm8 = vmpackc.low %vm7873_vm5, %vm14697_vm6  ;;  %vm11256_vm5 = vcmp.eq.s32.totalorder %v324_v55, 15  ;;  %v10243_v55 = vld [vmem:[%s14435_s1 + $0x128] sm:$0xff]  }
  0x69   : > { %v14761_v42 = vsel %vm11256_vm5, 4294967295, %v14760_v42  ;;  %812 = vst [vmem:[#allocation2 + $0x108] sm:$0xff] %v8772_v2  ;;  %813 = vst [vmem:[#allocation2 + $0x110] sm:$0xff] %v8773_v14  ;;  %v11280_v14 = vpack.c.bf16 %v1464_v36, %v1463_v41  ;;  %v10249_v2 = vld [vmem:[%s14435_s1 + $0x168] sm:$0xff]   ;;  %v242_v41 = vadd.s32 136, %v10745_v9  ;;  %v14771_v36 = vmov 0 }
  0x6a   : > { %14762 = vst [vmem:[#allocation29_spill] sm:$0xff] %v14761_v42 }
  0x6c   : > { %9404 = vmatmul.mubr.bf16.gmra.mxu0 %v11186_v50 }
  0x6d   : > { %9452 = vmatmul.mubr.msk.bf16.gmra.mxu1 %vm11190_vm14, %v11194_v58  ;;  %9471 = vmatprep.mubr.msk.bf16.mxu0 %vm11197_vm4, %v7867_v60  ;;  %vm11225_vm14 = vcmp.eq.s32.totalorder %v310_v23, 15  ;;  %vm11230_vm4 = vmpackc.low %vm7869_vm0, %vm14697_vm6  ;;  %v10242_v23 = vld [vmem:[%s14435_s1 + $0x130] sm:$0xff]  }
  0x6e   : > { %9519 = vmatprep.mubr.msk.bf16.mxu1 %vm10779_vm3, %v10829_v1  ;;  %v14753_v54 = vsel %vm11225_vm14, 4294967295, %v14752_v54  ;;  %v14757_v1 = vmov 0  ;;  %vm7881_vm0 = vmneg %vm11256_vm5  ;;  %vm11295_vm5 = vcmp.eq.s32.totalorder %v338_v32, 15  ;;  %v10244_v32 = vld [vmem:[%s14435_s1 + $0x120] sm:$0xff]  }
  0x6f   : > { %14754 = vst [vmem:[#allocation27_spill] sm:$0xff] %v14753_v54  ;;  %v14758_v1 = vsel %vm11236_vm8, 4294967295, %v14757_v1  ;;  %vm14763_vm11 = vmneg %vm11225_vm14  ;;  %v14767_v53 = vsel %vm11295_vm5, 4294967295, %v14766_v53  ;;  %v14776_v54 = vmov 0 }
  0x70   : > { %14759 = vst [vmem:[#allocation28_spill] sm:$0xff] %v14758_v1  ;;  %14768 = vst [vmem:[#allocation30_spill] sm:$0xff] %v14767_v53  ;;  %v244_v53 = vadd.s32 152, %v10745_v9  ;;  %v2208_v1 = vld [vmem:[#allocation2 + $0x70] sm:$0xff] }
  0x74   : > { %9472 = vmatmul.mubr.msk.bf16.vlgmr.msra.gmra.mxu0 %vm11230_vm4, %v11223_v49 }
  0x75   : > { %9552 = vmatpush3.bf16.msra.mxu0 %v11083_v22  ;;  %9520 = vmatmul.mubr.msk.bf16.vlgmr.msra.gmra.mxu1 %vm10837_vm10, %v10842_v6  ;;  %v352_v6 = vand.u32 15, %v238_v47  ;;  %v240_v22 = vadd.s32 120, %v10745_v9  ;;  %v11293_v47 = vpack.c.bf16 %v1466_v52, %v1465_v45  ;;  %vm11300_vm10 = vmpackc.low %vm7881_vm0, %vm14697_vm6  ;;  %v1467_v52 = vld [vmem:[#allocation2 + $0x59] sm:$0xff]  ;;  %v1469_v45 = vld [vmem:[#allocation2 + $0x69] sm:$0xff] }
  0x76   : > { %9475 = vmatprep.mubr.msk.bf16.mxu0 %vm11236_vm8, %v11240_v26  ;;  %9553 = vmatprep.subr.bf16.mxu0 %v10242_v23 }
  0x77   : > { %9523 = vmatprep.mubr.msk.bf16.mxu1 %vm10854_vm12, %v10889_v30  ;;  %9600 = vmatpush3.bf16.msra.mxu1 %v11171_v31  ;;  %vm11289_vm12 = vmpackc.low %vm14763_vm11, %vm14697_vm6  ;;  %vm11305_vm14 = vcmp.eq.s32.totalorder %v352_v6, 15  ;;  %v366_v42 = vand.u32 15, %v240_v22  ;;  %v1470_v6 = vld [vmem:[#allocation2 + $0x71] sm:$0xff]  ;;  %v380_v22 = vand.u32 15, %v242_v41 }
  0x78   : > { %9601 = vmatprep.subr.bf16.mxu1 %v10247_v25  ;;  %v14772_v36 = vsel %vm11305_vm14, 4294967295, %v14771_v36  ;;  %vm7885_vm11 = vmneg %vm11295_vm5  ;;  %v10252_v41 = vld [vmem:[%s14435_s1 + $0x158] sm:$0xff]  }
  0x79   : > { %9554 = vmatpush3.bf16.msra.mxu0 %v10242_v23  ;;  %14773 = vst [vmem:[#allocation31_spill] sm:$0xff] %v14772_v36  ;;  %v10250_v23 = vld [vmem:[%s14435_s1 + $0x160] sm:$0xff]   ;;  %vm7889_vm0 = vmneg %vm11305_vm14  ;;  %v14779_v36 = vmov 0 }
  0x7a   : > { %9555 = vmatprep.subr.bf16.mxu0 %v10243_v55  ;;  %vm11333_vm5 = vmpackc.low %vm7885_vm11, %vm14697_vm6 }
  0x7b   : > { %9602 = vmatpush3.bf16.msra.mxu1 %v10247_v25  ;;  %v1468_v25 = vld [vmem:[#allocation2 + $0x61] sm:$0xff]  ;;  %vm11350_vm11 = vmpackc.low %vm7889_vm0, %vm14697_vm6 }
  0x7c   : > { %9476 = vmatmul.mubr.msk.bf16.gmra.mxu0 %vm11289_vm12, %v11280_v14  ;;  %9603 = vmatprep.subr.bf16.mxu1 %v10249_v2  ;;  %v14780_v36 = vsel %vm11350_vm11, 4294967295, %v14779_v36 }
  0x7d   : > { %9524 = vmatmul.mubr.msk.bf16.gmra.mxu1 %vm10865_vm13, %v10903_v34  ;;  %9479 = vmatprep.mubr.msk.bf16.mxu0 %vm11300_vm10, %v11293_v47  ;;  %v14774_v34 = vmov 0  ;;  %vm11337_vm13 = vcmp.eq.s32.totalorder %v366_v42, 15  ;;  %v11354_v42 = vpack.c.bf16 %v1470_v6, %v1469_v45  ;;  %v1473_v45 = vld [vmem:[#allocation2 + $0x89] sm:$0xff]  ;;  %v1474_v6 = vld [vmem:[#allocation2 + $0x91] sm:$0xff] }
  0x7e   : > { %9527 = vmatprep.mubr.msk.bf16.mxu1 %vm10899_vm7, %v10942_v59  ;;  %9556 = vmatpush3.bf16.msra.mxu0 %v10243_v55  ;;  %v14775_v34 = vsel %vm11333_vm5, 4294967295, %v14774_v34  ;;  %v14777_v54 = vsel %vm11337_vm13, 4294967295, %v14776_v54  ;;  %v10245_v59 = vld [vmem:[%s14435_s1 + $0x118] sm:$0xff]   ;;  %v11344_v55 = vpack.c.bf16 %v1468_v25, %v1467_v52  ;;  %vm7893_vm14 = vmneg %vm11337_vm13  ;;  %vm11358_vm7 = vcmp.eq.s32.totalorder %v380_v22, 15 }
  0x7f   : > { %14778 = vst [vmem:[#allocation32_spill] sm:$0xff] %v14777_v54  ;;  %9557 = vmatprep.subr.bf16.mxu0 %v10244_v32  ;;  %9604 = vmatpush3.bf16.msra.mxu1 %v10249_v2  ;;  %v14781_v2 = vmov 0  ;;  %v394_v52 = vand.u32 15, %v244_v53  ;;  %v1471_v25 = vld [vmem:[#allocation2 + $0x79] sm:$0xff]  ;;  %v1472_v53 = vld [vmem:[#allocation2 + $0x81] sm:$0xff]  ;;  %vm11382_vm0 = vmpackc.low %vm7893_vm14, %vm14697_vm6  ;;  %v408_v22 = vand.u32 15, %v246_v0 }
  0x80   : > { %9605 = vmatprep.subr.bf16.mxu1 %v10250_v23  ;;  %v14782_v2 = vsel %vm11358_vm7, 4294967295, %v14781_v2  ;;  %v10251_v54 = vld [vmem:[%s14435_s1 + $0x108] sm:$0xff]   ;;  %v11398_v35 = vpack.c.bf16 %v1472_v53, %v1471_v25  ;;  %v248_v0 = vadd.s32 184, %v10745_v9  ;;  %v14791_v53 = vmov 0 }
  0x81   : > { %14783 = vst [vmem:[#allocation33_spill] sm:$0xff] %v14782_v2  ;;  %vm11391_vm3 = vcmp.eq.s32.totalorder %v394_v52, 15  ;;  %v14789_v52 = vmov 0  ;;  %v1476_v25 = vld [vmem:[#allocation2 + $0xa1] sm:$0xff]  ;;  %vm11413_vm13 = vcmp.eq.s32.totalorder %v408_v22, 15 }
  0x82   : > { %9558 = vmatpush3.bf16.msra.mxu0 %v10244_v32  ;;  %v10253_v32 = vld [vmem:[%s14435_s1 + $0x150] sm:$0xff]   ;;  %v14792_v53 = vsel %vm11413_vm13, 4294967295, %v14791_v53  ;;  %v10254_v2 = vld [vmem:[%s14435_s1 + $0x100] sm:$0xff]   ;;  %v422_v22 = vand.u32 15, %v248_v0  ;;  %v14796_v0 = vmov 0 }
  0x83   : > { %9559 = vmatprep.subr.bf16.mxu0 %v10245_v59  ;;  %9606 = vmatpush3.bf16.msra.mxu1 %v10250_v23  ;;  %v14784_v23 = vmov 0  ;;  %14793 = vst [vmem:[#allocation35_spill] sm:$0xff] %v14792_v53 }
  0x84   : > { %9480 = vmatmul.mubr.msk.bf16.gmra.mxu0 %vm11333_vm5, %v11344_v55  ;;  %9607 = vmatprep.subr.bf16.mxu1 %v10252_v41  ;;  %v14785_v23 = vsel %vm11382_vm0, 4294967295, %v14784_v23 }
  0x85   : > { %9528 = vmatmul.mubr.msk.bf16.gmra.mxu1 %vm10921_vm9, %v10957_v63  ;;  %9483 = vmatprep.mubr.msk.bf16.mxu0 %vm11350_vm11, %v11354_v42  ;;  %vm7897_vm9 = vmneg %vm11358_vm7  ;;  %v14786_v63 = vmov 0 }
  0x86   : > { %9531 = vmatprep.mubr.msk.bf16.mxu1 %vm10953_vm15, %v11009_v29  ;;  %v14787_v63 = vsel %vm11391_vm3, 4294967295, %v14786_v63  ;;  %9560 = vmatpush3.bf16.msra.mxu0 %v10245_v59  ;;  %v10255_v29 = vld [vmem:[%s14435_s1 + $0x148] sm:$0xff]   ;;  %vm11404_vm14 = vmpackc.low %vm7897_vm9, %vm14697_vm6  ;;  %v11408_v59 = vpack.c.bf16 %v1474_v6, %v1473_v45  ;;  %v250_v45 = vadd.s32 200, %v10745_v9  ;;  %v1478_v6 = vld [vmem:[#allocation2 + $0xb1] sm:$0xff]  ;;  %vm14805_vm15 = vnez %v14716_v19 }
  0x87   : > { %14788 = vst [vmem:[#allocation34_spill] sm:$0xff] %v14787_v63  ;;  %9561 = vmatprep.subr.bf16.mxu0 %v10248_v61  ;;  %9608 = vmatpush3.bf16.msra.mxu1 %v10252_v41  ;;  %v14790_v52 = vsel %vm11404_vm14, 4294967295, %v14789_v52  ;;  %vm7901_vm7 = vmneg %vm11391_vm3  ;;  %v1475_v41 = vld [vmem:[#allocation2 + $0x99] sm:$0xff] }
  0x88   : > { %9609 = vmatprep.subr.bf16.mxu1 %v10253_v32  ;;  %vm7905_vm9 = vmneg %vm11413_vm13  ;;  %v11443_v17 = vpack.c.bf16 %v1476_v25, %v1475_v41  ;;  %v436_v7 = vand.u32 15, %v250_v45  ;;  %v252_v41 = vadd.s32 216, %v10745_v9  ;;  %v14798_v25 = vmov 0 }
  0x89   : > { %vm11454_vm13 = vmpackc.low %vm7901_vm7, %vm14697_vm6  ;;  %v254_v45 = vadd.s32 232, %v10745_v9 }
  0x8a   : > { %9562 = vmatpush3.bf16.msra.mxu0 %v10248_v61  ;;  %v10256_v61 = vld [vmem:[%s14435_s1 + $0x140] sm:$0xff]   ;;  %vm11475_vm7 = vcmp.eq.s32.totalorder %v436_v7, 15  ;;  %v1481_v7 = vld [vmem:[#allocation2 + $0xc9] sm:$0xff] }
  0x8b   : > { %9563 = vmatprep.subr.bf16.mxu0 %v10251_v54  ;;  %9610 = vmatpush3.bf16.msra.mxu1 %v10253_v32  ;;  %v1477_v32 = vld [vmem:[#allocation2 + $0xa9] sm:$0xff]  ;;  %v464_v53 = vand.u32 15, %v254_v45  ;;  %v1483_v45 = vld [vmem:[#allocation2 + $0xd9] sm:$0xff] }
  0x8c   : > { %9484 = vmatmul.mubr.msk.bf16.gmra.mxu0 %vm11382_vm0, %v11398_v35  ;;  %9611 = vmatprep.subr.bf16.mxu1 %v10255_v29 }
  0x8d   : > { %9532 = vmatmul.mubr.msk.bf16.gmra.mxu1 %vm11005_vm2, %v11025_v39  ;;  %9487 = vmatprep.mubr.msk.bf16.mxu0 %vm11404_vm14, %v11408_v59  ;;  %v11441_v39 = vld [vmem:[%s14435_s1 + $0x1b8] sm:$0xff]   ;;  %vm11466_vm2 = vcmp.eq.s32.totalorder %v422_v22, 15  ;;  %v450_v22 = vand.u32 15, %v252_v41  ;;  %v14810_v41 = vmov 0 }
  0x8e   : > { %9535 = vmatprep.mubr.msk.bf16.mxu1 %vm11021_vm1, %v11062_v8  ;;  %9564 = vmatpush3.bf16.msra.mxu0 %v10251_v54  ;;  %v11448_v8 = vld [vmem:[%s14435_s1 + $0x1f8] sm:$0xff]   ;;  %v14794_v54 = vmov 0  ;;  %vm11461_vm1 = vmpackc.low %vm7905_vm9, %vm14697_vm6  ;;  %v14799_v25 = vsel %vm11466_vm2, 4294967295, %v14798_v25  ;;  %vm14804_vm9 = vnez %v14711_v5 }
  0x8f   : > { %9565 = vmatprep.subr.bf16.mxu0 %v10254_v2  ;;  %9612 = vmatpush3.bf16.msra.mxu1 %v10255_v29  ;;  %v14795_v54 = vsel %vm11454_vm13, 4294967295, %v14794_v54  ;;  %v11458_v29 = vpack.c.bf16 %v1478_v6, %v1477_v32  ;;  %v14797_v0 = vsel %vm11461_vm1, 4294967295, %v14796_v0  ;;  %14800 = vst [vmem:[#allocation36_spill] sm:$0xff] %v14799_v25  ;;  %v1479_v32 = vld [vmem:[#allocation2 + $0xb9] sm:$0xff]  ;;  %v14801_v6 = vmov 0  ;;  %vm7909_vm3 = vmneg %vm11466_vm2 }
  0x90   : > { %9613 = vmatprep.subr.bf16.mxu1 %v10256_v61  ;;  %v14802_v6 = vsel %vm11475_vm7, 4294967295, %v14801_v6 }
  0x91   : > { %14803 = vst [vmem:[#allocation37_spill] sm:$0xff] %v14802_v6 }
  0x92   : > { %9566 = vmatpush3.bf16.msra.mxu0 %v10254_v2  ;;  %v256_v2 = vadd.s32 248, %v10745_v9  ;;  %v1482_v9 = vld [vmem:[#allocation2 + $0xd1] sm:$0xff] }
  0x93   : > { %9614 = vmatpush3.bf16.msra.mxu1 %v10256_v61  ;;  %9647 = vmatprep.subr.bf16.mxu0 %v11441_v39  ;;  %v1480_v61 = vld [vmem:[#allocation2 + $0xc1] sm:$0xff]  ;;  %v11501_v25 = vpack.c.bf16 %v1482_v9, %v1481_v7  ;;  %v1486_v7 = vld [vmem:[#allocation2 + $0xf1] sm:$0xff] }
  0x94   : > { %9488 = vmatmul.mubr.msk.bf16.gmra.mxu0 %vm11454_vm13, %v11443_v17  ;;  %9695 = vmatprep.subr.bf16.mxu1 %v11448_v8  ;;  %vm7913_vm13 = vmneg %vm11475_vm7  ;;  %v478_v63 = vand.u32 15, %v256_v2  ;;  %vm11512_vm7 = vcmp.eq.s32.totalorder %v464_v53, 15  ;;  %v1484_v2 = vld [vmem:[#allocation2 + $0xe1] sm:$0xff]  ;;  %v1485_v53 = vld [vmem:[#allocation2 + $0xe9] sm:$0xff] }
  0x95   : > { %9536 = vmatmul.mubr.msk.bf16.gmra.mxu1 %vm14804_vm9, %v11065_v13  ;;  %9491 = vmatprep.mubr.msk.bf16.mxu0 %vm11461_vm1, %v11458_v29  ;;  %v11494_v13 = vpack.c.bf16 %v1480_v61, %v1479_v32  ;;  %vm11497_vm9 = vmpackc.low %vm7909_vm3, %vm14697_vm6  ;;  %v14813_v32 = vmov 0  ;;  %v14816_v61 = vmov 0  ;;  %v11545_v9 = vpack.c.bf16 %v1486_v7, %v1485_v53  ;;  %v2198_v53 = vld [vmem:[#allocation2 + $0x20] sm:$0xff]  ;;  %v1890_v7 = vld [vmem:[#allocation2 + $0x10f] sm:$0xff] }
  0x96   : > { %9539 = vmatprep.mubr.msk.bf16.mxu1 %vm14805_vm15, %v11102_v37  ;;  %v14807_v57 = vsel %vm11497_vm9, 4294967295, %v14806_v57  ;;  %vm11504_vm2 = vmpackc.low %vm7913_vm13, %vm14697_vm6  ;;  %vm11508_vm15 = vcmp.eq.s32.totalorder %v450_v22, 15  ;;  %v14814_v32 = vsel %vm11512_vm7, 4294967295, %v14813_v32  ;;  %vm11519_vm3 = vcmp.eq.s32.totalorder %v478_v63, 15 }
  0x97   : > { %v14811_v41 = vsel %vm11508_vm15, 4294967295, %v14810_v41  ;;  %14815 = vst [vmem:[#allocation39_spill] sm:$0xff] %v14814_v32  ;;  %v14817_v61 = vsel %vm11519_vm3, 4294967295, %v14816_v61  ;;  %vm14819_vm13 = vnez %v14722_v43  ;;  %vm7917_vm1 = vmneg %vm11508_vm15  ;;  %v14821_v63 = vmov 0 }
  0x98   : > { %14812 = vst [vmem:[#allocation38_spill] sm:$0xff] %v14811_v41  ;;  %14818 = vst [vmem:[#allocation40_spill] sm:$0xff] %v14817_v61  ;;  %v14823_v22 = vmov 0  ;;  %v2197_v61 = vld [vmem:[#allocation2 + $0x18] sm:$0xff] }
  0x99   : > { %vm7921_vm14 = vmneg %vm11512_vm7  ;;  %v2229_v51 = vpack.c.bf16 %v2198_v53, %v2197_v61  ;;  %v2203_v53 = vld [vmem:[#allocation2 + $0x48] sm:$0xff] }
  0x9a   : > { %vm7925_vm0 = vmneg %vm11519_vm3  ;;  %vm14831_vm3 = vnez %v14785_v23 }
  0x9b   : > { %vm11548_vm15 = vmpackc.low %vm7921_vm14, %vm14697_vm6  ;;  %vm14830_vm14 = vnez %v14744_v3  ;;  %v2206_v3 = vld [vmem:[#allocation2 + $0x60] sm:$0xff] }
  0x9c   : > { %9492 = vmatmul.mubr.msk.bf16.gmra.mxu0 %vm11497_vm9, %v11494_v13  ;;  %vm14820_vm9 = vnez %v14724_v46  ;;  %v14824_v22 = vsel %vm11548_vm15, 4294967295, %v14823_v22  ;;  %vm11553_vm7 = vmpackc.low %vm7925_vm0, %vm14697_vm6  ;;  %vm14829_vm0 = vnez %v14742_v56 }
  0x9d   : > { %9540 = vmatmul.mubr.msk.bf16.gmra.mxu1 %vm14819_vm13, %v11113_v44  ;;  %9495 = vmatprep.mubr.msk.bf16.mxu0 %vm11504_vm2, %v11501_v25  ;;  %v11538_v44 = vpack.c.bf16 %v1484_v2, %v1483_v45  ;;  %vm11541_vm13 = vmpackc.low %vm7917_vm1, %vm14697_vm6  ;;  %v1488_v45 = vld [vmem:[#allocation2 + $0x101] sm:$0xff]  ;;  %vm14827_vm1 = vnez %v14732_v18  ;;  %vm14828_vm6 = vnez %v14737_v24 }
  0x9e   : > { %9543 = vmatprep.mubr.msk.bf16.mxu1 %vm14820_vm9, %v11141_v10  ;;  %v14822_v63 = vsel %vm11541_vm13, 4294967295, %v14821_v63  ;;  %v1487_v10 = vld [vmem:[#allocation2 + $0xf9] sm:$0xff]  ;;  %v1889_v2 = vld [vmem:[#allocation2 + $0x107] sm:$0xff] }
  0x9f   : > { %v11569_v32 = vpack.c.bf16 %v1488_v45, %v1487_v10  ;;  %v11571_v41 = vpack.c.bf16 %v1890_v7, %v1889_v2  ;;  %v11582_v10 = vpack.c.bf16 %v2200_v15, %v2199_v48  ;;  %v10258_v45 = vld [vmem:[%s14435_s1 + $0x1b0] sm:$0xff]   ;;  %v2205_v7 = vld [vmem:[#allocation2 + $0x58] sm:$0xff]  ;;  %v10259_v15 = vld [vmem:[%s14435_s1 + $0x1a8] sm:$0xff]  }
  0xa0   : > { %v10263_v2 = vld [vmem:[%s14435_s1 + $0x1f0] sm:$0xff]   ;;  %v10265_v48 = vld [vmem:[%s14435_s1 + $0x1e8] sm:$0xff]  }
  0xa4   : > { %9496 = vmatmul.mubr.msk.bf16.gmra.mxu0 %vm11541_vm13, %v11538_v44 }
  0xa5   : > { %9544 = vmatmul.mubr.msk.bf16.gmra.mxu1 %vm14827_vm1, %v11151_v21  ;;  %9499 = vmatprep.mubr.msk.bf16.mxu0 %vm11548_vm15, %v11545_v9  ;;  %v2201_v21 = vld [vmem:[#allocation2 + $0x38] sm:$0xff] }
  0xa6   : > { %9547 = vmatprep.mubr.msk.bf16.mxu1 %vm14828_vm6, %v11194_v58  ;;  %v2202_v58 = vld [vmem:[#allocation2 + $0x40] sm:$0xff] }
  0xa7   : > { %v11584_v61 = vpack.c.bf16 %v2202_v58, %v2201_v21  ;;  %v10266_v21 = vld [vmem:[%s14435_s1 + $0x1e0] sm:$0xff]   ;;  %v2207_v58 = vld [vmem:[#allocation2 + $0x68] sm:$0xff] }
  0xac   : > { %9500 = vmatmul.mubr.msk.bf16.gmra.mxu0 %vm11553_vm7, %v11569_v32 }
  0xad   : > { %9548 = vmatmul.mubr.msk.bf16.gmra.mxu1 %vm14829_vm0, %v11571_v41  ;;  %9567 = vmatprep.mubr.bf16.mxu0 %v2229_v51  ;;  %v2204_v51 = vld [vmem:[#allocation2 + $0x50] sm:$0xff] }
  0xae   : > { %9615 = vmatprep.mubr.msk.bf16.mxu1 %vm14830_vm14, %v11223_v49  ;;  %v11608_v49 = vpack.c.bf16 %v2204_v51, %v2203_v53  ;;  %v2211_v53 = vld [vmem:[#allocation2 + $0x88] sm:$0xff]  ;;  %v2212_v51 = vld [vmem:[#allocation2 + $0x90] sm:$0xff] }
  0xb4   : > { %9568 = vmatmul.mubr.bf16.vlgmr.msra.gmra.mxu0 %v11582_v10 }
  0xb5   : > { %9648 = vmatpush3.bf16.msra.mxu0 %v11441_v39  ;;  %9616 = vmatmul.mubr.msk.bf16.vlgmr.msra.gmra.mxu1 %vm11230_vm4, %v11240_v26  ;;  %v11610_v39 = vpack.c.bf16 %v2206_v3, %v2205_v7  ;;  %v10260_v26 = vld [vmem:[%s14435_s1 + $0x1a0] sm:$0xff]   ;;  %v10261_v3 = vld [vmem:[%s14435_s1 + $0x198] sm:$0xff]  }
  0xb6   : > { %9571 = vmatprep.mubr.bf16.mxu0 %v11584_v61  ;;  %9649 = vmatprep.subr.bf16.mxu0 %v10258_v45  ;;  %v2213_v7 = vld [vmem:[#allocation2 + $0x98] sm:$0xff] }
  0xb7   : > { %9619 = vmatprep.mubr.msk.bf16.mxu1 %vm11236_vm8, %v11280_v14  ;;  %9696 = vmatpush3.bf16.msra.mxu1 %v11448_v8  ;;  %v2209_v14 = vld [vmem:[#allocation2 + $0x78] sm:$0xff]  ;;  %v2210_v8 = vld [vmem:[#allocation2 + $0x80] sm:$0xff] }
  0xb8   : > { %9697 = vmatprep.subr.bf16.mxu1 %v10263_v2 }
  0xb9   : > { %9650 = vmatpush3.bf16.msra.mxu0 %v10258_v45  ;;  %v11629_v45 = vpack.c.bf16 %v2208_v1, %v2207_v58  ;;  %v10269_v1 = vld [vmem:[%s14435_s1 + $0x1d0] sm:$0xff]   ;;  %v10272_v58 = vld [vmem:[%s14435_s1 + $0x1c0] sm:$0xff]  }
  0xba   : > { %9651 = vmatprep.subr.bf16.mxu0 %v10259_v15 }
  0xbb   : > { %9698 = vmatpush3.bf16.msra.mxu1 %v10263_v2  ;;  %v11634_v2 = vpack.c.bf16 %v2210_v8, %v2209_v14  ;;  %v2215_v14 = vld [vmem:[#allocation2 + $0xa8] sm:$0xff]  ;;  %v2216_v8 = vld [vmem:[#allocation2 + $0xb0] sm:$0xff] }
  0xbc   : > { %9572 = vmatmul.mubr.bf16.gmra.mxu0 %v11608_v49  ;;  %9699 = vmatprep.subr.bf16.mxu1 %v10265_v48 }
  0xbd   : > { %9620 = vmatmul.mubr.msk.bf16.gmra.mxu1 %vm11289_vm12, %v11293_v47  ;;  %9575 = vmatprep.mubr.bf16.mxu0 %v11610_v39  ;;  %v10268_v47 = vld [vmem:[%s14435_s1 + $0x1d8] sm:$0xff]  }
  0xbe   : > { %9623 = vmatprep.mubr.msk.bf16.mxu1 %vm11300_vm10, %v11344_v55  ;;  %9652 = vmatpush3.bf16.msra.mxu0 %v10259_v15  ;;  %v10264_v55 = vld [vmem:[%s14435_s1 + $0x190] sm:$0xff]   ;;  %v2214_v15 = vld [vmem:[#allocation2 + $0xa0] sm:$0xff] }
  0xbf   : > { %9653 = vmatprep.subr.bf16.mxu0 %v10260_v26  ;;  %9700 = vmatpush3.bf16.msra.mxu1 %v10265_v48  ;;  %v10267_v48 = vld [vmem:[%s14435_s1 + $0x188] sm:$0xff]  }
  0xc0   : > { %9701 = vmatprep.subr.bf16.mxu1 %v10266_v21 }
  0xc2   : > { %9654 = vmatpush3.bf16.msra.mxu0 %v10260_v26  ;;  %v11653_v26 = vpack.c.bf16 %v2212_v51, %v2211_v53  ;;  %v2220_v53 = vld [vmem:[#allocation2 + $0xd0] sm:$0xff]  ;;  %v2221_v51 = vld [vmem:[#allocation2 + $0xd8] sm:$0xff] }
  0xc3   : > { %9655 = vmatprep.subr.bf16.mxu0 %v10261_v3  ;;  %9702 = vmatpush3.bf16.msra.mxu1 %v10266_v21  ;;  %v11658_v21 = vpack.c.bf16 %v2214_v15, %v2213_v7  ;;  %v2222_v7 = vld [vmem:[#allocation2 + $0xe0] sm:$0xff] }
  0xc4   : > { %9576 = vmatmul.mubr.bf16.gmra.mxu0 %v11629_v45  ;;  %9703 = vmatprep.subr.bf16.mxu1 %v10268_v47 }
  0xc5   : > { %9624 = vmatmul.mubr.msk.bf16.gmra.mxu1 %vm11333_vm5, %v11354_v42  ;;  %9579 = vmatprep.mubr.bf16.mxu0 %v11634_v2  ;;  %v10271_v42 = vld [vmem:[%s14435_s1 + $0x1c8] sm:$0xff]   ;;  %vm14835_vm5 = vnez %v14807_v57 }
  0xc6   : > { %9627 = vmatprep.mubr.msk.bf16.mxu1 %vm11350_vm11, %v11398_v35  ;;  %9656 = vmatpush3.bf16.msra.mxu0 %v10261_v3  ;;  %v10270_v35 = vld [vmem:[%s14435_s1 + $0x180] sm:$0xff]   ;;  %vm14832_vm11 = vnez %v14790_v52  ;;  %v2217_v3 = vld [vmem:[#allocation2 + $0xb8] sm:$0xff] }
  0xc7   : > { %9657 = vmatprep.subr.bf16.mxu0 %v10264_v55  ;;  %9704 = vmatpush3.bf16.msra.mxu1 %v10268_v47  ;;  %v2218_v47 = vld [vmem:[#allocation2 + $0xc0] sm:$0xff] }
  0xc8   : > { %9705 = vmatprep.subr.bf16.mxu1 %v10269_v1 }
  0xca   : > { %9658 = vmatpush3.bf16.msra.mxu0 %v10264_v55  ;;  %v10273_v55 = vld [vmem:[%s14435_s1 + $0x238] sm:$0xff]  }
  0xcb   : > { %9659 = vmatprep.subr.bf16.mxu0 %v10267_v48  ;;  %9706 = vmatpush3.bf16.msra.mxu1 %v10269_v1  ;;  %v11677_v1 = vpack.c.bf16 %v2216_v8, %v2215_v14  ;;  %v10274_v8 = vld [vmem:[%s14435_s1 + $0x230] sm:$0xff]  }
  0xcc   : > { %9580 = vmatmul.mubr.bf16.gmra.mxu0 %v11653_v26  ;;  %9707 = vmatprep.subr.bf16.mxu1 %v10271_v42 }
  0xcd   : > { %9628 = vmatmul.mubr.msk.bf16.gmra.mxu1 %vm14831_vm3, %v11408_v59  ;;  %9583 = vmatprep.mubr.bf16.mxu0 %v11658_v21  ;;  %v11679_v59 = vpack.c.bf16 %v2218_v47, %v2217_v3  ;;  %vm14834_vm3 = vnez %v14797_v0 }
  0xce   : > { %9631 = vmatprep.mubr.msk.bf16.mxu1 %vm14832_vm11, %v11443_v17  ;;  %9660 = vmatpush3.bf16.msra.mxu0 %v10267_v48  ;;  %vm14833_vm11 = vnez %v14795_v54  ;;  %v2219_v17 = vld [vmem:[#allocation2 + $0xc8] sm:$0xff]  ;;  %v11691_v48 = vpack.c.bf16 %v2222_v7, %v2221_v51 }
  0xcf   : > { %9661 = vmatprep.subr.bf16.mxu0 %v10270_v35  ;;  %9708 = vmatpush3.bf16.msra.mxu1 %v10271_v42  ;;  %v11689_v15 = vpack.c.bf16 %v2220_v53, %v2219_v17  ;;  %v2842_v42 = vld [vmem:[#allocation2 + $0x2f] sm:$0xff]  ;;  %v2848_v17 = vld [vmem:[#allocation2 + $0x5f] sm:$0xff]  ;;  %v2849_v51 = vld [vmem:[#allocation2 + $0x67] sm:$0xff] }
  0xd0   : > { %9709 = vmatprep.subr.bf16.mxu1 %v10272_v58  ;;  %v2850_v7 = vld [vmem:[#allocation2 + $0x6f] sm:$0xff] }
  0xd2   : > { %9662 = vmatpush3.bf16.msra.mxu0 %v10270_v35 }
  0xd3   : > { %9710 = vmatpush3.bf16.msra.mxu1 %v10272_v58  ;;  %9743 = vmatprep.subr.bf16.mxu0 %v10273_v55 }
  0xd4   : > { %9584 = vmatmul.mubr.bf16.gmra.mxu0 %v11677_v1 }
  0xd5   : > { %9632 = vmatmul.mubr.msk.bf16.gmra.mxu1 %vm14833_vm11, %v11458_v29  ;;  %9587 = vmatprep.mubr.bf16.mxu0 %v11679_v59  ;;  %v2533_v29 = vld [vmem:[#allocation2 + $0x109] sm:$0xff] }
  0xd6   : > { %9635 = vmatprep.mubr.msk.bf16.mxu1 %vm14834_vm3, %v11494_v13  ;;  %v2841_v13 = vld [vmem:[#allocation2 + $0x27] sm:$0xff] }
  0xd7   : > { %v8155_v58 = vpack.c.bf16 %v2842_v42, %v2841_v13  ;;  %v8171_v42 = vpack.c.bf16 %v2850_v7, %v2849_v51 }
  0xdc   : > { %9588 = vmatmul.mubr.bf16.gmra.mxu0 %v11689_v15 }
  0xdd   : > { %9636 = vmatmul.mubr.msk.bf16.gmra.mxu1 %vm14835_vm5, %v11501_v25  ;;  %9591 = vmatprep.mubr.bf16.mxu0 %v11691_v48  ;;  %v2534_v25 = vld [vmem:[#allocation2 + $0x111] sm:$0xff] }
  0xde   : > { %9639 = vmatprep.mubr.msk.bf16.mxu1 %vm11504_vm2, %v11538_v44  ;;  %v11709_v35 = vpack.c.bf16 %v2534_v25, %v2533_v29  ;;  %v2846_v44 = vld [vmem:[#allocation2 + $0x4f] sm:$0xff] }
  0xe4   : > { %9592 = vmatmul.mubr.bf16.gmra.mxu0 %v11144_v12  ;;  %v2843_v12 = vld [vmem:[#allocation2 + $0x37] sm:$0xff] }
  0xe5   : > { %9640 = vmatmul.mubr.msk.bf16.gmra.mxu1 %vm11541_vm13, %v11545_v9  ;;  %9595 = vmatprep.mubr.bf16.mxu0 %v11186_v50  ;;  %vm14836_vm13 = vnez %v14660_v20  ;;  %v2844_v50 = vld [vmem:[#allocation2 + $0x3f] sm:$0xff]  ;;  %v2847_v20 = vld [vmem:[#allocation2 + $0x57] sm:$0xff] }
  0xe6   : > { %9643 = vmatprep.mubr.msk.bf16.mxu1 %vm11548_vm15, %v11569_v32  ;;  %v2845_v32 = vld [vmem:[#allocation2 + $0x47] sm:$0xff]  ;;  %v8159_v9 = vpack.c.bf16 %v2844_v50, %v2843_v12  ;;  %vm14837_vm15 = vnez %v14671_v4  ;;  %v8167_v25 = vpack.c.bf16 %v2848_v17, %v2847_v20  ;;  %v2854_v20 = vld [vmem:[#allocation2 + $0x8f] sm:$0xff] }
  0xe7   : > { %v8163_v14 = vpack.c.bf16 %v2846_v44, %v2845_v32  ;;  %v10275_v4 = vld [vmem:[%s14435_s1 + $0x228] sm:$0xff]   ;;  %v10276_v50 = vld [vmem:[%s14435_s1 + $0x220] sm:$0xff]  }
  0xec   : > { %9596 = vmatmul.mubr.bf16.gmra.mxu0 %v11246_v27 }
  0xed   : > { %9644 = vmatmul.mubr.msk.bf16.gmra.mxu1 %vm11553_vm7, %v11709_v35  ;;  %9663 = vmatprep.mubr.msk.bf16.mxu0 %vm14836_vm13, %v8155_v58  ;;  %vm14838_vm13 = vnez %v14676_v11 }
  0xee   : > { %9711 = vmatprep.mubr.bf16.mxu1 %v11582_v10 }
  0xf4   : > { %v9377_v3 = vpop.f32.mrf.mxu0  ;;  %9664 = vmatmul.mubr.msk.bf16.vlgmr.msra.gmra.mxu0 %vm14837_vm15, %v8159_v9  ;;  %vm14839_vm15 = vnez %v14678_v16  ;;  %v2851_v9 = vld [vmem:[#allocation2 + $0x77] sm:$0xff] }
  0xf5   : > { %v9425_v47 = vpop.f32.mrf.mxu1  ;;  %9744 = vmatpush3.bf16.msra.mxu0 %v10273_v55  ;;  %9712 = vmatmul.mubr.bf16.vlgmr.msra.gmra.mxu1 %v11584_v61  ;;  %v10277_v16 = vld [vmem:[%s14435_s1 + $0x218] sm:$0xff]  }
  0xf6   : > { %v11724_v53 = vadd.f32 %v9425_v47, %v9377_v3  ;;  %v1121_v10 = vpop.f32.mrf.mxu0  ;;  %9667 = vmatprep.mubr.msk.bf16.mxu0 %vm14838_vm13, %v8163_v14  ;;  %9745 = vmatprep.subr.bf16.mxu0 %v10274_v8  ;;  %vm14840_vm13 = vnez %v14683_v33  ;;  %v2852_v14 = vld [vmem:[#allocation2 + $0x7f] sm:$0xff]  ;;  %v2853_v47 = vld [vmem:[#allocation2 + $0x87] sm:$0xff] }
  0xf7   : > { %v1330_v29 = vpop.f32.mrf.mxu1  ;;  %9715 = vmatprep.mubr.bf16.mxu1 %v11608_v49  ;;  %v8179_v7 = vpack.c.bf16 %v2854_v20, %v2853_v47 }
  0xf8   : > { %v11732_v55 = vadd.f32 %v1330_v29, %v1121_v10  ;;  %v9378_v61 = vpop.f32.mrf.mxu0  ;;  %v8175_v10 = vpack.c.bf16 %v2852_v14, %v2851_v9  ;;  %v2858_v9 = vld [vmem:[#allocation2 + $0xaf] sm:$0xff] }
  0xf9   : > { %v9426_v13 = vpop.f32.mrf.mxu1  ;;  %9746 = vmatpush3.bf16.msra.mxu0 %v10274_v8 }
  0xfa   : > { %v11734_v58 = vadd.f32 %v9426_v13, %v9378_v61  ;;  %v1124_v11 = vpop.f32.mrf.mxu0  ;;  %9747 = vmatprep.subr.bf16.mxu0 %v10275_v4 }
  0xfb   : > { %v1333_v12 = vpop.f32.mrf.mxu1 }
  0xfc   : > { %v11739_v32 = vadd.f32 %v1333_v12, %v1124_v11  ;;  %v9381_v44 = vpop.f32.mrf.mxu0  ;;  %9668 = vmatmul.mubr.msk.bf16.gmra.mxu0 %vm14839_vm15, %v8167_v25  ;;  %vm14841_vm15 = vnez %v14688_v40  ;;  %v2855_v11 = vld [vmem:[#allocation2 + $0x97] sm:$0xff]  ;;  %v2856_v12 = vld [vmem:[#allocation2 + $0x9f] sm:$0xff]  ;;  %v10279_v40 = vld [vmem:[%s14435_s1 + $0x208] sm:$0xff]  }
  0xfd   : > { %v9429_v49 = vpop.f32.mrf.mxu1  ;;  %9716 = vmatmul.mubr.bf16.gmra.mxu1 %v11610_v39  ;;  %9671 = vmatprep.mubr.msk.bf16.mxu0 %vm14840_vm13, %v8171_v42  ;;  %vm14842_vm13 = vnez %v14693_v62 }
  0xfe   : > { %v11746_v8 = vadd.f32 %v9429_v49, %v9381_v44  ;;  %v1137_v3 = vpop.f32.mrf.mxu0  ;;  %9719 = vmatprep.mubr.bf16.mxu1 %v11629_v45  ;;  %9748 = vmatpush3.bf16.msra.mxu0 %v10275_v4  ;;  %v10278_v4 = vld [vmem:[%s14435_s1 + $0x210] sm:$0xff]   ;;  %v2857_v49 = vld [vmem:[#allocation2 + $0xa7] sm:$0xff] }
  0xff   : > { %v1346_v17 = vpop.f32.mrf.mxu1  ;;  %9749 = vmatprep.subr.bf16.mxu0 %v10276_v50  ;;  %v8187_v20 = vpack.c.bf16 %v2858_v9, %v2857_v49 }
 0x100   : > { %v11752_v39 = vadd.f32 %v1346_v17, %v1137_v3  ;;  %v9382_v33 = vpop.f32.mrf.mxu0  ;;  %v8183_v3 = vpack.c.bf16 %v2856_v12, %v2855_v11  ;;  %v2862_v11 = vld [vmem:[#allocation2 + $0xcf] sm:$0xff] }
 0x101   : > { %v9430_v51 = vpop.f32.mrf.mxu1 }
 0x102   : > { %v11754_v29 = vadd.f32 %v9430_v51, %v9382_v33  ;;  %v1140_v61 = vpop.f32.mrf.mxu0  ;;  %9750 = vmatpush3.bf16.msra.mxu0 %v10276_v50 }
 0x103   : > { %v1349_v45 = vpop.f32.mrf.mxu1  ;;  %9751 = vmatprep.subr.bf16.mxu0 %v10277_v16 }
 0x104   : > { %v11759_v25 = vadd.f32 %v1349_v45, %v1140_v61  ;;  %v9385_v13 = vpop.f32.mrf.mxu0  ;;  %9672 = vmatmul.mubr.msk.bf16.gmra.mxu0 %vm14841_vm15, %v8175_v10  ;;  %vm14843_vm15 = vnez %v14699_v28  ;;  %v2859_v61 = vld [vmem:[#allocation2 + $0xb7] sm:$0xff]  ;;  %v2860_v45 = vld [vmem:[#allocation2 + $0xbf] sm:$0xff] }
 0x105   : > { %v9433_v42 = vpop.f32.mrf.mxu1  ;;  %9720 = vmatmul.mubr.bf16.gmra.mxu1 %v11634_v2  ;;  %9675 = vmatprep.mubr.msk.bf16.mxu0 %vm14842_vm13, %v8179_v7  ;;  %vm14844_vm13 = vnez %v14705_v38  ;;  %v8191_v49 = vpack.c.bf16 %v2860_v45, %v2859_v61  ;;  %v3203_v61 = vld [vmem:[#allocation2 + $0xe8] sm:$0xff]  ;;  %v3204_v45 = vld [vmem:[#allocation2 + $0xf0] sm:$0xff] }
 0x106   : > { %v11766_v50 = vadd.f32 %v9433_v42, %v9385_v13  ;;  %v1153_v44 = vpop.f32.mrf.mxu0  ;;  %9723 = vmatprep.mubr.bf16.mxu1 %v11653_v26  ;;  %9752 = vmatpush3.bf16.msra.mxu0 %v10277_v16  ;;  %v10280_v16 = vld [vmem:[%s14435_s1 + $0x200] sm:$0xff]  }
 0x107   : > { %v1362_v14 = vpop.f32.mrf.mxu1  ;;  %9753 = vmatprep.subr.bf16.mxu0 %v10278_v4  ;;  %v2861_v42 = vld [vmem:[#allocation2 + $0xc7] sm:$0xff] }
 0x108   : > { %v11772_v2 = vadd.f32 %v1362_v14, %v1153_v44  ;;  %v9386_v62 = vpop.f32.mrf.mxu0  ;;  %v8195_v9 = vpack.c.bf16 %v2862_v11, %v2861_v42 }
 0x109   : > { %v9434_v47 = vpop.f32.mrf.mxu1 }
 0x10a   : > { %v11774_v17 = vadd.f32 %v9434_v47, %v9386_v62  ;;  %v1156_v33 = vpop.f32.mrf.mxu0  ;;  %9754 = vmatpush3.bf16.msra.mxu0 %v10278_v4 }
 0x10b   : > { %v1365_v26 = vpop.f32.mrf.mxu1  ;;  %9755 = vmatprep.subr.bf16.mxu0 %v10279_v40 }
 0x10c   : > { %v11779_v10 = vadd.f32 %v1365_v26, %v1156_v33  ;;  %v9389_v51 = vpop.f32.mrf.mxu0  ;;  %9676 = vmatmul.mubr.msk.bf16.gmra.mxu0 %vm14843_vm15, %v8183_v3  ;;  %vm14845_vm15 = vnez %v14711_v5 }
 0x10d   : > { %v9437_v7 = vpop.f32.mrf.mxu1  ;;  %9724 = vmatmul.mubr.bf16.gmra.mxu1 %v11658_v21  ;;  %9679 = vmatprep.mubr.msk.bf16.mxu0 %vm14844_vm13, %v8187_v20  ;;  %vm14846_vm13 = vnez %v14716_v19  ;;  %v2864_v20 = vld [vmem:[#allocation2 + $0xdf] sm:$0xff] }
 0x10e   : > { %v11786_v4 = vadd.f32 %v9437_v7, %v9389_v51  ;;  %v1169_v13 = vpop.f32.mrf.mxu0  ;;  %9727 = vmatprep.mubr.bf16.mxu1 %v11677_v1  ;;  %9756 = vmatpush3.bf16.msra.mxu0 %v10279_v40  ;;  %v2863_v40 = vld [vmem:[#allocation2 + $0xd7] sm:$0xff]  ;;  %v2866_v51 = vld [vmem:[#allocation2 + $0xef] sm:$0xff] }
 0x10f   : > { %v1378_v12 = vpop.f32.mrf.mxu1  ;;  %9757 = vmatprep.subr.bf16.mxu0 %v10280_v16  ;;  %v8199_v42 = vpack.c.bf16 %v2864_v20, %v2863_v40  ;;  %v3206_v40 = vld [vmem:[#allocation2 + $0x100] sm:$0xff] }
 0x110   : > { %v11789_v28 = vadd.f32 %v1378_v12, %v1169_v13  ;;  %v9390_v44 = vpop.f32.mrf.mxu0 }
 0x111   : > { %v9438_v21 = vpop.f32.mrf.mxu1 }
 0x112   : > { %v11791_v38 = vadd.f32 %v9438_v21, %v9390_v44  ;;  %v1172_v14 = vpop.f32.mrf.mxu0  ;;  %9758 = vmatpush3.bf16.msra.mxu0 %v10280_v16  ;;  %v2865_v16 = vld [vmem:[#allocation2 + $0xe7] sm:$0xff]  ;;  %v3223_v44 = vpack.c.bf16 %v3204_v45, %v3203_v61 }
 0x113   : > { %v1381_v62 = vpop.f32.mrf.mxu1  ;;  %v8203_v11 = vpack.c.bf16 %v2866_v51, %v2865_v16 }
 0x114   : > { %v11793_v3 = vadd.f32 %v1381_v62, %v1172_v14  ;;  %v9393_v47 = vpop.f32.mrf.mxu0  ;;  %9680 = vmatmul.mubr.msk.bf16.gmra.mxu0 %vm14845_vm15, %v8191_v49  ;;  %vm14847_vm15 = vnez %v14722_v43  ;;  %v2868_v14 = vld [vmem:[#allocation2 + $0xff] sm:$0xff] }
 0x115   : > { %v9441_v1 = vpop.f32.mrf.mxu1  ;;  %9728 = vmatmul.mubr.bf16.gmra.mxu1 %v11679_v59  ;;  %9683 = vmatprep.mubr.msk.bf16.mxu0 %vm14846_vm13, %v8195_v9  ;;  %v2867_v9 = vld [vmem:[#allocation2 + $0xf7] sm:$0xff] }
 0x116   : > { %v11800_v33 = vadd.f32 %v9441_v1, %v9393_v47  ;;  %v1185_v26 = vpop.f32.mrf.mxu0  ;;  %9731 = vmatprep.mubr.bf16.mxu1 %v11689_v15  ;;  %v3205_v1 = vld [vmem:[#allocation2 + $0xf8] sm:$0xff]  ;;  %v8207_v43 = vpack.c.bf16 %v2868_v14, %v2867_v9 }
 0x117   : > { %v1394_v7 = vpop.f32.mrf.mxu1 }
 0x118   : > { %v11803_v5 = vadd.f32 %v1394_v7, %v1185_v26  ;;  %v9394_v13 = vpop.f32.mrf.mxu0  ;;  %v3224_v7 = vpack.c.bf16 %v3206_v40, %v3205_v1  ;;  %v10573_v40 = vld [vmem:[#allocation2 + $0x8] sm:$0xff] }
 0x119   : > { %v9442_v59 = vpop.f32.mrf.mxu1 }
 0x11a   : > { %v11805_v19 = vadd.f32 %v9442_v59, %v9394_v13  ;;  %v11807_v12 = vpop.f32.mrf.mxu0  ;;  %v2872_v59 = vld [vmem:[#allocation2 + $0x11f] sm:$0xff] }
 0x11b   : > { %v11809_v49 = vpop.f32.mrf.mxu1 }
 0x11c   : > { %v9397_v21 = vpop.f32.mrf.mxu0  ;;  %9684 = vmatmul.mubr.msk.bf16.gmra.mxu0 %vm14847_vm15, %v8199_v42  ;;  %v2871_v42 = vld [vmem:[#allocation2 + $0x117] sm:$0xff] }
 0x11d   : > { %v9445_v15 = vpop.f32.mrf.mxu1  ;;  %9732 = vmatmul.mubr.bf16.gmra.mxu1 %v11691_v48  ;;  %9687 = vmatprep.mubr.msk.bf16.mxu0 %vm14820_vm9, %v8203_v11 }
 0x11e   : > { %v11816_v62 = vadd.f32 %v9445_v15, %v9397_v21  ;;  %v1201_v47 = vpop.f32.mrf.mxu0  ;;  %9735 = vmatprep.mubr.bf16.mxu1 %v3223_v44  ;;  %v3485_v21 = vld [vmem:[#allocation2 + $0x29] sm:$0xff]  ;;  %v3486_v15 = vld [vmem:[#allocation2 + $0x31] sm:$0xff] }
 0x11f   : > { %v1410_v20 = vpop.f32.mrf.mxu1 }
 0x120   : > { %v11818_v26 = vadd.f32 %v1410_v20, %v1201_v47  ;;  %v9398_v16 = vpop.f32.mrf.mxu0  ;;  %v8215_v47 = vpack.c.bf16 %v2872_v59, %v2871_v42  ;;  %v3226_v20 = vpack.c.bf16 %v10573_v40, %v10573_v40 }
 0x121   : > { %v9446_v51 = vpop.f32.mrf.mxu1 }
 0x122   : > { %v11820_v61 = vadd.f32 %v9446_v51, %v9398_v16  ;;  %v11822_v48 = vpop.f32.mrf.mxu0  ;;  %v8267_v16 = vpack.c.bf16 %v3486_v15, %v3485_v21  ;;  %v3490_v21 = vld [vmem:[#allocation2 + $0x51] sm:$0xff] }
 0x123   : > { %v11824_v46 = vpop.f32.mrf.mxu1 }
 0x124   : > { %14848 = vst [vmem:[#allocation41_spill] sm:$0xff] %v11824_v46  ;;  %v9401_v45 = vpop.f32.mrf.mxu0  ;;  %9688 = vmatmul.mubr.msk.bf16.gmra.mxu0 %vm14827_vm1, %v8207_v43 }
 0x125   : > { %v9449_v13 = vpop.f32.mrf.mxu1  ;;  %9736 = vmatmul.mubr.bf16.gmra.mxu1 %v3224_v7  ;;  %9691 = vmatprep.mubr.msk.bf16.mxu0 %vm14828_vm6, %v11571_v41 }
 0x126   : > { %v11831_v11 = vadd.f32 %v9449_v13, %v9401_v45  ;;  %v1217_v44 = vpop.f32.mrf.mxu0  ;;  %9739 = vmatprep.mubr.bf16.mxu1 %v11246_v27  ;;  %v3487_v45 = vld [vmem:[#allocation2 + $0x39] sm:$0xff]  ;;  %v3488_v13 = vld [vmem:[#allocation2 + $0x41] sm:$0xff] }
 0x127   : > { %v1426_v9 = vpop.f32.mrf.mxu1 }
 0x128   : > { %v11834_v14 = vadd.f32 %v1426_v9, %v1217_v44  ;;  %v9402_v18 = vpop.f32.mrf.mxu0  ;;  %v3489_v44 = vld [vmem:[#allocation2 + $0x49] sm:$0xff] }
 0x129   : > { %v9450_v1 = vpop.f32.mrf.mxu1  ;;  %v8275_v56 = vpack.c.bf16 %v3490_v21, %v3489_v44  ;;  %v3493_v44 = vld [vmem:[#allocation2 + $0x69] sm:$0xff]  ;;  %v3494_v21 = vld [vmem:[#allocation2 + $0x71] sm:$0xff] }
 0x12a   : > { %v11836_v24 = vadd.f32 %v9450_v1, %v9402_v18  ;;  %v11838_v41 = vpop.f32.mrf.mxu0  ;;  %v8271_v1 = vpack.c.bf16 %v3488_v13, %v3487_v45  ;;  %v3492_v45 = vld [vmem:[#allocation2 + $0x61] sm:$0xff] }
 0x12b   : > { %14849 = vst [vmem:[#allocation42_spill] sm:$0xff] %v11838_v41  ;;  %v11840_v43 = vpop.f32.mrf.mxu1 }
 0x12c   : > { %14850 = vst [vmem:[#allocation43_spill] sm:$0xff] %v11840_v43  ;;  %v9405_v51 = vpop.f32.mrf.mxu0  ;;  %9692 = vmatmul.mubr.msk.bf16.gmra.mxu0 %vm14829_vm0, %v8215_v47 }
 0x12d   : > { %v9453_v27 = vpop.f32.mrf.mxu1  ;;  %9740 = vmatmul.mubr.bf16.gmra.mxu1 %v3226_v20  ;;  %9759 = vmatprep.mubr.msk.bf16.mxu0 %vm14830_vm14, %v8267_v16 }
 0x12e   : > { %v11846_v42 = vadd.f32 %v9453_v27, %v9405_v51  ;;  %v1233_v59 = vpop.f32.mrf.mxu0 }
 0x12f   : > { %v1442_v15 = vpop.f32.mrf.mxu1 }
 0x130   : > { %v11848_v9 = vadd.f32 %v1442_v15, %v1233_v59  ;;  %v9406_v18 = vpop.f32.mrf.mxu0  ;;  %v3491_v59 = vld [vmem:[#allocation2 + $0x59] sm:$0xff] }
 0x131   : > { %v9454_v40 = vpop.f32.mrf.mxu1 }
 0x132   : > { %v11850_v47 = vadd.f32 %v9454_v40, %v9406_v18  ;;  %v11852_v20 = vpop.f32.mrf.mxu0 }
 0x133   : > { %14852 = vst [vmem:[#allocation24_spill] sm:$0xff] %v11852_v20  ;;  %v11854_v7 = vpop.f32.mrf.mxu1  ;;  %v8279_v20 = vpack.c.bf16 %v3492_v45, %v3491_v59  ;;  %v3497_v45 = vld [vmem:[#allocation2 + $0x89] sm:$0xff] }
 0x134   : > { %14853 = vst [vmem:[#allocation44_spill] sm:$0xff] %v11854_v7  ;;  %v9473_v16 = vpop.f32.mrf.mxu0  ;;  %9760 = vmatmul.mubr.msk.bf16.vlgmr.msra.gmra.mxu0 %vm11230_vm4, %v8271_v1  ;;  %vm14855_vm4 = vnez %v14775_v34 }
 0x135   : > { %v1829_v51 = vadd.f32 %v9473_v16, %v11724_v53  ;;  %v9521_v27 = vpop.f32.mrf.mxu1  ;;  %9763 = vmatprep.mubr.msk.bf16.mxu0 %vm11236_vm8, %v8275_v56  ;;  %v8283_v16 = vpack.c.bf16 %v3494_v21, %v3493_v44  ;;  %vm14858_vm8 = vnez %v14790_v52 }
 0x136   : > { %v1700_v13 = vpop.f32.mrf.mxu0 }
 0x137   : > { %v1827_v15 = vadd.f32 %v1700_v13, %v11732_v55  ;;  %v11862_v18 = vadd.f32 %v9521_v27, %v1829_v51  ;;  %v2038_v40 = vpop.f32.mrf.mxu1 }
 0x138   : > { %v9474_v7 = vpop.f32.mrf.mxu0 }
 0x139   : > { %v1830_v60 = vadd.f32 %v9474_v7, %v11734_v58  ;;  %v11865_v1 = vadd.f32 %v2038_v40, %v1827_v15  ;;  %v9522_v53 = vpop.f32.mrf.mxu1  ;;  %v3495_v58 = vld [vmem:[#allocation2 + $0x79] sm:$0xff]  ;;  %v3496_v7 = vld [vmem:[#allocation2 + $0x81] sm:$0xff] }
 0x13a   : > { %v1703_v43 = vpop.f32.mrf.mxu0  ;;  %v8287_v40 = vpack.c.bf16 %v3496_v7, %v3495_v58  ;;  %v3501_v7 = vld [vmem:[#allocation2 + $0xa9] sm:$0xff] }
 0x13b   : > { %v11868_v56 = vadd.f32 %v1703_v43, %v11739_v32  ;;  %v11870_v41 = vadd.f32 %v9522_v53, %v1830_v60  ;;  %v11872_v46 = vpop.f32.mrf.mxu1  ;;  %v3498_v32 = vld [vmem:[#allocation2 + $0x91] sm:$0xff] }
 0x13c   : > { %v9477_v55 = vpop.f32.mrf.mxu0  ;;  %9764 = vmatmul.mubr.msk.bf16.gmra.mxu0 %vm11289_vm12, %v8279_v20  ;;  %v8291_v60 = vpack.c.bf16 %v3498_v32, %v3497_v45  ;;  %vm14857_vm12 = vnez %v14785_v23 }
 0x13d   : > { %v1833_v51 = vadd.f32 %v9477_v55, %v11746_v8  ;;  %v9525_v27 = vpop.f32.mrf.mxu1  ;;  %9767 = vmatprep.mubr.msk.bf16.mxu0 %vm11300_vm10, %v8283_v16  ;;  %vm14856_vm10 = vnez %v14780_v36 }
 0x13e   : > { %v1716_v59 = vpop.f32.mrf.mxu0 }
 0x13f   : > { %v1831_v13 = vadd.f32 %v1716_v59, %v11752_v39  ;;  %v11880_v44 = vadd.f32 %v9525_v27, %v1833_v51  ;;  %v2054_v21 = vpop.f32.mrf.mxu1  ;;  %v3500_v27 = vld [vmem:[#allocation2 + $0xa1] sm:$0xff] }
 0x140   : > { %v9478_v15 = vpop.f32.mrf.mxu0 }
 0x141   : > { %v1834_v30 = vadd.f32 %v9478_v15, %v11754_v29  ;;  %v11883_v20 = vadd.f32 %v2054_v21, %v1831_v13  ;;  %v9526_v8 = vpop.f32.mrf.mxu1  ;;  %v3499_v29 = vld [vmem:[#allocation2 + $0x99] sm:$0xff] }
 0x142   : > { %v1719_v31 = vpop.f32.mrf.mxu0  ;;  %v8295_v21 = vpack.c.bf16 %v3500_v27, %v3499_v29  ;;  %v3505_v29 = vld [vmem:[#allocation2 + $0xc9] sm:$0xff] }
 0x143   : > { %v11886_v53 = vadd.f32 %v1719_v31, %v11759_v25  ;;  %v11888_v16 = vadd.f32 %v9526_v8, %v1834_v30  ;;  %v11890_v43 = vpop.f32.mrf.mxu1  ;;  %v3502_v25 = vld [vmem:[#allocation2 + $0xb1] sm:$0xff] }
 0x144   : > { %v9481_v39 = vpop.f32.mrf.mxu0  ;;  %9768 = vmatmul.mubr.msk.bf16.gmra.mxu0 %vm14855_vm4, %v8287_v40  ;;  %v8299_v40 = vpack.c.bf16 %v3502_v25, %v3501_v7 }
 0x145   : > { %v1837_v55 = vadd.f32 %v9481_v39, %v11766_v50  ;;  %v9529_v51 = vpop.f32.mrf.mxu1  ;;  %9771 = vmatprep.mubr.msk.bf16.mxu0 %vm14856_vm10, %v8291_v60 }
 0x146   : > { %v1732_v58 = vpop.f32.mrf.mxu0 }
 0x147   : > { %v1835_v59 = vadd.f32 %v1732_v58, %v11772_v2  ;;  %v11898_v45 = vadd.f32 %v9529_v51, %v1837_v55  ;;  %v2070_v32 = vpop.f32.mrf.mxu1  ;;  %v3504_v55 = vld [vmem:[#allocation2 + $0xc1] sm:$0xff] }
 0x148   : > { %v9482_v13 = vpop.f32.mrf.mxu0 }
 0x149   : > { %v1838_v34 = vadd.f32 %v9482_v13, %v11774_v17  ;;  %v11901_v15 = vadd.f32 %v2070_v32, %v1835_v59  ;;  %v9530_v50 = vpop.f32.mrf.mxu1  ;;  %v3503_v17 = vld [vmem:[#allocation2 + $0xb9] sm:$0xff] }
 0x14a   : > { %v1735_v36 = vpop.f32.mrf.mxu0  ;;  %v8303_v59 = vpack.c.bf16 %v3504_v55, %v3503_v17 }
 0x14b   : > { %v11904_v30 = vadd.f32 %v1735_v36, %v11779_v10  ;;  %v11906_v8 = vadd.f32 %v9530_v50, %v1838_v34  ;;  %v11908_v60 = vpop.f32.mrf.mxu1  ;;  %v3506_v10 = vld [vmem:[#allocation2 + $0xd1] sm:$0xff] }
 0x14c   : > { %v9485_v2 = vpop.f32.mrf.mxu0  ;;  %9772 = vmatmul.mubr.msk.bf16.gmra.mxu0 %vm14857_vm12, %v8295_v21  ;;  %v8307_v13 = vpack.c.bf16 %v3506_v10, %v3505_v29 }
 0x14d   : > { %v1841_v31 = vadd.f32 %v9485_v2, %v11786_v4  ;;  %v9533_v39 = vpop.f32.mrf.mxu1  ;;  %9775 = vmatprep.mubr.msk.bf16.mxu0 %vm14858_vm8, %v8299_v40  ;;  %v3508_v2 = vld [vmem:[#allocation2 + $0xe1] sm:$0xff] }
 0x14e   : > { %v1748_v51 = vpop.f32.mrf.mxu0 }
 0x14f   : > { %v1839_v27 = vadd.f32 %v1748_v51, %v11789_v28  ;;  %v11916_v58 = vadd.f32 %v9533_v39, %v1841_v31  ;;  %v2086_v7 = vpop.f32.mrf.mxu1  ;;  %v3509_v39 = vld [vmem:[#allocation2 + $0xe9] sm:$0xff] }
 0x150   : > { %v9486_v25 = vpop.f32.mrf.mxu0 }
 0x151   : > { %v1842_v23 = vadd.f32 %v9486_v25, %v11791_v38  ;;  %v11919_v32 = vadd.f32 %v2086_v7, %v1839_v27  ;;  %v9534_v4 = vpop.f32.mrf.mxu1  ;;  %v3507_v38 = vld [vmem:[#allocation2 + $0xd9] sm:$0xff] }
 0x152   : > { %v1751_v52 = vpop.f32.mrf.mxu0  ;;  %v8311_v10 = vpack.c.bf16 %v3508_v2, %v3507_v38 }
 0x153   : > { %v11922_v21 = vadd.f32 %v1751_v52, %v11793_v3  ;;  %v11924_v34 = vadd.f32 %v9534_v4, %v1842_v23  ;;  %v11926_v50 = vpop.f32.mrf.mxu1  ;;  %v3510_v3 = vld [vmem:[#allocation2 + $0xf1] sm:$0xff] }
 0x154   : > { %v9489_v28 = vpop.f32.mrf.mxu0  ;;  %9776 = vmatmul.mubr.msk.bf16.gmra.mxu0 %vm14833_vm11, %v8303_v59  ;;  %v8315_v7 = vpack.c.bf16 %v3510_v3, %v3509_v39 }
 0x155   : > { %v1845_v40 = vadd.f32 %v9489_v28, %v11800_v33  ;;  %v9537_v36 = vpop.f32.mrf.mxu1  ;;  %9779 = vmatprep.mubr.msk.bf16.mxu0 %vm14834_vm3, %v8307_v13  ;;  %v3512_v13 = vld [vmem:[#allocation2 + $0x101] sm:$0xff] }
 0x156   : > { %v1764_v31 = vpop.f32.mrf.mxu0 }
 0x157   : > { %v1843_v17 = vadd.f32 %v1764_v31, %v11803_v5  ;;  %v11934_v55 = vadd.f32 %v9537_v36, %v1845_v40  ;;  %v2102_v51 = vpop.f32.mrf.mxu1 }
 0x158   : > { %v9490_v29 = vpop.f32.mrf.mxu0 }
 0x159   : > { %v1846_v54 = vadd.f32 %v9490_v29, %v11805_v19  ;;  %v11937_v27 = vadd.f32 %v2102_v51, %v1843_v17  ;;  %v9538_v33 = vpop.f32.mrf.mxu1  ;;  %v3511_v19 = vld [vmem:[#allocation2 + $0xf9] sm:$0xff]  ;;  %v3516_v29 = vld [vmem:[#allocation2 + $0x121] sm:$0xff] }
 0x15a   : > { %v11939_v0 = vpop.f32.mrf.mxu0  ;;  %v8319_v2 = vpack.c.bf16 %v3512_v13, %v3511_v19 }
 0x15b   : > { %v11941_v25 = vadd.f32 %v9538_v33, %v1846_v54  ;;  %v11943_v59 = vpop.f32.mrf.mxu1 }
 0x15c   : > { %v9493_v23 = vpop.f32.mrf.mxu0  ;;  %9780 = vmatmul.mubr.msk.bf16.gmra.mxu0 %vm14835_vm5, %v8311_v10  ;;  %vm14860_vm5 = vnez %v14824_v22 }
 0x15d   : > { %v1849_v5 = vadd.f32 %v9493_v23, %v11816_v62  ;;  %v9541_v4 = vpop.f32.mrf.mxu1  ;;  %9783 = vmatprep.mubr.msk.bf16.mxu0 %vm11504_vm2, %v8315_v7  ;;  %vm14859_vm2 = vnez %v14822_v63 }
 0x15e   : > { %v1780_v52 = vpop.f32.mrf.mxu0 }
 0x15f   : > { %v1847_v28 = vadd.f32 %v1780_v52, %v11818_v26  ;;  %v11951_v40 = vadd.f32 %v9541_v4, %v1849_v5  ;;  %v2118_v36 = vpop.f32.mrf.mxu1 }
 0x160   : > { %v9494_v38 = vpop.f32.mrf.mxu0 }
 0x161   : > { %v1850_v31 = vadd.f32 %v9494_v38, %v11820_v61  ;;  %v11954_v57 = vadd.f32 %v2118_v36, %v1847_v28  ;;  %v9542_v39 = vpop.f32.mrf.mxu1  ;;  %v3515_v61 = vld [vmem:[#allocation2 + $0x119] sm:$0xff] }
 0x162   : > { %v11956_v62 = vpop.f32.mrf.mxu0  ;;  %v8327_v5 = vpack.c.bf16 %v3516_v29, %v3515_v61 }
 0x163   : > { %v11958_v3 = vadd.f32 %v9542_v39, %v1850_v31  ;;  %v11960_v37 = vpop.f32.mrf.mxu1 }
 0x164   : > { %v9497_v17 = vpop.f32.mrf.mxu0  ;;  %9784 = vmatmul.mubr.msk.bf16.gmra.mxu0 %vm14859_vm2, %v8319_v2 }
 0x165   : > { %v1853_v26 = vadd.f32 %v9497_v17, %v11831_v11  ;;  %v9545_v51 = vpop.f32.mrf.mxu1  ;;  %9787 = vmatprep.mubr.msk.bf16.mxu0 %vm14860_vm5, %v11709_v35  ;;  %v10281_v35 = vld [vmem:[%s14437_s3 + $0x38] sm:$0xff]  }
 0x166   : > { %v1796_v10 = vpop.f32.mrf.mxu0  ;;  %9791 = vmatprep.subr.bf16.mxu1 %v10281_v35 }
 0x167   : > { %v1851_v54 = vadd.f32 %v1796_v10, %v11834_v14  ;;  %v11969_v33 = vadd.f32 %v9545_v51, %v1853_v26  ;;  %v2134_v7 = vpop.f32.mrf.mxu1  ;;  %9792 = vmatpush3.bf16.msra.mxu1 %v10281_v35 }
 0x168   : > { %v9498_v23 = vpop.f32.mrf.mxu0 }
 0x169   : > { %v1854_v63 = vadd.f32 %v9498_v23, %v11836_v24  ;;  %v11972_v4 = vadd.f32 %v2134_v7, %v1851_v54  ;;  %v9546_v11 = vpop.f32.mrf.mxu1 }
 0x16a   : > { %v11974_v19 = vpop.f32.mrf.mxu0 }
 0x16b   : > { %v11976_v13 = vadd.f32 %v9546_v11, %v1854_v63  ;;  %v11978_v22 = vpop.f32.mrf.mxu1 }
 0x16c   : > { %v9501_v14 = vpop.f32.mrf.mxu0  ;;  %9788 = vmatmul.mubr.msk.bf16.gmra.mxu0 %vm11553_vm7, %v8327_v5  ;;  %vm14892_vm7 = vcmask 523264  }
 0x16d   : > { %v1857_v52 = vadd.f32 %v9501_v14, %v11846_v42  ;;  %v9549_v24 = vpop.f32.mrf.mxu1  ;;  %vm14893_vm9 = vmmov %vm14892_vm7 }
 0x16e   : > { %v1812_v28 = vpop.f32.mrf.mxu0  ;;  %vm15020_vm3 = vmmov %vm14892_vm7 }
 0x16f   : > { %v1855_v36 = vadd.f32 %v1812_v28, %v11848_v9  ;;  %v11987_v38 = vadd.f32 %v9549_v24, %v1857_v52  ;;  %v2150_v2 = vpop.f32.mrf.mxu1  ;;  %vm15021_vm1 = vmmov %vm15020_vm3 }
 0x170   : > { %v9502_v31 = vpop.f32.mrf.mxu0  ;;  %vm15022_vm6 = vmmov %vm15021_vm1 }
 0x171   : > { %v1858_v39 = vadd.f32 %v9502_v31, %v11850_v47  ;;  %v11990_v17 = vadd.f32 %v2150_v2, %v1855_v36  ;;  %v9550_v26 = vpop.f32.mrf.mxu1  ;;  %vm15023_vm0 = vmmov %vm15021_vm1 }
 0x172   : > { %v11992_v51 = vpop.f32.mrf.mxu0  ;;  %vm15024_vm14 = vmmov %vm15023_vm0 }
 0x173   : > { %v11994_v6 = vadd.f32 %v9550_v26, %v1858_v39  ;;  %v11996_v42 = vpop.f32.mrf.mxu1  ;;  %vm15025_vm13 = vmmov %vm15023_vm0 }
 0x174   : > { %v9569_v61 = vpop.f32.mrf.mxu0  ;;  %vm15028_vm4 = vmmov %vm15023_vm0 }
 0x175   : > { %v11999_v29 = vadd.f32 %v9569_v61, %v11862_v18  ;;  %v12001_v9 = vpop.f32.mrf.mxu1  ;;  %vm15030_vm10 = vmmov %vm15023_vm0 }
 0x176   : > { %v2344_v10 = vpop.f32.mrf.mxu0  ;;  %vm15032_vm12 = vmmov %vm15023_vm0 }
 0x177   : > { %v12004_v54 = vadd.f32 %v2344_v10, %v11865_v1  ;;  %v12006_v47 = vpop.f32.mrf.mxu1  ;;  %vm15033_vm8 = vmmov %vm15023_vm0 }
 0x178   : > { %v9570_v7 = vpop.f32.mrf.mxu0  ;;  %vm15034_vm2 = vmmov %vm15023_vm0 }
 0x179   : > { %v12009_v23 = vadd.f32 %v9570_v7, %v11870_v41  ;;  %v12011_v5 = vpop.f32.mrf.mxu1 }
 0x17a   : > { %v12013_v63 = vpop.f32.mrf.mxu0 }
 0x17b   : > { %v12015_v11 = vpop.f32.mrf.mxu1 }
 0x17c   : > { %v9573_v18 = vpop.f32.mrf.mxu0 }
 0x17d   : > { %v12018_v35 = vadd.f32 %v9573_v18, %v11880_v44  ;;  %v12020_v14 = vpop.f32.mrf.mxu1 }
 0x17e   : > { %v2360_v1 = vpop.f32.mrf.mxu0 }
 0x17f   : > { %v12023_v52 = vadd.f32 %v2360_v1, %v11883_v20  ;;  %v12025_v24 = vpop.f32.mrf.mxu1 }
 0x180   : > { %v9574_v41 = vpop.f32.mrf.mxu0 }
 0x181   : > { %v12028_v28 = vadd.f32 %v9574_v41, %v11888_v16  ;;  %v12030_v36 = vpop.f32.mrf.mxu1 }
 0x182   : > { %v12032_v2 = vpop.f32.mrf.mxu0 }
 0x183   : > { %v12034_v31 = vpop.f32.mrf.mxu1 }
 0x184   : > { %v9577_v44 = vpop.f32.mrf.mxu0 }
 0x185   : > { %v12037_v39 = vadd.f32 %v9577_v44, %v11898_v45  ;;  %v12039_v26 = vpop.f32.mrf.mxu1 }
 0x186   : > { %14861 = vst [vmem:[#allocation28_spill] sm:$0xff] %v12039_v26  ;;  %v2376_v20 = vpop.f32.mrf.mxu0 }
 0x187   : > { %v12042_v61 = vadd.f32 %v2376_v20, %v11901_v15  ;;  %v12044_v10 = vpop.f32.mrf.mxu1 }
 0x188   : > { %14862 = vst [vmem:[#allocation45_spill] sm:$0xff] %v12044_v10  ;;  %v9578_v16 = vpop.f32.mrf.mxu0 }
 0x189   : > { %v12047_v7 = vadd.f32 %v9578_v16, %v11906_v8  ;;  %v12049_v18 = vpop.f32.mrf.mxu1 }
 0x18a   : > { %14864 = vst [vmem:[#allocation47_spill] sm:$0xff] %v12049_v18  ;;  %v12051_v1 = vpop.f32.mrf.mxu0 }
 0x18b   : > { %14863 = vst [vmem:[#allocation46_spill] sm:$0xff] %v12047_v7  ;;  %v12053_v41 = vpop.f32.mrf.mxu1 }
 0x18c   : > { %14865 = vst [vmem:[#allocation48_spill] sm:$0xff] %v12053_v41  ;;  %v9581_v45 = vpop.f32.mrf.mxu0 }
 0x18d   : > { %v12056_v44 = vadd.f32 %v9581_v45, %v11916_v58  ;;  %v12058_v26 = vpop.f32.mrf.mxu1 }
 0x18e   : > { %14866 = vst [vmem:[#allocation49_spill] sm:$0xff] %v12058_v26  ;;  %v2392_v15 = vpop.f32.mrf.mxu0 }
 0x18f   : > { %v12061_v20 = vadd.f32 %v2392_v15, %v11919_v32  ;;  %v12063_v10 = vpop.f32.mrf.mxu1 }
 0x190   : > { %14867 = vst [vmem:[#allocation50_spill] sm:$0xff] %v12063_v10  ;;  %v9582_v8 = vpop.f32.mrf.mxu0 }
 0x191   : > { %v12066_v16 = vadd.f32 %v9582_v8, %v11924_v34  ;;  %v12068_v18 = vpop.f32.mrf.mxu1 }
 0x192   : > { %14869 = vst [vmem:[#allocation52_spill] sm:$0xff] %v12068_v18  ;;  %v12070_v7 = vpop.f32.mrf.mxu0 }
 0x193   : > { %14868 = vst [vmem:[#allocation51_spill] sm:$0xff] %v12066_v16  ;;  %v12072_v41 = vpop.f32.mrf.mxu1 }
 0x194   : > { %14870 = vst [vmem:[#allocation53_spill] sm:$0xff] %v12072_v41  ;;  %v9585_v58 = vpop.f32.mrf.mxu0 }
 0x195   : > { %v12075_v45 = vadd.f32 %v9585_v58, %v11934_v55  ;;  %v12077_v26 = vpop.f32.mrf.mxu1  ;;  %v10285_v55 = vld [vmem:[%s14437_s3 + $0x18] sm:$0xff]  }
 0x196   : > { %v2408_v32 = vpop.f32.mrf.mxu0  ;;  %9831 = vmatprep.subr.bf16.mxu0 %v10285_v55 }
 0x197   : > { %v12080_v15 = vadd.f32 %v2408_v32, %v11937_v27  ;;  %v12082_v10 = vpop.f32.mrf.mxu1  ;;  %9832 = vmatpush3.bf16.msra.mxu0 %v10285_v55  ;;  %v10287_v55 = vld [vmem:[%s14437_s3 + $0x8] sm:$0xff]  }
 0x198   : > { %14872 = vst [vmem:[#allocation55_spill] sm:$0xff] %v12082_v10  ;;  %v9586_v34 = vpop.f32.mrf.mxu0 }
 0x199   : > { %14871 = vst [vmem:[#allocation54_spill] sm:$0xff] %v12080_v15  ;;  %v12085_v8 = vadd.f32 %v9586_v34, %v11941_v25  ;;  %v12087_v18 = vpop.f32.mrf.mxu1  ;;  %v10282_v25 = vld [vmem:[%s14437_s3 + $0x30] sm:$0xff]  }
 0x19a   : > { %14874 = vst [vmem:[#allocation57_spill] sm:$0xff] %v12087_v18  ;;  %v12089_v16 = vpop.f32.mrf.mxu0  ;;  %v10286_v18 = vld [vmem:[%s14437_s3 + $0x10] sm:$0xff]   ;;  %9793 = vmatprep.subr.bf16.mxu1 %v10282_v25 }
 0x19b   : > { %14873 = vst [vmem:[#allocation56_spill] sm:$0xff] %v12085_v8  ;;  %v12091_v41 = vpop.f32.mrf.mxu1  ;;  %9794 = vmatpush3.bf16.msra.mxu1 %v10282_v25  ;;  %9833 = vmatprep.subr.bf16.mxu0 %v10286_v18 }
 0x19c   : > { %14875 = vst [vmem:[#allocation58_spill] sm:$0xff] %v12091_v41  ;;  %v9589_v58 = vpop.f32.mrf.mxu0  ;;  %9834 = vmatpush3.bf16.msra.mxu0 %v10286_v18 }
 0x19d   : > { %v12097_v27 = vadd.f32 %v9589_v58, %v11951_v40  ;;  %v12099_v32 = vpop.f32.mrf.mxu1  ;;  %9835 = vmatprep.subr.bf16.mxu0 %v10287_v55 }
 0x19e   : > { %14877 = vst [vmem:[#allocation60_spill] sm:$0xff] %v12099_v32  ;;  %v2424_v10 = vpop.f32.mrf.mxu0 }
 0x19f   : > { %14876 = vst [vmem:[#allocation59_spill] sm:$0xff] %v12097_v27  ;;  %v12105_v34 = vadd.f32 %v2424_v10, %v11954_v57  ;;  %v12107_v41 = vpop.f32.mrf.mxu1  ;;  %v10283_v57 = vld [vmem:[%s14437_s3 + $0x28] sm:$0xff]  }
 0x1a0   : > { %14879 = vst [vmem:[#allocation62_spill] sm:$0xff] %v12107_v41  ;;  %v9590_v40 = vpop.f32.mrf.mxu0  ;;  %9795 = vmatprep.subr.bf16.mxu1 %v10283_v57  ;;  %9836 = vmatpush3.bf16.msra.mxu0 %v10287_v55  ;;  %v4207_v55 = vld [vmem:[#allocation3 + $0x10] sm:$0xff] }
 0x1a1   : > { %14878 = vst [vmem:[#allocation61_spill] sm:$0xff] %v12105_v34  ;;  %v12113_v58 = vadd.f32 %v9590_v40, %v11958_v3  ;;  %v12115_v32 = vpop.f32.mrf.mxu1  ;;  %9796 = vmatpush3.bf16.msra.mxu1 %v10283_v57 }
 0x1a2   : > { %14881 = vst [vmem:[#allocation64_spill] sm:$0xff] %v12115_v32  ;;  %v12117_v27 = vpop.f32.mrf.mxu0 }
 0x1a3   : > { %14880 = vst [vmem:[#allocation63_spill] sm:$0xff] %v12113_v58  ;;  %v12122_v10 = vpop.f32.mrf.mxu1 }
 0x1a4   : > { %14882 = vst [vmem:[#allocation65_spill] sm:$0xff] %v12122_v10  ;;  %v9593_v41 = vpop.f32.mrf.mxu0  ;;  %v10284_v10 = vld [vmem:[%s14437_s3 + $0x20] sm:$0xff]  }
 0x1a5   : > { %v12128_v3 = vadd.f32 %v9593_v41, %v11969_v33  ;;  %v12130_v25 = vpop.f32.mrf.mxu1  ;;  %v10288_v33 = vld [vmem:[%s14437_s3] sm:$0xff]   ;;  %9797 = vmatprep.subr.bf16.mxu1 %v10284_v10 }
 0x1a6   : > { %14884 = vst [vmem:[#allocation67_spill] sm:$0xff] %v12130_v25  ;;  %v2440_v40 = vpop.f32.mrf.mxu0  ;;  %9837 = vmatprep.subr.bf16.mxu0 %v10288_v33  ;;  %9798 = vmatpush3.bf16.msra.mxu1 %v10284_v10 }
 0x1a7   : > { %14883 = vst [vmem:[#allocation66_spill] sm:$0xff] %v12128_v3  ;;  %v12133_v32 = vadd.f32 %v2440_v40, %v11972_v4  ;;  %v12135_v18 = vpop.f32.mrf.mxu1  ;;  %v4118_v3 = vld [vmem:[#allocation3 + $0x7] sm:$0xff]  ;;  %v4119_v40 = vld [vmem:[#allocation3 + $0xf] sm:$0xff]  ;;  %9838 = vmatpush3.bf16.msra.mxu0 %v10288_v33 }
 0x1a8   : > { %14886 = vst [vmem:[#allocation69_spill] sm:$0xff] %v12135_v18  ;;  %v9594_v41 = vpop.f32.mrf.mxu0  ;;  %v4206_v4 = vld [vmem:[#allocation3 + $0x8] sm:$0xff]  ;;  %v14889_v18 = vld [vmem:[#allocation7_spill] sm:$0xff] }
 0x1a9   : > { %14885 = vst [vmem:[#allocation68_spill] sm:$0xff] %v12133_v32  ;;  %v12144_v57 = vadd.f32 %v9594_v41, %v11976_v13  ;;  %v12146_v25 = vpop.f32.mrf.mxu1  ;;  %vm14890_vm11 = vnez %v14889_v18  ;;  %v4238_v34 = vpack.c.bf16 %v4207_v55, %v4206_v4 }
 0x1aa   : > { %14888 = vst [vmem:[#allocation71_spill] sm:$0xff] %v12146_v25  ;;  %v4150_v32 = vsel %vm14890_vm11, 0.0, %v4118_v3  ;;  %v12150_v58 = vpop.f32.mrf.mxu0 }
 0x1ab   : > { %14887 = vst [vmem:[#allocation70_spill] sm:$0xff] %v12144_v57  ;;  %v4182_v8 = vpack.c.bf16 %v4119_v40, %v4150_v32  ;;  %v12152_v15 = vpop.f32.mrf.mxu1  ;;  %9799 = vmatprep.mubr.msk.bf16.mxu1 %vm14892_vm7, %v4238_v34  ;;  %vm15037_vm7 = vmmov %vm15023_vm0 }
 0x1ac   : > { %14891 = vst [vmem:[#allocation72_spill] sm:$0xff] %v12152_v15  ;;  %v9597_v13 = vpop.f32.mrf.mxu0 }
 0x1ad   : > { %9839 = vmatprep.mubr.msk.bf16.mxu0 %vm14893_vm9, %v4182_v8  ;;  %v12157_v41 = vadd.f32 %v9597_v13, %v11987_v38  ;;  %v12159_v25 = vpop.f32.mrf.mxu1  ;;  %vm15039_vm9 = vmmov %vm15023_vm0 }
 0x1ae   : > { %14895 = vst [vmem:[#allocation74_spill] sm:$0xff] %v12159_v25  ;;  %v2456_v18 = vpop.f32.mrf.mxu0 }
 0x1af   : > { %14894 = vst [vmem:[#allocation73_spill] sm:$0xff] %v12157_v41  ;;  %v12162_v3 = vadd.f32 %v2456_v18, %v11990_v17  ;;  %v12164_v10 = vpop.f32.mrf.mxu1 }
 0x1b0   : > { %14897 = vst [vmem:[#allocation76_spill] sm:$0xff] %v12164_v10  ;;  %v9598_v33 = vpop.f32.mrf.mxu0 }
 0x1b1   : > { %14896 = vst [vmem:[#allocation75_spill] sm:$0xff] %v12162_v3  ;;  %v12167_v32 = vadd.f32 %v9598_v33, %v11994_v6  ;;  %v12169_v4 = vpop.f32.mrf.mxu1 }
 0x1b2   : > { %14899 = vst [vmem:[#allocation78_spill] sm:$0xff] %v12169_v4  ;;  %v12171_v34 = vpop.f32.mrf.mxu0 }
 0x1b3   : > { %14898 = vst [vmem:[#allocation77_spill] sm:$0xff] %v12167_v32  ;;  %14900 = vst [vmem:[#allocation79_spill] sm:$0xff] %v12171_v34  ;;  %v12173_v8 = vpop.f32.mrf.mxu1 }
 0x1b4   : > { %14901 = vst [vmem:[#allocation80_spill] sm:$0xff] %v12173_v8  ;;  %v12175_v38 = vpop.f32.mrf.mxu0 }
 0x1b5   : > { %v12177_v55 = vpop.f32.mrf.mxu1 }
 0x1b6   : > { %v12179_v40 = vpop.f32.mrf.mxu0 }
 0x1b7   : > { %v12181_v17 = vpop.f32.mrf.mxu1 }
 0x1b8   : > { %v12183_v18 = vpop.f32.mrf.mxu0 }
 0x1b9   : > { %v12185_v13 = vpop.f32.mrf.mxu1 }
 0x1ba   : > { %14902 = vst [vmem:[#allocation81_spill] sm:$0xff] %v12185_v13  ;;  %v12187_v6 = vpop.f32.mrf.mxu0 }
 0x1bb   : > { %14903 = vst [vmem:[#allocation82_spill] sm:$0xff] %v12187_v6  ;;  %v12189_v33 = vpop.f32.mrf.mxu1  ;;  %v14945_v6 = vld [vmem:[#allocation44_spill] sm:$0xff] }
 0x1bc   : > { %14904 = vst [vmem:[#allocation83_spill] sm:$0xff] %v12189_v33  ;;  %v12191_v4 = vpop.f32.mrf.mxu0 }
 0x1bd   : > { %14905 = vst [vmem:[#allocation84_spill] sm:$0xff] %v12191_v4  ;;  %v12193_v32 = vpop.f32.mrf.mxu1 }
 0x1be   : > { %14906 = vst [vmem:[#allocation85_spill] sm:$0xff] %v12193_v32  ;;  %v12195_v8 = vpop.f32.mrf.mxu0 }
 0x1bf   : > { %14907 = vst [vmem:[#allocation86_spill] sm:$0xff] %v12195_v8  ;;  %v12197_v34 = vpop.f32.mrf.mxu1 }
 0x1c0   : > { %14908 = vst [vmem:[#allocation87_spill] sm:$0xff] %v12197_v34  ;;  %v12199_v10 = vpop.f32.mrf.mxu0 }
 0x1c1   : > { %14909 = vst [vmem:[#allocation88_spill] sm:$0xff] %v12199_v10  ;;  %v12201_v3 = vpop.f32.mrf.mxu1 }
 0x1c2   : > { %14910 = vst [vmem:[#allocation89_spill] sm:$0xff] %v12201_v3  ;;  %v12203_v25 = vpop.f32.mrf.mxu0 }
 0x1c3   : > { %14911 = vst [vmem:[#allocation90_spill] sm:$0xff] %v12203_v25  ;;  %v12205_v41 = vpop.f32.mrf.mxu1 }
 0x1c4   : > { %14912 = vst [vmem:[#allocation91_spill] sm:$0xff] %v12205_v41  ;;  %v12207_v13 = vpop.f32.mrf.mxu0 }
 0x1c5   : > { %14913 = vst [vmem:[#allocation92_spill] sm:$0xff] %v12207_v13  ;;  %v12209_v15 = vpop.f32.mrf.mxu1 }
 0x1c6   : > { %14914 = vst [vmem:[#allocation93_spill] sm:$0xff] %v12209_v15  ;;  %v12211_v33 = vpop.f32.mrf.mxu0  ;;  %v12234_v15 = vld [vmem:[%s14437_s3 + $0x58] sm:$0xff]  }
 0x1c7   : > { %14915 = vst [vmem:[#allocation94_spill] sm:$0xff] %v12211_v33  ;;  %v12215_v32 = vpop.f32.mrf.mxu1  ;;  %14925 = vst [vmem:[#allocation104_spill] sm:$0xff] %v12234_v15  ;;  %9871 = vmatprep.subr.bf16.mxu1 %v12234_v15  ;;  %v12258_v15 = vld [vmem:[%s14437_s3 + $0x78] sm:$0xff]   ;;  %v14943_v33 = vld [vmem:[#allocation43_spill] sm:$0xff] }
 0x1c8   : > { %v12213_v4 = vpop.f32.mrf.mxu0  ;;  %14917 = vst [vmem:[#allocation96_spill] sm:$0xff] %v12215_v32  ;;  %14935 = vst [vmem:[#allocation114_spill] sm:$0xff] %v12258_v15  ;;  %9911 = vmatprep.subr.bf16.mxu0 %v12258_v15  ;;  %v14944_v15 = vld [vmem:[#allocation24_spill] sm:$0xff] }
 0x1c9   : > { %14916 = vst [vmem:[#allocation95_spill] sm:$0xff] %v12213_v4  ;;  %v12221_v10 = vpop.f32.mrf.mxu1 }
 0x1ca   : > { %v12217_v8 = vpop.f32.mrf.mxu0  ;;  %14920 = vst [vmem:[#allocation99_spill] sm:$0xff] %v12221_v10 }
 0x1cb   : > { %14918 = vst [vmem:[#allocation97_spill] sm:$0xff] %v12217_v8  ;;  %v12227_v41 = vpop.f32.mrf.mxu1 }
 0x1cc   : > { %v12219_v34 = vpop.f32.mrf.mxu0  ;;  %14923 = vst [vmem:[#allocation102_spill] sm:$0xff] %v12227_v41 }
 0x1cd   : > { %14919 = vst [vmem:[#allocation98_spill] sm:$0xff] %v12219_v34  ;;  %v12239_v34 = vpop.f32.mrf.mxu1 }
 0x1ce   : > { %v12223_v3 = vpop.f32.mrf.mxu0  ;;  %14927 = vst [vmem:[#allocation106_spill] sm:$0xff] %v12239_v34  ;;  %v14942_v34 = vld [vmem:[#allocation42_spill] sm:$0xff] }
 0x1cf   : > { %14921 = vst [vmem:[#allocation100_spill] sm:$0xff] %v12223_v3  ;;  %v1430_v57 = vadd.f32 %v14943_v33, %v14942_v34 }
 0x1d0   : > { %v12225_v25 = vpop.f32.mrf.mxu0 }
 0x1d1   : > { %14922 = vst [vmem:[#allocation101_spill] sm:$0xff] %v12225_v25  ;;  %v12245_v25 = vpop.f32.mrf.mxu1 }
 0x1d2   : > { %v12229_v13 = vpop.f32.mrf.mxu0  ;;  %14930 = vst [vmem:[#allocation109_spill] sm:$0xff] %v12245_v25 }
 0x1d3   : > { %14924 = vst [vmem:[#allocation103_spill] sm:$0xff] %v12229_v13  ;;  %v12251_v8 = vpop.f32.mrf.mxu1 }
 0x1d4   : > { %v12236_v32 = vpop.f32.mrf.mxu0  ;;  %14933 = vst [vmem:[#allocation112_spill] sm:$0xff] %v12251_v8  ;;  %v14941_v8 = vld [vmem:[#allocation41_spill] sm:$0xff] }
 0x1d5   : > { %14926 = vst [vmem:[#allocation105_spill] sm:$0xff] %v12236_v32 }
 0x1d6   : > { %v12241_v10 = vpop.f32.mrf.mxu0 }
 0x1d7   : > { %14928 = vst [vmem:[#allocation107_spill] sm:$0xff] %v12241_v10  ;;  %v1414_v10 = vadd.f32 %v14941_v8, %v11822_v48  ;;  %v2170_v48 = vadd.f32 %v11890_v43, %v11886_v53 }
 0x1d8   : > { %v12243_v3 = vpop.f32.mrf.mxu0 }
 0x1d9   : > { %14929 = vst [vmem:[#allocation108_spill] sm:$0xff] %v12243_v3  ;;  %v12263_v3 = vpop.f32.mrf.mxu1 }
 0x1da   : > { %v12247_v41 = vpop.f32.mrf.mxu0  ;;  %14937 = vst [vmem:[#allocation116_spill] sm:$0xff] %v12263_v3  ;;  %v1446_v3 = vadd.f32 %v14945_v6, %v14944_v15  ;;  %v2174_v15 = vadd.f32 %v11908_v60, %v11904_v30  ;;  %v2811_v60 = vadd.f32 %v12001_v9, %v11999_v29  ;;  %v2816_v29 = vadd.f32 %v12030_v36, %v12028_v28  ;;  %v14951_v28 = vld [vmem:[#allocation49_spill] sm:$0xff]  ;;  %v14956_v6 = vld [vmem:[#allocation54_spill] sm:$0xff] }
 0x1db   : > { %14931 = vst [vmem:[#allocation110_spill] sm:$0xff] %v12247_v41  ;;  %v12342_v36 = vadd.f32 %v14951_v28, %v12056_v44  ;;  %v12361_v44 = vadd.f32 %v12077_v26, %v12075_v45  ;;  %v14961_v26 = vld [vmem:[#allocation59_spill] sm:$0xff]  ;;  %v14962_v45 = vld [vmem:[#allocation60_spill] sm:$0xff] }
 0x1dc   : > { %v12249_v13 = vpop.f32.mrf.mxu0  ;;  %v1856_v34 = vadd.f32 %v11992_v51, %v1446_v3  ;;  %v2480_v51 = vadd.f32 %v12051_v1, %v2174_v15 }
 0x1dd   : > { %14932 = vst [vmem:[#allocation111_spill] sm:$0xff] %v12249_v13  ;;  %v12269_v13 = vpop.f32.mrf.mxu1 }
 0x1de   : > { %v12253_v4 = vpop.f32.mrf.mxu0  ;;  %14940 = vst [vmem:[#allocation119_spill] sm:$0xff] %v12269_v13  ;;  %v1848_v13 = vadd.f32 %v11956_v62, %v1414_v10  ;;  %v2476_v62 = vadd.f32 %v12032_v2, %v2170_v48  ;;  %v2194_v30 = vadd.f32 %v11996_v42, %v1856_v34  ;;  %v14953_v10 = vld [vmem:[#allocation51_spill] sm:$0xff] }
 0x1df   : > { %14934 = vst [vmem:[#allocation113_spill] sm:$0xff] %v12253_v4  ;;  %v1398_v4 = vadd.f32 %v11809_v49, %v11807_v12  ;;  %v1852_v12 = vadd.f32 %v11974_v19, %v1430_v57  ;;  %v12291_v8 = vpop.f32.mrf.mxu1 }
 0x1e0   : > { %v12260_v32 = vpop.f32.mrf.mxu0  ;;  %v2186_v53 = vadd.f32 %v11960_v37, %v1848_v13  ;;  %v2814_v9 = vadd.f32 %v12034_v31, %v2476_v62  ;;  %v14952_v31 = vld [vmem:[#allocation50_spill] sm:$0xff] }
 0x1e1   : > { %14936 = vst [vmem:[#allocation115_spill] sm:$0xff] %v12260_v32  ;;  %v2190_v43 = vadd.f32 %v11978_v22, %v1852_v12  ;;  %v2815_v22 = vadd.f32 %v12020_v14, %v12018_v35  ;;  %v14948_v35 = vld [vmem:[#allocation46_spill] sm:$0xff]  ;;  %v14949_v14 = vld [vmem:[#allocation47_spill] sm:$0xff]  ;;  %v14959_v12 = vld [vmem:[#allocation57_spill] sm:$0xff] }
 0x1e2   : > { %v12265_v25 = vpop.f32.mrf.mxu0 }
 0x1e3   : > { %14938 = vst [vmem:[#allocation117_spill] sm:$0xff] %v12265_v25  ;;  %v2166_v25 = vadd.f32 %v11872_v46, %v11868_v56  ;;  %v2496_v34 = vadd.f32 %v12150_v58, %v2190_v43 }
 0x1e4   : > { %v12267_v41 = vpop.f32.mrf.mxu0 }
 0x1e5   : > { %14939 = vst [vmem:[#allocation118_spill] sm:$0xff] %v12267_v41  ;;  %v1844_v41 = vadd.f32 %v11939_v0, %v1398_v4  ;;  %v2472_v46 = vadd.f32 %v12013_v63, %v2166_v25  ;;  %v2178_v0 = vadd.f32 %v11926_v50, %v11922_v21  ;;  %v2809_v21 = vadd.f32 %v12006_v47, %v12004_v54  ;;  %v14946_v54 = vld [vmem:[#allocation28_spill] sm:$0xff] }
 0x1e6   : > { %v12277_v32 = vpop.f32.mrf.mxu0  ;;  %v2812_v50 = vadd.f32 %v12011_v5, %v12009_v23  ;;  %v2813_v63 = vadd.f32 %v12025_v24, %v12023_v52  ;;  %v2819_v47 = vadd.f32 %v14946_v54, %v12037_v39  ;;  %v3149_v23 = vadd.f32 %v12175_v38, %v2811_v60  ;;  %v14947_v5 = vld [vmem:[#allocation45_spill] sm:$0xff]  ;;  %v14950_v24 = vld [vmem:[#allocation48_spill] sm:$0xff] }
 0x1e7   : > { %v2182_v19 = vadd.f32 %v11943_v59, %v1844_v41  ;;  %v12314_v59 = vpop.f32.mrf.mxu1  ;;  %v2810_v37 = vadd.f32 %v12015_v11, %v2472_v46  ;;  %v2484_v42 = vadd.f32 %v12070_v7, %v2178_v0  ;;  %v2817_v11 = vadd.f32 %v14947_v5, %v12042_v61  ;;  %v14954_v4 = vld [vmem:[#allocation52_spill] sm:$0xff]  ;;  %v14960_v0 = vld [vmem:[#allocation58_spill] sm:$0xff] }
 0x1e8   : > { %v12286_v49 = vpop.f32.mrf.mxu0  ;;  %v2820_v52 = vadd.f32 %v14949_v14, %v14948_v35  ;;  %v12335_v7 = vadd.f32 %v14950_v24, %v2480_v51  ;;  %v12346_v39 = vadd.f32 %v14952_v31, %v12061_v20  ;;  %v2492_v61 = vadd.f32 %v12117_v27, %v2186_v53  ;;  %v14957_v20 = vld [vmem:[#allocation55_spill] sm:$0xff]  ;;  %v14963_v53 = vld [vmem:[#allocation61_spill] sm:$0xff]  ;;  %v14964_v51 = vld [vmem:[#allocation62_spill] sm:$0xff] }
 0x1e9   : > { %v2488_v1 = vadd.f32 %v12089_v16, %v2182_v19  ;;  %v3147_v41 = vadd.f32 %v12179_v40, %v2809_v21  ;;  %v12350_v3 = vpop.f32.mrf.mxu1  ;;  %v12354_v38 = vadd.f32 %v14954_v4, %v14953_v10  ;;  %v14955_v16 = vld [vmem:[#allocation53_spill] sm:$0xff]  ;;  %v12365_v33 = vadd.f32 %v14957_v20, %v14956_v6  ;;  %v14958_v40 = vld [vmem:[#allocation56_spill] sm:$0xff]  ;;  %v14965_v21 = vld [vmem:[#allocation63_spill] sm:$0xff] }
 0x1ea   : > { %v12296_v56 = vpop.f32.mrf.mxu0  ;;  %v12357_v13 = vadd.f32 %v14955_v16, %v2484_v42  ;;  %v12371_v48 = vadd.f32 %v14959_v12, %v14958_v40  ;;  %v3455_v15 = vadd.f32 %v12177_v55, %v3149_v23  ;;  %v3150_v46 = vadd.f32 %v12183_v18, %v2812_v50  ;;  %v14966_v42 = vld [vmem:[#allocation64_spill] sm:$0xff]  ;;  %v12394_v55 = vld [vmem:[%s14436_s2] ss:$0 sm:$0xff]  ;;  %v14967_v18 = vld [vmem:[#allocation65_spill] sm:$0xff] }
 0x1eb   : > { %v12377_v62 = vadd.f32 %v14960_v0, %v2488_v1  ;;  %v12381_v19 = vadd.f32 %v14962_v45, %v14961_v26  ;;  %v12385_v60 = vadd.f32 %v14964_v51, %v14963_v53  ;;  %v12389_v54 = vadd.f32 %v14966_v42, %v14965_v21  ;;  %v14968_v23 = vld [vmem:[#allocation82_spill] sm:$0xff]  ;;  %v12401_v35 = vpop.f32.mrf.mxu1  ;;  %v14970_v1 = vld [vmem:[#allocation67_spill] sm:$0xff]  ;;  %v14971_v31 = vld [vmem:[#allocation68_spill] sm:$0xff] }
 0x1ec   : > { %v12305_v57 = vpop.f32.mrf.mxu0  ;;  %v12397_v43 = vadd.f32 %v14967_v18, %v2492_v61  ;;  %v3453_v50 = vadd.f32 %v12181_v17, %v3147_v41  ;;  %v3148_v5 = vadd.f32 %v14968_v23, %v2810_v37  ;;  %v14969_v24 = vld [vmem:[#allocation66_spill] sm:$0xff]  ;;  %v14972_v10 = vld [vmem:[#allocation69_spill] sm:$0xff]  ;;  %v14974_v6 = vld [vmem:[#allocation71_spill] sm:$0xff] }
 0x1ed   : > { %v12405_v28 = vadd.f32 %v14970_v1, %v14969_v24  ;;  %v12409_v4 = vadd.f32 %v14972_v10, %v14971_v31  ;;  %v14973_v16 = vld [vmem:[#allocation70_spill] sm:$0xff]  ;;  %v14975_v61 = vld [vmem:[#allocation84_spill] sm:$0xff]  ;;  %v14977_v12 = vld [vmem:[#allocation81_spill] sm:$0xff] }
 0x1ee   : > { %v12322_v2 = vpop.f32.mrf.mxu0  ;;  %v12413_v20 = vadd.f32 %v14974_v6, %v14973_v16  ;;  %v3153_v40 = vadd.f32 %v14975_v61, %v2815_v22  ;;  %v14976_v41 = vld [vmem:[#allocation72_spill] sm:$0xff]  ;;  %v14978_v45 = vld [vmem:[#allocation73_spill] sm:$0xff]  ;;  %v14979_v53 = vld [vmem:[#allocation74_spill] sm:$0xff] }
 0x1ef   : > { %v12417_v37 = vadd.f32 %v14976_v41, %v2496_v34  ;;  %v12425_v51 = vadd.f32 %v14979_v53, %v14978_v45  ;;  %v14980_v21 = vld [vmem:[#allocation75_spill] sm:$0xff]  ;;  %v14981_v42 = vld [vmem:[#allocation76_spill] sm:$0xff]  ;;  %v14983_v23 = vld [vmem:[#allocation86_spill] sm:$0xff] }
 0x1f0   : > { %v12338_v25 = vpop.f32.mrf.mxu0  ;;  %v14982_v18 = vld [vmem:[#allocation79_spill] sm:$0xff]  ;;  %v3151_v24 = vadd.f32 %v14983_v23, %v2813_v63  ;;  %v14985_v16 = vld [vmem:[#allocation77_spill] sm:$0xff]  ;;  %v14986_v6 = vld [vmem:[#allocation78_spill] sm:$0xff] }
 0x1f1   : > { %v2500_v22 = vadd.f32 %v14982_v18, %v2194_v30  ;;  %v14984_v1 = vld [vmem:[#allocation83_spill] sm:$0xff]  ;;  %v12442_v61 = vadd.f32 %v14986_v6, %v14985_v16  ;;  %v14988_v30 = vld [vmem:[#allocation88_spill] sm:$0xff]  ;;  %v14989_v63 = vld [vmem:[#allocation90_spill] sm:$0xff] }
 0x1f2   : > { %v12367_v27 = vpop.f32.mrf.mxu0  ;;  %v3454_v31 = vadd.f32 %v14984_v1, %v3148_v5  ;;  %v3152_v45 = vadd.f32 %v14989_v63, %v2814_v9  ;;  %v14991_v18 = vld [vmem:[#allocation92_spill] sm:$0xff]  ;;  %v14993_v16 = vld [vmem:[#allocation95_spill] sm:$0xff] }
 0x1f3   : > { %v3157_v23 = vadd.f32 %v14991_v18, %v2819_v47  ;;  %v14996_v47 = vld [vmem:[#allocation91_spill] sm:$0xff]  ;;  %v14998_v18 = vld [vmem:[#allocation93_spill] sm:$0xff] }
 0x1f4   : > { %v9761_v58 = vpop.f32.mrf.mxu0  ;;  %v3458_v63 = vadd.f32 %v14996_v47, %v3152_v45 }
 0x1f5   : > { %v3793_v14 = vadd.f32 %v9761_v58, %v3455_v15  ;;  %v3456_v15 = vadd.f32 %v14977_v12, %v3150_v46  ;;  %v12429_v58 = vadd.f32 %v14981_v42, %v14980_v21  ;;  %v12434_v46 = vpop.f32.mrf.mxu1  ;;  %v3154_v12 = vadd.f32 %v14988_v30, %v2816_v29  ;;  %v14990_v42 = vld [vmem:[#allocation87_spill] sm:$0xff] }
 0x1f6   : > { %v3664_v17 = vpop.f32.mrf.mxu0 }
 0x1f7   : > { %v12421_v0 = vadd.f32 %v12394_v55, %v3793_v14  ;;  %v3791_v26 = vadd.f32 %v3664_v17, %v3453_v50  ;;  %v14987_v17 = vld [vmem:[#allocation85_spill] sm:$0xff]  ;;  %v12455_v29 = vpop.f32.mrf.mxu1 }
 0x1f8   : > { %v9762_v34 = vpop.f32.mrf.mxu0  ;;  %v3459_v41 = vadd.f32 %v14987_v17, %v3153_v40  ;;  %v3158_v40 = vadd.f32 %v14993_v16, %v2820_v52  ;;  %v14994_v17 = vld [vmem:[#allocation80_spill] sm:$0xff]  ;;  %v15000_v16 = vld [vmem:[#allocation99_spill] sm:$0xff] }
 0x1f9   : > { %v8332_v14 = vmul.f32 -1.442695, %v12421_v0  ;;  %v12438_v50 = vadd.f32 %v12394_v55, %v3791_v26  ;;  %v3794_v10 = vadd.f32 %v9762_v34, %v3456_v15  ;;  %v3457_v15 = vadd.f32 %v14990_v42, %v3151_v24  ;;  %v14992_v34 = vld [vmem:[#allocation94_spill] sm:$0xff]  ;;  %v14995_v24 = vld [vmem:[#allocation89_spill] sm:$0xff] }
 0x1fa   : > { %v3667_v53 = vpop.f32.mrf.mxu0  ;;  %v3155_v1 = vadd.f32 %v14992_v34, %v2817_v11  ;;  %v3460_v30 = vadd.f32 %v14995_v24, %v3154_v12  ;;  %v14997_v11 = vld [vmem:[#allocation97_spill] sm:$0xff]  ;;  %v14999_v34 = vld [vmem:[#allocation96_spill] sm:$0xff]  ;;  %v15001_v12 = vld [vmem:[#allocation98_spill] sm:$0xff]  ;;  %v12477_v24 = vpop.f32.mrf.mxu1 }
 0x1fb   : > { %10317 = vpow2.f32 %v8332_v14  ;;  %v8330_v5 = vmul.f32 -1.442695, %v12438_v50  ;;  %v12449_v21 = vadd.f32 %v12394_v55, %v3794_v10  ;;  %v3792_v26 = vadd.f32 %v3667_v53, %v3454_v31 }
 0x1fc   : > { %v9765_v6 = vpop.f32.mrf.mxu0  ;;  %v12462_v31 = vadd.f32 %v14994_v17, %v2500_v22  ;;  %v3156_v52 = vadd.f32 %v14997_v11, %v12335_v7  ;;  %v3461_v22 = vadd.f32 %v14999_v34, %v3155_v1  ;;  %v3161_v45 = vadd.f32 %v15001_v12, %v12342_v36  ;;  %v15005_v36 = vld [vmem:[#allocation103_spill] sm:$0xff] }
 0x1fd   : > { %10319 = vpow2.f32 %v8330_v5  ;;  %v8333_v9 = vmul.f32 -1.442695, %v12449_v21  ;;  %v12459_v14 = vadd.f32 %v12394_v55, %v3792_v26  ;;  %v3797_v10 = vadd.f32 %v9765_v6, %v3459_v41 }
 0x1fe   : > { %v3680_v53 = vpop.f32.mrf.mxu0  ;;  %v3463_v41 = vadd.f32 %v14998_v18, %v3157_v23  ;;  %v3464_v6 = vadd.f32 %v15000_v16, %v3158_v40  ;;  %v15003_v23 = vld [vmem:[#allocation100_spill] sm:$0xff]  ;;  %v15004_v40 = vld [vmem:[#allocation101_spill] sm:$0xff] }
 0x1ff   : > { %10321 = vpow2.f32 %v8333_v9  ;;  %v8331_v5 = vmul.f32 -1.442695, %v12459_v14  ;;  %v12470_v42 = vadd.f32 %v12394_v55, %v3797_v10  ;;  %v3795_v26 = vadd.f32 %v3680_v53, %v3457_v15  ;;  %v15002_v15 = vld [vmem:[#allocation102_spill] sm:$0xff] }
 0x200   : > { %v9766_v17 = vpop.f32.mrf.mxu0  ;;  %v3462_v47 = vadd.f32 %v15002_v15, %v3156_v52  ;;  %v3159_v1 = vadd.f32 %v15003_v23, %v12346_v39  ;;  %v3162_v11 = vadd.f32 %v15004_v40, %v12354_v38  ;;  %v3160_v53 = vadd.f32 %v15005_v36, %v12357_v13  ;;  %v15007_v52 = vld [vmem:[#allocation105_spill] sm:$0xff]  ;;  %v15008_v39 = vld [vmem:[#allocation107_spill] sm:$0xff]  ;;  %v15009_v38 = vld [vmem:[#allocation108_spill] sm:$0xff]  ;;  %v12501_v23 = vpop.f32.mrf.mxu1 }
 0x201   : > { %10323 = vpow2.f32 %v8331_v5  ;;  %v8336_v7 = vmul.f32 -1.442695, %v12470_v42  ;;  %v12481_v9 = vadd.f32 %v12394_v55, %v3795_v26  ;;  %v3798_v10 = vadd.f32 %v9766_v17, %v3460_v30  ;;  %v15006_v30 = vld [vmem:[#allocation106_spill] sm:$0xff]  ;;  %v15011_v36 = vld [vmem:[#allocation112_spill] sm:$0xff] }
 0x202   : > { %v3683_v18 = vpop.f32.mrf.mxu0  ;;  %v3467_v16 = vadd.f32 %v15006_v30, %v3161_v45  ;;  %v3165_v12 = vadd.f32 %v15007_v52, %v12361_v44  ;;  %v3163_v17 = vadd.f32 %v15008_v39, %v12365_v33  ;;  %v3166_v15 = vadd.f32 %v15009_v38, %v12371_v48  ;;  %v15010_v45 = vld [vmem:[#allocation109_spill] sm:$0xff]  ;;  %v15013_v33 = vld [vmem:[#allocation110_spill] sm:$0xff] }
 0x203   : > { %10325 = vpow2.f32 %v8336_v7  ;;  %v8334_v5 = vmul.f32 -1.442695, %v12481_v9  ;;  %v12492_v34 = vadd.f32 %v12394_v55, %v3798_v10  ;;  %v3796_v26 = vadd.f32 %v3683_v18, %v3458_v63  ;;  %v15012_v18 = vld [vmem:[#allocation116_spill] sm:$0xff] }
 0x204   : > { %v9769_v13 = vpop.f32.mrf.mxu0  ;;  %v3465_v40 = vadd.f32 %v15010_v45, %v3159_v1  ;;  %v3468_v44 = vadd.f32 %v15011_v36, %v3162_v11  ;;  %v12510_v30 = vadd.f32 %v15012_v18, %v3160_v53  ;;  %v3164_v48 = vadd.f32 %v15013_v33, %v12377_v62  ;;  %v15015_v62 = vld [vmem:[#allocation111_spill] sm:$0xff]  ;;  %v12529_v45 = vpop.f32.mrf.mxu1 }
 0x205   : > { %10327 = vpow2.f32 %v8334_v5  ;;  %v8337_v7 = vmul.f32 -1.442695, %v12492_v34  ;;  %v12505_v10 = vadd.f32 %v12394_v55, %v3796_v26  ;;  %v3801_v63 = vadd.f32 %v9769_v13, %v3463_v41  ;;  %v15014_v41 = vld [vmem:[#allocation119_spill] sm:$0xff] }
 0x206   : > { %v3696_v52 = vpop.f32.mrf.mxu0  ;;  %v12519_v13 = vadd.f32 %v15014_v41, %v3165_v12  ;;  %v12522_v1 = vadd.f32 %v12291_v8, %v3163_v17  ;;  %v12525_v11 = vadd.f32 %v12314_v59, %v3166_v15  ;;  %v3169_v53 = vadd.f32 %v15015_v62, %v12381_v19  ;;  %v15016_v59 = vld [vmem:[#allocation113_spill] sm:$0xff]  ;;  %v15017_v15 = vld [vmem:[#allocation115_spill] sm:$0xff] }
 0x207   : > { %10329 = vpow2.f32 %v8337_v7  ;;  %v8335_v5 = vmul.f32 -1.442695, %v12505_v10  ;;  %v12516_v39 = vadd.f32 %v12394_v55, %v3801_v63  ;;  %v3799_v26 = vadd.f32 %v3696_v52, %v3461_v22 }
 0x208   : > { %v10318_v38 = vpop.eup %10317  ;;  %v9770_v7 = vpop.f32.mrf.mxu0  ;;  %v12536_v8 = vadd.f32 %v12350_v3, %v3164_v48  ;;  %v3167_v17 = vadd.f32 %v15016_v59, %v12385_v60  ;;  %v3170_v19 = vadd.f32 %v15017_v15, %v12389_v54  ;;  %v15018_v3 = vld [vmem:[#allocation117_spill] sm:$0xff] }
 0x209   : > { %v3960_v36 = vadd.f32 1.0, %v10318_v38  ;;  %10331 = vpow2.f32 %v8335_v5  ;;  %v8340_v22 = vmul.f32 -1.442695, %v12516_v39  ;;  %v12533_v63 = vadd.f32 %v12394_v55, %v3799_v26  ;;  %v9738_v54 = vpop.f32.mrf.mxu1 }
 0x20a   : > { %v10320_v12 = vpop.eup %10319  ;;  %v3802_v18 = vadd.f32 %v9770_v7, %v3464_v6  ;;  %v3699_v33 = vpop.f32.mrf.mxu0  ;;  %v12544_v26 = vadd.f32 %v12401_v35, %v3169_v53  ;;  %v3168_v48 = vadd.f32 %v15018_v3, %v12397_v43  ;;  %v12558_v35 = vadd.f32 %v12455_v29, %v3170_v19 }
 0x20b   : > { %10333 = vrcp.f32 %v3960_v36  ;;  %v3958_v52 = vadd.f32 1.0, %v10320_v12  ;;  %v8338_v5 = vmul.f32 -1.442695, %v12533_v63  ;;  %v3800_v38 = vadd.f32 %v3699_v33, %v3462_v47  ;;  %v3425_v19 = vpop.f32.mrf.mxu1 }
 0x20c   : > { %v10322_v41 = vpop.eup %10321  ;;  %10335 = vpow2.f32 %v8340_v22  ;;  %v12549_v60 = vadd.f32 %v12394_v55, %v3802_v18  ;;  %v9773_v62 = vpop.f32.mrf.mxu0  ;;  %v12555_v12 = vadd.f32 %v12434_v46, %v3167_v17  ;;  %v12568_v46 = vadd.f32 %v12477_v24, %v3168_v48 }
 0x20d   : > { %10337 = vrcp.f32 %v3958_v52  ;;  %v3961_v6 = vadd.f32 1.0, %v10322_v41  ;;  %v12552_v7 = vadd.f32 %v12394_v55, %v3800_v38  ;;  %v3805_v36 = vadd.f32 %v9773_v62, %v3467_v16  ;;  %v15019_v16 = vld [vmem:[#allocation118_spill] sm:$0xff] }
 0x20e   : > { %v10324_v47 = vpop.eup %10323  ;;  %10339 = vpow2.f32 %v8338_v5  ;;  %v8341_v43 = vmul.f32 -1.442695, %v12549_v60  ;;  %v3712_v53 = vpop.f32.mrf.mxu0  ;;  %v3173_v33 = vadd.f32 %v15019_v16, %v12405_v28  ;;  %v3171_v3 = vadd.f32 %v12277_v32, %v12409_v4 }
 0x20f   : > { %10341 = vrcp.f32 %v3961_v6  ;;  %v3959_v22 = vadd.f32 1.0, %v10324_v47  ;;  %v8339_v59 = vmul.f32 -1.442695, %v12552_v7  ;;  %v12563_v15 = vadd.f32 %v12394_v55, %v3805_v36 }
 0x210   : > { %v10326_v18 = vpop.eup %10325  ;;  %10343 = vpow2.f32 %v8341_v43  ;;  %v3803_v29 = vadd.f32 %v3712_v53, %v3465_v40  ;;  %v9774_v17 = vpop.f32.mrf.mxu0  ;;  %v3174_v62 = vadd.f32 %v12286_v49, %v12413_v20  ;;  %v12583_v36 = vadd.f32 %v12501_v23, %v3173_v33 }
 0x211   : > { %10345 = vrcp.f32 %v3959_v22  ;;  %v3964_v52 = vadd.f32 1.0, %v10326_v18  ;;  %v8344_v5 = vmul.f32 -1.442695, %v12563_v15  ;;  %v3806_v38 = vadd.f32 %v9774_v17, %v3468_v44  ;;  %v9741_v20 = vpop.f32.mrf.mxu1 }
 0x212   : > { %v10328_v41 = vpop.eup %10327  ;;  %10347 = vpow2.f32 %v8339_v59  ;;  %v12576_v28 = vadd.f32 %v12394_v55, %v3803_v29  ;;  %v3715_v24 = vpop.f32.mrf.mxu0  ;;  %v3172_v32 = vadd.f32 %v12296_v56, %v12417_v37  ;;  %v12593_v22 = vadd.f32 %v12529_v45, %v3171_v3 }
 0x213   : > { %10349 = vrcp.f32 %v3964_v52  ;;  %v3962_v40 = vadd.f32 1.0, %v10328_v41  ;;  %v12579_v48 = vadd.f32 %v12394_v55, %v3806_v38  ;;  %v3804_v6 = vadd.f32 %v3715_v24, %v12510_v30 }
 0x214   : > { %v10330_v44 = vpop.eup %10329  ;;  %10351 = vpow2.f32 %v8344_v5  ;;  %v8342_v49 = vmul.f32 -1.442695, %v12576_v28  ;;  %v9777_v4 = vpop.f32.mrf.mxu0  ;;  %v12595_v23 = vadd.f32 %v9738_v54, %v3174_v62  ;;  %v3177_v29 = vadd.f32 %v12305_v57, %v12425_v51 }
 0x215   : > { %10353 = vrcp.f32 %v3962_v40  ;;  %v3965_v47 = vadd.f32 1.0, %v10330_v44  ;;  %v8345_v43 = vmul.f32 -1.442695, %v12579_v48  ;;  %v12590_v53 = vadd.f32 %v12394_v55, %v3804_v6 }
 0x216   : > { %v10332_v30 = vpop.eup %10331  ;;  %10355 = vpow2.f32 %v8342_v49  ;;  %v3809_v56 = vadd.f32 %v9777_v4, %v12519_v13  ;;  %v3728_v37 = vpop.f32.mrf.mxu0  ;;  %v12602_v17 = vadd.f32 %v3425_v19, %v3172_v32  ;;  %v3175_v57 = vadd.f32 %v12322_v2, %v12429_v58 }
 0x217   : > { %10357 = vrcp.f32 %v3965_v47  ;;  %v3963_v59 = vadd.f32 1.0, %v10332_v30  ;;  %v8343_v18 = vmul.f32 -1.442695, %v12590_v53  ;;  %v3807_v16 = vadd.f32 %v3728_v37, %v12522_v1  ;;  %v3438_v13 = vpop.f32.mrf.mxu1 }
 0x218   : > { %v10334_v33 = vpop.eup %10333  ;;  %10359 = vpow2.f32 %v8345_v43  ;;  %v12605_v45 = vadd.f32 %v12394_v55, %v3809_v56  ;;  %v9778_v54 = vpop.f32.mrf.mxu0  ;;  %v12622_v44 = vadd.f32 %v9741_v20, %v3177_v29  ;;  %v3178_v2 = vadd.f32 %v12338_v25, %v12442_v61 }
 0x219   : > { %v10336_v52 = vpop.eup %10335  ;;  %v4056_v5 = vmul.f32 %v10334_v33, %v12421_v0  ;;  %10361 = vrcp.f32 %v3963_v59  ;;  %v12609_v38 = vadd.f32 %v12394_v55, %v3807_v16  ;;  %v3810_v1 = vadd.f32 %v9778_v54, %v12525_v11  ;;  %v9742_v4 = vpop.f32.mrf.mxu1 }
 0x21a   : > { %v10338_v41 = vpop.eup %10337  ;;  %v3968_v51 = vadd.f32 1.0, %v10336_v52  ;;  %10363 = vpow2.f32 %v8343_v18  ;;  %v8348_v19 = vmul.f32 -1.442695, %v12605_v45  ;;  %v3731_v3 = vpop.f32.mrf.mxu0  ;;  %v12632_v43 = vadd.f32 %v3438_v13, %v3175_v57 }
 0x21b   : > { %v10340_v62 = vpop.eup %10339  ;;  %4088 = vst.msk [vmem:[#allocation3 + $0x28] sm:$0xff] %vm15020_vm3, %v4056_v5  ;;  %v4054_v0 = vmul.f32 %v10338_v41, %v12438_v50  ;;  %v8346_v24 = vmul.f32 -1.442695, %v12609_v38  ;;  %v12619_v40 = vadd.f32 %v12394_v55, %v3810_v1  ;;  %v3808_v11 = vadd.f32 %v3731_v3, %v12536_v8  ;;  %v3441_v52 = vpop.f32.mrf.mxu1  ;;  %vm15041_vm3 = vmmov %vm15023_vm0 }
 0x21c   : > { %v10342_v6 = vpop.eup %10341  ;;  %10365 = vrcp.f32 %v3968_v51  ;;  %v3966_v58 = vadd.f32 1.0, %v10340_v62  ;;  %v9781_v32 = vpop.f32.mrf.mxu0  ;;  %v3176_v16 = vadd.f32 %v12367_v27, %v12462_v31  ;;  %v12650_v27 = vadd.f32 %v9742_v4, %v3178_v2 }
 0x21d   : > { %v10344_v49 = vpop.eup %10343  ;;  %4086 = vst.msk [vmem:[#allocation3 + $0x18] sm:$0xff] %vm15021_vm1, %v4054_v0  ;;  %v4057_v50 = vmul.f32 %v10342_v6, %v12449_v21  ;;  %10367 = vpow2.f32 %v8348_v19  ;;  %v8349_v47 = vmul.f32 -1.442695, %v12619_v40  ;;  %v12630_v8 = vadd.f32 %v12394_v55, %v3808_v11  ;;  %vm15042_vm1 = vmmov %vm15023_vm0 }
 0x21e   : > { %v10346_v20 = vpop.eup %10345  ;;  %10369 = vrcp.f32 %v3966_v58  ;;  %v3969_v25 = vadd.f32 1.0, %v10344_v49  ;;  %v3813_v61 = vadd.f32 %v9781_v32, %v12544_v26  ;;  %v3744_v30 = vpop.f32.mrf.mxu0  ;;  %v12659_v3 = vadd.f32 %v3441_v52, %v3176_v16 }
 0x21f   : > { %v10348_v56 = vpop.eup %10347  ;;  %4089 = vst.msk [vmem:[#allocation3 + $0x30] sm:$0xff] %vm15022_vm6, %v4057_v50  ;;  %v4055_v37 = vmul.f32 %v10346_v20, %v12459_v14  ;;  %10371 = vpow2.f32 %v8346_v24  ;;  %v8347_v21 = vmul.f32 -1.442695, %v12630_v8  ;;  %v3811_v59 = vadd.f32 %v3744_v30, %v12555_v12  ;;  %v15026_v50 = vld [vmem:[#allocation8_spill] sm:$0xff] }
 0x220   : > { %v10350_v18 = vpop.eup %10349  ;;  %10373 = vrcp.f32 %v3969_v25  ;;  %v3967_v33 = vadd.f32 1.0, %v10348_v56  ;;  %v12642_v29 = vadd.f32 %v12394_v55, %v3813_v61  ;;  %v9782_v26 = vpop.f32.mrf.mxu0  ;;  %vm15027_vm15 = vnez %v15026_v50 }
 0x221   : > { %v10352_v54 = vpop.eup %10351  ;;  %4087 = vst.msk [vmem:[#allocation3 + $0x20] sm:$0xff] %vm15023_vm0, %v4055_v37  ;;  %v4060_v14 = vmul.f32 %v10350_v18, %v12470_v42  ;;  %10375 = vpow2.f32 %v8349_v47  ;;  %v12647_v13 = vadd.f32 %v12394_v55, %v3811_v59  ;;  %v3814_v12 = vadd.f32 %v9782_v26, %v12558_v35 }
 0x222   : > { %v10354_v5 = vpop.eup %10353  ;;  %10377 = vrcp.f32 %v3967_v33  ;;  %v3972_v31 = vadd.f32 1.0, %v10352_v54  ;;  %v8352_v1 = vmul.f32 -1.442695, %v12642_v29  ;;  %v3747_v41 = vpop.f32.mrf.mxu0  ;;  %v4210_v30 = vld [vmem:[#allocation3 + $0x28] sm:$0xff] }
 0x223   : > { %v10356_v57 = vpop.eup %10355  ;;  %4092 = vst.msk [vmem:[#allocation3 + $0x48] sm:$0xff] %vm15024_vm14, %v4060_v14  ;;  %v4058_v51 = vmul.f32 %v10354_v5, %v12481_v9  ;;  %10379 = vpow2.f32 %v8347_v21  ;;  %v8350_v42 = vmul.f32 -1.442695, %v12647_v13  ;;  %v12657_v19 = vadd.f32 %v12394_v55, %v3814_v12  ;;  %vm15046_vm14 = vmmov %vm15023_vm0 }
 0x224   : > { %v10358_v35 = vpop.eup %10357  ;;  %10381 = vrcp.f32 %v3972_v31  ;;  %v3970_v62 = vadd.f32 1.0, %v10356_v57  ;;  %v3812_v0 = vadd.f32 %v3747_v41, %v12568_v46  ;;  %v9785_v24 = vpop.f32.mrf.mxu0  ;;  %v12662_v11 = vld [vmem:[#allocation3 + $0x17] sm:$0xff]  ;;  %v10290_v41 = vld [vmem:[%s14437_s3 + $0x50] sm:$0xff]  }
 0x225   : > { %v10360_v6 = vpop.eup %10359  ;;  %4090 = vst.msk [vmem:[#allocation3 + $0x38] sm:$0xff] %vm15025_vm13, %v4058_v51  ;;  %v4061_v9 = vmul.f32 %v10358_v35, %v12492_v34  ;;  %10383 = vpow2.f32 %v8352_v1  ;;  %v8353_v2 = vmul.f32 -1.442695, %v12657_v19  ;;  %v3817_v58 = vadd.f32 %v9785_v24, %v12583_v36  ;;  %v4208_v54 = vld [vmem:[#allocation3 + $0x18] sm:$0xff]  ;;  %vm15047_vm13 = vmmov %vm15023_vm0 }
 0x226   : > { %v10362_v32 = vpop.eup %10361  ;;  %10385 = vrcp.f32 %v3970_v62  ;;  %v3973_v49 = vadd.f32 1.0, %v10360_v6  ;;  %v12669_v4 = vadd.f32 %v12394_v55, %v3812_v0  ;;  %v3760_v46 = vpop.f32.mrf.mxu0  ;;  %v4152_v47 = vsel %vm15027_vm15, 0.0, %v12662_v11  ;;  %v4211_v20 = vld [vmem:[#allocation3 + $0x30] sm:$0xff]  ;;  %v15035_v6 = vld [vmem:[#allocation9_spill] sm:$0xff] }
 0x227   : > { %v10364_v25 = vpop.eup %10363  ;;  %4093 = vst.msk [vmem:[#allocation3 + $0x50] sm:$0xff] %vm15028_vm4, %v4061_v9  ;;  %v4059_v34 = vmul.f32 %v10362_v32, %v12505_v10  ;;  %10387 = vpow2.f32 %v8350_v42  ;;  %v12677_v36 = vadd.f32 %v12394_v55, %v3817_v58  ;;  %v3815_v61 = vadd.f32 %v3760_v46, %v12593_v22  ;;  %vm15049_vm4 = vmmov %vm15023_vm0 }
 0x228   : > { %10389 = vrcp.f32 %v3973_v49  ;;  %v3971_v56 = vadd.f32 1.0, %v10364_v25  ;;  %v8351_v37 = vmul.f32 -1.442695, %v12669_v4  ;;  %v9786_v21 = vpop.f32.mrf.mxu0  ;;  %v4209_v59 = vld [vmem:[#allocation3 + $0x20] sm:$0xff]  ;;  %v12683_v16 = vpack.c.bf16 %v4211_v20, %v4210_v30  ;;  %v15038_v49 = vld [vmem:[#allocation104_spill] sm:$0xff]  ;;  %v15040_v30 = vld [vmem:[#allocation114_spill] sm:$0xff] }
 0x229   : > { %v12681_v18 = vld [vmem:[#allocation3 + $0x1f] sm:$0xff]  ;;  %v10366_v33 = vpop.eup %10365  ;;  %4091 = vst.msk [vmem:[#allocation3 + $0x40] sm:$0xff] %vm15030_vm10, %v4059_v34  ;;  %10391 = vpow2.f32 %v8353_v2  ;;  %v8356_v10 = vmul.f32 -1.442695, %v12677_v36  ;;  %v12688_v26 = vadd.f32 %v12394_v55, %v3815_v61  ;;  %v3818_v22 = vadd.f32 %v9786_v21, %v12595_v23  ;;  %v12691_v52 = vld [vmem:[#allocation3 + $0x27] sm:$0xff]  ;;  %vm15050_vm10 = vmmov %vm15023_vm0 }
 0x22a   : > { %15029 = vst [vmem:[#allocation41_spill] sm:$0xff] %v12683_v16  ;;  %v10368_v14 = vpop.eup %10367  ;;  %v4064_v12 = vmul.f32 %v10366_v33, %v12516_v39  ;;  %10393 = vrcp.f32 %v3971_v56  ;;  %v3763_v5 = vpop.f32.mrf.mxu0  ;;  %v12694_v31 = vpack.c.bf16 %v4209_v59, %v4208_v54  ;;  %v4183_v1 = vpack.c.bf16 %v12681_v18, %v4152_v47  ;;  %v10294_v39 = vld [vmem:[%s14437_s3 + $0x70] sm:$0xff]   ;;  %v10291_v61 = vld [vmem:[%s14437_s3 + $0x48] sm:$0xff]  }
 0x22b   : > { %v10370_v57 = vpop.eup %10369  ;;  %v3976_v51 = vadd.f32 1.0, %v10368_v14  ;;  %10395 = vpow2.f32 %v8351_v37  ;;  %v8354_v23 = vmul.f32 -1.442695, %v12688_v26  ;;  %v12702_v42 = vadd.f32 %v12394_v55, %v3818_v22  ;;  %v12742_v59 = vld [vmem:[%s14437_s3 + $0x68] sm:$0xff]  }
 0x22c   : > { %15031 = vst [vmem:[#allocation42_spill] sm:$0xff] %v12694_v31  ;;  %v10372_v35 = vpop.eup %10371  ;;  %4096 = vst.msk [vmem:[#allocation3 + $0x68] sm:$0xff] %vm15032_vm12, %v4064_v12  ;;  %v4062_v62 = vmul.f32 %v10370_v57, %v12533_v63  ;;  %10397 = vpow2.f32 %v8356_v10  ;;  %v3816_v0 = vadd.f32 %v3763_v5, %v12602_v17  ;;  %9800 = vmatmul.mubr.msk.bf16.vlgmr.msra.gmra.mxu1 %vm15033_vm8, %v12694_v31  ;;  %9840 = vmatmul.mubr.msk.bf16.vlgmr.msra.gmra.mxu0 %vm15034_vm2, %v4183_v1  ;;  %v9789_v24 = vpop.f32.mrf.mxu0  ;;  %v12720_v17 = vld [vmem:[#allocation3 + $0x2f] sm:$0xff]  ;;  %v12723_v46 = vld [vmem:[#allocation3 + $0x37] sm:$0xff] }
 0x22d   : > { %vm15036_vm5 = vnez %v15035_v6  ;;  %v10374_v2 = vpop.eup %10373  ;;  %10399 = vrcp.f32 %v3976_v51  ;;  %v3974_v58 = vadd.f32 1.0, %v10372_v35  ;;  %v8357_v32 = vmul.f32 -1.442695, %v12702_v42  ;;  %9803 = vmatprep.mubr.msk.bf16.mxu1 %vm15037_vm7, %v12683_v16  ;;  %9872 = vmatpush3.bf16.msra.mxu1 %v15038_v49  ;;  %vm15053_vm8 = vmmov %vm15023_vm0 }
 0x22e   : > { %v4154_v9 = vsel %vm15036_vm5, 0.0, %v12691_v52  ;;  %v3821_v63 = vadd.f32 %v9789_v24, %v12622_v44  ;;  %v10376_v47 = vpop.eup %10375  ;;  %4094 = vst.msk [vmem:[#allocation3 + $0x58] sm:$0xff] %vm15039_vm9, %v4062_v62  ;;  %v4065_v20 = vmul.f32 %v10374_v2, %v12549_v60  ;;  %10401 = vpow2.f32 %v8354_v23  ;;  %v3776_v34 = vpop.f32.mrf.mxu0  ;;  %9873 = vmatprep.subr.bf16.mxu1 %v10290_v41  ;;  %9912 = vmatpush3.bf16.msra.mxu0 %v15040_v30  ;;  %v4215_v2 = vld [vmem:[#allocation3 + $0x50] sm:$0xff]  ;;  %vm15054_vm2 = vmmov %vm15023_vm0 }
 0x22f   : > { %v12728_v25 = vadd.f32 %v12394_v55, %v3816_v0  ;;  %v4184_v44 = vpack.c.bf16 %v12720_v17, %v4154_v9  ;;  %v10378_v56 = vpop.eup %10377  ;;  %10403 = vrcp.f32 %v3974_v58  ;;  %v3977_v37 = vadd.f32 1.0, %v10376_v47  ;;  %9913 = vmatprep.subr.bf16.mxu0 %v10294_v39  ;;  %v10292_v58 = vld [vmem:[%s14437_s3 + $0x40] sm:$0xff]   ;;  %vm15055_vm7 = vmmov %vm15023_vm0 }
 0x230   : > { %v12736_v21 = vadd.f32 %v12394_v55, %v3821_v63  ;;  %v3819_v60 = vadd.f32 %v3776_v34, %v12632_v43  ;;  %v10380_v33 = vpop.eup %10379  ;;  %4097 = vst.msk [vmem:[#allocation3 + $0x70] sm:$0xff] %vm15041_vm3, %v4065_v20  ;;  %v4063_v10 = vmul.f32 %v10378_v56, %v12552_v7  ;;  %10405 = vpow2.f32 %v8357_v32  ;;  %v9790_v54 = vpop.f32.mrf.mxu0  ;;  %v4213_v14 = vld [vmem:[#allocation3 + $0x40] sm:$0xff]  ;;  %v15043_v43 = vld [vmem:[#allocation10_spill] sm:$0xff]  ;;  %v4212_v7 = vld [vmem:[#allocation3 + $0x38] sm:$0xff] }
 0x231   : > { %v8355_v22 = vmul.f32 -1.442695, %v12728_v25  ;;  %9843 = vmatprep.mubr.msk.bf16.mxu0 %vm15042_vm1, %v4184_v44  ;;  %vm15044_vm6 = vnez %v15043_v43  ;;  %v10382_v5 = vpop.eup %10381  ;;  %10407 = vrcp.f32 %v3977_v37  ;;  %v3975_v1 = vadd.f32 1.0, %v10380_v33  ;;  %v12755_v23 = vld [vmem:[#allocation3 + $0x3f] sm:$0xff]  ;;  %9874 = vmatpush3.bf16.msra.mxu1 %v10290_v41  ;;  %v12767_v49 = vld [vmem:[#allocation3 + $0x47] sm:$0xff]  ;;  %vm15058_vm3 = vmmov %vm15023_vm0 }
 0x232   : > { %v4156_v12 = vsel %vm15044_vm6, 0.0, %v12723_v46  ;;  %v8360_v57 = vmul.f32 -1.442695, %v12736_v21  ;;  %v12753_v51 = vadd.f32 %v12394_v55, %v3819_v60  ;;  %v10384_v35 = vpop.eup %10383  ;;  %4095 = vst.msk [vmem:[#allocation3 + $0x60] sm:$0xff] %vm15023_vm0, %v4063_v10  ;;  %v4068_v62 = vmul.f32 %v10382_v5, %v12563_v15  ;;  %v3779_v24 = vpop.f32.mrf.mxu0  ;;  %9875 = vmatprep.subr.bf16.mxu1 %v10291_v61  ;;  %9914 = vmatpush3.bf16.msra.mxu0 %v10294_v39  ;;  %v4214_v44 = vld [vmem:[#allocation3 + $0x48] sm:$0xff] }
 0x233   : > { %10409 = vpow2.f32 %v8355_v22  ;;  %v3822_v0 = vadd.f32 %v9790_v54, %v12650_v27  ;;  %v12760_v9 = vpack.c.bf16 %v4213_v14, %v4212_v7  ;;  %v10386_v32 = vpop.eup %10385  ;;  %v3980_v41 = vadd.f32 1.0, %v10384_v35  ;;  %9915 = vmatprep.subr.bf16.mxu0 %v12742_v59  ;;  %v12790_v10 = vld [vmem:[#allocation3 + $0x4f] sm:$0xff] }
 0x234   : > { %10411 = vrcp.f32 %v3975_v1  ;;  %v8358_v63 = vmul.f32 -1.442695, %v12753_v51  ;;  %v3820_v15 = vadd.f32 %v3779_v24, %v12659_v3  ;;  %v10388_v27 = vpop.eup %10387  ;;  %4100 = vst.msk [vmem:[#allocation3 + $0x88] sm:$0xff] %vm15046_vm14, %v4068_v62  ;;  %v4066_v47 = vmul.f32 %v10386_v32, %v12576_v28  ;;  %v10296_v3 = vld [vmem:[%s14437_s3 + $0x60] sm:$0xff]   ;;  %v12812_v62 = vld [vmem:[%s14437_s3 + $0xb8] sm:$0xff]   ;;  %v15056_v32 = vld [vmem:[#allocation12_spill] sm:$0xff] }
 0x235   : > { %15045 = vst [vmem:[#allocation43_spill] sm:$0xff] %v12760_v9  ;;  %10413 = vpow2.f32 %v8360_v57  ;;  %v12773_v20 = vadd.f32 %v12394_v55, %v3822_v0  ;;  %9804 = vmatmul.mubr.msk.bf16.gmra.mxu1 %vm15047_vm13, %v12760_v9  ;;  %v4185_v39 = vpack.c.bf16 %v12755_v23, %v4156_v12  ;;  %v10390_v34 = vpop.eup %10389  ;;  %v3978_v30 = vadd.f32 1.0, %v10388_v27  ;;  %v15051_v22 = vld [vmem:[#allocation11_spill] sm:$0xff]  ;;  %v4216_v7 = vld [vmem:[#allocation3 + $0x58] sm:$0xff]  ;;  %vm15063_vm14 = vmmov %vm15023_vm0 }
 0x236   : > { %10415 = vrcp.f32 %v3980_v41  ;;  %v12782_v56 = vadd.f32 %v12394_v55, %v3820_v15  ;;  %v12784_v28 = vpack.c.bf16 %v4215_v2, %v4214_v44  ;;  %9876 = vmatpush3.bf16.msra.mxu1 %v10291_v61  ;;  %v10392_v37 = vpop.eup %10391  ;;  %4098 = vst.msk [vmem:[#allocation3 + $0x78] sm:$0xff] %vm15049_vm4, %v4066_v47  ;;  %v4069_v60 = vmul.f32 %v10390_v34, %v12579_v48  ;;  %v12795_v54 = vld [vmem:[#allocation3 + $0x57] sm:$0xff]  ;;  %v12800_v61 = vld [vmem:[%s14437_s3 + $0x98] sm:$0xff]   ;;  %vm15064_vm13 = vmmov %vm15023_vm0 }
 0x237   : > { %10417 = vpow2.f32 %v8358_v63  ;;  %v8361_v33 = vmul.f32 -1.442695, %v12773_v20  ;;  %9844 = vmatmul.mubr.msk.bf16.gmra.mxu0 %vm15050_vm10, %v4185_v39  ;;  %vm15052_vm12 = vnez %v15051_v22  ;;  %9877 = vmatprep.subr.bf16.mxu1 %v10292_v58  ;;  %v10394_v48 = vpop.eup %10393  ;;  %v3981_v14 = vadd.f32 1.0, %v10392_v37  ;;  %v4219_v35 = vld [vmem:[#allocation3 + $0x70] sm:$0xff]  ;;  %v4218_v39 = vld [vmem:[#allocation3 + $0x68] sm:$0xff]  ;;  %vm15065_vm4 = vmmov %vm15023_vm0 }
 0x238   : > { %15048 = vst [vmem:[#allocation24_spill] sm:$0xff] %v12784_v28  ;;  %v4158_v55 = vsel %vm15052_vm12, 0.0, %v12767_v49  ;;  %10419 = vrcp.f32 %v3978_v30  ;;  %v8359_v12 = vmul.f32 -1.442695, %v12782_v56  ;;  %9807 = vmatprep.mubr.msk.bf16.mxu1 %vm15053_vm8, %v12784_v28  ;;  %9916 = vmatpush3.bf16.msra.mxu0 %v12742_v59  ;;  %v10396_v1 = vpop.eup %10395  ;;  %4101 = vst.msk [vmem:[#allocation3 + $0x90] sm:$0xff] %vm15054_vm2, %v4069_v60  ;;  %v4067_v57 = vmul.f32 %v10394_v48, %v12590_v53  ;;  %v12830_v37 = vld [vmem:[#allocation3 + $0x6f] sm:$0xff] }
 0x239   : > { %v4186_v5 = vpack.c.bf16 %v12790_v10, %v4158_v55  ;;  %10421 = vpow2.f32 %v8361_v33  ;;  %9917 = vmatprep.subr.bf16.mxu0 %v10296_v3  ;;  %v10398_v0 = vpop.eup %10397  ;;  %v3979_v24 = vadd.f32 1.0, %v10396_v1  ;;  %v4217_v59 = vld [vmem:[#allocation3 + $0x60] sm:$0xff]  ;;  %vm15057_vm9 = vnez %v15056_v32  ;;  %vm15066_vm10 = vmmov %vm15023_vm0  ;;  %v15112_v9 = vld [vmem:[#allocation19_spill] sm:$0xff] }
 0x23a   : > { %10423 = vrcp.f32 %v3981_v14  ;;  %v12815_v2 = vld [vmem:[#allocation3 + $0x5f] sm:$0xff]  ;;  %v4160_v53 = vsel %vm15057_vm9, 0.0, %v12795_v54  ;;  %v12820_v41 = vld [vmem:[#allocation3 + $0x67] sm:$0xff]  ;;  %9878 = vmatpush3.bf16.msra.mxu1 %v10292_v58  ;;  %v10400_v63 = vpop.eup %10399  ;;  %4099 = vst.msk [vmem:[#allocation3 + $0x80] sm:$0xff] %vm15058_vm3, %v4067_v57  ;;  %v3984_v15 = vadd.f32 1.0, %v10398_v0  ;;  %v12823_v27 = vpack.c.bf16 %v4217_v59, %v4216_v7  ;;  %vm15067_vm8 = vmmov %vm15023_vm0 }
 0x23b   : > { %9847 = vmatprep.mubr.msk.bf16.mxu0 %vm15055_vm7, %v4186_v5  ;;  %10425 = vpow2.f32 %v8359_v12  ;;  %v4187_v47 = vpack.c.bf16 %v12815_v2, %v4160_v53  ;;  %9951 = vmatprep.subr.bf16.mxu1 %v12800_v61  ;;  %v10402_v44 = vpop.eup %10401  ;;  %v4072_v34 = vmul.f32 %v10400_v63, %v12605_v45  ;;  %v12828_v30 = vpack.c.bf16 %v4219_v35, %v4218_v39  ;;  %v15061_v58 = vld [vmem:[#allocation13_spill] sm:$0xff]  ;;  %vm15068_vm2 = vmmov %vm15023_vm0  ;;  %v12966_v31 = vld [vmem:[#allocation3 + $0x69] sm:$0xff] }
 0x23c   : > { %15059 = vst [vmem:[#allocation44_spill] sm:$0xff] %v12823_v27  ;;  %10427 = vrcp.f32 %v3979_v24  ;;  %vm15062_vm1 = vnez %v15061_v58  ;;  %9918 = vmatpush3.bf16.msra.mxu0 %v10296_v3  ;;  %v10404_v33 = vpop.eup %10403  ;;  %v3982_v55 = vadd.f32 1.0, %v10402_v44  ;;  %vm15072_vm3 = vmmov %vm15023_vm0 }
 0x23d   : > { %15060 = vst [vmem:[#allocation28_spill] sm:$0xff] %v12828_v30  ;;  %v4162_v60 = vsel %vm15062_vm1, 0.0, %v12820_v41  ;;  %10429 = vrcp.f32 %v3984_v15  ;;  %9808 = vmatmul.mubr.msk.bf16.gmra.mxu1 %vm15023_vm0, %v12823_v27  ;;  %9991 = vmatprep.subr.bf16.mxu0 %v12812_v62  ;;  %v10406_v45 = vpop.eup %10405  ;;  %4104 = vst.msk [vmem:[#allocation3 + $0xa8] sm:$0xff] %vm15063_vm14, %v4072_v34  ;;  %v4070_v14 = vmul.f32 %v10404_v33, %v12609_v38  ;;  %v12844_v5 = vld [vmem:[#allocation3 + $0x77] sm:$0xff]  ;;  %v15069_v15 = vld [vmem:[#allocation14_spill] sm:$0xff] }
 0x23e   : > { %v4188_v48 = vpack.c.bf16 %v12830_v37, %v4162_v60  ;;  %9811 = vmatprep.mubr.msk.bf16.mxu1 %vm15064_vm13, %v12828_v30  ;;  %v10408_v12 = vpop.eup %10407  ;;  %10431 = vrcp.f32 %v3982_v55  ;;  %v3985_v3 = vadd.f32 1.0, %v10406_v45  ;;  %v4220_v35 = vld [vmem:[#allocation3 + $0x78] sm:$0xff]  ;;  %vm15070_vm7 = vnez %v15069_v15  ;;  %v4222_v33 = vld [vmem:[#allocation3 + $0x88] sm:$0xff]  ;;  %vm15076_vm14 = vmmov %vm15068_vm2 }
 0x23f   : > { %9848 = vmatmul.mubr.msk.bf16.gmra.mxu0 %vm15065_vm4, %v4187_v47  ;;  %4102 = vst.msk [vmem:[#allocation3 + $0x98] sm:$0xff] %vm15066_vm10, %v4070_v14  ;;  %v4073_v57 = vmul.f32 %v10408_v12, %v12619_v40  ;;  %v4223_v0 = vld [vmem:[#allocation3 + $0x90] sm:$0xff]  ;;  %v4164_v47 = vsel %vm15070_vm7, 0.0, %v12844_v5  ;;  %vm15077_vm13 = vmmov %vm15068_vm2 }
 0x240   : > { %v10410_v1 = vpop.eup %10409  ;;  %9851 = vmatprep.mubr.msk.bf16.mxu0 %vm15067_vm8, %v4188_v48  ;;  %10433 = vrcp.f32 %v3985_v3  ;;  %v12863_v48 = vpack.c.bf16 %v4223_v0, %v4222_v33  ;;  %v12865_v45 = vld [vmem:[#allocation3 + $0x8f] sm:$0xff]  ;;  %vm15078_vm4 = vmmov %vm15068_vm2 }
 0x241   : > { %v10412_v7 = vpop.eup %10411  ;;  %v3983_v38 = vadd.f32 1.0, %v10410_v1  ;;  %4105 = vst.msk [vmem:[#allocation3 + $0xb0] sm:$0xff] %vm15068_vm2, %v4073_v57  ;;  %v4221_v53 = vld [vmem:[#allocation3 + $0x80] sm:$0xff]  ;;  %v15074_v14 = vld [vmem:[#allocation15_spill] sm:$0xff]  ;;  %vm15079_vm10 = vmmov %vm15068_vm2 }
 0x242   : > { %v10414_v24 = vpop.eup %10413  ;;  %v4071_v59 = vmul.f32 %v10412_v7, %v12630_v8  ;;  %v12851_v63 = vld [vmem:[#allocation3 + $0x7f] sm:$0xff]  ;;  %v12856_v40 = vld [vmem:[#allocation3 + $0x87] sm:$0xff]  ;;  %v12858_v34 = vpack.c.bf16 %v4221_v53, %v4220_v35  ;;  %15073 = vst [vmem:[#allocation46_spill] sm:$0xff] %v12863_v48  ;;  %vm15075_vm0 = vnez %v15074_v14  ;;  %vm15080_vm8 = vmmov %vm15068_vm2 }
 0x243   : > { %v10416_v39 = vpop.eup %10415  ;;  %10435 = vrcp.f32 %v3983_v38  ;;  %v3988_v44 = vadd.f32 1.0, %v10414_v24  ;;  %v4189_v60 = vpack.c.bf16 %v12851_v63, %v4164_v47  ;;  %v4166_v12 = vsel %vm15075_vm0, 0.0, %v12856_v40 }
 0x244   : > { %15071 = vst [vmem:[#allocation45_spill] sm:$0xff] %v12858_v34  ;;  %v10418_v55 = vpop.eup %10417  ;;  %4103 = vst.msk [vmem:[#allocation3 + $0xa0] sm:$0xff] %vm15072_vm3, %v4071_v59  ;;  %v4076_v8 = vmul.f32 %v10416_v39, %v12642_v29  ;;  %v4190_v57 = vpack.c.bf16 %v12865_v45, %v4166_v12 }
 0x245   : > { %v10420_v3 = vpop.eup %10419  ;;  %10437 = vrcp.f32 %v3988_v44  ;;  %v3986_v1 = vadd.f32 1.0, %v10418_v55  ;;  %9812 = vmatmul.mubr.msk.bf16.gmra.mxu1 %vm15076_vm14, %v12858_v34  ;;  %vm15081_vm3 = vmmov %vm15068_vm2  ;;  %v15108_v34 = vld [vmem:[#allocation30_spill] sm:$0xff] }
 0x246   : > { %v10422_v7 = vpop.eup %10421  ;;  %4108 = vst.msk [vmem:[#allocation3 + $0xc8] sm:$0xff] %vm15077_vm13, %v4076_v8  ;;  %v4074_v29 = vmul.f32 %v10420_v3, %v12647_v13  ;;  %9815 = vmatprep.mubr.msk.bf16.mxu1 %vm15078_vm4, %v12863_v48  ;;  %v12881_v59 = vld [vmem:[#allocation3 + $0x97] sm:$0xff]  ;;  %vm15084_vm13 = vmmov %vm15068_vm2 }
 0x247   : > { %v10424_v38 = vpop.eup %10423  ;;  %10439 = vrcp.f32 %v3986_v1  ;;  %v3989_v35 = vadd.f32 1.0, %v10422_v7  ;;  %9852 = vmatmul.mubr.msk.bf16.gmra.mxu0 %vm15079_vm10, %v4189_v60  ;;  %v4224_v44 = vld [vmem:[#allocation3 + $0x98] sm:$0xff]  ;;  %v4226_v7 = vld [vmem:[#allocation3 + $0xa8] sm:$0xff]  ;;  %vm15089_vm10 = vmmov %vm15068_vm2 }
 0x248   : > { %v10426_v0 = vpop.eup %10425  ;;  %4106 = vst.msk [vmem:[#allocation3 + $0xb8] sm:$0xff] %vm15080_vm8, %v4074_v29  ;;  %v4077_v24 = vmul.f32 %v10424_v38, %v12657_v19  ;;  %9855 = vmatprep.mubr.msk.bf16.mxu0 %vm15068_vm2, %v4190_v57  ;;  %v4227_v33 = vld [vmem:[#allocation3 + $0xb0] sm:$0xff]  ;;  %v15082_v19 = vld [vmem:[#allocation16_spill] sm:$0xff]  ;;  %vm15091_vm8 = vmmov %vm15068_vm2 }
 0x249   : > { %v10428_v53 = vpop.eup %10427  ;;  %10441 = vrcp.f32 %v3989_v35  ;;  %v3987_v13 = vadd.f32 1.0, %v10426_v0  ;;  %vm15083_vm14 = vnez %v15082_v19  ;;  %v12897_v29 = vld [vmem:[#allocation3 + $0xaf] sm:$0xff]  ;;  %v12904_v0 = vpack.c.bf16 %v4227_v33, %v4226_v7 }
 0x24a   : > { %v10430_v47 = vpop.eup %10429  ;;  %4109 = vst.msk [vmem:[#allocation3 + $0xd0] sm:$0xff] %vm15081_vm3, %v4077_v24  ;;  %v4075_v39 = vmul.f32 %v10428_v53, %v12669_v4  ;;  %v4168_v12 = vsel %vm15083_vm14, 0.0, %v12881_v59  ;;  %15086 = vst [vmem:[#allocation48_spill] sm:$0xff] %v12897_v29  ;;  %v12921_v33 = vld [vmem:[#allocation3 + $0x71] sm:$0xff] }
 0x24b   : > { %v4080_v60 = vmul.f32 %v10430_v47, %v12677_v36  ;;  %10443 = vrcp.f32 %v3987_v13  ;;  %v4225_v55 = vld [vmem:[#allocation3 + $0xa0] sm:$0xff]  ;;  %v10432_v1 = vpop.eup %10431  ;;  %15090 = vst [vmem:[#allocation49_spill] sm:$0xff] %v12904_v0  ;;  %v12909_v13 = vld [vmem:[#allocation3 + $0x31] sm:$0xff]  ;;  %vm15092_vm3 = vmmov %vm15068_vm2 }
 0x24c   : > { %v12886_v8 = vld [vmem:[#allocation3 + $0x9f] sm:$0xff]  ;;  %v12891_v3 = vld [vmem:[#allocation3 + $0xa7] sm:$0xff]  ;;  %4107 = vst.msk [vmem:[#allocation3 + $0xc0] sm:$0xff] %vm15084_vm13, %v4075_v39  ;;  %v12894_v57 = vpack.c.bf16 %v4225_v55, %v4224_v44  ;;  %v4078_v35 = vmul.f32 %v10432_v1, %v12688_v26  ;;  %vm15093_vm13 = vmmov %vm15068_vm2 }
 0x24d   : > { %v4191_v4 = vpack.c.bf16 %v12886_v8, %v4168_v12  ;;  %v15087_v36 = vld [vmem:[#allocation17_spill] sm:$0xff]  ;;  %4112 = vst.msk [vmem:[#allocation3 + $0xe8] sm:$0xff] %vm15089_vm10, %v4080_v60  ;;  %v10434_v53 = vpop.eup %10433  ;;  %v12916_v26 = vld [vmem:[#allocation3 + $0x51] sm:$0xff]  ;;  %vm15094_vm10 = vmmov %vm15068_vm2 }
 0x24e   : > { %15085 = vst [vmem:[#allocation47_spill] sm:$0xff] %v12894_v57  ;;  %vm15088_vm4 = vnez %v15087_v36  ;;  %9816 = vmatmul.mubr.msk.bf16.gmra.mxu1 %vm15091_vm8, %v12894_v57  ;;  %4110 = vst.msk [vmem:[#allocation3 + $0xd8] sm:$0xff] %vm15068_vm2, %v4078_v35  ;;  %v4081_v47 = vmul.f32 %v10434_v53, %v12702_v42  ;;  %v12925_v55 = vld [vmem:[#allocation3 + $0x29] sm:$0xff]  ;;  %v15097_v42 = vld [vmem:[#allocation25_spill] sm:$0xff] }
 0x24f   : > { %v4170_v38 = vsel %vm15088_vm4, 0.0, %v12891_v3  ;;  %9856 = vmatmul.mubr.msk.bf16.gmra.mxu0 %vm15092_vm3, %v4191_v4  ;;  %9819 = vmatprep.mubr.msk.bf16.mxu1 %vm15093_vm13, %v12904_v0  ;;  %v12919_v44 = vld [vmem:[#allocation3 + $0xb7] sm:$0xff]  ;;  %vm15096_vm8 = vmmov %vm15068_vm2  ;;  %vm15098_vm2 = vnez %v15097_v42  ;;  %v15104_v0 = vld [vmem:[#allocation18_spill] sm:$0xff] }
 0x250   : > { %v4192_v24 = vpack.c.bf16 %v12897_v29, %v4170_v38  ;;  %v10436_v39 = vpop.eup %10435  ;;  %15095 = vst [vmem:[#allocation50_spill] sm:$0xff] %v12919_v44  ;;  %4113 = vst.msk [vmem:[#allocation3 + $0xf0] sm:$0xff] %vm15096_vm8, %v4081_v47  ;;  %v5794_v12 = vsel %vm15098_vm2, 0.0, %v12909_v13  ;;  %v4228_v4 = vld [vmem:[#allocation3 + $0xb8] sm:$0xff]  ;;  %v12930_v38 = vld [vmem:[#allocation3 + $0x49] sm:$0xff] }
 0x251   : > { %v4079_v60 = vmul.f32 %v10436_v39, %v12728_v25  ;;  %v4231_v7 = vld [vmem:[#allocation3 + $0xd0] sm:$0xff]  ;;  %v12933_v35 = vpack.c.bf16 %v5794_v12, %v12925_v55  ;;  %vm15102_vm13 = vmmov %vm15096_vm8  ;;  %vm15109_vm8 = vnez %v15108_v34 }
 0x252   : > { %9859 = vmatprep.mubr.msk.bf16.mxu0 %vm15094_vm10, %v4192_v24  ;;  %v10438_v1 = vpop.eup %10437  ;;  %v15100_v24 = vld [vmem:[#allocation27_spill] sm:$0xff]  ;;  %vm15105_vm10 = vnez %v15104_v0  ;;  %v5802_v30 = vsel %vm15109_vm8, 0.0, %v12921_v33  ;;  %v15131_v0 = vld [vmem:[#allocation34_spill] sm:$0xff] }
 0x253   : > { %15099 = vst [vmem:[#allocation51_spill] sm:$0xff] %v12933_v35  ;;  %vm15101_vm3 = vnez %v15100_v24  ;;  %4111 = vst.msk [vmem:[#allocation3 + $0xe0] sm:$0xff] %vm15102_vm13, %v4079_v60  ;;  %v4084_v25 = vmul.f32 %v10438_v1, %v12736_v21  ;;  %v4229_v47 = vld [vmem:[#allocation3 + $0xc0] sm:$0xff]  ;;  %v4172_v57 = vsel %vm15105_vm10, 0.0, %v12919_v44  ;;  %v4230_v1 = vld [vmem:[#allocation3 + $0xc8] sm:$0xff]  ;;  %vm15113_vm13 = vnez %v15112_v9 }
 0x254   : > { %v5798_v53 = vsel %vm15101_vm3, 0.0, %v12916_v26  ;;  %v12940_v39 = vld [vmem:[#allocation3 + $0xbf] sm:$0xff]  ;;  %v12945_v48 = vld [vmem:[#allocation3 + $0xc7] sm:$0xff]  ;;  %v10440_v27 = vpop.eup %10439  ;;  %v12953_v60 = vpack.c.bf16 %v4229_v47, %v4228_v4  ;;  %v12956_v28 = vld [vmem:[#allocation3 + $0xcf] sm:$0xff]  ;;  %vm15114_vm10 = vcmask 523264   ;;  %v12973_v47 = vpack.c.bf16 %v5802_v30, %v12966_v31 }
 0x255   : > { %15103 = vst [vmem:[#allocation52_spill] sm:$0xff] %v12940_v39  ;;  %15106 = vst [vmem:[#allocation53_spill] sm:$0xff] %v12945_v48  ;;  %v12948_v12 = vpack.c.bf16 %v5798_v53, %v12930_v38  ;;  %v4193_v21 = vpack.c.bf16 %v12940_v39, %v4172_v57  ;;  %v4174_v35 = vsel %vm15113_vm13, 0.0, %v12945_v48  ;;  %v4082_v53 = vmul.f32 %v10440_v27, %v12753_v51  ;;  %v12968_v4 = vld [vmem:[#allocation3 + $0x91] sm:$0xff]  ;;  %v12987_v30 = vld [vmem:[#allocation3 + $0x89] sm:$0xff] }
 0x256   : > { %15110 = vst [vmem:[#allocation55_spill] sm:$0xff] %v12953_v60  ;;  %15111 = vst [vmem:[#allocation56_spill] sm:$0xff] %v12956_v28  ;;  %v4194_v16 = vpack.c.bf16 %v12956_v28, %v4174_v35  ;;  %v10442_v57 = vpop.eup %10441  ;;  %v12980_v51 = vld [vmem:[#allocation3 + $0xd7] sm:$0xff]  ;;  %v13019_v39 = vld [vmem:[#allocation3 + $0xa9] sm:$0xff] }
 0x257   : > { %15107 = vst [vmem:[#allocation54_spill] sm:$0xff] %v12948_v12  ;;  %4116 = vst.msk [vmem:[#allocation3 + $0x108] sm:$0xff] %vm15114_vm10, %v4084_v25  ;;  %v12963_v12 = vpack.c.bf16 %v4231_v7, %v4230_v1  ;;  %v4085_v25 = vmul.f32 %v10442_v57, %v12773_v20  ;;  %v12982_v27 = vld [vmem:[#allocation3 + $0xb1] sm:$0xff]  ;;  %v4234_v36 = vld [vmem:[#allocation3 + $0xe8] sm:$0xff] }
 0x258   : > { %vm15116_vm4 = vmmov %vm15114_vm10  ;;  %15117 = vst [vmem:[#allocation58_spill] sm:$0xff] %v12973_v47  ;;  %v12984_v7 = vld [vmem:[#allocation3 + $0xd1] sm:$0xff]  ;;  %v10444_v35 = vpop.eup %10443  ;;  %v13022_v29 = vld [vmem:[#allocation3 + $0xc9] sm:$0xff] }
 0x259   : > { %15115 = vst [vmem:[#allocation57_spill] sm:$0xff] %v12963_v12  ;;  %9820 = vmatmul.mubr.msk.bf16.gmra.mxu1 %vm15116_vm4, %v12953_v60  ;;  %vm15118_vm13 = vmmov %vm15116_vm4  ;;  %v15123_v1 = vld [vmem:[#allocation32_spill] sm:$0xff]  ;;  %v4235_v57 = vld [vmem:[#allocation3 + $0xf0] sm:$0xff] }
 0x25a   : > { %4114 = vst.msk [vmem:[#allocation3 + $0xf8] sm:$0xff] %vm15118_vm13, %v4082_v53  ;;  %vm15119_vm10 = vmmov %vm15116_vm4  ;;  %vm15124_vm13 = vnez %v15123_v1  ;;  %v4232_v53 = vld [vmem:[#allocation3 + $0xd8] sm:$0xff]  ;;  %v4233_v60 = vld [vmem:[#allocation3 + $0xe0] sm:$0xff] }
 0x25b   : > { %9860 = vmatmul.mubr.msk.bf16.gmra.mxu0 %vm15119_vm10, %v4193_v21  ;;  %vm15120_vm14 = vmmov %vm15116_vm4  ;;  %15121 = vst [vmem:[#allocation59_spill] sm:$0xff] %v12980_v51  ;;  %v5806_v20 = vsel %vm15124_vm13, 0.0, %v12968_v4  ;;  %v4083_v21 = vmul.f32 %v10444_v35, %v12782_v56  ;;  %v12997_v47 = vld [vmem:[#allocation3 + $0xdf] sm:$0xff]  ;;  %v13002_v28 = vld [vmem:[#allocation3 + $0xe7] sm:$0xff]  ;;  %vm15132_vm10 = vnez %v15131_v0 }
 0x25c   : > { %9823 = vmatprep.mubr.msk.bf16.mxu1 %vm15120_vm14, %v12963_v12  ;;  %15122 = vst [vmem:[#allocation60_spill] sm:$0xff] %v12984_v7  ;;  %9863 = vmatprep.mubr.msk.bf16.mxu0 %vm15116_vm4, %v4194_v16  ;;  %vm15125_vm0 = vmmov %vm15116_vm4  ;;  %v12995_v12 = vpack.c.bf16 %v5806_v20, %v12987_v30  ;;  %v15128_v16 = vld [vmem:[#allocation20_spill] sm:$0xff]  ;;  %v13011_v20 = vpack.c.bf16 %v4233_v60, %v4232_v53  ;;  %v13014_v48 = vld [vmem:[#allocation3 + $0xef] sm:$0xff] }
 0x25d   : > { %4117 = vst.msk [vmem:[#allocation3 + $0x110] sm:$0xff] %vm15125_vm0, %v4085_v25  ;;  %15127 = vst [vmem:[#allocation62_spill] sm:$0xff] %v12997_v47  ;;  %vm15129_vm14 = vnez %v15128_v16  ;;  %v5810_v25 = vsel %vm15132_vm10, 0.0, %v12982_v27  ;;  %v15133_v56 = vld [vmem:[#allocation36_spill] sm:$0xff]  ;;  %v15137_v16 = vld [vmem:[#allocation21_spill] sm:$0xff]  ;;  %v13027_v60 = vpack.c.bf16 %v4235_v57, %v4234_v36 }
 0x25e   : > { %15126 = vst [vmem:[#allocation61_spill] sm:$0xff] %v12995_v12  ;;  %v4176_v9 = vsel %vm15129_vm14, 0.0, %v12980_v51  ;;  %15130 = vst [vmem:[#allocation63_spill] sm:$0xff] %v13002_v28  ;;  %vm15134_vm0 = vnez %v15133_v56  ;;  %vm15138_vm14 = vnez %v15137_v16  ;;  %v4730_v53 = vld [vmem:[#allocation3 + $0x11] sm:$0xff]  ;;  %v13042_v36 = vld [vmem:[#allocation3 + $0xe9] sm:$0xff] }
 0x25f   : > { %v5814_v35 = vsel %vm15134_vm0, 0.0, %v12984_v7  ;;  %4115 = vst.msk [vmem:[#allocation3 + $0x100] sm:$0xff] %vm15116_vm4, %v4083_v21  ;;  %15135 = vst [vmem:[#allocation64_spill] sm:$0xff] %v13011_v20  ;;  %v4195_v12 = vpack.c.bf16 %v12997_v47, %v4176_v9  ;;  %v4178_v51 = vsel %vm15138_vm14, 0.0, %v13002_v28  ;;  %v13025_v7 = vpack.c.bf16 %v5810_v25, %v13019_v39  ;;  %v15148_v57 = vld [vmem:[#allocation38_spill] sm:$0xff]  ;;  %v15153_v28 = vld [vmem:[#allocation23_spill] sm:$0xff] }
 0x260   : > { %15136 = vst [vmem:[#allocation65_spill] sm:$0xff] %v13014_v48  ;;  %v4196_v44 = vpack.c.bf16 %v13014_v48, %v4178_v51  ;;  %15139 = vst [vmem:[#allocation82_spill] sm:$0xff] %v13022_v29  ;;  %v13030_v9 = vpack.c.bf16 %v5814_v35, %v13022_v29  ;;  %vm15149_vm13 = vnez %v15148_v57  ;;  %v4729_v35 = vld [vmem:[#allocation3 + $0x9] sm:$0xff]  ;;  %v6115_v29 = vld [vmem:[#allocation3 + $0x37] sm:$0xff] }
 0x261   : > { %15140 = vst [vmem:[#allocation66_spill] sm:$0xff] %v13025_v7  ;;  %15141 = vst [vmem:[#allocation67_spill] sm:$0xff] %v13027_v60  ;;  %9824 = vmatmul.mubr.msk.bf16.gmra.mxu1 %vm15116_vm4, %v13011_v20  ;;  %v13034_v21 = vld [vmem:[#allocation3 + $0xf1] sm:$0xff] }
 0x262   : > { %15142 = vst [vmem:[#allocation68_spill] sm:$0xff] %v13030_v9  ;;  %15143 = vst [vmem:[#allocation69_spill] sm:$0xff] %v13034_v21  ;;  %v13039_v51 = vld [vmem:[#allocation3 + $0xf7] sm:$0xff]  ;;  %v5818_v25 = vsel %vm15149_vm13, 0.0, %v13034_v21 }
 0x263   : > { %vm15144_vm0 = vmmov %vm15116_vm4  ;;  %15147 = vst [vmem:[#allocation70_spill] sm:$0xff] %v13042_v36  ;;  %v13048_v20 = vpack.c.bf16 %v5818_v25, %v13042_v36  ;;  %v4236_v9 = vld [vmem:[#allocation3 + $0xf8] sm:$0xff]  ;;  %v5115_v25 = vsel %vm14890_vm11, 0.0, %v12662_v11  ;;  %v13066_v36 = vld [vmem:[#allocation3 + $0x21] sm:$0xff]  ;;  %v5117_v11 = vsel %vm15027_vm15, 0.0, %v12691_v52  ;;  %vm15197_vm15 = vnez %v15133_v56 }
 0x264   : > { %9864 = vmatmul.mubr.msk.bf16.gmra.mxu0 %vm15144_vm0, %v4195_v12  ;;  %vm15145_vm10 = vmmov %vm15144_vm0  ;;  %v10298_v52 = vld [vmem:[%s14437_s3 + $0x90] sm:$0xff]   ;;  %v15166_v24 = vld [vmem:[#allocation39_spill] sm:$0xff] }
 0x265   : > { %9827 = vmatprep.mubr.msk.bf16.mxu1 %vm15145_vm10, %v13027_v60  ;;  %vm15146_vm7 = vmmov %vm15144_vm0  ;;  %15150 = vst [vmem:[#allocation71_spill] sm:$0xff] %v13048_v20  ;;  %v15151_v60 = vld [vmem:[#allocation22_spill] sm:$0xff]  ;;  %v5147_v20 = vpack.c.bf16 %v12681_v18, %v5115_v25 }
 0x266   : > { %9867 = vmatprep.mubr.msk.bf16.mxu0 %vm15146_vm7, %v4196_v44  ;;  %v4237_v12 = vld [vmem:[#allocation3 + $0x100] sm:$0xff]  ;;  %vm15152_vm10 = vnez %v15151_v60  ;;  %vm15154_vm7 = vnez %v15153_v28  ;;  %vm15156_vm4 = vmmov %vm15144_vm0  ;;  %v15159_v18 = vld [vmem:[#allocation26_spill] sm:$0xff] }
 0x267   : > { %v13050_v7 = vld [vmem:[#allocation3 + $0xff] sm:$0xff]  ;;  %v4180_v48 = vsel %vm15152_vm10, 0.0, %v13039_v51  ;;  %v4762_v44 = vsel %vm15154_vm7, 0.0, %v4730_v53  ;;  %v13057_v47 = vpack.c.bf16 %v4237_v12, %v4236_v9  ;;  %vm15157_vm10 = vmmov %vm15144_vm0  ;;  %v5119_v12 = vsel %vm15036_vm5, 0.0, %v12723_v46 }
 0x268   : > { %v4197_v57 = vpack.c.bf16 %v13050_v7, %v4180_v48  ;;  %v4793_v21 = vpack.c.bf16 %v4762_v44, %v4729_v35  ;;  %vm15158_vm7 = vmmov %vm15144_vm0  ;;  %v13071_v9 = vld [vmem:[#allocation3 + $0x19] sm:$0xff]  ;;  %v4764_v48 = vsel %vm15098_vm2, 0.0, %v13066_v36  ;;  %v13082_v35 = vld [vmem:[#allocation3 + $0x107] sm:$0xff] }
 0x269   : > { %9828 = vmatmul.mubr.msk.bf16.gmra.mxu1 %vm15144_vm0, %v13057_v47  ;;  %vm15160_vm0 = vnez %v15159_v18  ;;  %v13093_v44 = vld [vmem:[#allocation3 + $0x10f] sm:$0xff]  ;;  %v13100_v25 = vld [vmem:[#allocation3 + $0x41] sm:$0xff]  ;;  %vm15163_vm2 = vmmov %vm15156_vm4 }
 0x26a   : > { %9879 = vmatprep.mubr.msk.bf16.mxu1 %vm15157_vm10, %v4793_v21  ;;  %v4766_v53 = vsel %vm15160_vm0, 0.0, %v12909_v13  ;;  %v4794_v21 = vpack.c.bf16 %v4764_v48, %v13071_v9  ;;  %v6173_v13 = vsel %vm15138_vm14, 0.0, %v13082_v35  ;;  %vm15161_vm10 = vmmov %vm15156_vm4  ;;  %v10302_v46 = vld [vmem:[%s14437_s3 + $0xb0] sm:$0xff]   ;;  %v6798_v18 = vld [vmem:[#allocation3 + $0x71] sm:$0xff] }
 0x26b   : > { %v13112_v48 = vld [vmem:[#allocation3 + $0x39] sm:$0xff]  ;;  %v13286_v56 = vld [vmem:[#allocation3 + $0x101] sm:$0xff] }
 0x26c   : > { %9868 = vmatmul.mubr.msk.bf16.gmra.mxu0 %vm15156_vm4, %v4197_v57  ;;  %v4795_v57 = vpack.c.bf16 %v4766_v53, %v12925_v55  ;;  %v13106_v55 = vpack.c.bf16 %v13093_v44, %v6173_v13  ;;  %v5121_v53 = vsel %vm15044_vm6, 0.0, %v12767_v49 }
 0x26d   : > { %9919 = vmatprep.mubr.msk.bf16.mxu0 %vm15158_vm7, %v5147_v20  ;;  %v5148_v20 = vpack.c.bf16 %v12720_v17, %v5117_v11  ;;  %v5149_v17 = vpack.c.bf16 %v12755_v23, %v5119_v12  ;;  %vm15162_vm7 = vmmov %vm15156_vm4  ;;  %v4768_v23 = vsel %vm15101_vm3, 0.0, %v13100_v25  ;;  %v10299_v11 = vld [vmem:[%s14437_s3 + $0x88] sm:$0xff]   ;;  %v13132_v12 = vld [vmem:[#allocation3 + $0x109] sm:$0xff] }
 0x26e   : > { %v4796_v13 = vpack.c.bf16 %v4768_v23, %v13112_v48  ;;  %vm15170_vm3 = vmmov %vm15156_vm4  ;;  %v5125_v23 = vsel %vm15057_vm9, 0.0, %v12820_v41  ;;  %v5127_v41 = vsel %vm15062_vm1, 0.0, %v12844_v5  ;;  %vm15177_vm9 = vnez %v15123_v1 }
 0x26f   : > { %vm15171_vm6 = vmmov %vm15170_vm3 }
 0x271   : > { %9880 = vmatmul.mubr.msk.bf16.vlgmr.msra.gmra.mxu1 %vm15161_vm10, %v4794_v21  ;;  %v15164_v21 = vld [vmem:[#allocation29_spill] sm:$0xff]  ;;  %vm15167_vm10 = vnez %v15166_v24 }
 0x272   : > { %9883 = vmatprep.mubr.msk.bf16.mxu1 %vm15156_vm4, %v4795_v57  ;;  %9952 = vmatpush3.bf16.msra.mxu1 %v12800_v61  ;;  %v13130_v57 = vld [vmem:[#allocation3 + $0x111] sm:$0xff] }
 0x273   : > { %9953 = vmatprep.subr.bf16.mxu1 %v10298_v52  ;;  %v6850_v42 = vsel %vm15167_vm10, 0.0, %v13130_v57 }
 0x274   : > { %9920 = vmatmul.mubr.msk.bf16.vlgmr.msra.gmra.mxu0 %vm15162_vm7, %v5148_v20  ;;  %v10303_v20 = vld [vmem:[%s14437_s3 + $0xa8] sm:$0xff]   ;;  %vm15168_vm7 = vmmov %vm15156_vm4 }
 0x275   : > { %9923 = vmatprep.mubr.msk.bf16.mxu0 %vm15163_vm2, %v5149_v17  ;;  %9992 = vmatpush3.bf16.msra.mxu0 %v12812_v62  ;;  %vm15165_vm2 = vnez %v15164_v21  ;;  %v5150_v62 = vpack.c.bf16 %v12790_v10, %v5121_v53  ;;  %v10300_v17 = vld [vmem:[%s14437_s3 + $0x80] sm:$0xff]  }
 0x276   : > { %v4770_v61 = vsel %vm15165_vm2, 0.0, %v12916_v26  ;;  %9993 = vmatprep.subr.bf16.mxu0 %v10302_v46  ;;  %9954 = vmatpush3.bf16.msra.mxu1 %v10298_v52  ;;  %v5123_v26 = vsel %vm15052_vm12, 0.0, %v12795_v54  ;;  %v13148_v52 = vld [vmem:[#allocation3 + $0x61] sm:$0xff]  ;;  %v10304_v54 = vld [vmem:[%s14437_s3 + $0xa0] sm:$0xff]   ;;  %vm15185_vm12 = vnez %v15131_v0 }
 0x277   : > { %v4797_v49 = vpack.c.bf16 %v4770_v61, %v12930_v38  ;;  %9955 = vmatprep.subr.bf16.mxu1 %v10299_v11  ;;  %v5151_v10 = vpack.c.bf16 %v12815_v2, %v5123_v26  ;;  %v13154_v38 = vpack.c.bf16 %v6850_v42, %v13132_v12  ;;  %v4772_v2 = vsel %vm15109_vm8, 0.0, %v13148_v52  ;;  %v13167_v42 = vld [vmem:[%s14437_s3 + $0xd8] sm:$0xff]   ;;  %v15172_v53 = vld [vmem:[#allocation31_spill] sm:$0xff]  ;;  %vm15176_vm8 = vmmov %vm15170_vm3 }
 0x278   : > { %v13178_v61 = vld [vmem:[%s14437_s3 + $0xf8] sm:$0xff]  }
 0x279   : > { %9994 = vmatpush3.bf16.msra.mxu0 %v10302_v46  ;;  %9884 = vmatmul.mubr.msk.bf16.gmra.mxu1 %vm15168_vm7, %v4796_v13  ;;  %15169 = vst [vmem:[#allocation84_spill] sm:$0xff] %v13154_v38  ;;  %v13159_v46 = vld [vmem:[#allocation3 + $0x59] sm:$0xff]  ;;  %v5152_v13 = vpack.c.bf16 %v12830_v37, %v5125_v23  ;;  %vm15174_vm7 = vmmov %vm15170_vm3  ;;  %v13262_v38 = vld [vmem:[#allocation3 + $0xe1] sm:$0xff] }
 0x27a   : > { %9995 = vmatprep.subr.bf16.mxu0 %v10303_v20  ;;  %9887 = vmatprep.mubr.msk.bf16.mxu1 %vm15170_vm3, %v4797_v49  ;;  %v13189_v49 = vld [vmem:[#allocation3 + $0x81] sm:$0xff] }
 0x27b   : > { %9956 = vmatpush3.bf16.msra.mxu1 %v10299_v11  ;;  %v4776_v37 = vsel %vm15177_vm9, 0.0, %v13189_v49 }
 0x27c   : > { %9924 = vmatmul.mubr.msk.bf16.gmra.mxu0 %vm15156_vm4, %v5150_v62  ;;  %9957 = vmatprep.subr.bf16.mxu1 %v10300_v17  ;;  %vm15175_vm4 = vmmov %vm15170_vm3 }
 0x27d   : > { %9927 = vmatprep.mubr.msk.bf16.mxu0 %vm15171_vm6, %v5151_v10  ;;  %9996 = vmatpush3.bf16.msra.mxu0 %v10303_v20  ;;  %vm15173_vm6 = vnez %v15172_v53  ;;  %v4798_v20 = vpack.c.bf16 %v4772_v2, %v13159_v46  ;;  %vm15183_vm9 = vmmov %vm15175_vm4 }
 0x27e   : > { %v4774_v11 = vsel %vm15173_vm6, 0.0, %v12921_v33  ;;  %9997 = vmatprep.subr.bf16.mxu0 %v10304_v54  ;;  %v5153_v33 = vpack.c.bf16 %v12851_v63, %v5127_v41  ;;  %v15179_v63 = vld [vmem:[#allocation33_spill] sm:$0xff]  ;;  %v15190_v41 = vld [vmem:[#allocation50_spill] sm:$0xff] }
 0x27f   : > { %9958 = vmatpush3.bf16.msra.mxu1 %v10300_v17  ;;  %v4799_v62 = vpack.c.bf16 %v4774_v11, %v12966_v31  ;;  %v13195_v31 = vld [vmem:[#allocation3 + $0x79] sm:$0xff]  ;;  %vm15180_vm1 = vnez %v15179_v63  ;;  %v13214_v11 = vld [vmem:[#allocation3 + $0xa1] sm:$0xff] }
 0x280   : > { %10031 = vmatprep.subr.bf16.mxu1 %v13167_v42  ;;  %v4778_v26 = vsel %vm15180_vm1, 0.0, %v12968_v4  ;;  %v4800_v17 = vpack.c.bf16 %v4776_v37, %v13195_v31 }
 0x281   : > { %9998 = vmatpush3.bf16.msra.mxu0 %v10304_v54  ;;  %9888 = vmatmul.mubr.msk.bf16.gmra.mxu1 %vm15170_vm3, %v4798_v20  ;;  %vm15178_vm3 = vnez %v15069_v15  ;;  %v4801_v54 = vpack.c.bf16 %v4778_v26, %v12987_v30  ;;  %v15189_v20 = vld [vmem:[#allocation48_spill] sm:$0xff] }
 0x282   : > { %10071 = vmatprep.subr.bf16.mxu0 %v13178_v61  ;;  %9891 = vmatprep.mubr.msk.bf16.mxu1 %vm15175_vm4, %v4799_v62  ;;  %v5129_v5 = vsel %vm15178_vm3, 0.0, %v12856_v40  ;;  %vm15184_vm3 = vmmov %vm15175_vm4  ;;  %v13219_v40 = vld [vmem:[#allocation3 + $0x99] sm:$0xff] }
 0x283   : > { %v5154_v10 = vpack.c.bf16 %v12865_v45, %v5129_v5  ;;  %v4780_v45 = vsel %vm15185_vm12, 0.0, %v13214_v11  ;;  %v15193_v5 = vld [vmem:[#allocation52_spill] sm:$0xff]  ;;  %vm15195_vm12 = vmmov %vm15184_vm3 }
 0x284   : > { %9928 = vmatmul.mubr.msk.bf16.gmra.mxu0 %vm15174_vm7, %v5152_v13  ;;  %vm15182_vm7 = vmmov %vm15175_vm4  ;;  %v4802_v30 = vpack.c.bf16 %v4780_v45, %v13219_v40 }
 0x285   : > { %9931 = vmatprep.mubr.msk.bf16.mxu0 %vm15176_vm8, %v5153_v33  ;;  %vm15181_vm8 = vnez %v15074_v14  ;;  %v15191_v33 = vld [vmem:[#allocation17_spill] sm:$0xff] }
 0x286   : > { %v5131_v2 = vsel %vm15181_vm8, 0.0, %v12881_v59  ;;  %vm15186_vm8 = vnez %v15082_v19 }
 0x287   : > { %v5155_v23 = vpack.c.bf16 %v12886_v8, %v5131_v2  ;;  %v5133_v59 = vsel %vm15186_vm8, 0.0, %v12891_v3  ;;  %v15187_v8 = vld [vmem:[#allocation35_spill] sm:$0xff]  ;;  %vm15196_vm8 = vmmov %vm15184_vm3  ;;  %v13243_v3 = vld [vmem:[#allocation3 + $0xb9] sm:$0xff] }
 0x288   : > { %v5156_v13 = vpack.c.bf16 %v15189_v20, %v5133_v59  ;;  %v15201_v2 = vld [vmem:[#allocation60_spill] sm:$0xff]  ;;  %v15205_v20 = vld [vmem:[#allocation82_spill] sm:$0xff] }
 0x289   : > { %9892 = vmatmul.mubr.msk.bf16.gmra.mxu1 %vm15182_vm7, %v4800_v17  ;;  %vm15188_vm7 = vnez %v15187_v8  ;;  %v13238_v17 = vld [vmem:[#allocation3 + $0xc1] sm:$0xff] }
 0x28a   : > { %9895 = vmatprep.mubr.msk.bf16.mxu1 %vm15183_vm9, %v4801_v54  ;;  %v4782_v4 = vsel %vm15188_vm7, 0.0, %v12982_v27  ;;  %vm15192_vm9 = vnez %v15191_v33  ;;  %v15198_v27 = vld [vmem:[#allocation53_spill] sm:$0xff] }
 0x28b   : > { %v4803_v62 = vpack.c.bf16 %v4782_v4, %v13019_v39  ;;  %v5135_v37 = vsel %vm15192_vm9, 0.0, %v15190_v41  ;;  %v4784_v39 = vsel %vm15197_vm15, 0.0, %v13238_v17  ;;  %v15204_v4 = vld [vmem:[#allocation56_spill] sm:$0xff]  ;;  %v15207_v41 = vld [vmem:[#allocation19_spill] sm:$0xff] }
 0x28c   : > { %9932 = vmatmul.mubr.msk.bf16.gmra.mxu0 %vm15175_vm4, %v5154_v10  ;;  %v5157_v26 = vpack.c.bf16 %v15193_v5, %v5135_v37  ;;  %vm15194_vm4 = vmmov %vm15184_vm3  ;;  %v15199_v10 = vld [vmem:[#allocation18_spill] sm:$0xff]  ;;  %v4804_v59 = vpack.c.bf16 %v4784_v39, %v13243_v3  ;;  %v13267_v39 = vld [vmem:[#allocation3 + $0xd9] sm:$0xff] }
 0x28d   : > { %9935 = vmatprep.mubr.msk.bf16.mxu0 %vm15184_vm3, %v5155_v23  ;;  %vm15200_vm9 = vnez %v15199_v10  ;;  %v15202_v23 = vld [vmem:[#allocation37_spill] sm:$0xff]  ;;  %v15210_v5 = vld [vmem:[#allocation62_spill] sm:$0xff]  ;;  %vm15211_vm15 = vmmov %vm15194_vm4 }
 0x28e   : > { %v5137_v54 = vsel %vm15200_vm9, 0.0, %v15198_v27  ;;  %vm15212_vm9 = vmmov %vm15194_vm4 }
 0x291   : > { %9896 = vmatmul.mubr.msk.bf16.gmra.mxu1 %vm15184_vm3, %v4802_v30  ;;  %vm15203_vm3 = vnez %v15202_v23  ;;  %v5158_v30 = vpack.c.bf16 %v15204_v4, %v5137_v54  ;;  %v4788_v54 = vsel %vm15149_vm13, 0.0, %v13262_v38  ;;  %v15217_v4 = vld [vmem:[#allocation69_spill] sm:$0xff] }
 0x292   : > { %9899 = vmatprep.mubr.msk.bf16.mxu1 %vm15195_vm12, %v4803_v62  ;;  %v4786_v45 = vsel %vm15203_vm3, 0.0, %v15201_v2  ;;  %v15206_v62 = vld [vmem:[#allocation59_spill] sm:$0xff]  ;;  %vm15208_vm12 = vnez %v15207_v41 }
 0x293   : > { %v5139_v37 = vsel %vm15208_vm12, 0.0, %v15206_v62  ;;  %v15214_v2 = vld [vmem:[#allocation63_spill] sm:$0xff]  ;;  %v15218_v62 = vld [vmem:[#allocation65_spill] sm:$0xff] }
 0x294   : > { %9936 = vmatmul.mubr.msk.bf16.gmra.mxu0 %vm15194_vm4, %v5156_v13  ;;  %v4805_v13 = vpack.c.bf16 %v4786_v45, %v15205_v20  ;;  %v15215_v45 = vld [vmem:[#allocation20_spill] sm:$0xff]  ;;  %v4790_v20 = vsel %vm15167_vm10, 0.0, %v15217_v4 }
 0x295   : > { %9939 = vmatprep.mubr.msk.bf16.mxu0 %vm15196_vm8, %v5157_v26  ;;  %vm15209_vm8 = vmmov %vm15194_vm4  ;;  %v5159_v26 = vpack.c.bf16 %v15210_v5, %v5139_v37  ;;  %vm15216_vm12 = vnez %v15215_v45  ;;  %v15219_v37 = vld [vmem:[#allocation70_spill] sm:$0xff] }
 0x296   : > { %v4807_v5 = vpack.c.bf16 %v4790_v20, %v15219_v37  ;;  %v15229_v20 = vld [vmem:[#allocation42_spill] sm:$0xff]  ;;  %v5800_v37 = vsel %vm15165_vm2, 0.0, %v13148_v52  ;;  %v15241_v52 = vld [vmem:[#allocation44_spill] sm:$0xff] }
 0x299   : > { %9900 = vmatmul.mubr.msk.bf16.gmra.mxu1 %vm15209_vm8, %v4804_v59  ;;  %v5141_v59 = vsel %vm15216_vm12, 0.0, %v15214_v2  ;;  %vm15222_vm8 = vmmov %vm15194_vm4  ;;  %v15223_v2 = vld [vmem:[#allocation40_spill] sm:$0xff] }
 0x29a   : > { %9903 = vmatprep.mubr.msk.bf16.mxu1 %vm15211_vm15, %v4805_v13  ;;  %v5160_v13 = vpack.c.bf16 %v15218_v62, %v5141_v59  ;;  %vm15220_vm15 = vmmov %vm15194_vm4  ;;  %vm15224_vm13 = vnez %v15223_v2  ;;  %v15233_v62 = vld [vmem:[#allocation51_spill] sm:$0xff] }
 0x29b   : > { %v4792_v59 = vsel %vm15224_vm13, 0.0, %v13286_v56  ;;  %vm15230_vm12 = vmmov %vm15194_vm4  ;;  %v5822_v24 = vsel %vm15224_vm13, 0.0, %v13130_v57  ;;  %v6117_v57 = vld [vmem:[#allocation3 + $0x47] sm:$0xff] }
 0x29c   : > { %9940 = vmatmul.mubr.msk.bf16.gmra.mxu0 %vm15194_vm4, %v5158_v30  ;;  %v4806_v30 = vpack.c.bf16 %v4788_v54, %v13267_v39  ;;  %v13291_v54 = vld [vmem:[#allocation3 + $0xf9] sm:$0xff] }
 0x29d   : > { %9943 = vmatprep.mubr.msk.bf16.mxu0 %vm15212_vm9, %v5159_v26  ;;  %v5143_v26 = vsel %vm15138_vm14, 0.0, %v13039_v51  ;;  %vm15221_vm9 = vmmov %vm15194_vm4  ;;  %vm15225_vm14 = vnez %v15151_v60  ;;  %v4808_v51 = vpack.c.bf16 %v4792_v59, %v13291_v54  ;;  %v15240_v59 = vld [vmem:[#allocation54_spill] sm:$0xff] }
 0x29e   : > { %v5161_v27 = vpack.c.bf16 %v13050_v7, %v5143_v26  ;;  %v5145_v16 = vsel %vm15225_vm14, 0.0, %v13082_v35  ;;  %v5796_v35 = vsel %vm15160_vm0, 0.0, %v13100_v25  ;;  %v10307_v25 = vld [vmem:[%s14437_s3 + $0xc8] sm:$0xff]   ;;  %v10312_v26 = vld [vmem:[%s14437_s3 + $0xe0] sm:$0xff]   ;;  %v6792_v60 = vld [vmem:[#allocation3 + $0x41] sm:$0xff] }
 0x29f   : > { %v5162_v4 = vpack.c.bf16 %v13093_v44, %v5145_v16  ;;  %v15231_v44 = vld [vmem:[#allocation41_spill] sm:$0xff]  ;;  %v5804_v16 = vsel %vm15173_vm6, 0.0, %v13189_v49  ;;  %v5808_v49 = vsel %vm15180_vm1, 0.0, %v13214_v11  ;;  %vm15255_vm6 = vmmov %vm15194_vm4 }
 0x2a1   : > { %9904 = vmatmul.mubr.msk.bf16.gmra.mxu1 %vm15220_vm15, %v4806_v30  ;;  %vm15226_vm15 = vnez %v15153_v28  ;;  %v10310_v30 = vld [vmem:[%s14437_s3 + $0xf0] sm:$0xff]  }
 0x2a2   : > { %9907 = vmatprep.mubr.msk.bf16.mxu1 %vm15222_vm8, %v4807_v5  ;;  %v5792_v7 = vsel %vm15226_vm15, 0.0, %v13066_v36  ;;  %vm15228_vm8 = vmmov %vm15194_vm4  ;;  %v10306_v36 = vld [vmem:[%s14437_s3 + $0xd0] sm:$0xff]   ;;  %v15238_v5 = vld [vmem:[#allocation24_spill] sm:$0xff] }
 0x2a3   : > { %vm15232_vm15 = vmmov %vm15194_vm4 }
 0x2a4   : > { %9944 = vmatmul.mubr.msk.bf16.gmra.mxu0 %vm15221_vm9, %v5160_v13  ;;  %vm15227_vm9 = vmmov %vm15194_vm4  ;;  %v15235_v13 = vld [vmem:[#allocation43_spill] sm:$0xff] }
 0x2a5   : > { %9947 = vmatprep.mubr.msk.bf16.mxu0 %vm15194_vm4, %v5161_v27  ;;  %v5823_v27 = vpack.c.bf16 %v5792_v7, %v13071_v9  ;;  %v5825_v9 = vpack.c.bf16 %v5796_v35, %v13112_v48  ;;  %v10311_v48 = vld [vmem:[%s14437_s3 + $0xe8] sm:$0xff]   ;;  %v5831_v35 = vpack.c.bf16 %v5808_v49, %v13219_v40  ;;  %v15260_v40 = vld [vmem:[#allocation55_spill] sm:$0xff] }
 0x2a6   : > { %v15244_v7 = vld [vmem:[#allocation28_spill] sm:$0xff]  ;;  %v6472_v49 = vld [vmem:[#allocation3 + $0x50] sm:$0xff] }
 0x2a9   : > { %9908 = vmatmul.mubr.msk.bf16.gmra.mxu1 %vm15227_vm9, %v4808_v51  ;;  %vm15234_vm9 = vmmov %vm15194_vm4  ;;  %v5829_v51 = vpack.c.bf16 %v5804_v16, %v13195_v31  ;;  %v15254_v31 = vld [vmem:[#allocation47_spill] sm:$0xff] }
 0x2aa   : > { %9959 = vmatprep.mubr.msk.bf16.mxu1 %vm15194_vm4, %v15229_v20  ;;  %v15250_v20 = vld [vmem:[#allocation46_spill] sm:$0xff] }
 0x2ac   : > { %9948 = vmatmul.mubr.msk.bf16.gmra.mxu0 %vm15228_vm8, %v5162_v4  ;;  %vm15237_vm8 = vmmov %vm15194_vm4  ;;  %v15246_v4 = vld [vmem:[#allocation58_spill] sm:$0xff] }
 0x2ad   : > { %9999 = vmatprep.mubr.msk.bf16.mxu0 %vm15230_vm12, %v5823_v27  ;;  %vm15236_vm12 = vmmov %vm15194_vm4  ;;  %v15248_v27 = vld [vmem:[#allocation45_spill] sm:$0xff] }
 0x2b1   : > { %9960 = vmatmul.mubr.msk.bf16.vlgmr.msra.gmra.mxu1 %vm15232_vm15, %v15231_v44  ;;  %vm15239_vm15 = vmmov %vm15194_vm4  ;;  %v5812_v44 = vsel %vm15188_vm7, 0.0, %v13238_v17 }
 0x2b2   : > { %9963 = vmatprep.mubr.msk.bf16.mxu1 %vm15236_vm12, %v15235_v13  ;;  %10032 = vmatpush3.bf16.msra.mxu1 %v13167_v42  ;;  %v10308_v42 = vld [vmem:[%s14437_s3 + $0xc0] sm:$0xff]   ;;  %vm15243_vm12 = vmmov %vm15194_vm4  ;;  %v5833_v11 = vpack.c.bf16 %v5812_v44, %v13243_v3  ;;  %v15263_v13 = vld [vmem:[#allocation57_spill] sm:$0xff] }
 0x2b3   : > { %10033 = vmatprep.subr.bf16.mxu1 %v10306_v36  ;;  %v15267_v3 = vld [vmem:[#allocation64_spill] sm:$0xff] }
 0x2b4   : > { %10000 = vmatmul.mubr.msk.bf16.vlgmr.msra.gmra.mxu0 %vm15234_vm9, %v15233_v62  ;;  %vm15242_vm9 = vmmov %vm15194_vm4  ;;  %v5816_v62 = vsel %vm15203_vm3, 0.0, %v13262_v38 }
 0x2b5   : > { %10003 = vmatprep.mubr.msk.bf16.mxu0 %vm15237_vm8, %v5825_v9  ;;  %10072 = vmatpush3.bf16.msra.mxu0 %v13178_v61  ;;  %v5827_v61 = vpack.c.bf16 %v5800_v37, %v13159_v46  ;;  %v13355_v46 = vld [vmem:[%s14437_s3 + $0x118] sm:$0xff]   ;;  %vm15245_vm8 = vmmov %vm15194_vm4  ;;  %v15257_v9 = vld [vmem:[#allocation49_spill] sm:$0xff]  ;;  %v5835_v17 = vpack.c.bf16 %v5816_v62, %v13267_v39 }
 0x2b6   : > { %10073 = vmatprep.subr.bf16.mxu0 %v10310_v30  ;;  %10034 = vmatpush3.bf16.msra.mxu1 %v10306_v36  ;;  %v15252_v36 = vld [vmem:[#allocation61_spill] sm:$0xff]  ;;  %v15269_v37 = vld [vmem:[#allocation67_spill] sm:$0xff] }
 0x2b7   : > { %10035 = vmatprep.subr.bf16.mxu1 %v10307_v25  ;;  %v6113_v39 = vld [vmem:[#allocation3 + $0x27] sm:$0xff] }
 0x2b9   : > { %10074 = vmatpush3.bf16.msra.mxu0 %v10310_v30  ;;  %9964 = vmatmul.mubr.msk.bf16.gmra.mxu1 %vm15239_vm15, %v15238_v5  ;;  %vm15247_vm15 = vmmov %vm15194_vm4  ;;  %v15258_v30 = vld [vmem:[#allocation66_spill] sm:$0xff]  ;;  %v5468_v5 = vld [vmem:[#allocation3 + $0x110] sm:$0xff] }
 0x2ba   : > { %10075 = vmatprep.subr.bf16.mxu0 %v10311_v48  ;;  %9967 = vmatprep.mubr.msk.bf16.mxu1 %vm15242_vm9, %v15241_v52  ;;  %vm15249_vm9 = vmmov %vm15194_vm4  ;;  %v5838_v52 = vpack.c.bf16 %v5822_v24, %v13132_v12 }
 0x2bb   : > { %10036 = vmatpush3.bf16.msra.mxu1 %v10307_v25  ;;  %v15265_v25 = vld [vmem:[#allocation68_spill] sm:$0xff] }
 0x2bc   : > { %10004 = vmatmul.mubr.msk.bf16.gmra.mxu0 %vm15194_vm4, %v15240_v59  ;;  %10037 = vmatprep.subr.bf16.mxu1 %v10308_v42  ;;  %v6114_v59 = vld [vmem:[#allocation3 + $0x2f] sm:$0xff] }
 0x2bd   : > { %10007 = vmatprep.mubr.msk.bf16.mxu0 %vm15243_vm12, %v5827_v61  ;;  %10076 = vmatpush3.bf16.msra.mxu0 %v10311_v48  ;;  %vm15251_vm12 = vmmov %vm15194_vm4  ;;  %v5820_v48 = vsel %vm15167_vm10, 0.0, %v13286_v56  ;;  %v6145_v56 = vsel %vm14890_vm11, 0.0, %v6113_v39  ;;  %v5467_v61 = vld [vmem:[#allocation3 + $0x108] sm:$0xff]  ;;  %vm15278_vm11 = vnez %v15026_v50 }
 0x2be   : > { %10077 = vmatprep.subr.bf16.mxu0 %v10312_v26  ;;  %v5837_v38 = vpack.c.bf16 %v5820_v48, %v13291_v54  ;;  %v13418_v54 = vpack.c.bf16 %v5468_v5, %v5467_v61  ;;  %v6177_v16 = vpack.c.bf16 %v6114_v59, %v6145_v56  ;;  %vm15275_vm10 = vmmov %vm15194_vm4  ;;  %v6147_v12 = vsel %vm15278_vm11, 0.0, %v6115_v29  ;;  %v6474_v5 = vld [vmem:[#allocation3 + $0x60] sm:$0xff] }
 0x2bf   : > { %10038 = vmatpush3.bf16.msra.mxu1 %v10308_v42  ;;  %v15271_v42 = vld [vmem:[#allocation71_spill] sm:$0xff] }
 0x2c0   : > { %10111 = vmatprep.subr.bf16.mxu1 %v13355_v46 }
 0x2c1   : > { %10078 = vmatpush3.bf16.msra.mxu0 %v10312_v26  ;;  %9968 = vmatmul.mubr.msk.bf16.gmra.mxu1 %vm15245_vm8, %v15244_v7  ;;  %vm15253_vm8 = vmmov %vm15194_vm4  ;;  %v6468_v26 = vld [vmem:[#allocation3 + $0x30] sm:$0xff] }
 0x2c2   : > { %9971 = vmatprep.mubr.msk.bf16.mxu1 %vm15194_vm4, %v15248_v27  ;;  %v6149_v27 = vsel %vm15036_vm5, 0.0, %v6117_v57  ;;  %vm15280_vm5 = vmmov %vm15194_vm4 }
 0x2c3   : > { %vm15287_vm11 = vmmov %vm15280_vm5 }
 0x2c4   : > { %10008 = vmatmul.mubr.msk.bf16.gmra.mxu0 %vm15247_vm15, %v15246_v4  ;;  %vm15256_vm15 = vmmov %vm15194_vm4  ;;  %v6470_v4 = vld [vmem:[#allocation3 + $0x40] sm:$0xff] }
 0x2c5   : > { %10011 = vmatprep.mubr.msk.bf16.mxu0 %vm15249_vm9, %v5829_v51  ;;  %vm15259_vm9 = vmmov %vm15194_vm4  ;;  %v6116_v51 = vld [vmem:[#allocation3 + $0x3f] sm:$0xff] }
 0x2c9   : > { %9972 = vmatmul.mubr.msk.bf16.gmra.mxu1 %vm15251_vm12, %v15250_v20  ;;  %vm15261_vm12 = vmmov %vm15194_vm4  ;;  %v6178_v20 = vpack.c.bf16 %v6116_v51, %v6147_v12  ;;  %v6475_v51 = vld [vmem:[#allocation3 + $0x68] sm:$0xff] }
 0x2ca   : > { %9975 = vmatprep.mubr.msk.bf16.mxu1 %vm15255_vm6, %v15254_v31  ;;  %vm15264_vm6 = vmmov %vm15194_vm4  ;;  %v6125_v12 = vld [vmem:[#allocation3 + $0x87] sm:$0xff] }
 0x2cc   : > { %10012 = vmatmul.mubr.msk.bf16.gmra.mxu0 %vm15253_vm8, %v15252_v36  ;;  %vm15262_vm8 = vmmov %vm15194_vm4  ;;  %v6118_v36 = vld [vmem:[#allocation3 + $0x4f] sm:$0xff] }
 0x2cd   : > { %10015 = vmatprep.mubr.msk.bf16.mxu0 %vm15256_vm15, %v5831_v35  ;;  %vm15266_vm15 = vmmov %vm15194_vm4  ;;  %v6469_v35 = vld [vmem:[#allocation3 + $0x38] sm:$0xff] }
 0x2d1   : > { %9976 = vmatmul.mubr.msk.bf16.gmra.mxu1 %vm15194_vm4, %v15257_v9  ;;  %v6500_v9 = vpack.c.bf16 %v6470_v4, %v6469_v35 }
 0x2d2   : > { %9979 = vmatprep.mubr.msk.bf16.mxu1 %vm15261_vm12, %v15260_v40  ;;  %vm15270_vm12 = vmmov %vm15194_vm4  ;;  %v10314_v40 = vld [vmem:[%s14437_s3 + $0x110] sm:$0xff]  }
 0x2d4   : > { %10016 = vmatmul.mubr.msk.bf16.gmra.mxu0 %vm15259_vm9, %v15258_v30  ;;  %vm15268_vm9 = vmmov %vm15194_vm4  ;;  %v6471_v30 = vld [vmem:[#allocation3 + $0x48] sm:$0xff] }
 0x2d5   : > { %10019 = vmatprep.mubr.msk.bf16.mxu0 %vm15262_vm8, %v5833_v11  ;;  %vm15272_vm8 = vmmov %vm15194_vm4  ;;  %v6179_v11 = vpack.c.bf16 %v6118_v36, %v6149_v27  ;;  %v6501_v6 = vpack.c.bf16 %v6472_v49, %v6471_v30 }
 0x2d9   : > { %9980 = vmatmul.mubr.msk.bf16.gmra.mxu1 %vm15264_vm6, %v15263_v13  ;;  %vm15273_vm6 = vmmov %vm15194_vm4 }
 0x2da   : > { %9983 = vmatprep.mubr.msk.bf16.mxu1 %vm15194_vm4, %v15267_v3  ;;  %v6119_v3 = vld [vmem:[#allocation3 + $0x57] sm:$0xff] }
 0x2dc   : > { %10020 = vmatmul.mubr.msk.bf16.gmra.mxu0 %vm15266_vm15, %v15265_v25  ;;  %vm15274_vm15 = vmmov %vm15194_vm4 }
 0x2dd   : > { %10023 = vmatprep.mubr.msk.bf16.mxu0 %vm15268_vm9, %v5835_v17  ;;  %vm15276_vm9 = vmmov %vm15194_vm4  ;;  %v6121_v17 = vld [vmem:[#allocation3 + $0x67] sm:$0xff] }
 0x2e1   : > { %9984 = vmatmul.mubr.msk.bf16.gmra.mxu1 %vm15270_vm12, %v15269_v37  ;;  %vm15277_vm12 = vmmov %vm15194_vm4 }
 0x2e2   : > { %9987 = vmatprep.mubr.msk.bf16.mxu1 %vm15273_vm6, %v13057_v47  ;;  %v6467_v47 = vld [vmem:[#allocation3 + $0x28] sm:$0xff]  ;;  %vm15281_vm6 = vmmov %vm15194_vm4 }
 0x2e3   : > { %v6499_v7 = vpack.c.bf16 %v6468_v26, %v6467_v47  ;;  %v6476_v26 = vld [vmem:[#allocation3 + $0x70] sm:$0xff] }
 0x2e4   : > { %10024 = vmatmul.mubr.msk.bf16.gmra.mxu0 %vm15272_vm8, %v15271_v42  ;;  %vm15279_vm8 = vmmov %vm15194_vm4  ;;  %v10315_v42 = vld [vmem:[%s14437_s3 + $0x108] sm:$0xff]   ;;  %v6122_v47 = vld [vmem:[#allocation3 + $0x6f] sm:$0xff] }
 0x2e5   : > { %10027 = vmatprep.mubr.msk.bf16.mxu0 %vm15274_vm15, %v5837_v38  ;;  %vm15282_vm15 = vmmov %vm15194_vm4  ;;  %v6120_v38 = vld [vmem:[#allocation3 + $0x5f] sm:$0xff] }
 0x2e9   : > { %9988 = vmatmul.mubr.msk.bf16.gmra.mxu1 %vm15275_vm10, %v13418_v54  ;;  %vm15283_vm10 = vnez %v15051_v22  ;;  %v10316_v22 = vld [vmem:[%s14437_s3 + $0x100] sm:$0xff]  }
 0x2ea   : > { %10039 = vmatprep.mubr.msk.bf16.mxu1 %vm15276_vm9, %v6177_v16  ;;  %v6153_v24 = vsel %vm15283_vm10, 0.0, %v6121_v17  ;;  %v6473_v16 = vld [vmem:[#allocation3 + $0x58] sm:$0xff]  ;;  %vm15285_vm9 = vmmov %vm15280_vm5 }
 0x2eb   : > { %v6502_v57 = vpack.c.bf16 %v6474_v5, %v6473_v16  ;;  %v6181_v29 = vpack.c.bf16 %v6122_v47, %v6153_v24  ;;  %v6479_v24 = vld [vmem:[#allocation3 + $0x88] sm:$0xff] }
 0x2ec   : > { %10028 = vmatmul.mubr.msk.bf16.gmra.mxu0 %vm15194_vm4, %v5838_v52  ;;  %v9801_v31 = vpop.f32.mrf.mxu1  ;;  %v9841_v44 = vpop.f32.mrf.mxu0  ;;  %vm15284_vm4 = vnez %v15043_v43  ;;  %v6503_v43 = vpack.c.bf16 %v6476_v26, %v6475_v51 }
 0x2ed   : > { %10079 = vmatprep.mubr.msk.bf16.mxu0 %vm15277_vm12, %v6499_v7  ;;  %v13433_v62 = vadd.f32 %v9841_v44, %v9801_v31  ;;  %vm15286_vm12 = vmmov %vm15280_vm5  ;;  %v6124_v31 = vld [vmem:[#allocation3 + $0x7f] sm:$0xff] }
 0x2ee   : > { %v4369_v50 = vpop.f32.mrf.mxu1  ;;  %v4602_v13 = vpop.f32.mrf.mxu0 }
 0x2ef   : > { %v13440_v25 = vadd.f32 %v4602_v13, %v4369_v50  ;;  %v6480_v50 = vld [vmem:[#allocation3 + $0x90] sm:$0xff] }
 0x2f0   : > { %v9802_v48 = vpop.f32.mrf.mxu1  ;;  %v9842_v37 = vpop.f32.mrf.mxu0 }
 0x2f1   : > { %10040 = vmatmul.mubr.msk.bf16.vlgmr.msra.gmra.mxu1 %vm15279_vm8, %v6178_v20  ;;  %v13445_v39 = vadd.f32 %v9842_v37, %v9802_v48  ;;  %vm15288_vm8 = vmmov %vm15280_vm5  ;;  %v6123_v20 = vld [vmem:[#allocation3 + $0x77] sm:$0xff]  ;;  %v6126_v48 = vld [vmem:[#allocation3 + $0x8f] sm:$0xff] }
 0x2f2   : > { %10043 = vmatprep.mubr.msk.bf16.mxu1 %vm15281_vm6, %v6179_v11  ;;  %10112 = vmatpush3.bf16.msra.mxu1 %v13355_v46  ;;  %v4372_v56 = vpop.f32.mrf.mxu1  ;;  %v4605_v61 = vpop.f32.mrf.mxu0  ;;  %v6151_v46 = vsel %vm15284_vm4, 0.0, %v6119_v3  ;;  %vm15290_vm6 = vnez %v15056_v32  ;;  %v6477_v3 = vld [vmem:[#allocation3 + $0x78] sm:$0xff]  ;;  %vm15292_vm10 = vmmov %vm15288_vm8 }
 0x2f3   : > { %10113 = vmatprep.subr.bf16.mxu1 %v10314_v40  ;;  %v13451_v59 = vadd.f32 %v4605_v61, %v4372_v56  ;;  %v6180_v52 = vpack.c.bf16 %v6120_v38, %v6151_v46  ;;  %vm15293_vm4 = vmmov %vm15288_vm8  ;;  %v6129_v46 = vld [vmem:[#allocation3 + $0xa7] sm:$0xff] }
 0x2f4   : > { %10080 = vmatmul.mubr.msk.bf16.vlgmr.msra.gmra.mxu0 %vm15280_vm5, %v6500_v9  ;;  %v6478_v9 = vld [vmem:[#allocation3 + $0x80] sm:$0xff]  ;;  %vm15289_vm5 = vnez %v15061_v58  ;;  %v6505_v58 = vpack.c.bf16 %v6480_v50, %v6479_v24 }
 0x2f5   : > { %10083 = vmatprep.mubr.msk.bf16.mxu0 %vm15282_vm15, %v6501_v6  ;;  %v9805_v7 = vpop.f32.mrf.mxu1  ;;  %v6157_v11 = vsel %vm15289_vm5, 0.0, %v6125_v12  ;;  %v6155_v6 = vsel %vm15290_vm6, 0.0, %v6123_v20  ;;  %vm15291_vm15 = vmmov %vm15288_vm8  ;;  %v6486_v24 = vld [vmem:[#allocation3 + $0xc0] sm:$0xff] }
 0x2f6   : > { %10114 = vmatpush3.bf16.msra.mxu1 %v10314_v40  ;;  %v6182_v17 = vpack.c.bf16 %v6124_v31, %v6155_v6  ;;  %v6183_v5 = vpack.c.bf16 %v6126_v48, %v6157_v11  ;;  %vm15298_vm5 = vmmov %vm15293_vm4  ;;  %v6131_v48 = vld [vmem:[#allocation3 + $0xb7] sm:$0xff] }
 0x2f7   : > { %10115 = vmatprep.subr.bf16.mxu1 %v10315_v42  ;;  %v9845_v4 = vpop.f32.mrf.mxu0  ;;  %v4385_v27 = vpop.f32.mrf.mxu1  ;;  %vm15299_vm6 = vmmov %vm15293_vm4 }
 0x2f8   : > { %v13459_v49 = vadd.f32 %v9845_v4, %v9805_v7  ;;  %v6128_v7 = vld [vmem:[#allocation3 + $0x9f] sm:$0xff] }
 0x2f9   : > { %10044 = vmatmul.mubr.msk.bf16.gmra.mxu1 %vm15285_vm9, %v6180_v52  ;;  %v4618_v35 = vpop.f32.mrf.mxu0  ;;  %v9806_v36 = vpop.f32.mrf.mxu1  ;;  %vm15294_vm9 = vmmov %vm15293_vm4  ;;  %v6127_v52 = vld [vmem:[#allocation3 + $0x97] sm:$0xff] }
 0x2fa   : > { %10047 = vmatprep.mubr.msk.bf16.mxu1 %vm15287_vm11, %v6181_v29  ;;  %10116 = vmatpush3.bf16.msra.mxu1 %v10315_v42  ;;  %v13462_v44 = vadd.f32 %v4618_v35, %v4385_v27  ;;  %v6504_v42 = vpack.c.bf16 %v6478_v9, %v6477_v3  ;;  %v6482_v29 = vld [vmem:[#allocation3 + $0xa0] sm:$0xff]  ;;  %vm15296_vm11 = vnez %v15069_v15  ;;  %v6484_v27 = vld [vmem:[#allocation3 + $0xb0] sm:$0xff]  ;;  %v6481_v35 = vld [vmem:[#allocation3 + $0x98] sm:$0xff] }
 0x2fb   : > { %10117 = vmatprep.subr.bf16.mxu1 %v10316_v22  ;;  %v9846_v30 = vpop.f32.mrf.mxu0  ;;  %v4388_v40 = vpop.f32.mrf.mxu1  ;;  %v6159_v4 = vsel %vm15296_vm11, 0.0, %v6127_v52  ;;  %v6506_v11 = vpack.c.bf16 %v6482_v29, %v6481_v35  ;;  %v6488_v52 = vld [vmem:[#allocation3 + $0xd0] sm:$0xff]  ;;  %vm15305_vm11 = vmmov %vm15298_vm5 }
 0x2fc   : > { %10084 = vmatmul.mubr.msk.bf16.gmra.mxu0 %vm15286_vm12, %v6502_v57  ;;  %v13468_v13 = vadd.f32 %v9846_v30, %v9806_v36  ;;  %vm15295_vm12 = vnez %v15074_v14  ;;  %v6184_v20 = vpack.c.bf16 %v6128_v7, %v6159_v4  ;;  %v6130_v36 = vld [vmem:[#allocation3 + $0xaf] sm:$0xff]  ;;  %v6485_v7 = vld [vmem:[#allocation3 + $0xb8] sm:$0xff] }
 0x2fd   : > { %10087 = vmatprep.mubr.msk.bf16.mxu0 %vm15288_vm8, %v6503_v43  ;;  %v4621_v37 = vpop.f32.mrf.mxu0  ;;  %v9809_v38 = vpop.f32.mrf.mxu1  ;;  %v6161_v51 = vsel %vm15295_vm12, 0.0, %v6129_v46  ;;  %vm15297_vm8 = vmmov %vm15293_vm4  ;;  %v6134_v29 = vld [vmem:[#allocation3 + $0xcf] sm:$0xff] }
 0x2fe   : > { %10118 = vmatpush3.bf16.msra.mxu1 %v10316_v22  ;;  %v13470_v56 = vadd.f32 %v4621_v37, %v4388_v40  ;;  %v6185_v30 = vpack.c.bf16 %v6130_v36, %v6161_v51  ;;  %v6483_v40 = vld [vmem:[#allocation3 + $0xa8] sm:$0xff]  ;;  %vm15304_vm12 = vmmov %vm15298_vm5 }
 0x2ff   : > { %v9849_v61 = vpop.f32.mrf.mxu0  ;;  %v4401_v32 = vpop.f32.mrf.mxu1  ;;  %v6507_v14 = vpack.c.bf16 %v6484_v27, %v6483_v40  ;;  %v6487_v4 = vld [vmem:[#allocation3 + $0xc8] sm:$0xff] }
 0x300   : > { %v13475_v26 = vadd.f32 %v9849_v61, %v9809_v38 }
 0x301   : > { %10048 = vmatmul.mubr.msk.bf16.gmra.mxu1 %vm15291_vm15, %v6182_v17  ;;  %v4634_v16 = vpop.f32.mrf.mxu0  ;;  %v9810_v47 = vpop.f32.mrf.mxu1  ;;  %v6133_v17 = vld [vmem:[#allocation3 + $0xc7] sm:$0xff]  ;;  %vm15300_vm15 = vmmov %vm15293_vm4 }
 0x302   : > { %10051 = vmatprep.mubr.msk.bf16.mxu1 %vm15293_vm4, %v6183_v5  ;;  %v13478_v57 = vadd.f32 %v4634_v16, %v4401_v32  ;;  %vm15302_vm4 = vnez %v15082_v19  ;;  %v6137_v19 = vld [vmem:[#allocation3 + $0xe7] sm:$0xff] }
 0x303   : > { %v9850_v22 = vpop.f32.mrf.mxu0  ;;  %v4404_v43 = vpop.f32.mrf.mxu1  ;;  %v6163_v46 = vsel %vm15302_vm4, 0.0, %v6131_v48 }
 0x304   : > { %10088 = vmatmul.mubr.msk.bf16.gmra.mxu0 %vm15292_vm10, %v6504_v42  ;;  %v13484_v12 = vadd.f32 %v9850_v22, %v9810_v47  ;;  %v6132_v42 = vld [vmem:[#allocation3 + $0xbf] sm:$0xff]  ;;  %vm15301_vm10 = vnez %v15191_v33  ;;  %v6508_v22 = vpack.c.bf16 %v6486_v24, %v6485_v7  ;;  %v6509_v33 = vpack.c.bf16 %v6488_v52, %v6487_v4 }
 0x305   : > { %10091 = vmatprep.mubr.msk.bf16.mxu0 %vm15294_vm9, %v6505_v58  ;;  %v4637_v31 = vpop.f32.mrf.mxu0  ;;  %v9813_v9 = vpop.f32.mrf.mxu1  ;;  %v6165_v58 = vsel %vm15301_vm10, 0.0, %v6133_v17  ;;  %v6186_v47 = vpack.c.bf16 %v6132_v42, %v6163_v46  ;;  %vm15303_vm9 = vmmov %vm15298_vm5 }
 0x306   : > { %v13486_v6 = vadd.f32 %v4637_v31, %v4404_v43  ;;  %v6187_v43 = vpack.c.bf16 %v6134_v29, %v6165_v58  ;;  %v6489_v58 = vld [vmem:[#allocation3 + $0xd8] sm:$0xff] }
 0x307   : > { %v9853_v50 = vpop.f32.mrf.mxu0  ;;  %v4417_v15 = vpop.f32.mrf.mxu1 }
 0x308   : > { %v13491_v3 = vadd.f32 %v9853_v50, %v9813_v9  ;;  %v6135_v9 = vld [vmem:[#allocation3 + $0xd7] sm:$0xff]  ;;  %v6490_v50 = vld [vmem:[#allocation3 + $0xe0] sm:$0xff] }
 0x309   : > { %10052 = vmatmul.mubr.msk.bf16.gmra.mxu1 %vm15297_vm8, %v6184_v20  ;;  %v4650_v37 = vpop.f32.mrf.mxu0  ;;  %v9814_v38 = vpop.f32.mrf.mxu1  ;;  %vm15306_vm8 = vmmov %vm15298_vm5  ;;  %v6510_v46 = vpack.c.bf16 %v6490_v50, %v6489_v58  ;;  %v6493_v50 = vld [vmem:[#allocation3 + $0xf8] sm:$0xff] }
 0x30a   : > { %10055 = vmatprep.mubr.msk.bf16.mxu1 %vm15299_vm6, %v6185_v30  ;;  %v13494_v5 = vadd.f32 %v4650_v37, %v4417_v15  ;;  %v6136_v30 = vld [vmem:[#allocation3 + $0xdf] sm:$0xff]  ;;  %vm15308_vm6 = vnez %v15199_v10  ;;  %v6492_v37 = vld [vmem:[#allocation3 + $0xf0] sm:$0xff]  ;;  %vm15310_vm10 = vmmov %vm15306_vm8 }
 0x30b   : > { %v9854_v61 = vpop.f32.mrf.mxu0  ;;  %v4420_v32 = vpop.f32.mrf.mxu1  ;;  %v6167_v48 = vsel %vm15308_vm6, 0.0, %v6135_v9  ;;  %vm15311_vm4 = vmmov %vm15306_vm8 }
 0x30c   : > { %10092 = vmatmul.mubr.msk.bf16.gmra.mxu0 %vm15298_vm5, %v6506_v11  ;;  %v13500_v16 = vadd.f32 %v9854_v61, %v9814_v38  ;;  %vm15307_vm5 = vnez %v15207_v41  ;;  %v6188_v24 = vpack.c.bf16 %v6136_v30, %v6167_v48  ;;  %v6138_v61 = vld [vmem:[#allocation3 + $0xef] sm:$0xff]  ;;  %vm15317_vm6 = vmmov %vm15311_vm4 }
 0x30d   : > { %10095 = vmatprep.mubr.msk.bf16.mxu0 %vm15300_vm15, %v6507_v14  ;;  %v4653_v51 = vpop.f32.mrf.mxu0  ;;  %v6169_v15 = vsel %vm15307_vm5, 0.0, %v6137_v19  ;;  %vm15309_vm15 = vmmov %vm15306_vm8  ;;  %v6494_v19 = vld [vmem:[#allocation3 + $0x100] sm:$0xff] }
 0x30e   : > { %v13502_v27 = vadd.f32 %v4653_v51, %v4420_v32  ;;  %v9817_v20 = vpop.f32.mrf.mxu1  ;;  %v6189_v52 = vpack.c.bf16 %v6138_v61, %v6169_v15  ;;  %vm15316_vm5 = vmmov %vm15311_vm4 }
 0x30f   : > { %v9857_v35 = vpop.f32.mrf.mxu0 }
 0x310   : > { %v13507_v36 = vadd.f32 %v9857_v35, %v9817_v20  ;;  %v4433_v31 = vpop.f32.mrf.mxu1  ;;  %v6140_v20 = vld [vmem:[#allocation3 + $0xff] sm:$0xff] }
 0x311   : > { %10056 = vmatmul.mubr.msk.bf16.gmra.mxu1 %vm15303_vm9, %v6186_v47  ;;  %v4666_v11 = vpop.f32.mrf.mxu0  ;;  %v6491_v47 = vld [vmem:[#allocation3 + $0xe8] sm:$0xff]  ;;  %vm15312_vm9 = vmmov %vm15311_vm4 }
 0x312   : > { %10059 = vmatprep.mubr.msk.bf16.mxu1 %vm15305_vm11, %v6187_v43  ;;  %v13510_v40 = vadd.f32 %v4666_v11, %v4433_v31  ;;  %v9818_v14 = vpop.f32.mrf.mxu1  ;;  %v6511_v41 = vpack.c.bf16 %v6492_v37, %v6491_v47  ;;  %v6139_v43 = vld [vmem:[#allocation3 + $0xf7] sm:$0xff]  ;;  %vm15314_vm11 = vmmov %vm15311_vm4  ;;  %v6144_v47 = vld [vmem:[#allocation3 + $0x11f] sm:$0xff] }
 0x313   : > { %v9858_v17 = vpop.f32.mrf.mxu0 }
 0x314   : > { %10096 = vmatmul.mubr.msk.bf16.gmra.mxu0 %vm15304_vm12, %v6508_v22  ;;  %v13516_v38 = vadd.f32 %v9858_v17, %v9818_v14  ;;  %v4436_v42 = vpop.f32.mrf.mxu1  ;;  %vm15313_vm12 = vnez %v15215_v45  ;;  %v6512_v17 = vpack.c.bf16 %v6494_v19, %v6493_v50  ;;  %v6790_v45 = vld [vmem:[#allocation3 + $0x31] sm:$0xff] }
 0x315   : > { %10099 = vmatprep.mubr.msk.bf16.mxu0 %vm15306_vm8, %v6509_v33  ;;  %v4669_v32 = vpop.f32.mrf.mxu0  ;;  %v6171_v9 = vsel %vm15313_vm12, 0.0, %v6139_v43  ;;  %vm15315_vm8 = vmmov %vm15311_vm4 }
 0x316   : > { %v13518_v7 = vadd.f32 %v4669_v32, %v4436_v42  ;;  %v6190_v14 = vpack.c.bf16 %v6140_v20, %v6171_v9  ;;  %v6143_v42 = vld [vmem:[#allocation3 + $0x117] sm:$0xff]  ;;  %vm15323_vm12 = vmmov %vm15311_vm4 }
 0x317   : > { %v6497_v32 = vld [vmem:[#allocation3 + $0x118] sm:$0xff] }
 0x319   : > { %v9821_v29 = vpop.f32.mrf.mxu1  ;;  %10060 = vmatmul.mubr.msk.bf16.gmra.mxu1 %vm15309_vm15, %v6188_v24  ;;  %vm15318_vm15 = vnez %v15153_v28  ;;  %v6794_v28 = vld [vmem:[#allocation3 + $0x51] sm:$0xff] }
 0x31a   : > { %10063 = vmatprep.mubr.msk.bf16.mxu1 %vm15311_vm4, %v6189_v52 }
 0x31b   : > { %v9861_v51 = vpop.f32.mrf.mxu0  ;;  %v4449_v22 = vpop.f32.mrf.mxu1 }
 0x31c   : > { %10100 = vmatmul.mubr.msk.bf16.gmra.mxu0 %vm15310_vm10, %v6510_v46  ;;  %v13523_v10 = vadd.f32 %v9861_v51, %v9821_v29  ;;  %v6498_v46 = vld [vmem:[#allocation3 + $0x120] sm:$0xff]  ;;  %v6175_v29 = vsel %vm15225_vm14, 0.0, %v6143_v42  ;;  %vm15319_vm10 = vmmov %vm15311_vm4 }
 0x31d   : > { %10103 = vmatprep.mubr.msk.bf16.mxu0 %vm15312_vm9, %v6511_v41  ;;  %v4682_v4 = vpop.f32.mrf.mxu0  ;;  %v9822_v35 = vpop.f32.mrf.mxu1  ;;  %v6514_v43 = vpack.c.bf16 %v6498_v46, %v6497_v32  ;;  %vm15320_vm14 = vmmov %vm15311_vm4  ;;  %v15321_v42 = vld [vmem:[#allocation25_spill] sm:$0xff]  ;;  %v6826_v32 = vsel %vm15160_vm0, 0.0, %v6794_v28 }
 0x31e   : > { %v13526_v33 = vadd.f32 %v4682_v4, %v4449_v22  ;;  %vm15322_vm9 = vnez %v15321_v42  ;;  %v6795_v28 = vld [vmem:[#allocation3 + $0x59] sm:$0xff]  ;;  %v6830_v42 = vsel %vm15165_vm2, 0.0, %v6798_v18  ;;  %vm15328_vm2 = vmmov %vm15311_vm4 }
 0x31f   : > { %v9862_v31 = vpop.f32.mrf.mxu0  ;;  %v4452_v30 = vpop.f32.mrf.mxu1 }
 0x320   : > { %v13530_v11 = vadd.f32 %v9862_v31, %v9822_v35  ;;  %v6789_v35 = vld [vmem:[#allocation3 + $0x29] sm:$0xff] }
 0x321   : > { %v4685_v15 = vpop.f32.mrf.mxu0  ;;  %v9825_v37 = vpop.f32.mrf.mxu1  ;;  %10064 = vmatmul.mubr.msk.bf16.gmra.mxu1 %vm15314_vm11, %v6190_v14  ;;  %vm15324_vm11 = vmmov %vm15311_vm4 }
 0x322   : > { %v13532_v48 = vadd.f32 %v4685_v15, %v4452_v30  ;;  %10067 = vmatprep.mubr.msk.bf16.mxu1 %vm15316_vm5, %v13106_v55  ;;  %v6822_v55 = vsel %vm15318_vm15, 0.0, %v6790_v45  ;;  %vm15329_vm5 = vnez %v15108_v34  ;;  %vm15331_vm15 = vmmov %vm15328_vm2 }
 0x323   : > { %v4465_v61 = vpop.f32.mrf.mxu1  ;;  %v6853_v31 = vpack.c.bf16 %v6822_v55, %v6789_v35 }
 0x324   : > { %v9865_v24 = vpop.f32.mrf.mxu0  ;;  %10104 = vmatmul.mubr.msk.bf16.gmra.mxu0 %vm15315_vm8, %v6512_v17  ;;  %vm15327_vm8 = vmmov %vm15311_vm4 }
 0x325   : > { %v13538_v58 = vadd.f32 %v9865_v24, %v9825_v37  ;;  %10107 = vmatprep.mubr.msk.bf16.mxu0 %vm15317_vm6, %v13418_v54  ;;  %v9826_v51 = vpop.f32.mrf.mxu1  ;;  %v6192_v54 = vpack.c.bf16 %v6144_v47, %v6175_v29  ;;  %v6791_v37 = vld [vmem:[#allocation3 + $0x39] sm:$0xff]  ;;  %v6824_v24 = vsel %vm15322_vm9, 0.0, %v6792_v60  ;;  %vm15330_vm6 = vnez %v15172_v53 }
 0x326   : > { %v4698_v52 = vpop.f32.mrf.mxu0  ;;  %v6854_v29 = vpack.c.bf16 %v6824_v24, %v6791_v37  ;;  %vm15336_vm9 = vnez %v15131_v0 }
 0x327   : > { %v13544_v41 = vadd.f32 %v4698_v52, %v4465_v61  ;;  %v4468_v20 = vpop.f32.mrf.mxu1 }
 0x328   : > { %v9866_v22 = vpop.f32.mrf.mxu0 }
 0x329   : > { %v13548_v4 = vadd.f32 %v9866_v22, %v9826_v51  ;;  %v9829_v30 = vpop.f32.mrf.mxu1  ;;  %10068 = vmatmul.mubr.msk.bf16.gmra.mxu1 %vm15319_vm10, %v6192_v54  ;;  %v6793_v51 = vld [vmem:[#allocation3 + $0x49] sm:$0xff]  ;;  %v6796_v54 = vld [vmem:[#allocation3 + $0x61] sm:$0xff]  ;;  %vm15332_vm10 = vmmov %vm15328_vm2 }
 0x32a   : > { %v4701_v19 = vpop.f32.mrf.mxu0  ;;  %10119 = vmatprep.mubr.msk.bf16.mxu1 %vm15320_vm14, %v6853_v31  ;;  %v6855_v22 = vpack.c.bf16 %v6826_v32, %v6793_v51  ;;  %vm15333_vm14 = vnez %v15123_v1 }
 0x32b   : > { %v13550_v9 = vadd.f32 %v4701_v19, %v4468_v20  ;;  %v4481_v15 = vpop.f32.mrf.mxu1 }
 0x32c   : > { %v9869_v14 = vpop.f32.mrf.mxu0  ;;  %10108 = vmatmul.mubr.msk.bf16.gmra.mxu0 %vm15311_vm4, %v6514_v43  ;;  %vm15334_vm4 = vmmov %vm15328_vm2 }
 0x32d   : > { %v13555_v50 = vadd.f32 %v9869_v14, %v9829_v30  ;;  %v9830_v61 = vpop.f32.mrf.mxu1 }
 0x32e   : > { %v4714_v17 = vpop.f32.mrf.mxu0 }
 0x32f   : > { %v13559_v45 = vadd.f32 %v4714_v17, %v4481_v15  ;;  %v4484_v47 = vpop.f32.mrf.mxu1  ;;  %v15325_v15 = vld [vmem:[#allocation27_spill] sm:$0xff] }
 0x330   : > { %v9870_v46 = vpop.f32.mrf.mxu0  ;;  %vm15326_vm0 = vnez %v15325_v15 }
 0x331   : > { %v13563_v52 = vadd.f32 %v9870_v46, %v9830_v61  ;;  %v9881_v20 = vpop.f32.mrf.mxu1  ;;  %10120 = vmatmul.mubr.msk.bf16.vlgmr.msra.gmra.mxu1 %vm15323_vm12, %v6854_v29  ;;  %v6828_v17 = vsel %vm15326_vm0, 0.0, %v6796_v54 }
 0x332   : > { %v4717_v55 = vpop.f32.mrf.mxu0  ;;  %v5053_v35 = vadd.f32 %v9881_v20, %v13433_v62  ;;  %10123 = vmatprep.mubr.msk.bf16.mxu1 %vm15324_vm11, %v6855_v22  ;;  %v6856_v46 = vpack.c.bf16 %v6828_v17, %v6795_v28  ;;  %v6800_v20 = vld [vmem:[#allocation3 + $0x81] sm:$0xff] }
 0x333   : > { %v13565_v43 = vadd.f32 %v4717_v55, %v4484_v47  ;;  %v4924_v31 = vpop.f32.mrf.mxu1  ;;  %v6797_v47 = vld [vmem:[#allocation3 + $0x69] sm:$0xff] }
 0x334   : > { %v9921_v19 = vpop.f32.mrf.mxu0  ;;  %v5051_v60 = vadd.f32 %v4924_v31, %v13440_v25  ;;  %v6857_v55 = vpack.c.bf16 %v6830_v42, %v6797_v47 }
 0x335   : > { %v13570_v30 = vadd.f32 %v9921_v19, %v5053_v35  ;;  %v9882_v37 = vpop.f32.mrf.mxu1 }
 0x336   : > { %v5278_v14 = vpop.f32.mrf.mxu0  ;;  %v5054_v62 = vadd.f32 %v9882_v37, %v13445_v39  ;;  %v6802_v39 = vld [vmem:[#allocation3 + $0x91] sm:$0xff] }
 0x337   : > { %v13577_v24 = vadd.f32 %v5278_v14, %v5051_v60  ;;  %v4927_v32 = vpop.f32.mrf.mxu1  ;;  %v6799_v60 = vld [vmem:[#allocation3 + $0x79] sm:$0xff]  ;;  %v6832_v14 = vsel %vm15329_vm5, 0.0, %v6800_v20  ;;  %v6834_v15 = vsel %vm15330_vm6, 0.0, %v6802_v39 }
 0x338   : > { %v9922_v61 = vpop.f32.mrf.mxu0  ;;  %v5052_v25 = vadd.f32 %v4927_v32, %v13451_v59 }
 0x339   : > { %v13580_v29 = vadd.f32 %v9922_v61, %v5054_v62  ;;  %v9885_v22 = vpop.f32.mrf.mxu1  ;;  %10124 = vmatmul.mubr.msk.bf16.gmra.mxu1 %vm15327_vm8, %v6856_v46  ;;  %v6858_v62 = vpack.c.bf16 %v6832_v14, %v6799_v60  ;;  %v6801_v61 = vld [vmem:[#allocation3 + $0x89] sm:$0xff] }
 0x33a   : > { %v5281_v51 = vpop.f32.mrf.mxu0  ;;  %v5057_v54 = vadd.f32 %v9885_v22, %v13459_v49  ;;  %10127 = vmatprep.mubr.msk.bf16.mxu1 %vm15328_vm2, %v6857_v55  ;;  %v6859_v47 = vpack.c.bf16 %v6834_v15, %v6801_v61  ;;  %v6805_v15 = vld [vmem:[#allocation3 + $0xa9] sm:$0xff] }
 0x33b   : > { %v13584_v21 = vadd.f32 %v5281_v51, %v5052_v25  ;;  %v4940_v19 = vpop.f32.mrf.mxu1  ;;  %v6804_v25 = vld [vmem:[#allocation3 + $0xa1] sm:$0xff] }
 0x33c   : > { %v9925_v35 = vpop.f32.mrf.mxu0  ;;  %v5055_v31 = vadd.f32 %v4940_v19, %v13462_v44  ;;  %v6836_v39 = vsel %vm15333_vm14, 0.0, %v6804_v25  ;;  %v6807_v25 = vld [vmem:[#allocation3 + $0xb9] sm:$0xff] }
 0x33d   : > { %v13588_v18 = vadd.f32 %v9925_v35, %v5057_v54  ;;  %v9886_v28 = vpop.f32.mrf.mxu1  ;;  %v6803_v35 = vld [vmem:[#allocation3 + $0x99] sm:$0xff] }
 0x33e   : > { %v5294_v59 = vpop.f32.mrf.mxu0  ;;  %v5058_v49 = vadd.f32 %v9886_v28, %v13468_v13  ;;  %v6806_v13 = vld [vmem:[#allocation3 + $0xb1] sm:$0xff]  ;;  %v6860_v28 = vpack.c.bf16 %v6836_v39, %v6803_v35  ;;  %v6809_v39 = vld [vmem:[#allocation3 + $0xc9] sm:$0xff] }
 0x33f   : > { %v13595_v17 = vadd.f32 %v5294_v59, %v5055_v31  ;;  %v4943_v42 = vpop.f32.mrf.mxu1  ;;  %v6838_v31 = vsel %vm15180_vm1, 0.0, %v6806_v13  ;;  %vm15335_vm1 = vmmov %vm15328_vm2 }
 0x340   : > { %v9926_v37 = vpop.f32.mrf.mxu0  ;;  %v5056_v44 = vadd.f32 %v4943_v42, %v13470_v56  ;;  %v6861_v42 = vpack.c.bf16 %v6838_v31, %v6805_v15  ;;  %vm15337_vm12 = vmmov %vm15335_vm1 }
 0x341   : > { %v13598_v32 = vadd.f32 %v9926_v37, %v5058_v49  ;;  %v9889_v34 = vpop.f32.mrf.mxu1  ;;  %10128 = vmatmul.mubr.msk.bf16.gmra.mxu1 %vm15331_vm15, %v6858_v62  ;;  %v6808_v62 = vld [vmem:[#allocation3 + $0xc1] sm:$0xff]  ;;  %vm15341_vm0 = vmmov %vm15335_vm1 }
 0x342   : > { %v5297_v46 = vpop.f32.mrf.mxu0  ;;  %v5061_v51 = vadd.f32 %v9889_v34, %v13475_v26  ;;  %10131 = vmatprep.mubr.msk.bf16.mxu1 %vm15332_vm10, %v6859_v47  ;;  %vm15345_vm2 = vmmov %vm15341_vm0 }
 0x343   : > { %v13602_v53 = vadd.f32 %v5297_v46, %v5056_v44  ;;  %v4956_v22 = vpop.f32.mrf.mxu1  ;;  %vm15347_vm5 = vmmov %vm15341_vm0 }
 0x344   : > { %v9929_v55 = vpop.f32.mrf.mxu0  ;;  %v5059_v54 = vadd.f32 %v4956_v22, %v13478_v57 }
 0x345   : > { %v13606_v20 = vadd.f32 %v9929_v55, %v5061_v51  ;;  %v9890_v19 = vpop.f32.mrf.mxu1  ;;  %v6840_v51 = vsel %vm15336_vm9, 0.0, %v6808_v62 }
 0x346   : > { %v5310_v56 = vpop.f32.mrf.mxu0  ;;  %v5062_v26 = vadd.f32 %v9890_v19, %v13484_v12  ;;  %v6810_v12 = vld [vmem:[#allocation3 + $0xd1] sm:$0xff]  ;;  %v6862_v35 = vpack.c.bf16 %v6840_v51, %v6807_v25  ;;  %v6813_v25 = vld [vmem:[#allocation3 + $0xe9] sm:$0xff] }
 0x347   : > { %v13613_v59 = vadd.f32 %v5310_v56, %v5059_v54  ;;  %v4959_v14 = vpop.f32.mrf.mxu1  ;;  %v6842_v13 = vsel %vm15188_vm7, 0.0, %v6810_v12  ;;  %vm15338_vm7 = vmmov %vm15335_vm1 }
 0x348   : > { %v9930_v60 = vpop.f32.mrf.mxu0  ;;  %v5060_v57 = vadd.f32 %v4959_v14, %v13486_v6 }
 0x349   : > { %v13616_v49 = vadd.f32 %v9930_v60, %v5062_v26  ;;  %v9893_v1 = vpop.f32.mrf.mxu1  ;;  %10132 = vmatmul.mubr.msk.bf16.gmra.mxu1 %vm15334_vm4, %v6860_v28  ;;  %v6863_v26 = vpack.c.bf16 %v6842_v13, %v6809_v39  ;;  %v6812_v60 = vld [vmem:[#allocation3 + $0xe1] sm:$0xff] }
 0x34a   : > { %v5313_v37 = vpop.f32.mrf.mxu0  ;;  %v5065_v61 = vadd.f32 %v9893_v1, %v13491_v3  ;;  %10135 = vmatprep.mubr.msk.bf16.mxu1 %vm15335_vm1, %v6861_v42  ;;  %v6811_v42 = vld [vmem:[#allocation3 + $0xd9] sm:$0xff] }
 0x34b   : > { %v13620_v63 = vadd.f32 %v5313_v37, %v5060_v57  ;;  %v4972_v46 = vpop.f32.mrf.mxu1  ;;  %v15339_v1 = vld [vmem:[#allocation36_spill] sm:$0xff] }
 0x34c   : > { %v9933_v44 = vpop.f32.mrf.mxu0  ;;  %v5063_v34 = vadd.f32 %v4972_v46, %v13494_v5  ;;  %vm15340_vm11 = vnez %v15339_v1 }
 0x34d   : > { %v13624_v47 = vadd.f32 %v9933_v44, %v5065_v61  ;;  %v9894_v55 = vpop.f32.mrf.mxu1  ;;  %v6844_v62 = vsel %vm15340_vm11, 0.0, %v6812_v60 }
 0x34e   : > { %v5326_v6 = vpop.f32.mrf.mxu0  ;;  %v5066_v3 = vadd.f32 %v9894_v55, %v13500_v16  ;;  %v6814_v16 = vld [vmem:[#allocation3 + $0xf1] sm:$0xff] }
 0x34f   : > { %v13631_v22 = vadd.f32 %v5326_v6, %v5063_v34  ;;  %v4975_v56 = vpop.f32.mrf.mxu1  ;;  %v6846_v44 = vsel %vm15203_vm3, 0.0, %v6814_v16  ;;  %v6864_v6 = vpack.c.bf16 %v6844_v62, %v6811_v42  ;;  %vm15342_vm3 = vmmov %vm15341_vm0 }
 0x350   : > { %v9934_v54 = vpop.f32.mrf.mxu0  ;;  %v5064_v5 = vadd.f32 %v4975_v56, %v13502_v27  ;;  %v6865_v13 = vpack.c.bf16 %v6846_v44, %v6813_v25 }
 0x351   : > { %v13634_v19 = vadd.f32 %v9934_v54, %v5066_v3  ;;  %v9897_v0 = vpop.f32.mrf.mxu1  ;;  %10136 = vmatmul.mubr.msk.bf16.gmra.mxu1 %vm15337_vm12, %v6862_v35  ;;  %v6816_v54 = vld [vmem:[#allocation3 + $0x101] sm:$0xff] }
 0x352   : > { %v5329_v31 = vpop.f32.mrf.mxu0  ;;  %v5069_v14 = vadd.f32 %v9897_v0, %v13507_v36  ;;  %10139 = vmatprep.mubr.msk.bf16.mxu1 %vm15338_vm7, %v6863_v26  ;;  %v15343_v26 = vld [vmem:[#allocation38_spill] sm:$0xff] }
 0x353   : > { %v13638_v8 = vadd.f32 %v5329_v31, %v5064_v5  ;;  %v4988_v15 = vpop.f32.mrf.mxu1  ;;  %vm15344_vm8 = vnez %v15343_v26 }
 0x354   : > { %v9937_v28 = vpop.f32.mrf.mxu0  ;;  %v5067_v37 = vadd.f32 %v4988_v15, %v13510_v40  ;;  %v6848_v0 = vsel %vm15344_vm8, 0.0, %v6816_v54 }
 0x355   : > { %v13642_v57 = vadd.f32 %v9937_v28, %v5069_v14  ;;  %v9898_v61 = vpop.f32.mrf.mxu1 }
 0x356   : > { %v5342_v27 = vpop.f32.mrf.mxu0  ;;  %v5070_v36 = vadd.f32 %v9898_v61, %v13516_v38 }
 0x357   : > { %v13649_v12 = vadd.f32 %v5342_v27, %v5067_v37  ;;  %v4991_v34 = vpop.f32.mrf.mxu1 }
 0x358   : > { %v9938_v46 = vpop.f32.mrf.mxu0  ;;  %v5068_v40 = vadd.f32 %v4991_v34, %v13518_v7  ;;  %v6815_v7 = vld [vmem:[#allocation3 + $0xf9] sm:$0xff] }
 0x359   : > { %v13652_v51 = vadd.f32 %v9938_v46, %v5070_v36  ;;  %v9901_v3 = vpop.f32.mrf.mxu1  ;;  %10140 = vmatmul.mubr.msk.bf16.gmra.mxu1 %vm15341_vm0, %v6864_v6  ;;  %v6866_v37 = vpack.c.bf16 %v6848_v0, %v6815_v7  ;;  %v15346_v36 = vld [vmem:[#allocation84_spill] sm:$0xff] }
 0x35a   : > { %v5345_v55 = vpop.f32.mrf.mxu0  ;;  %v5073_v56 = vadd.f32 %v9901_v3, %v13523_v10  ;;  %10143 = vmatprep.mubr.msk.bf16.mxu1 %vm15342_vm3, %v6865_v13  ;;  %v6820_v10 = vld [vmem:[#allocation3 + $0x121] sm:$0xff]  ;;  %v6819_v46 = vld [vmem:[#allocation3 + $0x119] sm:$0xff] }
 0x35b   : > { %v13656_v23 = vadd.f32 %v5345_v55, %v5068_v40  ;;  %v5004_v38 = vpop.f32.mrf.mxu1  ;;  %v6852_v62 = vsel %vm15224_vm13, 0.0, %v6820_v10  ;;  %vm15348_vm13 = vmmov %vm15341_vm0 }
 0x35c   : > { %v9941_v35 = vpop.f32.mrf.mxu0  ;;  %v5071_v5 = vadd.f32 %v5004_v38, %v13526_v33  ;;  %v6868_v55 = vpack.c.bf16 %v6852_v62, %v6819_v46 }
 0x35d   : > { %v13660_v39 = vadd.f32 %v9941_v35, %v5073_v56  ;;  %v9902_v60 = vpop.f32.mrf.mxu1 }
 0x35e   : > { %v5358_v31 = vpop.f32.mrf.mxu0  ;;  %v5074_v28 = vadd.f32 %v9902_v60, %v13530_v11 }
 0x35f   : > { %v13665_v14 = vadd.f32 %v5358_v31, %v5071_v5  ;;  %v5007_v15 = vpop.f32.mrf.mxu1 }
 0x360   : > { %v9942_v16 = vpop.f32.mrf.mxu0  ;;  %v5072_v42 = vadd.f32 %v5007_v15, %v13532_v48 }
 0x361   : > { %v13668_v27 = vadd.f32 %v9942_v16, %v5074_v28  ;;  %v9905_v33 = vpop.f32.mrf.mxu1  ;;  %10144 = vmatmul.mubr.msk.bf16.gmra.mxu1 %vm15345_vm2, %v6866_v37 }
 0x362   : > { %v5361_v1 = vpop.f32.mrf.mxu0  ;;  %v5077_v44 = vadd.f32 %v9905_v33, %v13538_v58  ;;  %10147 = vmatprep.mubr.msk.bf16.mxu1 %vm15347_vm5, %v15346_v36 }
 0x363   : > { %v13674_v61 = vadd.f32 %v5361_v1, %v5072_v42  ;;  %v5020_v34 = vpop.f32.mrf.mxu1 }
 0x364   : > { %v9945_v11 = vpop.f32.mrf.mxu0  ;;  %v5075_v48 = vadd.f32 %v5020_v34, %v13544_v41 }
 0x365   : > { %v13679_v6 = vadd.f32 %v9945_v11, %v5077_v44  ;;  %v9906_v40 = vpop.f32.mrf.mxu1 }
 0x366   : > { %v5374_v25 = vpop.f32.mrf.mxu0  ;;  %v5078_v2 = vadd.f32 %v9906_v40, %v13548_v4 }
 0x367   : > { %v13682_v13 = vadd.f32 %v5374_v25, %v5075_v48  ;;  %v5023_v54 = vpop.f32.mrf.mxu1 }
 0x368   : > { %v9946_v3 = vpop.f32.mrf.mxu0  ;;  %v5076_v56 = vadd.f32 %v5023_v54, %v13550_v9 }
 0x369   : > { %v13685_v58 = vadd.f32 %v9946_v3, %v5078_v2  ;;  %v9909_v38 = vpop.f32.mrf.mxu1  ;;  %10148 = vmatmul.mubr.msk.bf16.gmra.mxu1 %vm15348_vm13, %v6868_v55 }
 0x36a   : > { %v5377_v35 = vpop.f32.mrf.mxu0  ;;  %v5081_v41 = vadd.f32 %v9909_v38, %v13555_v50 }
 0x36b   : > { %v13689_v5 = vadd.f32 %v5377_v35, %v5076_v56  ;;  %v5036_v7 = vpop.f32.mrf.mxu1 }
 0x36c   : > { %v9949_v31 = vpop.f32.mrf.mxu0  ;;  %v5079_v4 = vadd.f32 %v5036_v7, %v13559_v45 }
 0x36d   : > { %v13692_v26 = vadd.f32 %v9949_v31, %v5081_v41  ;;  %v9910_v60 = vpop.f32.mrf.mxu1 }
 0x36e   : > { %v5390_v0 = vpop.f32.mrf.mxu0  ;;  %v5082_v9 = vadd.f32 %v9910_v60, %v13563_v52 }
 0x36f   : > { %v13695_v28 = vadd.f32 %v5390_v0, %v5079_v4  ;;  %v5039_v10 = vpop.f32.mrf.mxu1 }
 0x370   : > { %v9950_v16 = vpop.f32.mrf.mxu0  ;;  %v5080_v37 = vadd.f32 %v5039_v10, %v13565_v43 }
 0x371   : > { %v13698_v15 = vadd.f32 %v9950_v16, %v5082_v9  ;;  %v9961_v50 = vpop.f32.mrf.mxu1 }
 0x372   : > { %v5393_v42 = vpop.f32.mrf.mxu0  ;;  %v5729_v33 = vadd.f32 %v9961_v50, %v13570_v30 }
 0x373   : > { %v13701_v1 = vadd.f32 %v5393_v42, %v5080_v37  ;;  %v5600_v45 = vpop.f32.mrf.mxu1 }
 0x374   : > { %v10001_v62 = vpop.f32.mrf.mxu0  ;;  %v5727_v11 = vadd.f32 %v5600_v45, %v13577_v24 }
 0x375   : > { %v13704_v44 = vadd.f32 %v10001_v62, %v5729_v33  ;;  %v9962_v52 = vpop.f32.mrf.mxu1 }
 0x376   : > { %v5954_v36 = vpop.f32.mrf.mxu0  ;;  %v13710_v34 = vadd.f32 %v9962_v52, %v13580_v29 }
 0x377   : > { %v13707_v46 = vadd.f32 %v5954_v36, %v5727_v11  ;;  %v5603_v48 = vpop.f32.mrf.mxu1 }
 0x378   : > { %v13712_v43 = vpop.f32.mrf.mxu0  ;;  %v13715_v25 = vadd.f32 %v5603_v48, %v13584_v21 }
 0x379   : > { %v9965_v40 = vpop.f32.mrf.mxu1 }
 0x37a   : > { %v13717_v30 = vpop.f32.mrf.mxu0  ;;  %v5733_v55 = vadd.f32 %v9965_v40, %v13588_v18 }
 0x37b   : > { %v5616_v24 = vpop.f32.mrf.mxu1 }
 0x37c   : > { %v10005_v2 = vpop.f32.mrf.mxu0  ;;  %v5731_v54 = vadd.f32 %v5616_v24, %v13595_v17 }
 0x37d   : > { %v13720_v3 = vadd.f32 %v10005_v2, %v5733_v55  ;;  %v9966_v29 = vpop.f32.mrf.mxu1 }
 0x37e   : > { %v5970_v56 = vpop.f32.mrf.mxu0  ;;  %v13726_v38 = vadd.f32 %v9966_v29, %v13598_v32 }
 0x37f   : > { %v13723_v35 = vadd.f32 %v5970_v56, %v5731_v54  ;;  %v5619_v41 = vpop.f32.mrf.mxu1 }
 0x380   : > { %v13728_v21 = vpop.f32.mrf.mxu0  ;;  %v13731_v31 = vadd.f32 %v5619_v41, %v13602_v53 }
 0x381   : > { %v9969_v7 = vpop.f32.mrf.mxu1 }
 0x382   : > { %v13733_v18 = vpop.f32.mrf.mxu0  ;;  %v5737_v4 = vadd.f32 %v9969_v7, %v13606_v20 }
 0x383   : > { %v5632_v17 = vpop.f32.mrf.mxu1 }
 0x384   : > { %v10009_v0 = vpop.f32.mrf.mxu0  ;;  %v5735_v9 = vadd.f32 %v5632_v17, %v13613_v59 }
 0x385   : > { %v13736_v60 = vadd.f32 %v10009_v0, %v5737_v4  ;;  %v9970_v32 = vpop.f32.mrf.mxu1 }
 0x386   : > { %v5986_v16 = vpop.f32.mrf.mxu0  ;;  %v13742_v37 = vadd.f32 %v9970_v32, %v13616_v49 }
 0x387   : > { %v13739_v10 = vadd.f32 %v5986_v16, %v5735_v9  ;;  %v5635_v42 = vpop.f32.mrf.mxu1 }
 0x388   : > { %v13744_v53 = vpop.f32.mrf.mxu0  ;;  %v13747_v50 = vadd.f32 %v5635_v42, %v13620_v63 }
 0x389   : > { %v9973_v33 = vpop.f32.mrf.mxu1 }
 0x38a   : > { %v13749_v20 = vpop.f32.mrf.mxu0  ;;  %v5741_v62 = vadd.f32 %v9973_v33, %v13624_v47 }
 0x38b   : > { %v5648_v59 = vpop.f32.mrf.mxu1 }
 0x38c   : > { %v10013_v45 = vpop.f32.mrf.mxu0  ;;  %v5739_v36 = vadd.f32 %v5648_v59, %v13631_v22 }
 0x38d   : > { %v13752_v11 = vadd.f32 %v10013_v45, %v5741_v62  ;;  %v9974_v49 = vpop.f32.mrf.mxu1 }
 0x38e   : > { %v6002_v52 = vpop.f32.mrf.mxu0  ;;  %v13758_v40 = vadd.f32 %v9974_v49, %v13634_v19 }
 0x38f   : > { %v13755_v48 = vadd.f32 %v6002_v52, %v5739_v36  ;;  %v5651_v55 = vpop.f32.mrf.mxu1 }
 0x390   : > { %v13760_v63 = vpop.f32.mrf.mxu0  ;;  %v13763_v2 = vadd.f32 %v5651_v55, %v13638_v8 }
 0x391   : > { %v9977_v24 = vpop.f32.mrf.mxu1 }
 0x392   : > { %v13765_v47 = vpop.f32.mrf.mxu0  ;;  %v5745_v54 = vadd.f32 %v9977_v24, %v13642_v57 }
 0x393   : > { %v5664_v22 = vpop.f32.mrf.mxu1 }
 0x394   : > { %v10017_v56 = vpop.f32.mrf.mxu0  ;;  %v5743_v41 = vadd.f32 %v5664_v22, %v13649_v12 }
 0x395   : > { %v13768_v29 = vadd.f32 %v10017_v56, %v5745_v54  ;;  %v9978_v19 = vpop.f32.mrf.mxu1 }
 0x396   : > { %v6018_v7 = vpop.f32.mrf.mxu0  ;;  %v13774_v0 = vadd.f32 %v9978_v19, %v13652_v51 }
 0x397   : > { %v13771_v4 = vadd.f32 %v6018_v7, %v5743_v41  ;;  %v5667_v17 = vpop.f32.mrf.mxu1 }
 0x398   : > { %v13776_v8 = vpop.f32.mrf.mxu0  ;;  %v13779_v9 = vadd.f32 %v5667_v17, %v13656_v23 }
 0x399   : > { %v9981_v16 = vpop.f32.mrf.mxu1 }
 0x39a   : > { %v13781_v57 = vpop.f32.mrf.mxu0  ;;  %v5749_v32 = vadd.f32 %v9981_v16, %v13660_v39 }
 0x39b   : > { %v5680_v12 = vpop.f32.mrf.mxu1 }
 0x39c   : > { %v10021_v42 = vpop.f32.mrf.mxu0  ;;  %v5747_v62 = vadd.f32 %v5680_v12, %v13665_v14 }
 0x39d   : > { %v13784_v33 = vadd.f32 %v10021_v42, %v5749_v32  ;;  %v9982_v51 = vpop.f32.mrf.mxu1 }
 0x39e   : > { %v6034_v45 = vpop.f32.mrf.mxu0  ;;  %v5750_v36 = vadd.f32 %v9982_v51, %v13668_v27 }
 0x39f   : > { %v13787_v59 = vadd.f32 %v6034_v45, %v5747_v62  ;;  %v5683_v23 = vpop.f32.mrf.mxu1 }
 0x3a0   : > { %v10022_v52 = vpop.f32.mrf.mxu0  ;;  %v13793_v55 = vadd.f32 %v5683_v23, %v13674_v61 }
 0x3a1   : > { %v13790_v49 = vadd.f32 %v10022_v52, %v5750_v36  ;;  %v9985_v24 = vpop.f32.mrf.mxu1 }
 0x3a2   : > { %v13795_v39 = vpop.f32.mrf.mxu0  ;;  %v5753_v54 = vadd.f32 %v9985_v24, %v13679_v6 }
 0x3a3   : > { %v5696_v14 = vpop.f32.mrf.mxu1 }
 0x3a4   : > { %v10025_v56 = vpop.f32.mrf.mxu0  ;;  %v5751_v41 = vadd.f32 %v5696_v14, %v13682_v13 }
 0x3a5   : > { %v13798_v22 = vadd.f32 %v10025_v56, %v5753_v54  ;;  %v9986_v27 = vpop.f32.mrf.mxu1 }
 0x3a6   : > { %v6050_v7 = vpop.f32.mrf.mxu0  ;;  %v13804_v17 = vadd.f32 %v9986_v27, %v13685_v58 }
 0x3a7   : > { %v13801_v19 = vadd.f32 %v6050_v7, %v5751_v41  ;;  %v5699_v16 = vpop.f32.mrf.mxu1 }
 0x3a8   : > { %v13806_v61 = vpop.f32.mrf.mxu0  ;;  %v13809_v32 = vadd.f32 %v5699_v16, %v13689_v5 }
 0x3a9   : > { %v9989_v42 = vpop.f32.mrf.mxu1 }
 0x3aa   : > { %15349 = vst [vmem:[#allocation72_spill] sm:$0xff] %v13809_v32  ;;  %v13811_v6 = vpop.f32.mrf.mxu0  ;;  %v5757_v12 = vadd.f32 %v9989_v42, %v13692_v26 }
 0x3ab   : > { %15350 = vst [vmem:[#allocation81_spill] sm:$0xff] %v13811_v6  ;;  %v5712_v13 = vpop.f32.mrf.mxu1 }
 0x3ac   : > { %v10029_v62 = vpop.f32.mrf.mxu0  ;;  %v5755_v51 = vadd.f32 %v5712_v13, %v13695_v28 }
 0x3ad   : > { %v13814_v45 = vadd.f32 %v10029_v62, %v5757_v12  ;;  %v9990_v58 = vpop.f32.mrf.mxu1 }
 0x3ae   : > { %v6066_v36 = vpop.f32.mrf.mxu0  ;;  %v5758_v23 = vadd.f32 %v9990_v58, %v13698_v15 }
 0x3af   : > { %v13817_v52 = vadd.f32 %v6066_v36, %v5755_v51  ;;  %v5715_v5 = vpop.f32.mrf.mxu1 }
 0x3b0   : > { %v10030_v24 = vpop.f32.mrf.mxu0  ;;  %v5756_v56 = vadd.f32 %v5715_v5, %v13701_v1 }
 0x3b1   : > { %v13820_v54 = vadd.f32 %v10030_v24, %v5758_v23  ;;  %v10041_v26 = vpop.f32.mrf.mxu1 }
 0x3b2   : > { %v6069_v14 = vpop.f32.mrf.mxu0  ;;  %v13826_v7 = vadd.f32 %v10041_v26, %v13704_v44 }
 0x3b3   : > { %v13823_v41 = vadd.f32 %v6069_v14, %v5756_v56  ;;  %v6308_v27 = vpop.f32.mrf.mxu1 }
 0x3b4   : > { %v13828_v28 = vpop.f32.mrf.mxu0  ;;  %v13831_v16 = vadd.f32 %v6308_v27, %v13707_v46 }
 0x3b5   : > { %v13835_v42 = vpop.f32.mrf.mxu1 }
 0x3b6   : > { %v13833_v15 = vpop.f32.mrf.mxu0 }
 0x3b7   : > { %v13839_v1 = vpop.f32.mrf.mxu1 }
 0x3b8   : > { %v13837_v12 = vpop.f32.mrf.mxu0 }
 0x3b9   : > { %v10045_v13 = vpop.f32.mrf.mxu1 }
 0x3ba   : > { %v13841_v62 = vpop.f32.mrf.mxu0  ;;  %v13844_v44 = vadd.f32 %v10045_v13, %v13720_v3 }
 0x3bb   : > { %v6324_v36 = vpop.f32.mrf.mxu1 }
 0x3bc   : > { %v13846_v51 = vpop.f32.mrf.mxu0  ;;  %v13849_v46 = vadd.f32 %v6324_v36, %v13723_v35 }
 0x3bd   : > { %v13853_v23 = vpop.f32.mrf.mxu1 }
 0x3be   : > { %v13851_v58 = vpop.f32.mrf.mxu0 }
 0x3bf   : > { %v13857_v5 = vpop.f32.mrf.mxu1 }
 0x3c0   : > { %v13855_v24 = vpop.f32.mrf.mxu0 }
 0x3c1   : > { %15351 = vst [vmem:[#allocation73_spill] sm:$0xff] %v13855_v24  ;;  %v10049_v14 = vpop.f32.mrf.mxu1 }
 0x3c2   : > { %v13859_v56 = vpop.f32.mrf.mxu0  ;;  %v13862_v3 = vadd.f32 %v10049_v14, %v13736_v60 }
 0x3c3   : > { %15352 = vst [vmem:[#allocation74_spill] sm:$0xff] %v13859_v56  ;;  %v6340_v27 = vpop.f32.mrf.mxu1 }
 0x3c4   : > { %v13864_v26 = vpop.f32.mrf.mxu0  ;;  %v13867_v35 = vadd.f32 %v6340_v27, %v13739_v10 }
 0x3c5   : > { %15353 = vst [vmem:[#allocation75_spill] sm:$0xff] %v13864_v26  ;;  %v13871_v36 = vpop.f32.mrf.mxu1 }
 0x3c6   : > { %15354 = vst [vmem:[#allocation76_spill] sm:$0xff] %v13867_v35  ;;  %v13869_v13 = vpop.f32.mrf.mxu0 }
 0x3c7   : > { %15355 = vst [vmem:[#allocation79_spill] sm:$0xff] %v13869_v13  ;;  %v13875_v24 = vpop.f32.mrf.mxu1 }
 0x3c8   : > { %v13873_v6 = vpop.f32.mrf.mxu0  ;;  %15357 = vst [vmem:[#allocation83_spill] sm:$0xff] %v13875_v24 }
 0x3c9   : > { %15356 = vst [vmem:[#allocation86_spill] sm:$0xff] %v13873_v6  ;;  %v10053_v32 = vpop.f32.mrf.mxu1 }
 0x3ca   : > { %v13878_v56 = vadd.f32 %v10053_v32, %v13752_v11  ;;  %v13880_v60 = vpop.f32.mrf.mxu0 }
 0x3cb   : > { %v6356_v14 = vpop.f32.mrf.mxu1 }
 0x3cc   : > { %15358 = vst [vmem:[#allocation77_spill] sm:$0xff] %v13878_v56  ;;  %v13883_v26 = vadd.f32 %v6356_v14, %v13755_v48  ;;  %v13887_v27 = vpop.f32.mrf.mxu0 }
 0x3cd   : > { %v13885_v10 = vpop.f32.mrf.mxu1  ;;  %15360 = vst [vmem:[#allocation85_spill] sm:$0xff] %v13887_v27 }
 0x3ce   : > { %15359 = vst [vmem:[#allocation78_spill] sm:$0xff] %v13883_v26  ;;  %v13894_v24 = vpop.f32.mrf.mxu0 }
 0x3cf   : > { %v13889_v13 = vpop.f32.mrf.mxu1 }
 0x3d0   : > { %15361 = vst [vmem:[#allocation88_spill] sm:$0xff] %v13889_v13  ;;  %v13901_v48 = vpop.f32.mrf.mxu0 }
 0x3d1   : > { %v10057_v35 = vpop.f32.mrf.mxu1 }
 0x3d2   : > { %v13892_v6 = vadd.f32 %v10057_v35, %v13768_v29  ;;  %v13908_v13 = vpop.f32.mrf.mxu0 }
 0x3d3   : > { %v6372_v11 = vpop.f32.mrf.mxu1 }
 0x3d4   : > { %15362 = vst [vmem:[#allocation90_spill] sm:$0xff] %v13892_v6  ;;  %v13897_v32 = vadd.f32 %v6372_v11, %v13771_v4  ;;  %v13916_v11 = vpop.f32.mrf.mxu0 }
 0x3d5   : > { %v13899_v56 = vpop.f32.mrf.mxu1 }
 0x3d6   : > { %15363 = vst [vmem:[#allocation87_spill] sm:$0xff] %v13897_v32  ;;  %15364 = vst [vmem:[#allocation92_spill] sm:$0xff] %v13899_v56 }
 0x3d7   : > { %v13903_v14 = vpop.f32.mrf.mxu1 }
 0x3d8   : > { %15365 = vst [vmem:[#allocation94_spill] sm:$0xff] %v13903_v14 }
 0x3d9   : > { %v10061_v26 = vpop.f32.mrf.mxu1 }
 0x3da   : > { %v13906_v27 = vadd.f32 %v10061_v26, %v13784_v33  ;;  %v13923_v33 = vpop.f32.mrf.mxu0 }
 0x3db   : > { %v6388_v29 = vpop.f32.mrf.mxu1 }
 0x3dc   : > { %15366 = vst [vmem:[#allocation95_spill] sm:$0xff] %v13906_v27  ;;  %v13911_v35 = vadd.f32 %v6388_v29, %v13787_v59  ;;  %v13930_v29 = vpop.f32.mrf.mxu0 }
 0x3dd   : > { %v10062_v6 = vpop.f32.mrf.mxu1 }
 0x3de   : > { %15367 = vst [vmem:[#allocation80_spill] sm:$0xff] %v13911_v35  ;;  %v13914_v4 = vadd.f32 %v10062_v6, %v13790_v49  ;;  %v13937_v35 = vpop.f32.mrf.mxu0 }
 0x3df   : > { %v13918_v32 = vpop.f32.mrf.mxu1 }
 0x3e0   : > { %15368 = vst [vmem:[#allocation89_spill] sm:$0xff] %v13914_v4 }
 0x3e1   : > { %v10065_v56 = vpop.f32.mrf.mxu1 }
 0x3e2   : > { %v13921_v14 = vadd.f32 %v10065_v56, %v13798_v22 }
 0x3e3   : > { %v6404_v26 = vpop.f32.mrf.mxu1 }
 0x3e4   : > { %15369 = vst [vmem:[#allocation91_spill] sm:$0xff] %v13921_v14  ;;  %v13926_v27 = vadd.f32 %v6404_v26, %v13801_v19  ;;  %v6084_v26 = vadd.f32 %v13712_v43, %v13710_v34  ;;  %v13947_v14 = vpop.f32.mrf.mxu0  ;;  %v6088_v34 = vadd.f32 %v13728_v21, %v13726_v38  ;;  %v6086_v43 = vadd.f32 %v13733_v18, %v13731_v31 }
 0x3e5   : > { %v13928_v59 = vpop.f32.mrf.mxu1  ;;  %v13978_v38 = vadd.f32 %v13749_v20, %v13747_v50  ;;  %v6757_v21 = vadd.f32 %v13833_v15, %v13831_v16 }
 0x3e6   : > { %15370 = vst [vmem:[#allocation97_spill] sm:$0xff] %v13926_v27  ;;  %v13995_v50 = vpop.f32.mrf.mxu0 }
 0x3e7   : > { %v13932_v49 = vpop.f32.mrf.mxu1 }
 0x3e8   : > { %15371 = vst [vmem:[#allocation93_spill] sm:$0xff] %v13932_v49 }
 0x3e9   : > { %v10069_v6 = vpop.f32.mrf.mxu1 }
 0x3ea   : > { %v13935_v4 = vadd.f32 %v10069_v6, %v13814_v45  ;;  %v6082_v45 = vadd.f32 %v13717_v30, %v13715_v25  ;;  %v6759_v6 = vadd.f32 %v13828_v28, %v13826_v7  ;;  %v13971_v30 = vld [vmem:[%s14438_s4] ss:$0 sm:$0xff]  ;;  %v13993_v7 = vadd.f32 %v13776_v8, %v13774_v0 }
 0x3eb   : > { %v6420_v22 = vpop.f32.mrf.mxu1  ;;  %v14015_v0 = vadd.f32 %v13795_v39, %v13793_v55  ;;  %v14027_v55 = vpop.f32.mrf.mxu0 }
 0x3ec   : > { %v13940_v56 = vadd.f32 %v6420_v22, %v13817_v52  ;;  %v6438_v52 = vadd.f32 %v13835_v42, %v6084_v26  ;;  %v6436_v31 = vadd.f32 %v13839_v1, %v6082_v45  ;;  %v14004_v42 = vld [vmem:[%s10768_s13 + $0x18] sm:$0xff]  }
 0x3ed   : > { %v10070_v19 = vpop.f32.mrf.mxu1 }
 0x3ee   : > { %15372 = vst [vmem:[#allocation96_spill] sm:$0xff] %v13940_v56  ;;  %v13945_v27 = vadd.f32 %v10070_v19, %v13820_v54  ;;  %v13958_v56 = vld [vmem:[%s10768_s13 + $0x8] sm:$0xff]   ;;  %v13966_v54 = vadd.f32 %v13744_v53, %v13742_v37  ;;  %v13985_v37 = vadd.f32 %v13760_v63, %v13758_v40  ;;  %v13989_v53 = vadd.f32 %v13765_v47, %v13763_v2  ;;  %v14007_v2 = vld [vmem:[%s10768_s13 + $0x10] sm:$0xff]  }
 0x3ef   : > { %v6423_v49 = vpop.f32.mrf.mxu1  ;;  %v8780_v20 = vunpack.c.l.bf16 %v13958_v56  ;;  %v6760_v16 = vadd.f32 %v13837_v12, %v6438_v52  ;;  %v14011_v47 = vadd.f32 %v13781_v57, %v13779_v9  ;;  %v6763_v9 = vadd.f32 %v13846_v51, %v13844_v44  ;;  %v15379_v52 = vld [vmem:[#allocation76_spill] sm:$0xff] }
 0x3f0   : > { %v13955_v22 = vadd.f32 %v6423_v49, %v13823_v41  ;;  %v13974_v41 = vld [vmem:[%s10768_s13] sm:$0xff]   ;;  %v6758_v49 = vadd.f32 %v13841_v62, %v6436_v31  ;;  %v6442_v57 = vadd.f32 %v13853_v23, %v6088_v34  ;;  %v14036_v31 = vld [vmem:[%s10768_s13 + $0x28] sm:$0xff]   ;;  %v14040_v44 = vadd.f32 %v13806_v61, %v13804_v17  ;;  %v15374_v61 = vld [vmem:[#allocation81_spill] sm:$0xff] }
 0x3f1   : > { %v10121_v25 = vpop.f32.mrf.mxu1  ;;  %v6761_v51 = vadd.f32 %v13851_v58, %v13849_v46  ;;  %v6440_v23 = vadd.f32 %v13857_v5, %v6086_v43  ;;  %v15373_v17 = vld [vmem:[#allocation72_spill] sm:$0xff]  ;;  %v15375_v46 = vld [vmem:[#allocation73_spill] sm:$0xff]  ;;  %v14058_v5 = vpop.f32.mrf.mxu0 }
 0x3f2   : > { %v7113_v18 = vadd.f32 %v10121_v25, %v6759_v6  ;;  %v6764_v58 = vadd.f32 %v15375_v46, %v6442_v57  ;;  %v15381_v6 = vld [vmem:[#allocation86_spill] sm:$0xff] }
 0x3f3   : > { %v6984_v28 = vpop.f32.mrf.mxu1 }
 0x3f4   : > { %v14000_v15 = vadd.f32 %v13971_v30, %v7113_v18  ;;  %v7111_v40 = vadd.f32 %v6984_v28, %v6757_v21  ;;  %v14078_v18 = vld [vmem:[%s10768_s13 + $0x30] sm:$0xff]  }
 0x3f5   : > { %v10122_v8 = vpop.f32.mrf.mxu1 }
 0x3f6   : > { %v8609_v19 = vmul.f32 -1.442695, %v14000_v15  ;;  %v14022_v26 = vadd.f32 %v13971_v30, %v7111_v40  ;;  %v7114_v45 = vadd.f32 %v10122_v8, %v6760_v16  ;;  %v14051_v8 = vld [vmem:[%s10768_s13 + $0x20] sm:$0xff]  }
 0x3f7   : > { %v6987_v39 = vpop.f32.mrf.mxu1 }
 0x3f8   : > { %10445 = vpow2.f32 %v8609_v19  ;;  %v8607_v62 = vmul.f32 -1.442695, %v14022_v26  ;;  %v14033_v25 = vadd.f32 %v13971_v30, %v7114_v45  ;;  %v7112_v21 = vadd.f32 %v6987_v39, %v6758_v49 }
 0x3f9   : > { %v10125_v34 = vpop.f32.mrf.mxu1  ;;  %v14055_v49 = vadd.f32 %v15374_v61, %v15373_v17  ;;  %v14086_v61 = vpop.f32.mrf.mxu0 }
 0x3fa   : > { %10447 = vpow2.f32 %v8607_v62  ;;  %v8610_v28 = vmul.f32 -1.442695, %v14033_v25  ;;  %v14048_v16 = vadd.f32 %v13971_v30, %v7112_v21  ;;  %v7117_v40 = vadd.f32 %v10125_v34, %v6763_v9  ;;  %v14067_v21 = vld [vmem:[%s10768_s13 + $0x38] sm:$0xff]  }
 0x3fb   : > { %v7000_v43 = vpop.f32.mrf.mxu1  ;;  %v15376_v34 = vld [vmem:[#allocation74_spill] sm:$0xff] }
 0x3fc   : > { %10449 = vpow2.f32 %v8610_v28  ;;  %v8608_v39 = vmul.f32 -1.442695, %v14048_v16  ;;  %v14064_v9 = vadd.f32 %v13971_v30, %v7117_v40  ;;  %v7115_v62 = vadd.f32 %v7000_v43, %v6761_v51  ;;  %v15377_v51 = vld [vmem:[#allocation75_spill] sm:$0xff] }
 0x3fd   : > { %v6762_v17 = vadd.f32 %v15376_v34, %v6440_v23  ;;  %v10126_v57 = vpop.f32.mrf.mxu1  ;;  %v6767_v43 = vadd.f32 %v15377_v51, %v13862_v3  ;;  %v6446_v23 = vadd.f32 %v13871_v36, %v13966_v54  ;;  %v15378_v34 = vld [vmem:[#allocation83_spill] sm:$0xff]  ;;  %v6450_v36 = vadd.f32 %v13885_v10, %v13985_v37  ;;  %v15384_v10 = vld [vmem:[#allocation88_spill] sm:$0xff] }
 0x3fe   : > { %10451 = vpow2.f32 %v8608_v39  ;;  %v8613_v28 = vmul.f32 -1.442695, %v14064_v9  ;;  %v14075_v45 = vadd.f32 %v13971_v30, %v7115_v62  ;;  %v7118_v40 = vadd.f32 %v10126_v57, %v6764_v58  ;;  %v15380_v3 = vld [vmem:[#allocation79_spill] sm:$0xff] }
 0x3ff   : > { %v6444_v46 = vadd.f32 %v15378_v34, %v13978_v38  ;;  %v7003_v39 = vpop.f32.mrf.mxu1  ;;  %v6765_v51 = vadd.f32 %v15380_v3, %v15379_v52  ;;  %v15382_v52 = vld [vmem:[#allocation77_spill] sm:$0xff]  ;;  %v6448_v37 = vadd.f32 %v15384_v10, %v13989_v53  ;;  %v14109_v38 = vpop.f32.mrf.mxu0  ;;  %v15387_v53 = vld [vmem:[#allocation94_spill] sm:$0xff] }
 0x400   : > { %10453 = vpow2.f32 %v8613_v28  ;;  %v8611_v62 = vmul.f32 -1.442695, %v14075_v45  ;;  %v14091_v58 = vadd.f32 %v13971_v30, %v7118_v40  ;;  %v7116_v57 = vadd.f32 %v7003_v39, %v6762_v17  ;;  %v15383_v3 = vld [vmem:[#allocation85_spill] sm:$0xff] }
 0x401   : > { %v10129_v54 = vpop.f32.mrf.mxu1  ;;  %v6768_v17 = vadd.f32 %v15381_v6, %v6446_v23  ;;  %v6766_v39 = vadd.f32 %v13880_v60, %v6444_v46  ;;  %v6771_v1 = vadd.f32 %v15383_v3, %v15382_v52  ;;  %v15385_v6 = vld [vmem:[#allocation78_spill] sm:$0xff]  ;;  %v6772_v46 = vadd.f32 %v13901_v48, %v6450_v36  ;;  %v15386_v23 = vld [vmem:[#allocation92_spill] sm:$0xff]  ;;  %v15389_v36 = vld [vmem:[#allocation87_spill] sm:$0xff] }
 0x402   : > { %10455 = vpow2.f32 %v8611_v62  ;;  %v8614_v28 = vmul.f32 -1.442695, %v14091_v58  ;;  %v14101_v19 = vadd.f32 %v13971_v30, %v7116_v57  ;;  %v7121_v40 = vadd.f32 %v10129_v54, %v6767_v43 }
 0x403   : > { %v7016_v34 = vpop.f32.mrf.mxu1  ;;  %v6769_v60 = vadd.f32 %v13894_v24, %v15385_v6  ;;  %v6454_v52 = vadd.f32 %v15386_v23, %v13993_v7  ;;  %v6452_v3 = vadd.f32 %v15387_v53, %v14011_v47  ;;  %v15388_v24 = vld [vmem:[#allocation90_spill] sm:$0xff]  ;;  %v14133_v7 = vadd.f32 %v13923_v33, %v15389_v36  ;;  %v10106_v47 = vpop.f32.mrf.mxu0 }
 0x404   : > { %10457 = vpow2.f32 %v8614_v28  ;;  %v8612_v62 = vmul.f32 -1.442695, %v14101_v19  ;;  %v14113_v57 = vadd.f32 %v13971_v30, %v7121_v40  ;;  %v7119_v43 = vadd.f32 %v7016_v34, %v6765_v51 }
 0x405   : > { %v10446_v54 = vpop.eup %10445  ;;  %v10130_v10 = vpop.f32.mrf.mxu1  ;;  %v6770_v34 = vadd.f32 %v13908_v13, %v6448_v37  ;;  %v14129_v48 = vadd.f32 %v13916_v11, %v15388_v24  ;;  %v14137_v63 = vadd.f32 %v13930_v29, %v6454_v52  ;;  %v14140_v13 = vadd.f32 %v13937_v35, %v6452_v3 }
 0x406   : > { %v7280_v28 = vadd.f32 1.0, %v10446_v54  ;;  %10459 = vpow2.f32 %v8612_v62  ;;  %v8617_v12 = vmul.f32 -1.442695, %v14113_v57  ;;  %v14124_v40 = vadd.f32 %v13971_v30, %v7119_v43  ;;  %v6729_v29 = vpop.f32.mrf.mxu0 }
 0x407   : > { %v10448_v51 = vpop.eup %10447  ;;  %v7122_v6 = vadd.f32 %v10130_v10, %v6768_v17  ;;  %v7019_v54 = vpop.f32.mrf.mxu1  ;;  %v6456_v35 = vadd.f32 %v13918_v32, %v14015_v0 }
 0x408   : > { %10461 = vrcp.f32 %v7280_v28  ;;  %v7278_v62 = vadd.f32 1.0, %v10448_v51  ;;  %v8615_v23 = vmul.f32 -1.442695, %v14124_v40  ;;  %v7120_v43 = vadd.f32 %v7019_v54, %v6766_v39  ;;  %v15390_v39 = vld [vmem:[#allocation95_spill] sm:$0xff]  ;;  %v15392_v54 = vld [vmem:[#allocation89_spill] sm:$0xff]  ;;  %v10109_v0 = vpop.f32.mrf.mxu0 }
 0x409   : > { %v10450_v53 = vpop.eup %10449  ;;  %10463 = vpow2.f32 %v8617_v12  ;;  %v14143_v11 = vadd.f32 %v13971_v30, %v7122_v6  ;;  %v10133_v33 = vpop.f32.mrf.mxu1  ;;  %v14150_v51 = vadd.f32 %v13947_v14, %v15390_v39  ;;  %v15391_v6 = vld [vmem:[#allocation80_spill] sm:$0xff]  ;;  %v14165_v32 = vadd.f32 %v14027_v55, %v15392_v54 }
 0x40a   : > { %10465 = vrcp.f32 %v7278_v62  ;;  %v7281_v17 = vadd.f32 1.0, %v10450_v53  ;;  %v14146_v37 = vadd.f32 %v13971_v30, %v7120_v43  ;;  %v7125_v10 = vadd.f32 %v10133_v33, %v6771_v1 }
 0x40b   : > { %v10452_v28 = vpop.eup %10451  ;;  %10467 = vpow2.f32 %v8615_v23  ;;  %v8618_v12 = vmul.f32 -1.442695, %v14143_v11  ;;  %v7032_v52 = vpop.f32.mrf.mxu1  ;;  %v14161_v14 = vadd.f32 %v13995_v50, %v15391_v6  ;;  %v6462_v50 = vadd.f32 %v13928_v59, %v14040_v44 }
 0x40c   : > { %10469 = vrcp.f32 %v7281_v17  ;;  %v7279_v3 = vadd.f32 1.0, %v10452_v28  ;;  %v8616_v24 = vmul.f32 -1.442695, %v14146_v37  ;;  %v14157_v36 = vadd.f32 %v13971_v30, %v7125_v10  ;;  %v6742_v59 = vpop.f32.mrf.mxu0 }
 0x40d   : > { %v10454_v1 = vpop.eup %10453  ;;  %10471 = vpow2.f32 %v8618_v12  ;;  %v7123_v62 = vadd.f32 %v7032_v52, %v6769_v60  ;;  %v10134_v23 = vpop.f32.mrf.mxu1  ;;  %v14169_v10 = vadd.f32 %v14058_v5, %v6456_v35  ;;  %v15394_v5 = vld [vmem:[#allocation93_spill] sm:$0xff] }
 0x40e   : > { %10473 = vrcp.f32 %v7279_v3  ;;  %v7284_v43 = vadd.f32 1.0, %v10454_v1  ;;  %v8621_v53 = vmul.f32 -1.442695, %v14157_v36  ;;  %v7126_v33 = vadd.f32 %v10134_v23, %v6772_v46  ;;  %v15393_v46 = vld [vmem:[#allocation91_spill] sm:$0xff] }
 0x40f   : > { %v10456_v17 = vpop.eup %10455  ;;  %10475 = vpow2.f32 %v8616_v24  ;;  %v14174_v55 = vadd.f32 %v13971_v30, %v7123_v62  ;;  %v7035_v28 = vpop.f32.mrf.mxu1  ;;  %v14181_v3 = vadd.f32 %v14086_v61, %v15393_v46  ;;  %v6460_v35 = vadd.f32 %v15394_v5, %v14055_v49  ;;  %v15395_v62 = vld [vmem:[#allocation97_spill] sm:$0xff]  ;;  %v15396_v5 = vld [vmem:[#allocation96_spill] sm:$0xff] }
 0x410   : > { %10477 = vrcp.f32 %v7284_v43  ;;  %v7282_v60 = vadd.f32 1.0, %v10456_v17  ;;  %v14177_v39 = vadd.f32 %v13971_v30, %v7126_v33  ;;  %v7124_v12 = vadd.f32 %v7035_v28, %v6770_v34 }
 0x411   : > { %v10458_v52 = vpop.eup %10457  ;;  %10479 = vpow2.f32 %v8621_v53  ;;  %v8619_v44 = vmul.f32 -1.442695, %v14174_v55  ;;  %v10137_v24 = vpop.f32.mrf.mxu1  ;;  %v14192_v61 = vadd.f32 %v14109_v38, %v15395_v62  ;;  %v14194_v23 = vadd.f32 %v10106_v47, %v6462_v50 }
 0x412   : > { %10481 = vrcp.f32 %v7282_v60  ;;  %v7285_v1 = vadd.f32 1.0, %v10458_v52  ;;  %v8622_v6 = vmul.f32 -1.442695, %v14177_v39  ;;  %v14188_v54 = vadd.f32 %v13971_v30, %v7124_v12  ;;  %v10110_v38 = vpop.f32.mrf.mxu0 }
 0x413   : > { %v10460_v34 = vpop.eup %10459  ;;  %10483 = vpow2.f32 %v8619_v44  ;;  %v7129_v49 = vadd.f32 %v10137_v24, %v14129_v48  ;;  %v7048_v43 = vpop.f32.mrf.mxu1  ;;  %v14199_v60 = vadd.f32 %v6729_v29, %v6460_v35  ;;  %v14202_v12 = vadd.f32 %v10109_v0, %v13935_v4 }
 0x414   : > { %10485 = vrcp.f32 %v7285_v1  ;;  %v7283_v53 = vadd.f32 1.0, %v10460_v34  ;;  %v8620_v33 = vmul.f32 -1.442695, %v14188_v54  ;;  %v7127_v17 = vadd.f32 %v7048_v43, %v14133_v7 }
 0x415   : > { %v10462_v28 = vpop.eup %10461  ;;  %10487 = vpow2.f32 %v8622_v6  ;;  %v14205_v47 = vadd.f32 %v13971_v30, %v7129_v49  ;;  %v10138_v48 = vpop.f32.mrf.mxu1  ;;  %v14213_v35 = vadd.f32 %v6742_v59, %v15396_v5 }
 0x416   : > { %v10464_v50 = vpop.eup %10463  ;;  %v7376_v52 = vmul.f32 %v10462_v28, %v14000_v15  ;;  %10489 = vrcp.f32 %v7283_v53  ;;  %v14209_v46 = vadd.f32 %v13971_v30, %v7127_v17  ;;  %v7130_v7 = vadd.f32 %v10138_v48, %v14137_v63 }
 0x417   : > { %v10466_v29 = vpop.eup %10465  ;;  %v7288_v4 = vadd.f32 1.0, %v10464_v50  ;;  %10491 = vpow2.f32 %v8620_v33  ;;  %v8625_v0 = vmul.f32 -1.442695, %v14205_v47  ;;  %v7051_v44 = vpop.f32.mrf.mxu1  ;;  %v14218_v15 = vadd.f32 %v10110_v38, %v13945_v27 }
 0x418   : > { %v10468_v24 = vpop.eup %10467  ;;  %v7374_v1 = vmul.f32 %v10466_v29, %v14022_v26  ;;  %v8623_v6 = vmul.f32 -1.442695, %v14209_v46  ;;  %v14223_v63 = vadd.f32 %v13971_v30, %v7130_v7  ;;  %v7472_v34 = vadd.f32 %v8780_v20, %v7376_v52 }
 0x419   : > { %v10470_v59 = vpop.eup %10469  ;;  %10493 = vrcp.f32 %v7288_v4  ;;  %v7286_v62 = vadd.f32 1.0, %v10468_v24  ;;  %v7128_v49 = vadd.f32 %v7051_v44, %v14140_v13  ;;  %v10141_v43 = vpop.f32.mrf.mxu1  ;;  %v15397_v27 = vunpack.c.l.bf16 %v13974_v41 }
 0x41a   : > { %v10472_v53 = vpop.eup %10471  ;;  %v7377_v26 = vmul.f32 %v10470_v59, %v14033_v25  ;;  %10495 = vpow2.f32 %v8625_v0  ;;  %v8626_v17 = vmul.f32 -1.442695, %v14223_v63  ;;  %v7133_v13 = vadd.f32 %v10141_v43, %v14150_v51 }
 0x41b   : > { %v7470_v33 = vadd.f32 %v15397_v27, %v7374_v1  ;;  %v10474_v28 = vpop.eup %10473  ;;  %10497 = vrcp.f32 %v7286_v62  ;;  %v7289_v20 = vadd.f32 1.0, %v10472_v53  ;;  %v14237_v38 = vadd.f32 %v13971_v30, %v7128_v49  ;;  %v7064_v48 = vpop.f32.mrf.mxu1 }
 0x41c   : > { %v10476_v50 = vpop.eup %10475  ;;  %v15398_v52 = vunpack.c.h.bf16 %v13958_v56  ;;  %v7375_v29 = vmul.f32 %v10474_v28, %v14048_v16  ;;  %10499 = vpow2.f32 %v8623_v6  ;;  %v7131_v25 = vadd.f32 %v7064_v48, %v14161_v14 }
 0x41d   : > { %v10478_v5 = vpop.eup %10477  ;;  %10501 = vrcp.f32 %v7289_v20  ;;  %v7287_v4 = vadd.f32 1.0, %v10476_v50  ;;  %v8624_v0 = vmul.f32 -1.442695, %v14237_v38  ;;  %v14246_v44 = vadd.f32 %v13971_v30, %v7133_v13  ;;  %v10142_v51 = vpop.f32.mrf.mxu1 }
 0x41e   : > { %v7473_v7 = vadd.f32 %v15398_v52, %v7377_v26  ;;  %v10480_v24 = vpop.eup %10479  ;;  %v15399_v56 = vunpack.c.h.bf16 %v13974_v41  ;;  %v7380_v16 = vmul.f32 %v10478_v5, %v14064_v9  ;;  %10503 = vpow2.f32 %v8626_v17 }
 0x41f   : > { %v10482_v6 = vpop.eup %10481  ;;  %10505 = vrcp.f32 %v7287_v4  ;;  %v7292_v14 = vadd.f32 1.0, %v10480_v24  ;;  %v8629_v62 = vmul.f32 -1.442695, %v14246_v44  ;;  %v14253_v49 = vadd.f32 %v13971_v30, %v7131_v25  ;;  %v7067_v43 = vpop.f32.mrf.mxu1 }
 0x420   : > { %v8846_v1 = vpack.c.bf16 %v7473_v7, %v7472_v34  ;;  %v7471_v59 = vadd.f32 %v15399_v56, %v7375_v29  ;;  %v10484_v53 = vpop.eup %10483  ;;  %v15400_v34 = vunpack.c.l.bf16 %v14004_v42  ;;  %v7378_v27 = vmul.f32 %v10482_v6, %v14075_v45 }
 0x421   : > { %10507 = vpow2.f32 %v8624_v0  ;;  %v10486_v26 = vpop.eup %10485  ;;  %v7290_v17 = vadd.f32 1.0, %v10484_v53  ;;  %v8627_v28 = vmul.f32 -1.442695, %v14253_v49  ;;  %v7134_v20 = vadd.f32 %v10142_v51, %v14165_v32  ;;  %v10145_v13 = vpop.f32.mrf.mxu1 }
 0x422   : > { %8948 = vst [vmem:[%s14256_s30 + $0x8] sm:$0xff] %v8846_v1   ;;  %v8841_v41 = vpack.c.bf16 %v7471_v59, %v7470_v33  ;;  %v7476_v9 = vadd.f32 %v15400_v34, %v7380_v16  ;;  %10509 = vrcp.f32 %v7292_v14  ;;  %v10488_v48 = vpop.eup %10487  ;;  %v15401_v50 = vunpack.c.l.bf16 %v14007_v2 }
 0x423   : > { %v7381_v33 = vmul.f32 %v10486_v26, %v14091_v58  ;;  %10511 = vpow2.f32 %v8629_v62  ;;  %v7132_v7 = vadd.f32 %v7067_v43, %v14169_v10  ;;  %v10490_v45 = vpop.eup %10489  ;;  %v7293_v29 = vadd.f32 1.0, %v10488_v48  ;;  %v7080_v32 = vpop.f32.mrf.mxu1 }
 0x424   : > { %8842 = vst [vmem:[%s14256_s30] sm:$0xff] %v8841_v41   ;;  %v7474_v52 = vadd.f32 %v15401_v50, %v7378_v27  ;;  %10513 = vrcp.f32 %v7290_v17  ;;  %v14270_v25 = vadd.f32 %v13971_v30, %v7134_v20  ;;  %v7137_v5 = vadd.f32 %v10145_v13, %v14181_v3  ;;  %v10492_v4 = vpop.eup %10491 }
 0x425   : > { %v15402_v0 = vunpack.c.h.bf16 %v14004_v42  ;;  %v7379_v24 = vmul.f32 %v10490_v45, %v14101_v19  ;;  %10515 = vpow2.f32 %v8627_v28  ;;  %v14277_v58 = vadd.f32 %v13971_v30, %v7132_v7  ;;  %v10146_v3 = vpop.f32.mrf.mxu1 }
 0x426   : > { %10517 = vrcp.f32 %v7293_v29  ;;  %v7291_v10 = vadd.f32 1.0, %v10492_v4  ;;  %v8630_v1 = vmul.f32 -1.442695, %v14270_v25  ;;  %v14281_v56 = vadd.f32 %v13971_v30, %v7137_v5  ;;  %v10494_v59 = vpop.eup %10493 }
 0x427   : > { %v7477_v51 = vadd.f32 %v15402_v0, %v7381_v33  ;;  %v15403_v42 = vunpack.c.h.bf16 %v14007_v2  ;;  %v8628_v19 = vmul.f32 -1.442695, %v14277_v58  ;;  %v7135_v14 = vadd.f32 %v7080_v32, %v14192_v61  ;;  %v10496_v62 = vpop.eup %10495  ;;  %v7083_v34 = vpop.f32.mrf.mxu1 }
 0x428   : > { %v7384_v43 = vmul.f32 %v10494_v59, %v14113_v57  ;;  %10519 = vrcp.f32 %v7291_v10  ;;  %v8633_v53 = vmul.f32 -1.442695, %v14281_v56  ;;  %v7138_v41 = vadd.f32 %v10146_v3, %v14194_v23  ;;  %v10498_v27 = vpop.eup %10497 }
 0x429   : > { %v8856_v16 = vpack.c.bf16 %v7477_v51, %v7476_v9  ;;  %v7475_v6 = vadd.f32 %v15403_v42, %v7379_v24  ;;  %v7296_v26 = vadd.f32 1.0, %v10496_v62  ;;  %10521 = vpow2.f32 %v8630_v1  ;;  %v10500_v17 = vpop.eup %10499  ;;  %v10149_v23 = vpop.f32.mrf.mxu1 }
 0x42a   : > { %v14292_v2 = vadd.f32 %v13971_v30, %v7135_v14  ;;  %v15404_v61 = vunpack.c.l.bf16 %v14036_v31  ;;  %v7382_v57 = vmul.f32 %v10498_v27, %v14124_v40  ;;  %10523 = vpow2.f32 %v8628_v19  ;;  %v10502_v13 = vpop.eup %10501 }
 0x42b   : > { %8950 = vst [vmem:[%s14256_s30 + $0x18] sm:$0xff] %v8856_v16   ;;  %v8851_v9 = vpack.c.bf16 %v7475_v6, %v7474_v52  ;;  %v14298_v20 = vadd.f32 %v13971_v30, %v7138_v41  ;;  %10525 = vrcp.f32 %v7296_v26  ;;  %v7294_v48 = vadd.f32 1.0, %v10500_v17  ;;  %v10504_v33 = vpop.eup %10503  ;;  %v7096_v5 = vpop.f32.mrf.mxu1 }
 0x42c   : > { %v7480_v28 = vadd.f32 %v15404_v61, %v7384_v43  ;;  %v8631_v50 = vmul.f32 -1.442695, %v14292_v2  ;;  %v7136_v52 = vadd.f32 %v7083_v34, %v14199_v60  ;;  %v15405_v7 = vunpack.c.l.bf16 %v14051_v8  ;;  %v10506_v32 = vpop.eup %10505  ;;  %v6745_v16 = vpop.f32.mrf.mxu0 }
 0x42d   : > { %8949 = vst [vmem:[%s14256_s30 + $0x10] sm:$0xff] %v8851_v9   ;;  %v7385_v29 = vmul.f32 %v10502_v13, %v14143_v11  ;;  %10527 = vpow2.f32 %v8633_v53  ;;  %v8634_v40 = vmul.f32 -1.442695, %v14298_v20  ;;  %v7297_v4 = vadd.f32 1.0, %v10504_v33  ;;  %v10150_v3 = vpop.f32.mrf.mxu1 }
 0x42e   : > { %v7478_v45 = vadd.f32 %v15405_v7, %v7382_v57  ;;  %10529 = vrcp.f32 %v7294_v48  ;;  %v14308_v0 = vadd.f32 %v13971_v30, %v7136_v52  ;;  %v7141_v51 = vadd.f32 %v10149_v23, %v14202_v12  ;;  %v10508_v24 = vpop.eup %10507 }
 0x42f   : > { %v15406_v60 = vunpack.c.h.bf16 %v14036_v31  ;;  %v7383_v1 = vmul.f32 %v10506_v32, %v14146_v37  ;;  %10531 = vpow2.f32 %v8631_v50  ;;  %v7139_v11 = vadd.f32 %v7096_v5, %v14213_v35  ;;  %v10510_v59 = vpop.eup %10509  ;;  %v7099_v34 = vpop.f32.mrf.mxu1 }
 0x430   : > { %10533 = vrcp.f32 %v7297_v4  ;;  %v7295_v42 = vadd.f32 1.0, %v10508_v24  ;;  %v8632_v6 = vmul.f32 -1.442695, %v14308_v0  ;;  %v14317_v19 = vadd.f32 %v13971_v30, %v7141_v51  ;;  %v10512_v12 = vpop.eup %10511 }
 0x431   : > { %v7481_v10 = vadd.f32 %v15406_v60, %v7385_v29  ;;  %v15407_v31 = vunpack.c.h.bf16 %v14051_v8  ;;  %v7388_v37 = vmul.f32 %v10510_v59, %v14157_v36  ;;  %10535 = vpow2.f32 %v8634_v40  ;;  %v10514_v35 = vpop.eup %10513  ;;  %v8941_v60 = vld [vmem:[%s10768_s13 + $0x48] sm:$0xff]  }
 0x432   : > { %10537 = vrcp.f32 %v7295_v42  ;;  %v7300_v43 = vadd.f32 1.0, %v10512_v12  ;;  %v8637_v53 = vmul.f32 -1.442695, %v14317_v19  ;;  %v14324_v41 = vadd.f32 %v13971_v30, %v7139_v11  ;;  %v10516_v27 = vpop.eup %10515 }
 0x433   : > { %v8866_v14 = vpack.c.bf16 %v7481_v10, %v7480_v28  ;;  %v7479_v62 = vadd.f32 %v15407_v31, %v7383_v1  ;;  %v6786_v9 = vadd.f32 %v6745_v16, %v13955_v22  ;;  %v8801_v8 = vunpack.c.h.bf16 %v14078_v18  ;;  %v10518_v36 = vpop.eup %10517 }
 0x434   : > { %10539 = vpow2.f32 %v8632_v6  ;;  %v7298_v17 = vadd.f32 1.0, %v10516_v27  ;;  %v8635_v61 = vmul.f32 -1.442695, %v14324_v41  ;;  %v7142_v28 = vadd.f32 %v10150_v3, %v14218_v15 }
 0x435   : > { %8952 = vst [vmem:[%s14256_s30 + $0x28] sm:$0xff] %v8866_v14   ;;  %v8861_v26 = vpack.c.bf16 %v7479_v62, %v7478_v45  ;;  %10541 = vrcp.f32 %v7300_v43  ;;  %v7386_v57 = vmul.f32 %v10514_v35, %v14174_v55  ;;  %v7389_v23 = vmul.f32 %v10518_v36, %v14177_v39  ;;  %v10520_v22 = vpop.eup %10519 }
 0x436   : > { %10543 = vpow2.f32 %v8637_v53  ;;  %v7140_v13 = vadd.f32 %v7099_v34, %v6786_v9  ;;  %v15408_v48 = vunpack.c.l.bf16 %v14067_v21  ;;  %v14337_v52 = vadd.f32 %v13971_v30, %v7142_v28  ;;  %v10522_v33 = vpop.eup %10521  ;;  %v8943_v28 = vld [vmem:[%s10768_s13 + $0x58] sm:$0xff]  }
 0x437   : > { %8951 = vst [vmem:[%s14256_s30 + $0x20] sm:$0xff] %v8861_v26   ;;  %10545 = vrcp.f32 %v7298_v17  ;;  %v15409_v15 = vunpack.c.h.bf16 %v14067_v21  ;;  %v7387_v55 = vmul.f32 %v10520_v22, %v14188_v54  ;;  %v10524_v45 = vpop.eup %10523  ;;  %v7301_v29 = vadd.f32 1.0, %v10522_v33  ;;  %v8940_v54 = vld [vmem:[%s10768_s13 + $0x40] sm:$0xff]  }
 0x438   : > { %v7484_v50 = vadd.f32 %v15408_v48, %v7388_v37  ;;  %10547 = vpow2.f32 %v8635_v61  ;;  %v14343_v39 = vadd.f32 %v13971_v30, %v7140_v13  ;;  %v8638_v40 = vmul.f32 -1.442695, %v14337_v52  ;;  %v10526_v5 = vpop.eup %10525  ;;  %v8942_v13 = vld [vmem:[%s10768_s13 + $0x50] sm:$0xff]  }
 0x439   : > { %v7485_v7 = vadd.f32 %v15409_v15, %v7389_v23  ;;  %v15410_v32 = vunpack.c.l.bf16 %v14078_v18  ;;  %v7483_v24 = vadd.f32 %v8801_v8, %v7387_v55  ;;  %v7299_v21 = vadd.f32 1.0, %v10524_v45 }
 0x43a   : > { %v10528_v10 = vpop.eup %10527  ;;  %10549 = vrcp.f32 %v7301_v29  ;;  %v8636_v1 = vmul.f32 -1.442695, %v14343_v39  ;;  %v7392_v16 = vmul.f32 %v10526_v5, %v14205_v47  ;;  %v8812_v18 = vunpack.c.l.bf16 %v8941_v60 }
 0x43b   : > { %v7482_v4 = vadd.f32 %v15410_v32, %v7386_v57  ;;  %v8876_v51 = vpack.c.bf16 %v7485_v7, %v7484_v50  ;;  %v10530_v30 = vpop.eup %10529  ;;  %10551 = vrcp.f32 %v7299_v21  ;;  %v7304_v3 = vadd.f32 1.0, %v10528_v10 }
 0x43c   : > { %v10532_v59 = vpop.eup %10531  ;;  %v8813_v42 = vunpack.c.h.bf16 %v8941_v60  ;;  %10553 = vpow2.f32 %v8638_v40  ;;  %v8808_v12 = vunpack.c.l.bf16 %v8940_v54  ;;  %v7390_v62 = vmul.f32 %v10530_v30, %v14209_v46  ;;  %v8944_v30 = vld [vmem:[%s10768_s13 + $0x60] sm:$0xff]  }
 0x43d   : > { %8954 = vst [vmem:[%s14256_s30 + $0x38] sm:$0xff] %v8876_v51   ;;  %v8871_v11 = vpack.c.bf16 %v7483_v24, %v7482_v4  ;;  %v10534_v6 = vpop.eup %10533  ;;  %10555 = vrcp.f32 %v7304_v3  ;;  %v7302_v14 = vadd.f32 1.0, %v10532_v59  ;;  %v8809_v35 = vunpack.c.h.bf16 %v8940_v54  ;;  %v8945_v24 = vld [vmem:[%s10768_s13 + $0x68] sm:$0xff]  }
 0x43e   : > { %v10536_v31 = vpop.eup %10535  ;;  %v7393_v37 = vmul.f32 %v10534_v6, %v14223_v63  ;;  %10557 = vpow2.f32 %v8636_v1  ;;  %v7488_v34 = vadd.f32 %v8812_v18, %v7392_v16  ;;  %v7486_v36 = vadd.f32 %v8808_v12, %v7390_v62 }
 0x43f   : > { %8953 = vst [vmem:[%s14256_s30 + $0x30] sm:$0xff] %v8871_v11   ;;  %v10538_v43 = vpop.eup %10537  ;;  %10559 = vrcp.f32 %v7302_v14  ;;  %v7305_v53 = vadd.f32 1.0, %v10536_v31  ;;  %v8821_v50 = vunpack.c.h.bf16 %v8943_v28  ;;  %v8816_v55 = vunpack.c.l.bf16 %v8942_v13 }
 0x440   : > { %v7489_v27 = vadd.f32 %v8813_v42, %v7393_v37  ;;  %v7391_v9 = vmul.f32 %v10538_v43, %v14237_v38  ;;  %v8820_v38 = vunpack.c.l.bf16 %v8943_v28  ;;  %v8817_v45 = vunpack.c.h.bf16 %v8942_v13 }
 0x441   : > { %v10540_v47 = vpop.eup %10539  ;;  %10561 = vrcp.f32 %v7305_v53  ;;  %v8829_v59 = vunpack.c.h.bf16 %v8945_v24  ;;  %v8824_v42 = vunpack.c.l.bf16 %v8944_v30  ;;  %v8825_v12 = vunpack.c.h.bf16 %v8944_v30 }
 0x442   : > { %v10542_v26 = vpop.eup %10541  ;;  %v7303_v8 = vadd.f32 1.0, %v10540_v47  ;;  %v8886_v63 = vpack.c.bf16 %v7489_v27, %v7488_v34  ;;  %v7487_v17 = vadd.f32 %v8809_v35, %v7391_v9  ;;  %v8947_v34 = vld [vmem:[%s10768_s13 + $0x78] sm:$0xff]   ;;  %v8946_v27 = vld [vmem:[%s10768_s13 + $0x70] sm:$0xff]   ;;  %s8709_s13 = sshll.u32 %s10693_s22, 11  ;;  %s10574_s22 = scalar_lea.vmem %s14388_s6, 2048 }
 0x443   : > { %v10544_v46 = vpop.eup %10543  ;;  %v7396_v48 = vmul.f32 %v10542_v26, %v14246_v44  ;;  %v8836_v9 = vunpack.c.l.bf16 %v8947_v34  ;;  %v8837_v26 = vunpack.c.h.bf16 %v8947_v34  ;;  %s14386_s9 = scalar_lea.hbm %s14439_s5, %s8709_s13  ;;  %p10575_p11 = scmp.ne.s32.totalorder %s14388_s6, %s10574_s22 }
 0x444   : > { %v10546_v61 = vpop.eup %10545  ;;  %10563 = vrcp.f32 %v7303_v8  ;;  %8956 = vst [vmem:[%s14256_s30 + $0x48] sm:$0xff] %v8886_v63   ;;  %v8881_v23 = vpack.c.bf16 %v7487_v17, %v7486_v36  ;;  %v7308_v22 = vadd.f32 1.0, %v10544_v46  ;;  %v8832_v46 = vunpack.c.l.bf16 %v8946_v27  ;;  %p10582_p1 = scmp.lt.s32.totalorder %s10580_s14, %s10574_s22 }
 0x445   : > { %v10548_v57 = vpop.eup %10547  ;;  %v7394_v7 = vmul.f32 %v10546_v61, %v14253_v49  ;;  %v7492_v51 = vadd.f32 %v8820_v38, %v7396_v48  ;;  %v8833_v63 = vunpack.c.h.bf16 %v8946_v27  ;;  %p10576_p12 = pnand %p10575_p11, %p10710_p5 }
 0x446   : > { %8955 = vst [vmem:[%s14256_s30 + $0x40] sm:$0xff] %v8881_v23   ;;  %v7306_v33 = vadd.f32 1.0, %v10548_v57  ;;  %10565 = vrcp.f32 %v7308_v22  ;;  %p10583_p2 = por %p10582_p1, %p10581_p0 }
 0x447   : > { %v10550_v15 = vpop.eup %10549  ;;  %v7490_v49 = vadd.f32 %v8816_v55, %v7394_v7  ;;  %p10577_p13 = pneg %p10576_p12 }
 0x448   : > { %v10552_v29 = vpop.eup %10551  ;;  %v7397_v40 = vmul.f32 %v10550_v15, %v14270_v25  ;;  %10567 = vrcp.f32 %v7306_v33 }
 0x449   : > { %v10554_v5 = vpop.eup %10553  ;;  %v7395_v32 = vmul.f32 %v10552_v29, %v14277_v58  ;;  %v8828_v58 = vunpack.c.l.bf16 %v8945_v24  ;;  %p10584_p3 = pnand %p10583_p2, %p10577_p13 }
 0x44a   : > { %v10556_v4 = vpop.eup %10555  ;;  %v7493_v44 = vadd.f32 %v8821_v50, %v7397_v40  ;;  %v7309_v60 = vadd.f32 1.0, %v10554_v5 }
 0x44b   : > { %v10558_v21 = vpop.eup %10557  ;;  %v7491_v10 = vadd.f32 %v8817_v45, %v7395_v32  ;;  %v7400_v3 = vmul.f32 %v10556_v4, %v14281_v56 }
 0x44c   : > { %v10560_v54 = vpop.eup %10559  ;;  %v8896_v1 = vpack.c.bf16 %v7493_v44, %v7492_v51  ;;  %10569 = vrcp.f32 %v7309_v60  ;;  %v7307_v25 = vadd.f32 1.0, %v10558_v21 }
 0x44d   : > { %v8891_v11 = vpack.c.bf16 %v7491_v10, %v7490_v49  ;;  %v7398_v18 = vmul.f32 %v10560_v54, %v14292_v2  ;;  %v7496_v31 = vadd.f32 %v8828_v58, %v7400_v3 }
 0x44e   : > { %v10562_v16 = vpop.eup %10561  ;;  %8958 = vst [vmem:[%s14256_s30 + $0x58] sm:$0xff] %v8896_v1   ;;  %10571 = vrcp.f32 %v7307_v25 }
 0x44f   : > { %8957 = vst [vmem:[%s14256_s30 + $0x50] sm:$0xff] %v8891_v11   ;;  %v7401_v6 = vmul.f32 %v10562_v16, %v14298_v20  ;;  %v7494_v37 = vadd.f32 %v8824_v42, %v7398_v18 }
 0x451   : > { %v10564_v14 = vpop.eup %10563  ;;  %v7497_v62 = vadd.f32 %v8829_v59, %v7401_v6 }
 0x452   : > { %v7399_v56 = vmul.f32 %v10564_v14, %v14308_v0 }
 0x453   : > { %v8906_v35 = vpack.c.bf16 %v7497_v62, %v7496_v31  ;;  %v10566_v53 = vpop.eup %10565 }
 0x454   : > { %v7495_v43 = vadd.f32 %v8825_v12, %v7399_v56  ;;  %v7404_v20 = vmul.f32 %v10566_v53, %v14317_v19 }
 0x455   : > { %8960 = vst [vmem:[%s14256_s30 + $0x68] sm:$0xff] %v8906_v35   ;;  %v10568_v2 = vpop.eup %10567 }
 0x456   : > { %v8901_v47 = vpack.c.bf16 %v7495_v43, %v7494_v37  ;;  %v7402_v0 = vmul.f32 %v10568_v2, %v14324_v41  ;;  %v7500_v61 = vadd.f32 %v8836_v9, %v7404_v20 }
 0x458   : > { %8959 = vst [vmem:[%s14256_s30 + $0x60] sm:$0xff] %v8901_v47   ;;  %v7498_v19 = vadd.f32 %v8832_v46, %v7402_v0 }
 0x459   : > { %v10570_v8 = vpop.eup %10569 }
 0x45a   : > { %v7405_v36 = vmul.f32 %v10570_v8, %v14337_v52 }
 0x45b   : > { %v10572_v17 = vpop.eup %10571 }
 0x45c   : > { %v7501_v28 = vadd.f32 %v8837_v26, %v7405_v36  ;;  %v7403_v57 = vmul.f32 %v10572_v17, %v14343_v39 }
 0x45e   : > { %v8916_v23 = vpack.c.bf16 %v7501_v28, %v7500_v61  ;;  %v7499_v13 = vadd.f32 %v8833_v63, %v7403_v57 }
 0x460   : > { %8962 = vst [vmem:[%s14256_s30 + $0x78] sm:$0xff] %v8916_v23   ;;  %v8911_v41 = vpack.c.bf16 %v7499_v13, %v7498_v19 }
 0x462   : > { %8961 = vst [vmem:[%s14256_s30 + $0x70] sm:$0xff] %v8911_v41  }
 0x463   : > { %10587 = shalt.err (!%p10584_p3)
}
 0x464   : > { %s10588_s15 = scalar_lea.hbm %s14386_s9, 2048  ;;  %s10592_s23 = scalar_lea.hbm %s14439_s5, 4096 }
 0x465   : > { %p10589_p4 = scmp.ne.s32.totalorder %s14386_s9, %s10588_s15  ;;  %p10593_p9 = scmp.lt.s32.totalorder %s14386_s9, %s14439_s5 }
 0x466   : > { %p10594_p10 = scmp.lt.s32.totalorder %s10592_s23, %s10588_s15 }
 0x467   : > { %p10590_p7 = pnand %p10589_p4, %p10710_p5 }
 0x468   : > { %p10595_p11 = por %p10594_p10, %p10593_p9 }
 0x469   : > { %p10591_p8 = pneg %p10590_p7 }
 0x46b   : > { %p10596_p12 = pnand %p10595_p11, %p10591_p8 }
 0x46d   : > { %10599 = shalt.err (!%p10596_p12)
}
 0x46e   : > { %s10640_s30 = smov 64   ;;  %s10641_s13 = smov 4  }
 0x46f   : > { %10151 = dma.vmem_to_hbm [thread:$0]  (%p10710_p5), %s14388_s6, 2048, %s14386_s9, %s14394_s10, %s10640_s30, %s10640_s30, %s10641_s13  }
 0x470 PF: > { %p10157_p13 = scmp.ge.s32.totalorder %s10634_s21, 2  ;;  %s7691_s7 = sand.u32 1, %s10622_s18  }
 0x471   : > { %s7692_s8 = scalar_lea.sflag [#allocation5], %s7691_s7 }
 0x472   : > { %p10154_p0 = pnand %p10157_p13, %p10714_p6 }
 0x474   : > { %p10155_p1 = pneg %p10154_p0 }
 0x476   : > { %10617 = dma.done.wait (%p10155_p1), %s7692_s8, 2048  }
 0x477   : > { %10619 = vsyncadd (%p10155_p1), %s7692_s8, 4294965248  ;;  %p15_p2 = scmp.ge.s32.totalorder %s10697_s24, 4   ;;  %s15411_s18 = smov %s10626_s19 }
 0x478   : > { %s15412_s19 = smov %s10630_s20  ;;  %s15413_s20 = smov %s10708_s27 }
 0x479   : > { %s15414_s21 = smov %s10697_s24  ;;  %17 = sbr.rel (!%p15_p2) target bundleno = 3 (0x3), region = 91 }
 0x47e   :  { %7697 = vsyncpa [#allocation5], 1 }
 0x47f   :  { %7699 = vsyncpa [#allocation5 + $0x1], 1 }

</bundles_post_ra>
